<compile_context>
chip_gen: v7x
topology: tpu7x:2x2x1
jax: 0.10.0
libtpu: 0.0.40
codegen_flags: <defaults>
</compile_context>

<pallas_src>
import functools

import jax
import jax.numpy as jnp
from jax.experimental import pallas as pl
from jax.experimental.pallas import tpu as pltpu

# ---- model hyperparameters (module defaults / feature-extractor config) ------
INPUT_DIM = 13
NUM_CLASSES = 9
TIME_DIM = 45
D_MODEL = 64
N_HEAD = 2
HEAD_DIM = D_MODEL // N_HEAD
N_LAYERS = 3
D_INNER = 128
N_UNITS = 128          # mlp_head hidden width
LN_EPS = 1e-5
LANES = 128

# ---- small example shapes ----------------------------------------------------
BATCH = 8
SEQ = 16               # n <= time_dim; pos_embedding[:, :n] is sliced

# ---- packed f32 bias/LayerNorm table row layout -------------------------------
_R_BQ = 0                       # + head index (scale folded in)
_R_BK = _R_BQ + N_HEAD          # + head index
_R_BV = _R_BK + N_HEAD          # + head index
_R_BAO = _R_BV + N_HEAD
_R_LN1G = _R_BAO + 1
_R_LN1B = _R_LN1G + 1
_R_BFF1 = _R_LN1B + 1
_R_BFF2 = _R_BFF1 + 1
_R_LN2G = _R_BFF2 + 1
_R_LN2B = _R_LN2G + 1
ROWS_PER_LAYER = _R_LN2B + 1    # 13

_G = N_LAYERS * ROWS_PER_LAYER  # 39
_R_BIN, _R_ENCG, _R_ENCB, _R_HLNG, _R_HLNB, _R_BH1, _R_BH2 = range(_G, _G + 7)
N_VEC_ROWS = ((_G + 7 + 7) // 8) * 8   # 48 (sublane-aligned)


# =============================== helpers (jnp) =================================

def _mm(a, w_bf16):
    """(R, K) f32 @ (K, M) bf16 -> (R, M) f32 on the MXU."""
    return jax.lax.dot_general(
        a.astype(jnp.bfloat16), w_bf16,
        (((1,), (0,)), ((), ())), preferred_element_type=jnp.float32)


def _bmm(a, b, contract_b_dim):
    """Batched (B, N, K) x (B, ?, ?) matmul, bf16 operands, f32 accumulation."""
    return jax.lax.dot_general(
        a.astype(jnp.bfloat16), b.astype(jnp.bfloat16),
        (((2,), (contract_b_dim,)), ((0,), (0,))),
        preferred_element_type=jnp.float32)


def _ln(v, g, b):
    """LayerNorm over the last dim (population variance, like PyTorch), f32 math."""
    mu = jnp.mean(v, axis=-1, keepdims=True)
    var = jnp.mean((v - mu) ** 2, axis=-1, keepdims=True)
    return (v - mu) * jax.lax.rsqrt(var + LN_EPS) * g + b


# =============================== fused kernel ==================================

def _fused_kernel(x_ref, pos_ref, w_in_ref, w_qkv_ref, w_ao_ref,
                  w_ff1_ref, w_ff2_ref, w_h1_ref, w_h2_ref, vecs_ref,
                  out_ref, *, b_tile, n):
    """B_TILE samples per grid step; all weights live in VMEM (constant index maps)."""
    rows = b_tile * n

    def vec(r, width):
        # static (1, width) f32 slice of the packed bias/LN table
        return vecs_ref[r:r + 1, 0:width]

    x = x_ref[...]                                                  # (rows, Din) f32
    # input linear with fused bias + positional embedding (pre-tiled to rows)
    h = _mm(x, w_in_ref[...]) + vec(_R_BIN, D_MODEL) + pos_ref[...]  # (rows, D)

    for l in range(N_LAYERS):
        base = l * ROWS_PER_LAYER

        # ---- multi-head self-attention; heads via host-split weights (no lane slicing)
        att = vec(base + _R_BAO, D_MODEL)                           # out-proj bias (1, D)
        for hh in range(N_HEAD):
            wq = w_qkv_ref[(l * 3 + 0) * N_HEAD + hh]               # (D, Dh) bf16, scale folded
            wk = w_qkv_ref[(l * 3 + 1) * N_HEAD + hh]
            wv = w_qkv_ref[(l * 3 + 2) * N_HEAD + hh]
            q = _mm(h, wq) + vec(base + _R_BQ + hh, HEAD_DIM)       # (rows, Dh) f32
            k = _mm(h, wk) + vec(base + _R_BK + hh, HEAD_DIM)
            v = _mm(h, wv) + vec(base + _R_BV + hh, HEAD_DIM)
            q3 = q.reshape(b_tile, n, HEAD_DIM)                     # cheap sublane reshape
            k3 = k.reshape(b_tile, n, HEAD_DIM)
            v3 = v.reshape(b_tile, n, HEAD_DIM)
            s = _bmm(q3, k3, 2)                                     # (bt, n, n) f32
            s = s - jnp.max(s, axis=-1, keepdims=True)
            p = jnp.exp(s)
            p = p * pl.reciprocal(jnp.sum(p, axis=-1, keepdims=True), approx=True)
            o = _bmm(p, v3, 1).reshape(rows, HEAD_DIM)              # (rows, Dh)
            att = att + _mm(o, w_ao_ref[l * N_HEAD + hh])           # head-merge via sum
        h = _ln(h + att, vec(base + _R_LN1G, D_MODEL), vec(base + _R_LN1B, D_MODEL))

        # ---- feed-forward (ReLU); dropout = identity in eval mode ----
        ff = jnp.maximum(_mm(h, w_ff1_ref[l]) + vec(base + _R_BFF1, D_INNER), 0.0)
        ff = _mm(ff, w_ff2_ref[l]) + vec(base + _R_BFF2, D_MODEL)
        h = _ln(h + ff, vec(base + _R_LN2G, D_MODEL), vec(base + _R_LN2B, D_MODEL))

    # final encoder LayerNorm (no residual)
    h = _ln(h, vec(_R_ENCG, D_MODEL), vec(_R_ENCB, D_MODEL))        # (rows, D)

    # embeddings = max over the sequence axis, per sample (static 8-aligned slices)
    emb_rows = [jnp.max(h[b * n:(b + 1) * n, :], axis=0, keepdims=True)
                for b in range(b_tile)]
    emb = emb_rows[0] if b_tile == 1 else jnp.concatenate(emb_rows, axis=0)  # (bt, D)

    # mlp_head: LayerNorm -> Linear -> ReLU -> (dropout = id) -> Linear (zero-padded)
    z = _ln(emb, vec(_R_HLNG, D_MODEL), vec(_R_HLNB, D_MODEL))
    z = jnp.maximum(_mm(z, w_h1_ref[...]) + vec(_R_BH1, N_UNITS), 0.0)
    logits_p = _mm(z, w_h2_ref[...]) + vec(_R_BH2, D_MODEL)         # (bt, 64) padded logits

    # single lane-dense (bt, 128) store: [ emb | padded logits ]
    out_ref[0] = jnp.concatenate([emb, logits_p], axis=-1)


# ============================== host-side wrapper ==============================

def vit_dann_forward(x, p):
    """Returns (embeddings, class_logits) — the alpha=None path of the module."""
    B, N, Din = x.shape
    D, H, Dh, L = D_MODEL, N_HEAD, HEAD_DIM, N_LAYERS
    f32, bf16 = jnp.float32, jnp.bfloat16

    steps = 2 if (B % 2 == 0 and B >= 2) else 1     # 2 grid steps -> both v7x TCs busy
    bt = B // steps
    rows = bt * N

    scale = 1.0 / float(HEAD_DIM) ** 0.5

    # ---- host-side packing (tiny; folds into the XLA graph ahead of the kernel) ----
    w_in = p["inlinear_w"].astype(bf16)                                   # (Din, D)
    ipw = p["in_proj_w"]                                                  # (L, D, 3D)
    wq = (ipw[:, :, 0:D] * scale).reshape(L, D, H, Dh).transpose(0, 2, 1, 3)
    wk = ipw[:, :, D:2 * D].reshape(L, D, H, Dh).transpose(0, 2, 1, 3)
    wv = ipw[:, :, 2 * D:3 * D].reshape(L, D, H, Dh).transpose(0, 2, 1, 3)
    w_qkv = jnp.stack([wq, wk, wv], axis=1).reshape(L * 3 * H, D, Dh).astype(bf16)
    w_ao = p["out_proj_w"].reshape(L * H, Dh, D).astype(bf16)             # per-head rows
    w_ff1 = p["ff1_w"].astype(bf16)                                       # (L, D, 128)
    w_ff2 = p["ff2_w"].astype(bf16)                                       # (L, 128, D)
    w_h1 = p["head_w1"].astype(bf16)                                      # (D, 128)
    w_h2 = jnp.zeros((N_UNITS, D), f32).at[:, :NUM_CLASSES].set(p["head_w2"]).astype(bf16)

    ipb = p["in_proj_b"][:, 0, :]                                         # (L, 3D)
    bq = (ipb[:, 0:D] * scale).reshape(L, H, Dh)
    bk = ipb[:, D:2 * D].reshape(L, H, Dh)
    bv = ipb[:, 2 * D:3 * D].reshape(L, H, Dh)

    def row(v):
        v = v.reshape(-1).astype(f32)
        return jnp.zeros((LANES,), f32).at[:v.shape[0]].set(v)

    vec_rows = []
    for l in range(L):
        for hh in range(H):
            vec_rows.append(row(bq[l, hh]))
        for hh in range(H):
            vec_rows.append(row(bk[l, hh]))
        for hh in range(H):
            vec_rows.append(row(bv[l, hh]))
        vec_rows.append(row(p["out_proj_b"][l]))
        vec_rows.append(row(p["ln1_g"][l]))
        vec_rows.append(row(p["ln1_b"][l]))
        vec_rows.append(row(p["ff1_b"][l]))
        vec_rows.append(row(p["ff2_b"][l]))
        vec_rows.append(row(p["ln2_g"][l]))
        vec_rows.append(row(p["ln2_b"][l]))
    vec_rows += [row(p["inlinear_b"]), row(p["enc_ln_g"]), row(p["enc_ln_b"]),
                 row(p["head_ln_g"]), row(p["head_ln_b"]),
                 row(p["head_b1"]), row(p["head_b2"])]
    while len(vec_rows) < N_VEC_ROWS:
        vec_rows.append(jnp.zeros((LANES,), f32))
    vecs = jnp.stack(vec_rows)                                            # (48, 128) f32

    pos_t = jnp.tile(p["pos_embedding"][0, :N, :], (bt, 1)).astype(f32)   # (rows, D)
    x_flat = x.reshape(B * N, Din)

    weights = (pos_t, w_in, w_qkv, w_ao, w_ff1, w_ff2, w_h1, w_h2, vecs)

    def const_spec(a):
        nd = a.ndim
        return pl.BlockSpec(a.shape, lambda i, _nd=nd: (0,) * _nd)

    kernel = functools.partial(_fused_kernel, b_tile=bt, n=N)

    out = pl.pallas_call(
        kernel,
        out_shape=jax.ShapeDtypeStruct((steps, bt, LANES), f32),
        grid=(steps,),
        in_specs=[pl.BlockSpec((rows, Din), lambda i: (i, 0))] +
                 [const_spec(w) for w in weights],
        out_specs=pl.BlockSpec((1, bt, LANES), lambda i: (i, 0, 0)),
        compiler_params=pltpu.CompilerParams(
            dimension_semantics=("parallel",)),
    )(x_flat, *weights)

    out = out.reshape(B, LANES)
    return out[:, :D_MODEL], out[:, D_MODEL:D_MODEL + NUM_CLASSES]


# ================================ parameter init ===============================

def init_params(key):
    ks = iter(jax.random.split(key, 64))

    def lin(din, dout):
        s = 1.0 / (din ** 0.5)
        w = jax.random.uniform(next(ks), (din, dout), jnp.float32, -s, s)
        b = jax.random.uniform(next(ks), (1, dout), jnp.float32, -s, s)
        return w, b

    def stack_lin(din, dout):
        ws, bs = zip(*[lin(din, dout) for _ in range(N_LAYERS)])
        return jnp.stack(ws), jnp.stack(bs)      # (L, din, dout), (L, 1, dout)

    p = {}
    p["inlinear_w"], p["inlinear_b"] = lin(INPUT_DIM, D_MODEL)
    p["pos_embedding"] = jax.random.normal(next(ks), (1, TIME_DIM, D_MODEL), jnp.float32)
    # packed QKV weights: columns ordered [Q | K | V], heads contiguous in Dh chunks
    # (matches nn.MultiheadAttention; if importing from PyTorch, transpose (out,in)->(in,out))
    p["in_proj_w"], p["in_proj_b"] = stack_lin(D_MODEL, 3 * D_MODEL)
    p["out_proj_w"], p["out_proj_b"] = stack_lin(D_MODEL, D_MODEL)
    p["ff1_w"], p["ff1_b"] = stack_lin(D_MODEL, D_INNER)
    p["ff2_w"], p["ff2_b"] = stack_lin(D_INNER, D_MODEL)
    p["ln1_g"] = jnp.ones((N_LAYERS, 1, D_MODEL), jnp.float32)
    p["ln1_b"] = jnp.zeros((N_LAYERS, 1, D_MODEL), jnp.float32)
    p["ln2_g"] = jnp.ones((N_LAYERS, 1, D_MODEL), jnp.float32)
    p["ln2_b"] = jnp.zeros((N_LAYERS, 1, D_MODEL), jnp.float32)
    p["enc_ln_g"] = jnp.ones((1, D_MODEL), jnp.float32)
    p["enc_ln_b"] = jnp.zeros((1, D_MODEL), jnp.float32)
    p["head_ln_g"] = jnp.ones((1, D_MODEL), jnp.float32)
    p["head_ln_b"] = jnp.zeros((1, D_MODEL), jnp.float32)
    p["head_w1"], p["head_b1"] = lin(D_MODEL, N_UNITS)
    p["head_w2"], p["head_b2"] = lin(N_UNITS, NUM_CLASSES)
    return p


# ============================ pure-JAX f32 reference ===========================

def _ln_ref(v, g, b):
    mu = jnp.mean(v, axis=-1, keepdims=True)
    var = jnp.var(v, axis=-1, keepdims=True)
    return (v - mu) / jnp.sqrt(var + LN_EPS) * g + b


def _ref_forward(x, p):
    B, N, _ = x.shape
    h = x @ p["inlinear_w"] + p["inlinear_b"]
    h = h + p["pos_embedding"][:, :N, :]
    for l in range(N_LAYERS):
        qkv = h @ p["in_proj_w"][l] + p["in_proj_b"][l]
        q, k, v = jnp.split(qkv, 3, axis=-1)
        q = q.reshape(B, N, N_HEAD, HEAD_DIM).transpose(0, 2, 1, 3)
        k = k.reshape(B, N, N_HEAD, HEAD_DIM).transpose(0, 2, 1, 3)
        v = v.reshape(B, N, N_HEAD, HEAD_DIM).transpose(0, 2, 1, 3)
        s = jnp.einsum("bhqd,bhkd->bhqk", q, k) / (HEAD_DIM ** 0.5)
        a = jax.nn.softmax(s, axis=-1)
        att = jnp.einsum("bhqk,bhkd->bhqd", a, v)
        att = att.transpose(0, 2, 1, 3).reshape(B, N, D_MODEL)
        att = att @ p["out_proj_w"][l] + p["out_proj_b"][l]
        h = _ln_ref(h + att, p["ln1_g"][l], p["ln1_b"][l])
        ff = jax.nn.relu(h @ p["ff1_w"][l] + p["ff1_b"][l])
        ff = ff @ p["ff2_w"][l] + p["ff2_b"][l]
        h = _ln_ref(h + ff, p["ln2_g"][l], p["ln2_b"][l])
    h = _ln_ref(h, p["enc_ln_g"], p["enc_ln_b"])
    emb = jnp.max(h, axis=1)
    z = _ln_ref(emb, p["head_ln_g"], p["head_ln_b"])
    z = jax.nn.relu(z @ p["head_w1"] + p["head_b1"])
    logits = z @ p["head_w2"] + p["head_b2"]
    return emb, logits


# ==================================== main =====================================

if __name__ == "__main__":
    key = jax.random.PRNGKey(0)
    kx, kp = jax.random.split(key)

    x = jax.random.normal(kx, (BATCH, SEQ, INPUT_DIM), jnp.float32)
    params = init_params(kp)

    embeddings, class_logits = jax.jit(vit_dann_forward)(x, params)
    jax.block_until_ready((embeddings, class_logits))

    assert embeddings.shape == (BATCH, D_MODEL)
    assert class_logits.shape == (BATCH, NUM_CLASSES)
    assert bool(jnp.all(jnp.isfinite(embeddings)))
    assert bool(jnp.all(jnp.isfinite(class_logits)))

    # compare against a pure-JAX f32 reference (loose tolerance: kernel uses bf16 MXU operands)
    ref_emb, ref_logits = _ref_forward(x, params)
    assert float(jnp.max(jnp.abs(embeddings - ref_emb))) < 0.2
    assert float(jnp.max(jnp.abs(class_logits - ref_logits))) < 0.2

    print("KERNEL_OK")
</pallas_src>

<mosaic_0001>
module attributes {stable_mosaic.version = 11 : i64} {
  func.func @_fused_kernel(%arg0: i32, %arg1: memref<64x13xf32, #tpu.memory_space<vmem>>, %arg2: memref<64x64xf32, #tpu.memory_space<vmem>>, %arg3: memref<13x64xbf16, #tpu.memory_space<vmem>>, %arg4: memref<18x64x32xbf16, #tpu.memory_space<vmem>>, %arg5: memref<6x32x64xbf16, #tpu.memory_space<vmem>>, %arg6: memref<3x64x128xbf16, #tpu.memory_space<vmem>>, %arg7: memref<3x128x64xbf16, #tpu.memory_space<vmem>>, %arg8: memref<64x128xbf16, #tpu.memory_space<vmem>>, %arg9: memref<128x64xbf16, #tpu.memory_space<vmem>>, %arg10: memref<48x128xf32, #tpu.memory_space<vmem>>, %arg11: memref<1x4x128xf32, #tpu.memory_space<vmem>>) attributes {dimension_semantics = [#tpu.dimension_semantics<parallel>], iteration_bounds = array<i64: 2>, scalar_prefetch = 0 : i64, scratch_operands = 0 : i64, tpu.core_type = #tpu.core_type<tc>, window_params = [{transform_indices = @transform_0, window_bounds = array<i64: 64, 13>}, {pipeline_mode = #tpu.pipeline_mode<synchronous>, transform_indices = @transform_1, window_bounds = array<i64: 64, 64>}, {pipeline_mode = #tpu.pipeline_mode<synchronous>, transform_indices = @transform_2, window_bounds = array<i64: 13, 64>}, {pipeline_mode = #tpu.pipeline_mode<synchronous>, transform_indices = @transform_3, window_bounds = array<i64: 18, 64, 32>}, {pipeline_mode = #tpu.pipeline_mode<synchronous>, transform_indices = @transform_4, window_bounds = array<i64: 6, 32, 64>}, {pipeline_mode = #tpu.pipeline_mode<synchronous>, transform_indices = @transform_5, window_bounds = array<i64: 3, 64, 128>}, {pipeline_mode = #tpu.pipeline_mode<synchronous>, transform_indices = @transform_6, window_bounds = array<i64: 3, 128, 64>}, {pipeline_mode = #tpu.pipeline_mode<synchronous>, transform_indices = @transform_7, window_bounds = array<i64: 64, 128>}, {pipeline_mode = #tpu.pipeline_mode<synchronous>, transform_indices = @transform_8, window_bounds = array<i64: 128, 64>}, {pipeline_mode = #tpu.pipeline_mode<synchronous>, transform_indices = @transform_9, window_bounds = array<i64: 48, 128>}, {transform_indices = @transform_10, window_bounds = array<i64: 1, 4, 128>}]} {
    %c0 = arith.constant 0 : index
    %c0_0 = arith.constant 0 : index
    %0 = vector.load %arg1[%c0, %c0_0] : memref<64x13xf32, #tpu.memory_space<vmem>>, vector<64x13xf32>
    %c0_1 = arith.constant 0 : index
    %c0_2 = arith.constant 0 : index
    %1 = vector.load %arg3[%c0_1, %c0_2] : memref<13x64xbf16, #tpu.memory_space<vmem>>, vector<13x64xbf16>
    %2 = arith.truncf %0 : vector<64x13xf32> to vector<64x13xbf16>
    %cst = arith.constant dense<0.000000e+00> : vector<64x64xf32>
    %3 = tpu.matmul %2, %1, %cst {dimension_numbers = #tpu.dot_dimension_numbers<[1], [0], [0], [1], [0, 0, 1, 1], [], []>} : vector<64x13xbf16>, vector<13x64xbf16>, vector<64x64xf32> -> vector<64x64xf32>
    %c39 = arith.constant 39 : index
    %c0_3 = arith.constant 0 : index
    %4 = vector.load %arg10[%c39, %c0_3] : memref<48x128xf32, #tpu.memory_space<vmem>>, vector<1x64xf32>
    %5 = vector.broadcast %4 : vector<1x64xf32> to vector<64x64xf32>
    %6 = arith.addf %3, %5 : vector<64x64xf32>
    %c0_4 = arith.constant 0 : index
    %c0_5 = arith.constant 0 : index
    %7 = vector.load %arg2[%c0_4, %c0_5] : memref<64x64xf32, #tpu.memory_space<vmem>>, vector<64x64xf32>
    %8 = arith.addf %6, %7 : vector<64x64xf32>
    %c6 = arith.constant 6 : index
    %c0_6 = arith.constant 0 : index
    %9 = vector.load %arg10[%c6, %c0_6] : memref<48x128xf32, #tpu.memory_space<vmem>>, vector<1x64xf32>
    %c0_7 = arith.constant 0 : index
    %c0_8 = arith.constant 0 : index
    %c0_9 = arith.constant 0 : index
    %10 = vector.load %arg4[%c0_7, %c0_8, %c0_9] : memref<18x64x32xbf16, #tpu.memory_space<vmem>>, vector<1x64x32xbf16>
    %11 = vector.shape_cast %10 : vector<1x64x32xbf16> to vector<64x32xbf16>
    %c2 = arith.constant 2 : index
    %c0_10 = arith.constant 0 : index
    %c0_11 = arith.constant 0 : index
    %12 = vector.load %arg4[%c2, %c0_10, %c0_11] : memref<18x64x32xbf16, #tpu.memory_space<vmem>>, vector<1x64x32xbf16>
    %13 = vector.shape_cast %12 : vector<1x64x32xbf16> to vector<64x32xbf16>
    %c4 = arith.constant 4 : index
    %c0_12 = arith.constant 0 : index
    %c0_13 = arith.constant 0 : index
    %14 = vector.load %arg4[%c4, %c0_12, %c0_13] : memref<18x64x32xbf16, #tpu.memory_space<vmem>>, vector<1x64x32xbf16>
    %15 = vector.shape_cast %14 : vector<1x64x32xbf16> to vector<64x32xbf16>
    %16 = arith.truncf %8 : vector<64x64xf32> to vector<64x64xbf16>
    %cst_14 = arith.constant dense<0.000000e+00> : vector<64x32xf32>
    %17 = tpu.matmul %16, %11, %cst_14 {dimension_numbers = #tpu.dot_dimension_numbers<[1], [0], [0], [1], [0, 0, 1, 1], [], []>} : vector<64x64xbf16>, vector<64x32xbf16>, vector<64x32xf32> -> vector<64x32xf32>
    %c0_15 = arith.constant 0 : index
    %c0_16 = arith.constant 0 : index
    %18 = vector.load %arg10[%c0_15, %c0_16] : memref<48x128xf32, #tpu.memory_space<vmem>>, vector<1x32xf32>
    %19 = vector.broadcast %18 : vector<1x32xf32> to vector<64x32xf32>
    %20 = arith.addf %17, %19 : vector<64x32xf32>
    %21 = arith.truncf %8 : vector<64x64xf32> to vector<64x64xbf16>
    %cst_17 = arith.constant dense<0.000000e+00> : vector<64x32xf32>
    %22 = tpu.matmul %21, %13, %cst_17 {dimension_numbers = #tpu.dot_dimension_numbers<[1], [0], [0], [1], [0, 0, 1, 1], [], []>} : vector<64x64xbf16>, vector<64x32xbf16>, vector<64x32xf32> -> vector<64x32xf32>
    %c2_18 = arith.constant 2 : index
    %c0_19 = arith.constant 0 : index
    %23 = vector.load %arg10[%c2_18, %c0_19] : memref<48x128xf32, #tpu.memory_space<vmem>>, vector<1x32xf32>
    %24 = vector.broadcast %23 : vector<1x32xf32> to vector<64x32xf32>
    %25 = arith.addf %22, %24 : vector<64x32xf32>
    %26 = arith.truncf %8 : vector<64x64xf32> to vector<64x64xbf16>
    %cst_20 = arith.constant dense<0.000000e+00> : vector<64x32xf32>
    %27 = tpu.matmul %26, %15, %cst_20 {dimension_numbers = #tpu.dot_dimension_numbers<[1], [0], [0], [1], [0, 0, 1, 1], [], []>} : vector<64x64xbf16>, vector<64x32xbf16>, vector<64x32xf32> -> vector<64x32xf32>
    %c4_21 = arith.constant 4 : index
    %c0_22 = arith.constant 0 : index
    %28 = vector.load %arg10[%c4_21, %c0_22] : memref<48x128xf32, #tpu.memory_space<vmem>>, vector<1x32xf32>
    %29 = vector.broadcast %28 : vector<1x32xf32> to vector<64x32xf32>
    %30 = arith.addf %27, %29 : vector<64x32xf32>
    %31 = vector.shape_cast %20 : vector<64x32xf32> to vector<4x16x32xf32>
    %32 = vector.shape_cast %25 : vector<64x32xf32> to vector<4x16x32xf32>
    %33 = vector.shape_cast %30 : vector<64x32xf32> to vector<4x16x32xf32>
    %34 = arith.truncf %31 : vector<4x16x32xf32> to vector<4x16x32xbf16>
    %35 = arith.truncf %32 : vector<4x16x32xf32> to vector<4x16x32xbf16>
    %cst_23 = arith.constant dense<0.000000e+00> : vector<4x16x16xf32>
    %36 = tpu.matmul %34, %35, %cst_23 {dimension_numbers = #tpu.dot_dimension_numbers<[2], [2], [1], [1], [0, 0, 0, 1, 1, 1], [0], [0]>} : vector<4x16x32xbf16>, vector<4x16x32xbf16>, vector<4x16x16xf32> -> vector<4x16x16xf32>
    %cst_24 = arith.constant dense<0xFF800000> : vector<4x16xf32>
    %37 = vector.multi_reduction <maximumf>, %36, %cst_24 [2] : vector<4x16x16xf32> to vector<4x16xf32>
    %38 = vector.shape_cast %37 : vector<4x16xf32> to vector<4x16x1xf32>
    %39 = vector.broadcast %38 : vector<4x16x1xf32> to vector<4x16x16xf32>
    %40 = arith.subf %36, %39 : vector<4x16x16xf32>
    %41 = math.exp %40 : vector<4x16x16xf32>
    %cst_25 = arith.constant dense<0.000000e+00> : vector<4x16xf32>
    %42 = vector.multi_reduction <add>, %41, %cst_25 [2] : vector<4x16x16xf32> to vector<4x16xf32>
    %43 = vector.shape_cast %42 : vector<4x16xf32> to vector<4x16x1xf32>
    %44 = tpu.reciprocal %43 {approx = true} : vector<4x16x1xf32> -> vector<4x16x1xf32>
    %45 = vector.broadcast %44 : vector<4x16x1xf32> to vector<4x16x16xf32>
    %46 = arith.mulf %41, %45 : vector<4x16x16xf32>
    %47 = arith.truncf %46 : vector<4x16x16xf32> to vector<4x16x16xbf16>
    %48 = arith.truncf %33 : vector<4x16x32xf32> to vector<4x16x32xbf16>
    %cst_26 = arith.constant dense<0.000000e+00> : vector<4x16x32xf32>
    %49 = tpu.matmul %47, %48, %cst_26 {dimension_numbers = #tpu.dot_dimension_numbers<[2], [1], [1], [2], [0, 0, 0, 1, 1, 2], [0], [0]>} : vector<4x16x16xbf16>, vector<4x16x32xbf16>, vector<4x16x32xf32> -> vector<4x16x32xf32>
    %50 = vector.shape_cast %49 : vector<4x16x32xf32> to vector<64x32xf32>
    %c0_27 = arith.constant 0 : index
    %c0_28 = arith.constant 0 : index
    %c0_29 = arith.constant 0 : index
    %51 = vector.load %arg5[%c0_27, %c0_28, %c0_29] : memref<6x32x64xbf16, #tpu.memory_space<vmem>>, vector<1x32x64xbf16>
    %52 = vector.shape_cast %51 : vector<1x32x64xbf16> to vector<32x64xbf16>
    %53 = arith.truncf %50 : vector<64x32xf32> to vector<64x32xbf16>
    %cst_30 = arith.constant dense<0.000000e+00> : vector<64x64xf32>
    %54 = tpu.matmul %53, %52, %cst_30 {dimension_numbers = #tpu.dot_dimension_numbers<[1], [0], [0], [1], [0, 0, 1, 1], [], []>} : vector<64x32xbf16>, vector<32x64xbf16>, vector<64x64xf32> -> vector<64x64xf32>
    %55 = vector.broadcast %9 : vector<1x64xf32> to vector<64x64xf32>
    %56 = arith.addf %55, %54 : vector<64x64xf32>
    %c1 = arith.constant 1 : index
    %c0_31 = arith.constant 0 : index
    %c0_32 = arith.constant 0 : index
    %57 = vector.load %arg4[%c1, %c0_31, %c0_32] : memref<18x64x32xbf16, #tpu.memory_space<vmem>>, vector<1x64x32xbf16>
    %58 = vector.shape_cast %57 : vector<1x64x32xbf16> to vector<64x32xbf16>
    %c3 = arith.constant 3 : index
    %c0_33 = arith.constant 0 : index
    %c0_34 = arith.constant 0 : index
    %59 = vector.load %arg4[%c3, %c0_33, %c0_34] : memref<18x64x32xbf16, #tpu.memory_space<vmem>>, vector<1x64x32xbf16>
    %60 = vector.shape_cast %59 : vector<1x64x32xbf16> to vector<64x32xbf16>
    %c5 = arith.constant 5 : index
    %c0_35 = arith.constant 0 : index
    %c0_36 = arith.constant 0 : index
    %61 = vector.load %arg4[%c5, %c0_35, %c0_36] : memref<18x64x32xbf16, #tpu.memory_space<vmem>>, vector<1x64x32xbf16>
    %62 = vector.shape_cast %61 : vector<1x64x32xbf16> to vector<64x32xbf16>
    %63 = arith.truncf %8 : vector<64x64xf32> to vector<64x64xbf16>
    %cst_37 = arith.constant dense<0.000000e+00> : vector<64x32xf32>
    %64 = tpu.matmul %63, %58, %cst_37 {dimension_numbers = #tpu.dot_dimension_numbers<[1], [0], [0], [1], [0, 0, 1, 1], [], []>} : vector<64x64xbf16>, vector<64x32xbf16>, vector<64x32xf32> -> vector<64x32xf32>
    %c1_38 = arith.constant 1 : index
    %c0_39 = arith.constant 0 : index
    %65 = vector.load %arg10[%c1_38, %c0_39] : memref<48x128xf32, #tpu.memory_space<vmem>>, vector<1x32xf32>
    %66 = vector.broadcast %65 : vector<1x32xf32> to vector<64x32xf32>
    %67 = arith.addf %64, %66 : vector<64x32xf32>
    %68 = arith.truncf %8 : vector<64x64xf32> to vector<64x64xbf16>
    %cst_40 = arith.constant dense<0.000000e+00> : vector<64x32xf32>
    %69 = tpu.matmul %68, %60, %cst_40 {dimension_numbers = #tpu.dot_dimension_numbers<[1], [0], [0], [1], [0, 0, 1, 1], [], []>} : vector<64x64xbf16>, vector<64x32xbf16>, vector<64x32xf32> -> vector<64x32xf32>
    %c3_41 = arith.constant 3 : index
    %c0_42 = arith.constant 0 : index
    %70 = vector.load %arg10[%c3_41, %c0_42] : memref<48x128xf32, #tpu.memory_space<vmem>>, vector<1x32xf32>
    %71 = vector.broadcast %70 : vector<1x32xf32> to vector<64x32xf32>
    %72 = arith.addf %69, %71 : vector<64x32xf32>
    %73 = arith.truncf %8 : vector<64x64xf32> to vector<64x64xbf16>
    %cst_43 = arith.constant dense<0.000000e+00> : vector<64x32xf32>
    %74 = tpu.matmul %73, %62, %cst_43 {dimension_numbers = #tpu.dot_dimension_numbers<[1], [0], [0], [1], [0, 0, 1, 1], [], []>} : vector<64x64xbf16>, vector<64x32xbf16>, vector<64x32xf32> -> vector<64x32xf32>
    %c5_44 = arith.constant 5 : index
    %c0_45 = arith.constant 0 : index
    %75 = vector.load %arg10[%c5_44, %c0_45] : memref<48x128xf32, #tpu.memory_space<vmem>>, vector<1x32xf32>
    %76 = vector.broadcast %75 : vector<1x32xf32> to vector<64x32xf32>
    %77 = arith.addf %74, %76 : vector<64x32xf32>
    %78 = vector.shape_cast %67 : vector<64x32xf32> to vector<4x16x32xf32>
    %79 = vector.shape_cast %72 : vector<64x32xf32> to vector<4x16x32xf32>
    %80 = vector.shape_cast %77 : vector<64x32xf32> to vector<4x16x32xf32>
    %81 = arith.truncf %78 : vector<4x16x32xf32> to vector<4x16x32xbf16>
    %82 = arith.truncf %79 : vector<4x16x32xf32> to vector<4x16x32xbf16>
    %cst_46 = arith.constant dense<0.000000e+00> : vector<4x16x16xf32>
    %83 = tpu.matmul %81, %82, %cst_46 {dimension_numbers = #tpu.dot_dimension_numbers<[2], [2], [1], [1], [0, 0, 0, 1, 1, 1], [0], [0]>} : vector<4x16x32xbf16>, vector<4x16x32xbf16>, vector<4x16x16xf32> -> vector<4x16x16xf32>
    %cst_47 = arith.constant dense<0xFF800000> : vector<4x16xf32>
    %84 = vector.multi_reduction <maximumf>, %83, %cst_47 [2] : vector<4x16x16xf32> to vector<4x16xf32>
    %85 = vector.shape_cast %84 : vector<4x16xf32> to vector<4x16x1xf32>
    %86 = vector.broadcast %85 : vector<4x16x1xf32> to vector<4x16x16xf32>
    %87 = arith.subf %83, %86 : vector<4x16x16xf32>
    %88 = math.exp %87 : vector<4x16x16xf32>
    %cst_48 = arith.constant dense<0.000000e+00> : vector<4x16xf32>
    %89 = vector.multi_reduction <add>, %88, %cst_48 [2] : vector<4x16x16xf32> to vector<4x16xf32>
    %90 = vector.shape_cast %89 : vector<4x16xf32> to vector<4x16x1xf32>
    %91 = tpu.reciprocal %90 {approx = true} : vector<4x16x1xf32> -> vector<4x16x1xf32>
    %92 = vector.broadcast %91 : vector<4x16x1xf32> to vector<4x16x16xf32>
    %93 = arith.mulf %88, %92 : vector<4x16x16xf32>
    %94 = arith.truncf %93 : vector<4x16x16xf32> to vector<4x16x16xbf16>
    %95 = arith.truncf %80 : vector<4x16x32xf32> to vector<4x16x32xbf16>
    %cst_49 = arith.constant dense<0.000000e+00> : vector<4x16x32xf32>
    %96 = tpu.matmul %94, %95, %cst_49 {dimension_numbers = #tpu.dot_dimension_numbers<[2], [1], [1], [2], [0, 0, 0, 1, 1, 2], [0], [0]>} : vector<4x16x16xbf16>, vector<4x16x32xbf16>, vector<4x16x32xf32> -> vector<4x16x32xf32>
    %97 = vector.shape_cast %96 : vector<4x16x32xf32> to vector<64x32xf32>
    %c1_50 = arith.constant 1 : index
    %c0_51 = arith.constant 0 : index
    %c0_52 = arith.constant 0 : index
    %98 = vector.load %arg5[%c1_50, %c0_51, %c0_52] : memref<6x32x64xbf16, #tpu.memory_space<vmem>>, vector<1x32x64xbf16>
    %99 = vector.shape_cast %98 : vector<1x32x64xbf16> to vector<32x64xbf16>
    %100 = arith.truncf %97 : vector<64x32xf32> to vector<64x32xbf16>
    %cst_53 = arith.constant dense<0.000000e+00> : vector<64x64xf32>
    %101 = tpu.matmul %100, %99, %cst_53 {dimension_numbers = #tpu.dot_dimension_numbers<[1], [0], [0], [1], [0, 0, 1, 1], [], []>} : vector<64x32xbf16>, vector<32x64xbf16>, vector<64x64xf32> -> vector<64x64xf32>
    %102 = arith.addf %56, %101 : vector<64x64xf32>
    %103 = arith.addf %8, %102 : vector<64x64xf32>
    %c7 = arith.constant 7 : index
    %c0_54 = arith.constant 0 : index
    %104 = vector.load %arg10[%c7, %c0_54] : memref<48x128xf32, #tpu.memory_space<vmem>>, vector<1x64xf32>
    %c8 = arith.constant 8 : index
    %c0_55 = arith.constant 0 : index
    %105 = vector.load %arg10[%c8, %c0_55] : memref<48x128xf32, #tpu.memory_space<vmem>>, vector<1x64xf32>
    %cst_56 = arith.constant dense<0.000000e+00> : vector<64xf32>
    %106 = vector.multi_reduction <add>, %103, %cst_56 [1] : vector<64x64xf32> to vector<64xf32>
    %107 = vector.shape_cast %106 : vector<64xf32> to vector<64x1xf32>
    %cst_57 = arith.constant 6.400000e+01 : f32
    %108 = vector.broadcast %cst_57 : f32 to vector<64x1xf32>
    %109 = arith.divf %107, %108 : vector<64x1xf32>
    %110 = vector.broadcast %109 : vector<64x1xf32> to vector<64x64xf32>
    %111 = arith.subf %103, %110 : vector<64x64xf32>
    %112 = arith.mulf %111, %111 : vector<64x64xf32>
    %cst_58 = arith.constant dense<0.000000e+00> : vector<64xf32>
    %113 = vector.multi_reduction <add>, %112, %cst_58 [1] : vector<64x64xf32> to vector<64xf32>
    %114 = vector.shape_cast %113 : vector<64xf32> to vector<64x1xf32>
    %cst_59 = arith.constant 6.400000e+01 : f32
    %115 = vector.broadcast %cst_59 : f32 to vector<64x1xf32>
    %116 = arith.divf %114, %115 : vector<64x1xf32>
    %117 = vector.broadcast %109 : vector<64x1xf32> to vector<64x64xf32>
    %118 = arith.subf %103, %117 : vector<64x64xf32>
    %cst_60 = arith.constant 9.99999974E-6 : f32
    %119 = vector.broadcast %cst_60 : f32 to vector<64x1xf32>
    %120 = arith.addf %116, %119 : vector<64x1xf32>
    %121 = math.rsqrt %120 : vector<64x1xf32>
    %122 = vector.broadcast %121 : vector<64x1xf32> to vector<64x64xf32>
    %123 = arith.mulf %118, %122 : vector<64x64xf32>
    %124 = vector.broadcast %104 : vector<1x64xf32> to vector<64x64xf32>
    %125 = arith.mulf %123, %124 : vector<64x64xf32>
    %126 = vector.broadcast %105 : vector<1x64xf32> to vector<64x64xf32>
    %127 = arith.addf %125, %126 : vector<64x64xf32>
    %c0_61 = arith.constant 0 : index
    %c0_62 = arith.constant 0 : index
    %c0_63 = arith.constant 0 : index
    %128 = vector.load %arg6[%c0_61, %c0_62, %c0_63] : memref<3x64x128xbf16, #tpu.memory_space<vmem>>, vector<1x64x128xbf16>
    %129 = vector.shape_cast %128 : vector<1x64x128xbf16> to vector<64x128xbf16>
    %130 = arith.truncf %127 : vector<64x64xf32> to vector<64x64xbf16>
    %cst_64 = arith.constant dense<0.000000e+00> : vector<64x128xf32>
    %131 = tpu.matmul %130, %129, %cst_64 {dimension_numbers = #tpu.dot_dimension_numbers<[1], [0], [0], [1], [0, 0, 1, 1], [], []>} : vector<64x64xbf16>, vector<64x128xbf16>, vector<64x128xf32> -> vector<64x128xf32>
    %c9 = arith.constant 9 : index
    %c0_65 = arith.constant 0 : index
    %132 = vector.load %arg10[%c9, %c0_65] : memref<48x128xf32, #tpu.memory_space<vmem>>, vector<1x128xf32>
    %133 = vector.broadcast %132 : vector<1x128xf32> to vector<64x128xf32>
    %134 = arith.addf %131, %133 : vector<64x128xf32>
    %cst_66 = arith.constant 0.000000e+00 : f32
    %135 = vector.broadcast %cst_66 : f32 to vector<64x128xf32>
    %136 = arith.maximumf %134, %135 : vector<64x128xf32>
    %c0_67 = arith.constant 0 : index
    %c0_68 = arith.constant 0 : index
    %c0_69 = arith.constant 0 : index
    %137 = vector.load %arg7[%c0_67, %c0_68, %c0_69] : memref<3x128x64xbf16, #tpu.memory_space<vmem>>, vector<1x128x64xbf16>
    %138 = vector.shape_cast %137 : vector<1x128x64xbf16> to vector<128x64xbf16>
    %139 = arith.truncf %136 : vector<64x128xf32> to vector<64x128xbf16>
    %cst_70 = arith.constant dense<0.000000e+00> : vector<64x64xf32>
    %140 = tpu.matmul %139, %138, %cst_70 {dimension_numbers = #tpu.dot_dimension_numbers<[1], [0], [0], [1], [0, 0, 1, 1], [], []>} : vector<64x128xbf16>, vector<128x64xbf16>, vector<64x64xf32> -> vector<64x64xf32>
    %c10 = arith.constant 10 : index
    %c0_71 = arith.constant 0 : index
    %141 = vector.load %arg10[%c10, %c0_71] : memref<48x128xf32, #tpu.memory_space<vmem>>, vector<1x64xf32>
    %142 = vector.broadcast %141 : vector<1x64xf32> to vector<64x64xf32>
    %143 = arith.addf %140, %142 : vector<64x64xf32>
    %144 = arith.addf %127, %143 : vector<64x64xf32>
    %c11 = arith.constant 11 : index
    %c0_72 = arith.constant 0 : index
    %145 = vector.load %arg10[%c11, %c0_72] : memref<48x128xf32, #tpu.memory_space<vmem>>, vector<1x64xf32>
    %c12 = arith.constant 12 : index
    %c0_73 = arith.constant 0 : index
    %146 = vector.load %arg10[%c12, %c0_73] : memref<48x128xf32, #tpu.memory_space<vmem>>, vector<1x64xf32>
    %cst_74 = arith.constant dense<0.000000e+00> : vector<64xf32>
    %147 = vector.multi_reduction <add>, %144, %cst_74 [1] : vector<64x64xf32> to vector<64xf32>
    %148 = vector.shape_cast %147 : vector<64xf32> to vector<64x1xf32>
    %cst_75 = arith.constant 6.400000e+01 : f32
    %149 = vector.broadcast %cst_75 : f32 to vector<64x1xf32>
    %150 = arith.divf %148, %149 : vector<64x1xf32>
    %151 = vector.broadcast %150 : vector<64x1xf32> to vector<64x64xf32>
    %152 = arith.subf %144, %151 : vector<64x64xf32>
    %153 = arith.mulf %152, %152 : vector<64x64xf32>
    %cst_76 = arith.constant dense<0.000000e+00> : vector<64xf32>
    %154 = vector.multi_reduction <add>, %153, %cst_76 [1] : vector<64x64xf32> to vector<64xf32>
    %155 = vector.shape_cast %154 : vector<64xf32> to vector<64x1xf32>
    %cst_77 = arith.constant 6.400000e+01 : f32
    %156 = vector.broadcast %cst_77 : f32 to vector<64x1xf32>
    %157 = arith.divf %155, %156 : vector<64x1xf32>
    %158 = vector.broadcast %150 : vector<64x1xf32> to vector<64x64xf32>
    %159 = arith.subf %144, %158 : vector<64x64xf32>
    %cst_78 = arith.constant 9.99999974E-6 : f32
    %160 = vector.broadcast %cst_78 : f32 to vector<64x1xf32>
    %161 = arith.addf %157, %160 : vector<64x1xf32>
    %162 = math.rsqrt %161 : vector<64x1xf32>
    %163 = vector.broadcast %162 : vector<64x1xf32> to vector<64x64xf32>
    %164 = arith.mulf %159, %163 : vector<64x64xf32>
    %165 = vector.broadcast %145 : vector<1x64xf32> to vector<64x64xf32>
    %166 = arith.mulf %164, %165 : vector<64x64xf32>
    %167 = vector.broadcast %146 : vector<1x64xf32> to vector<64x64xf32>
    %168 = arith.addf %166, %167 : vector<64x64xf32>
    %c19 = arith.constant 19 : index
    %c0_79 = arith.constant 0 : index
    %169 = vector.load %arg10[%c19, %c0_79] : memref<48x128xf32, #tpu.memory_space<vmem>>, vector<1x64xf32>
    %c6_80 = arith.constant 6 : index
    %c0_81 = arith.constant 0 : index
    %c0_82 = arith.constant 0 : index
    %170 = vector.load %arg4[%c6_80, %c0_81, %c0_82] : memref<18x64x32xbf16, #tpu.memory_space<vmem>>, vector<1x64x32xbf16>
    %171 = vector.shape_cast %170 : vector<1x64x32xbf16> to vector<64x32xbf16>
    %c8_83 = arith.constant 8 : index
    %c0_84 = arith.constant 0 : index
    %c0_85 = arith.constant 0 : index
    %172 = vector.load %arg4[%c8_83, %c0_84, %c0_85] : memref<18x64x32xbf16, #tpu.memory_space<vmem>>, vector<1x64x32xbf16>
    %173 = vector.shape_cast %172 : vector<1x64x32xbf16> to vector<64x32xbf16>
    %c10_86 = arith.constant 10 : index
    %c0_87 = arith.constant 0 : index
    %c0_88 = arith.constant 0 : index
    %174 = vector.load %arg4[%c10_86, %c0_87, %c0_88] : memref<18x64x32xbf16, #tpu.memory_space<vmem>>, vector<1x64x32xbf16>
    %175 = vector.shape_cast %174 : vector<1x64x32xbf16> to vector<64x32xbf16>
    %176 = arith.truncf %168 : vector<64x64xf32> to vector<64x64xbf16>
    %cst_89 = arith.constant dense<0.000000e+00> : vector<64x32xf32>
    %177 = tpu.matmul %176, %171, %cst_89 {dimension_numbers = #tpu.dot_dimension_numbers<[1], [0], [0], [1], [0, 0, 1, 1], [], []>} : vector<64x64xbf16>, vector<64x32xbf16>, vector<64x32xf32> -> vector<64x32xf32>
    %c13 = arith.constant 13 : index
    %c0_90 = arith.constant 0 : index
    %178 = vector.load %arg10[%c13, %c0_90] : memref<48x128xf32, #tpu.memory_space<vmem>>, vector<1x32xf32>
    %179 = vector.broadcast %178 : vector<1x32xf32> to vector<64x32xf32>
    %180 = arith.addf %177, %179 : vector<64x32xf32>
    %181 = arith.truncf %168 : vector<64x64xf32> to vector<64x64xbf16>
    %cst_91 = arith.constant dense<0.000000e+00> : vector<64x32xf32>
    %182 = tpu.matmul %181, %173, %cst_91 {dimension_numbers = #tpu.dot_dimension_numbers<[1], [0], [0], [1], [0, 0, 1, 1], [], []>} : vector<64x64xbf16>, vector<64x32xbf16>, vector<64x32xf32> -> vector<64x32xf32>
    %c15 = arith.constant 15 : index
    %c0_92 = arith.constant 0 : index
    %183 = vector.load %arg10[%c15, %c0_92] : memref<48x128xf32, #tpu.memory_space<vmem>>, vector<1x32xf32>
    %184 = vector.broadcast %183 : vector<1x32xf32> to vector<64x32xf32>
    %185 = arith.addf %182, %184 : vector<64x32xf32>
    %186 = arith.truncf %168 : vector<64x64xf32> to vector<64x64xbf16>
    %cst_93 = arith.constant dense<0.000000e+00> : vector<64x32xf32>
    %187 = tpu.matmul %186, %175, %cst_93 {dimension_numbers = #tpu.dot_dimension_numbers<[1], [0], [0], [1], [0, 0, 1, 1], [], []>} : vector<64x64xbf16>, vector<64x32xbf16>, vector<64x32xf32> -> vector<64x32xf32>
    %c17 = arith.constant 17 : index
    %c0_94 = arith.constant 0 : index
    %188 = vector.load %arg10[%c17, %c0_94] : memref<48x128xf32, #tpu.memory_space<vmem>>, vector<1x32xf32>
    %189 = vector.broadcast %188 : vector<1x32xf32> to vector<64x32xf32>
    %190 = arith.addf %187, %189 : vector<64x32xf32>
    %191 = vector.shape_cast %180 : vector<64x32xf32> to vector<4x16x32xf32>
    %192 = vector.shape_cast %185 : vector<64x32xf32> to vector<4x16x32xf32>
    %193 = vector.shape_cast %190 : vector<64x32xf32> to vector<4x16x32xf32>
    %194 = arith.truncf %191 : vector<4x16x32xf32> to vector<4x16x32xbf16>
    %195 = arith.truncf %192 : vector<4x16x32xf32> to vector<4x16x32xbf16>
    %cst_95 = arith.constant dense<0.000000e+00> : vector<4x16x16xf32>
    %196 = tpu.matmul %194, %195, %cst_95 {dimension_numbers = #tpu.dot_dimension_numbers<[2], [2], [1], [1], [0, 0, 0, 1, 1, 1], [0], [0]>} : vector<4x16x32xbf16>, vector<4x16x32xbf16>, vector<4x16x16xf32> -> vector<4x16x16xf32>
    %cst_96 = arith.constant dense<0xFF800000> : vector<4x16xf32>
    %197 = vector.multi_reduction <maximumf>, %196, %cst_96 [2] : vector<4x16x16xf32> to vector<4x16xf32>
    %198 = vector.shape_cast %197 : vector<4x16xf32> to vector<4x16x1xf32>
    %199 = vector.broadcast %198 : vector<4x16x1xf32> to vector<4x16x16xf32>
    %200 = arith.subf %196, %199 : vector<4x16x16xf32>
    %201 = math.exp %200 : vector<4x16x16xf32>
    %cst_97 = arith.constant dense<0.000000e+00> : vector<4x16xf32>
    %202 = vector.multi_reduction <add>, %201, %cst_97 [2] : vector<4x16x16xf32> to vector<4x16xf32>
    %203 = vector.shape_cast %202 : vector<4x16xf32> to vector<4x16x1xf32>
    %204 = tpu.reciprocal %203 {approx = true} : vector<4x16x1xf32> -> vector<4x16x1xf32>
    %205 = vector.broadcast %204 : vector<4x16x1xf32> to vector<4x16x16xf32>
    %206 = arith.mulf %201, %205 : vector<4x16x16xf32>
    %207 = arith.truncf %206 : vector<4x16x16xf32> to vector<4x16x16xbf16>
    %208 = arith.truncf %193 : vector<4x16x32xf32> to vector<4x16x32xbf16>
    %cst_98 = arith.constant dense<0.000000e+00> : vector<4x16x32xf32>
    %209 = tpu.matmul %207, %208, %cst_98 {dimension_numbers = #tpu.dot_dimension_numbers<[2], [1], [1], [2], [0, 0, 0, 1, 1, 2], [0], [0]>} : vector<4x16x16xbf16>, vector<4x16x32xbf16>, vector<4x16x32xf32> -> vector<4x16x32xf32>
    %210 = vector.shape_cast %209 : vector<4x16x32xf32> to vector<64x32xf32>
    %c2_99 = arith.constant 2 : index
    %c0_100 = arith.constant 0 : index
    %c0_101 = arith.constant 0 : index
    %211 = vector.load %arg5[%c2_99, %c0_100, %c0_101] : memref<6x32x64xbf16, #tpu.memory_space<vmem>>, vector<1x32x64xbf16>
    %212 = vector.shape_cast %211 : vector<1x32x64xbf16> to vector<32x64xbf16>
    %213 = arith.truncf %210 : vector<64x32xf32> to vector<64x32xbf16>
    %cst_102 = arith.constant dense<0.000000e+00> : vector<64x64xf32>
    %214 = tpu.matmul %213, %212, %cst_102 {dimension_numbers = #tpu.dot_dimension_numbers<[1], [0], [0], [1], [0, 0, 1, 1], [], []>} : vector<64x32xbf16>, vector<32x64xbf16>, vector<64x64xf32> -> vector<64x64xf32>
    %215 = vector.broadcast %169 : vector<1x64xf32> to vector<64x64xf32>
    %216 = arith.addf %215, %214 : vector<64x64xf32>
    %c7_103 = arith.constant 7 : index
    %c0_104 = arith.constant 0 : index
    %c0_105 = arith.constant 0 : index
    %217 = vector.load %arg4[%c7_103, %c0_104, %c0_105] : memref<18x64x32xbf16, #tpu.memory_space<vmem>>, vector<1x64x32xbf16>
    %218 = vector.shape_cast %217 : vector<1x64x32xbf16> to vector<64x32xbf16>
    %c9_106 = arith.constant 9 : index
    %c0_107 = arith.constant 0 : index
    %c0_108 = arith.constant 0 : index
    %219 = vector.load %arg4[%c9_106, %c0_107, %c0_108] : memref<18x64x32xbf16, #tpu.memory_space<vmem>>, vector<1x64x32xbf16>
    %220 = vector.shape_cast %219 : vector<1x64x32xbf16> to vector<64x32xbf16>
    %c11_109 = arith.constant 11 : index
    %c0_110 = arith.constant 0 : index
    %c0_111 = arith.constant 0 : index
    %221 = vector.load %arg4[%c11_109, %c0_110, %c0_111] : memref<18x64x32xbf16, #tpu.memory_space<vmem>>, vector<1x64x32xbf16>
    %222 = vector.shape_cast %221 : vector<1x64x32xbf16> to vector<64x32xbf16>
    %223 = arith.truncf %168 : vector<64x64xf32> to vector<64x64xbf16>
    %cst_112 = arith.constant dense<0.000000e+00> : vector<64x32xf32>
    %224 = tpu.matmul %223, %218, %cst_112 {dimension_numbers = #tpu.dot_dimension_numbers<[1], [0], [0], [1], [0, 0, 1, 1], [], []>} : vector<64x64xbf16>, vector<64x32xbf16>, vector<64x32xf32> -> vector<64x32xf32>
    %c14 = arith.constant 14 : index
    %c0_113 = arith.constant 0 : index
    %225 = vector.load %arg10[%c14, %c0_113] : memref<48x128xf32, #tpu.memory_space<vmem>>, vector<1x32xf32>
    %226 = vector.broadcast %225 : vector<1x32xf32> to vector<64x32xf32>
    %227 = arith.addf %224, %226 : vector<64x32xf32>
    %228 = arith.truncf %168 : vector<64x64xf32> to vector<64x64xbf16>
    %cst_114 = arith.constant dense<0.000000e+00> : vector<64x32xf32>
    %229 = tpu.matmul %228, %220, %cst_114 {dimension_numbers = #tpu.dot_dimension_numbers<[1], [0], [0], [1], [0, 0, 1, 1], [], []>} : vector<64x64xbf16>, vector<64x32xbf16>, vector<64x32xf32> -> vector<64x32xf32>
    %c16 = arith.constant 16 : index
    %c0_115 = arith.constant 0 : index
    %230 = vector.load %arg10[%c16, %c0_115] : memref<48x128xf32, #tpu.memory_space<vmem>>, vector<1x32xf32>
    %231 = vector.broadcast %230 : vector<1x32xf32> to vector<64x32xf32>
    %232 = arith.addf %229, %231 : vector<64x32xf32>
    %233 = arith.truncf %168 : vector<64x64xf32> to vector<64x64xbf16>
    %cst_116 = arith.constant dense<0.000000e+00> : vector<64x32xf32>
    %234 = tpu.matmul %233, %222, %cst_116 {dimension_numbers = #tpu.dot_dimension_numbers<[1], [0], [0], [1], [0, 0, 1, 1], [], []>} : vector<64x64xbf16>, vector<64x32xbf16>, vector<64x32xf32> -> vector<64x32xf32>
    %c18 = arith.constant 18 : index
    %c0_117 = arith.constant 0 : index
    %235 = vector.load %arg10[%c18, %c0_117] : memref<48x128xf32, #tpu.memory_space<vmem>>, vector<1x32xf32>
    %236 = vector.broadcast %235 : vector<1x32xf32> to vector<64x32xf32>
    %237 = arith.addf %234, %236 : vector<64x32xf32>
    %238 = vector.shape_cast %227 : vector<64x32xf32> to vector<4x16x32xf32>
    %239 = vector.shape_cast %232 : vector<64x32xf32> to vector<4x16x32xf32>
    %240 = vector.shape_cast %237 : vector<64x32xf32> to vector<4x16x32xf32>
    %241 = arith.truncf %238 : vector<4x16x32xf32> to vector<4x16x32xbf16>
    %242 = arith.truncf %239 : vector<4x16x32xf32> to vector<4x16x32xbf16>
    %cst_118 = arith.constant dense<0.000000e+00> : vector<4x16x16xf32>
    %243 = tpu.matmul %241, %242, %cst_118 {dimension_numbers = #tpu.dot_dimension_numbers<[2], [2], [1], [1], [0, 0, 0, 1, 1, 1], [0], [0]>} : vector<4x16x32xbf16>, vector<4x16x32xbf16>, vector<4x16x16xf32> -> vector<4x16x16xf32>
    %cst_119 = arith.constant dense<0xFF800000> : vector<4x16xf32>
    %244 = vector.multi_reduction <maximumf>, %243, %cst_119 [2] : vector<4x16x16xf32> to vector<4x16xf32>
    %245 = vector.shape_cast %244 : vector<4x16xf32> to vector<4x16x1xf32>
    %246 = vector.broadcast %245 : vector<4x16x1xf32> to vector<4x16x16xf32>
    %247 = arith.subf %243, %246 : vector<4x16x16xf32>
    %248 = math.exp %247 : vector<4x16x16xf32>
    %cst_120 = arith.constant dense<0.000000e+00> : vector<4x16xf32>
    %249 = vector.multi_reduction <add>, %248, %cst_120 [2] : vector<4x16x16xf32> to vector<4x16xf32>
    %250 = vector.shape_cast %249 : vector<4x16xf32> to vector<4x16x1xf32>
    %251 = tpu.reciprocal %250 {approx = true} : vector<4x16x1xf32> -> vector<4x16x1xf32>
    %252 = vector.broadcast %251 : vector<4x16x1xf32> to vector<4x16x16xf32>
    %253 = arith.mulf %248, %252 : vector<4x16x16xf32>
    %254 = arith.truncf %253 : vector<4x16x16xf32> to vector<4x16x16xbf16>
    %255 = arith.truncf %240 : vector<4x16x32xf32> to vector<4x16x32xbf16>
    %cst_121 = arith.constant dense<0.000000e+00> : vector<4x16x32xf32>
    %256 = tpu.matmul %254, %255, %cst_121 {dimension_numbers = #tpu.dot_dimension_numbers<[2], [1], [1], [2], [0, 0, 0, 1, 1, 2], [0], [0]>} : vector<4x16x16xbf16>, vector<4x16x32xbf16>, vector<4x16x32xf32> -> vector<4x16x32xf32>
    %257 = vector.shape_cast %256 : vector<4x16x32xf32> to vector<64x32xf32>
    %c3_122 = arith.constant 3 : index
    %c0_123 = arith.constant 0 : index
    %c0_124 = arith.constant 0 : index
    %258 = vector.load %arg5[%c3_122, %c0_123, %c0_124] : memref<6x32x64xbf16, #tpu.memory_space<vmem>>, vector<1x32x64xbf16>
    %259 = vector.shape_cast %258 : vector<1x32x64xbf16> to vector<32x64xbf16>
    %260 = arith.truncf %257 : vector<64x32xf32> to vector<64x32xbf16>
    %cst_125 = arith.constant dense<0.000000e+00> : vector<64x64xf32>
    %261 = tpu.matmul %260, %259, %cst_125 {dimension_numbers = #tpu.dot_dimension_numbers<[1], [0], [0], [1], [0, 0, 1, 1], [], []>} : vector<64x32xbf16>, vector<32x64xbf16>, vector<64x64xf32> -> vector<64x64xf32>
    %262 = arith.addf %216, %261 : vector<64x64xf32>
    %263 = arith.addf %168, %262 : vector<64x64xf32>
    %c20 = arith.constant 20 : index
    %c0_126 = arith.constant 0 : index
    %264 = vector.load %arg10[%c20, %c0_126] : memref<48x128xf32, #tpu.memory_space<vmem>>, vector<1x64xf32>
    %c21 = arith.constant 21 : index
    %c0_127 = arith.constant 0 : index
    %265 = vector.load %arg10[%c21, %c0_127] : memref<48x128xf32, #tpu.memory_space<vmem>>, vector<1x64xf32>
    %cst_128 = arith.constant dense<0.000000e+00> : vector<64xf32>
    %266 = vector.multi_reduction <add>, %263, %cst_128 [1] : vector<64x64xf32> to vector<64xf32>
    %267 = vector.shape_cast %266 : vector<64xf32> to vector<64x1xf32>
    %cst_129 = arith.constant 6.400000e+01 : f32
    %268 = vector.broadcast %cst_129 : f32 to vector<64x1xf32>
    %269 = arith.divf %267, %268 : vector<64x1xf32>
    %270 = vector.broadcast %269 : vector<64x1xf32> to vector<64x64xf32>
    %271 = arith.subf %263, %270 : vector<64x64xf32>
    %272 = arith.mulf %271, %271 : vector<64x64xf32>
    %cst_130 = arith.constant dense<0.000000e+00> : vector<64xf32>
    %273 = vector.multi_reduction <add>, %272, %cst_130 [1] : vector<64x64xf32> to vector<64xf32>
    %274 = vector.shape_cast %273 : vector<64xf32> to vector<64x1xf32>
    %cst_131 = arith.constant 6.400000e+01 : f32
    %275 = vector.broadcast %cst_131 : f32 to vector<64x1xf32>
    %276 = arith.divf %274, %275 : vector<64x1xf32>
    %277 = vector.broadcast %269 : vector<64x1xf32> to vector<64x64xf32>
    %278 = arith.subf %263, %277 : vector<64x64xf32>
    %cst_132 = arith.constant 9.99999974E-6 : f32
    %279 = vector.broadcast %cst_132 : f32 to vector<64x1xf32>
    %280 = arith.addf %276, %279 : vector<64x1xf32>
    %281 = math.rsqrt %280 : vector<64x1xf32>
    %282 = vector.broadcast %281 : vector<64x1xf32> to vector<64x64xf32>
    %283 = arith.mulf %278, %282 : vector<64x64xf32>
    %284 = vector.broadcast %264 : vector<1x64xf32> to vector<64x64xf32>
    %285 = arith.mulf %283, %284 : vector<64x64xf32>
    %286 = vector.broadcast %265 : vector<1x64xf32> to vector<64x64xf32>
    %287 = arith.addf %285, %286 : vector<64x64xf32>
    %c1_133 = arith.constant 1 : index
    %c0_134 = arith.constant 0 : index
    %c0_135 = arith.constant 0 : index
    %288 = vector.load %arg6[%c1_133, %c0_134, %c0_135] : memref<3x64x128xbf16, #tpu.memory_space<vmem>>, vector<1x64x128xbf16>
    %289 = vector.shape_cast %288 : vector<1x64x128xbf16> to vector<64x128xbf16>
    %290 = arith.truncf %287 : vector<64x64xf32> to vector<64x64xbf16>
    %cst_136 = arith.constant dense<0.000000e+00> : vector<64x128xf32>
    %291 = tpu.matmul %290, %289, %cst_136 {dimension_numbers = #tpu.dot_dimension_numbers<[1], [0], [0], [1], [0, 0, 1, 1], [], []>} : vector<64x64xbf16>, vector<64x128xbf16>, vector<64x128xf32> -> vector<64x128xf32>
    %c22 = arith.constant 22 : index
    %c0_137 = arith.constant 0 : index
    %292 = vector.load %arg10[%c22, %c0_137] : memref<48x128xf32, #tpu.memory_space<vmem>>, vector<1x128xf32>
    %293 = vector.broadcast %292 : vector<1x128xf32> to vector<64x128xf32>
    %294 = arith.addf %291, %293 : vector<64x128xf32>
    %cst_138 = arith.constant 0.000000e+00 : f32
    %295 = vector.broadcast %cst_138 : f32 to vector<64x128xf32>
    %296 = arith.maximumf %294, %295 : vector<64x128xf32>
    %c1_139 = arith.constant 1 : index
    %c0_140 = arith.constant 0 : index
    %c0_141 = arith.constant 0 : index
    %297 = vector.load %arg7[%c1_139, %c0_140, %c0_141] : memref<3x128x64xbf16, #tpu.memory_space<vmem>>, vector<1x128x64xbf16>
    %298 = vector.shape_cast %297 : vector<1x128x64xbf16> to vector<128x64xbf16>
    %299 = arith.truncf %296 : vector<64x128xf32> to vector<64x128xbf16>
    %cst_142 = arith.constant dense<0.000000e+00> : vector<64x64xf32>
    %300 = tpu.matmul %299, %298, %cst_142 {dimension_numbers = #tpu.dot_dimension_numbers<[1], [0], [0], [1], [0, 0, 1, 1], [], []>} : vector<64x128xbf16>, vector<128x64xbf16>, vector<64x64xf32> -> vector<64x64xf32>
    %c23 = arith.constant 23 : index
    %c0_143 = arith.constant 0 : index
    %301 = vector.load %arg10[%c23, %c0_143] : memref<48x128xf32, #tpu.memory_space<vmem>>, vector<1x64xf32>
    %302 = vector.broadcast %301 : vector<1x64xf32> to vector<64x64xf32>
    %303 = arith.addf %300, %302 : vector<64x64xf32>
    %304 = arith.addf %287, %303 : vector<64x64xf32>
    %c24 = arith.constant 24 : index
    %c0_144 = arith.constant 0 : index
    %305 = vector.load %arg10[%c24, %c0_144] : memref<48x128xf32, #tpu.memory_space<vmem>>, vector<1x64xf32>
    %c25 = arith.constant 25 : index
    %c0_145 = arith.constant 0 : index
    %306 = vector.load %arg10[%c25, %c0_145] : memref<48x128xf32, #tpu.memory_space<vmem>>, vector<1x64xf32>
    %cst_146 = arith.constant dense<0.000000e+00> : vector<64xf32>
    %307 = vector.multi_reduction <add>, %304, %cst_146 [1] : vector<64x64xf32> to vector<64xf32>
    %308 = vector.shape_cast %307 : vector<64xf32> to vector<64x1xf32>
    %cst_147 = arith.constant 6.400000e+01 : f32
    %309 = vector.broadcast %cst_147 : f32 to vector<64x1xf32>
    %310 = arith.divf %308, %309 : vector<64x1xf32>
    %311 = vector.broadcast %310 : vector<64x1xf32> to vector<64x64xf32>
    %312 = arith.subf %304, %311 : vector<64x64xf32>
    %313 = arith.mulf %312, %312 : vector<64x64xf32>
    %cst_148 = arith.constant dense<0.000000e+00> : vector<64xf32>
    %314 = vector.multi_reduction <add>, %313, %cst_148 [1] : vector<64x64xf32> to vector<64xf32>
    %315 = vector.shape_cast %314 : vector<64xf32> to vector<64x1xf32>
    %cst_149 = arith.constant 6.400000e+01 : f32
    %316 = vector.broadcast %cst_149 : f32 to vector<64x1xf32>
    %317 = arith.divf %315, %316 : vector<64x1xf32>
    %318 = vector.broadcast %310 : vector<64x1xf32> to vector<64x64xf32>
    %319 = arith.subf %304, %318 : vector<64x64xf32>
    %cst_150 = arith.constant 9.99999974E-6 : f32
    %320 = vector.broadcast %cst_150 : f32 to vector<64x1xf32>
    %321 = arith.addf %317, %320 : vector<64x1xf32>
    %322 = math.rsqrt %321 : vector<64x1xf32>
    %323 = vector.broadcast %322 : vector<64x1xf32> to vector<64x64xf32>
    %324 = arith.mulf %319, %323 : vector<64x64xf32>
    %325 = vector.broadcast %305 : vector<1x64xf32> to vector<64x64xf32>
    %326 = arith.mulf %324, %325 : vector<64x64xf32>
    %327 = vector.broadcast %306 : vector<1x64xf32> to vector<64x64xf32>
    %328 = arith.addf %326, %327 : vector<64x64xf32>
    %c32 = arith.constant 32 : index
    %c0_151 = arith.constant 0 : index
    %329 = vector.load %arg10[%c32, %c0_151] : memref<48x128xf32, #tpu.memory_space<vmem>>, vector<1x64xf32>
    %c12_152 = arith.constant 12 : index
    %c0_153 = arith.constant 0 : index
    %c0_154 = arith.constant 0 : index
    %330 = vector.load %arg4[%c12_152, %c0_153, %c0_154] : memref<18x64x32xbf16, #tpu.memory_space<vmem>>, vector<1x64x32xbf16>
    %331 = vector.shape_cast %330 : vector<1x64x32xbf16> to vector<64x32xbf16>
    %c14_155 = arith.constant 14 : index
    %c0_156 = arith.constant 0 : index
    %c0_157 = arith.constant 0 : index
    %332 = vector.load %arg4[%c14_155, %c0_156, %c0_157] : memref<18x64x32xbf16, #tpu.memory_space<vmem>>, vector<1x64x32xbf16>
    %333 = vector.shape_cast %332 : vector<1x64x32xbf16> to vector<64x32xbf16>
    %c16_158 = arith.constant 16 : index
    %c0_159 = arith.constant 0 : index
    %c0_160 = arith.constant 0 : index
    %334 = vector.load %arg4[%c16_158, %c0_159, %c0_160] : memref<18x64x32xbf16, #tpu.memory_space<vmem>>, vector<1x64x32xbf16>
    %335 = vector.shape_cast %334 : vector<1x64x32xbf16> to vector<64x32xbf16>
    %336 = arith.truncf %328 : vector<64x64xf32> to vector<64x64xbf16>
    %cst_161 = arith.constant dense<0.000000e+00> : vector<64x32xf32>
    %337 = tpu.matmul %336, %331, %cst_161 {dimension_numbers = #tpu.dot_dimension_numbers<[1], [0], [0], [1], [0, 0, 1, 1], [], []>} : vector<64x64xbf16>, vector<64x32xbf16>, vector<64x32xf32> -> vector<64x32xf32>
    %c26 = arith.constant 26 : index
    %c0_162 = arith.constant 0 : index
    %338 = vector.load %arg10[%c26, %c0_162] : memref<48x128xf32, #tpu.memory_space<vmem>>, vector<1x32xf32>
    %339 = vector.broadcast %338 : vector<1x32xf32> to vector<64x32xf32>
    %340 = arith.addf %337, %339 : vector<64x32xf32>
    %341 = arith.truncf %328 : vector<64x64xf32> to vector<64x64xbf16>
    %cst_163 = arith.constant dense<0.000000e+00> : vector<64x32xf32>
    %342 = tpu.matmul %341, %333, %cst_163 {dimension_numbers = #tpu.dot_dimension_numbers<[1], [0], [0], [1], [0, 0, 1, 1], [], []>} : vector<64x64xbf16>, vector<64x32xbf16>, vector<64x32xf32> -> vector<64x32xf32>
    %c28 = arith.constant 28 : index
    %c0_164 = arith.constant 0 : index
    %343 = vector.load %arg10[%c28, %c0_164] : memref<48x128xf32, #tpu.memory_space<vmem>>, vector<1x32xf32>
    %344 = vector.broadcast %343 : vector<1x32xf32> to vector<64x32xf32>
    %345 = arith.addf %342, %344 : vector<64x32xf32>
    %346 = arith.truncf %328 : vector<64x64xf32> to vector<64x64xbf16>
    %cst_165 = arith.constant dense<0.000000e+00> : vector<64x32xf32>
    %347 = tpu.matmul %346, %335, %cst_165 {dimension_numbers = #tpu.dot_dimension_numbers<[1], [0], [0], [1], [0, 0, 1, 1], [], []>} : vector<64x64xbf16>, vector<64x32xbf16>, vector<64x32xf32> -> vector<64x32xf32>
    %c30 = arith.constant 30 : index
    %c0_166 = arith.constant 0 : index
    %348 = vector.load %arg10[%c30, %c0_166] : memref<48x128xf32, #tpu.memory_space<vmem>>, vector<1x32xf32>
    %349 = vector.broadcast %348 : vector<1x32xf32> to vector<64x32xf32>
    %350 = arith.addf %347, %349 : vector<64x32xf32>
    %351 = vector.shape_cast %340 : vector<64x32xf32> to vector<4x16x32xf32>
    %352 = vector.shape_cast %345 : vector<64x32xf32> to vector<4x16x32xf32>
    %353 = vector.shape_cast %350 : vector<64x32xf32> to vector<4x16x32xf32>
    %354 = arith.truncf %351 : vector<4x16x32xf32> to vector<4x16x32xbf16>
    %355 = arith.truncf %352 : vector<4x16x32xf32> to vector<4x16x32xbf16>
    %cst_167 = arith.constant dense<0.000000e+00> : vector<4x16x16xf32>
    %356 = tpu.matmul %354, %355, %cst_167 {dimension_numbers = #tpu.dot_dimension_numbers<[2], [2], [1], [1], [0, 0, 0, 1, 1, 1], [0], [0]>} : vector<4x16x32xbf16>, vector<4x16x32xbf16>, vector<4x16x16xf32> -> vector<4x16x16xf32>
    %cst_168 = arith.constant dense<0xFF800000> : vector<4x16xf32>
    %357 = vector.multi_reduction <maximumf>, %356, %cst_168 [2] : vector<4x16x16xf32> to vector<4x16xf32>
    %358 = vector.shape_cast %357 : vector<4x16xf32> to vector<4x16x1xf32>
    %359 = vector.broadcast %358 : vector<4x16x1xf32> to vector<4x16x16xf32>
    %360 = arith.subf %356, %359 : vector<4x16x16xf32>
    %361 = math.exp %360 : vector<4x16x16xf32>
    %cst_169 = arith.constant dense<0.000000e+00> : vector<4x16xf32>
    %362 = vector.multi_reduction <add>, %361, %cst_169 [2] : vector<4x16x16xf32> to vector<4x16xf32>
    %363 = vector.shape_cast %362 : vector<4x16xf32> to vector<4x16x1xf32>
    %364 = tpu.reciprocal %363 {approx = true} : vector<4x16x1xf32> -> vector<4x16x1xf32>
    %365 = vector.broadcast %364 : vector<4x16x1xf32> to vector<4x16x16xf32>
    %366 = arith.mulf %361, %365 : vector<4x16x16xf32>
    %367 = arith.truncf %366 : vector<4x16x16xf32> to vector<4x16x16xbf16>
    %368 = arith.truncf %353 : vector<4x16x32xf32> to vector<4x16x32xbf16>
    %cst_170 = arith.constant dense<0.000000e+00> : vector<4x16x32xf32>
    %369 = tpu.matmul %367, %368, %cst_170 {dimension_numbers = #tpu.dot_dimension_numbers<[2], [1], [1], [2], [0, 0, 0, 1, 1, 2], [0], [0]>} : vector<4x16x16xbf16>, vector<4x16x32xbf16>, vector<4x16x32xf32> -> vector<4x16x32xf32>
    %370 = vector.shape_cast %369 : vector<4x16x32xf32> to vector<64x32xf32>
    %c4_171 = arith.constant 4 : index
    %c0_172 = arith.constant 0 : index
    %c0_173 = arith.constant 0 : index
    %371 = vector.load %arg5[%c4_171, %c0_172, %c0_173] : memref<6x32x64xbf16, #tpu.memory_space<vmem>>, vector<1x32x64xbf16>
    %372 = vector.shape_cast %371 : vector<1x32x64xbf16> to vector<32x64xbf16>
    %373 = arith.truncf %370 : vector<64x32xf32> to vector<64x32xbf16>
    %cst_174 = arith.constant dense<0.000000e+00> : vector<64x64xf32>
    %374 = tpu.matmul %373, %372, %cst_174 {dimension_numbers = #tpu.dot_dimension_numbers<[1], [0], [0], [1], [0, 0, 1, 1], [], []>} : vector<64x32xbf16>, vector<32x64xbf16>, vector<64x64xf32> -> vector<64x64xf32>
    %375 = vector.broadcast %329 : vector<1x64xf32> to vector<64x64xf32>
    %376 = arith.addf %375, %374 : vector<64x64xf32>
    %c13_175 = arith.constant 13 : index
    %c0_176 = arith.constant 0 : index
    %c0_177 = arith.constant 0 : index
    %377 = vector.load %arg4[%c13_175, %c0_176, %c0_177] : memref<18x64x32xbf16, #tpu.memory_space<vmem>>, vector<1x64x32xbf16>
    %378 = vector.shape_cast %377 : vector<1x64x32xbf16> to vector<64x32xbf16>
    %c15_178 = arith.constant 15 : index
    %c0_179 = arith.constant 0 : index
    %c0_180 = arith.constant 0 : index
    %379 = vector.load %arg4[%c15_178, %c0_179, %c0_180] : memref<18x64x32xbf16, #tpu.memory_space<vmem>>, vector<1x64x32xbf16>
    %380 = vector.shape_cast %379 : vector<1x64x32xbf16> to vector<64x32xbf16>
    %c17_181 = arith.constant 17 : index
    %c0_182 = arith.constant 0 : index
    %c0_183 = arith.constant 0 : index
    %381 = vector.load %arg4[%c17_181, %c0_182, %c0_183] : memref<18x64x32xbf16, #tpu.memory_space<vmem>>, vector<1x64x32xbf16>
    %382 = vector.shape_cast %381 : vector<1x64x32xbf16> to vector<64x32xbf16>
    %383 = arith.truncf %328 : vector<64x64xf32> to vector<64x64xbf16>
    %cst_184 = arith.constant dense<0.000000e+00> : vector<64x32xf32>
    %384 = tpu.matmul %383, %378, %cst_184 {dimension_numbers = #tpu.dot_dimension_numbers<[1], [0], [0], [1], [0, 0, 1, 1], [], []>} : vector<64x64xbf16>, vector<64x32xbf16>, vector<64x32xf32> -> vector<64x32xf32>
    %c27 = arith.constant 27 : index
    %c0_185 = arith.constant 0 : index
    %385 = vector.load %arg10[%c27, %c0_185] : memref<48x128xf32, #tpu.memory_space<vmem>>, vector<1x32xf32>
    %386 = vector.broadcast %385 : vector<1x32xf32> to vector<64x32xf32>
    %387 = arith.addf %384, %386 : vector<64x32xf32>
    %388 = arith.truncf %328 : vector<64x64xf32> to vector<64x64xbf16>
    %cst_186 = arith.constant dense<0.000000e+00> : vector<64x32xf32>
    %389 = tpu.matmul %388, %380, %cst_186 {dimension_numbers = #tpu.dot_dimension_numbers<[1], [0], [0], [1], [0, 0, 1, 1], [], []>} : vector<64x64xbf16>, vector<64x32xbf16>, vector<64x32xf32> -> vector<64x32xf32>
    %c29 = arith.constant 29 : index
    %c0_187 = arith.constant 0 : index
    %390 = vector.load %arg10[%c29, %c0_187] : memref<48x128xf32, #tpu.memory_space<vmem>>, vector<1x32xf32>
    %391 = vector.broadcast %390 : vector<1x32xf32> to vector<64x32xf32>
    %392 = arith.addf %389, %391 : vector<64x32xf32>
    %393 = arith.truncf %328 : vector<64x64xf32> to vector<64x64xbf16>
    %cst_188 = arith.constant dense<0.000000e+00> : vector<64x32xf32>
    %394 = tpu.matmul %393, %382, %cst_188 {dimension_numbers = #tpu.dot_dimension_numbers<[1], [0], [0], [1], [0, 0, 1, 1], [], []>} : vector<64x64xbf16>, vector<64x32xbf16>, vector<64x32xf32> -> vector<64x32xf32>
    %c31 = arith.constant 31 : index
    %c0_189 = arith.constant 0 : index
    %395 = vector.load %arg10[%c31, %c0_189] : memref<48x128xf32, #tpu.memory_space<vmem>>, vector<1x32xf32>
    %396 = vector.broadcast %395 : vector<1x32xf32> to vector<64x32xf32>
    %397 = arith.addf %394, %396 : vector<64x32xf32>
    %398 = vector.shape_cast %387 : vector<64x32xf32> to vector<4x16x32xf32>
    %399 = vector.shape_cast %392 : vector<64x32xf32> to vector<4x16x32xf32>
    %400 = vector.shape_cast %397 : vector<64x32xf32> to vector<4x16x32xf32>
    %401 = arith.truncf %398 : vector<4x16x32xf32> to vector<4x16x32xbf16>
    %402 = arith.truncf %399 : vector<4x16x32xf32> to vector<4x16x32xbf16>
    %cst_190 = arith.constant dense<0.000000e+00> : vector<4x16x16xf32>
    %403 = tpu.matmul %401, %402, %cst_190 {dimension_numbers = #tpu.dot_dimension_numbers<[2], [2], [1], [1], [0, 0, 0, 1, 1, 1], [0], [0]>} : vector<4x16x32xbf16>, vector<4x16x32xbf16>, vector<4x16x16xf32> -> vector<4x16x16xf32>
    %cst_191 = arith.constant dense<0xFF800000> : vector<4x16xf32>
    %404 = vector.multi_reduction <maximumf>, %403, %cst_191 [2] : vector<4x16x16xf32> to vector<4x16xf32>
    %405 = vector.shape_cast %404 : vector<4x16xf32> to vector<4x16x1xf32>
    %406 = vector.broadcast %405 : vector<4x16x1xf32> to vector<4x16x16xf32>
    %407 = arith.subf %403, %406 : vector<4x16x16xf32>
    %408 = math.exp %407 : vector<4x16x16xf32>
    %cst_192 = arith.constant dense<0.000000e+00> : vector<4x16xf32>
    %409 = vector.multi_reduction <add>, %408, %cst_192 [2] : vector<4x16x16xf32> to vector<4x16xf32>
    %410 = vector.shape_cast %409 : vector<4x16xf32> to vector<4x16x1xf32>
    %411 = tpu.reciprocal %410 {approx = true} : vector<4x16x1xf32> -> vector<4x16x1xf32>
    %412 = vector.broadcast %411 : vector<4x16x1xf32> to vector<4x16x16xf32>
    %413 = arith.mulf %408, %412 : vector<4x16x16xf32>
    %414 = arith.truncf %413 : vector<4x16x16xf32> to vector<4x16x16xbf16>
    %415 = arith.truncf %400 : vector<4x16x32xf32> to vector<4x16x32xbf16>
    %cst_193 = arith.constant dense<0.000000e+00> : vector<4x16x32xf32>
    %416 = tpu.matmul %414, %415, %cst_193 {dimension_numbers = #tpu.dot_dimension_numbers<[2], [1], [1], [2], [0, 0, 0, 1, 1, 2], [0], [0]>} : vector<4x16x16xbf16>, vector<4x16x32xbf16>, vector<4x16x32xf32> -> vector<4x16x32xf32>
    %417 = vector.shape_cast %416 : vector<4x16x32xf32> to vector<64x32xf32>
    %c5_194 = arith.constant 5 : index
    %c0_195 = arith.constant 0 : index
    %c0_196 = arith.constant 0 : index
    %418 = vector.load %arg5[%c5_194, %c0_195, %c0_196] : memref<6x32x64xbf16, #tpu.memory_space<vmem>>, vector<1x32x64xbf16>
    %419 = vector.shape_cast %418 : vector<1x32x64xbf16> to vector<32x64xbf16>
    %420 = arith.truncf %417 : vector<64x32xf32> to vector<64x32xbf16>
    %cst_197 = arith.constant dense<0.000000e+00> : vector<64x64xf32>
    %421 = tpu.matmul %420, %419, %cst_197 {dimension_numbers = #tpu.dot_dimension_numbers<[1], [0], [0], [1], [0, 0, 1, 1], [], []>} : vector<64x32xbf16>, vector<32x64xbf16>, vector<64x64xf32> -> vector<64x64xf32>
    %422 = arith.addf %376, %421 : vector<64x64xf32>
    %423 = arith.addf %328, %422 : vector<64x64xf32>
    %c33 = arith.constant 33 : index
    %c0_198 = arith.constant 0 : index
    %424 = vector.load %arg10[%c33, %c0_198] : memref<48x128xf32, #tpu.memory_space<vmem>>, vector<1x64xf32>
    %c34 = arith.constant 34 : index
    %c0_199 = arith.constant 0 : index
    %425 = vector.load %arg10[%c34, %c0_199] : memref<48x128xf32, #tpu.memory_space<vmem>>, vector<1x64xf32>
    %cst_200 = arith.constant dense<0.000000e+00> : vector<64xf32>
    %426 = vector.multi_reduction <add>, %423, %cst_200 [1] : vector<64x64xf32> to vector<64xf32>
    %427 = vector.shape_cast %426 : vector<64xf32> to vector<64x1xf32>
    %cst_201 = arith.constant 6.400000e+01 : f32
    %428 = vector.broadcast %cst_201 : f32 to vector<64x1xf32>
    %429 = arith.divf %427, %428 : vector<64x1xf32>
    %430 = vector.broadcast %429 : vector<64x1xf32> to vector<64x64xf32>
    %431 = arith.subf %423, %430 : vector<64x64xf32>
    %432 = arith.mulf %431, %431 : vector<64x64xf32>
    %cst_202 = arith.constant dense<0.000000e+00> : vector<64xf32>
    %433 = vector.multi_reduction <add>, %432, %cst_202 [1] : vector<64x64xf32> to vector<64xf32>
    %434 = vector.shape_cast %433 : vector<64xf32> to vector<64x1xf32>
    %cst_203 = arith.constant 6.400000e+01 : f32
    %435 = vector.broadcast %cst_203 : f32 to vector<64x1xf32>
    %436 = arith.divf %434, %435 : vector<64x1xf32>
    %437 = vector.broadcast %429 : vector<64x1xf32> to vector<64x64xf32>
    %438 = arith.subf %423, %437 : vector<64x64xf32>
    %cst_204 = arith.constant 9.99999974E-6 : f32
    %439 = vector.broadcast %cst_204 : f32 to vector<64x1xf32>
    %440 = arith.addf %436, %439 : vector<64x1xf32>
    %441 = math.rsqrt %440 : vector<64x1xf32>
    %442 = vector.broadcast %441 : vector<64x1xf32> to vector<64x64xf32>
    %443 = arith.mulf %438, %442 : vector<64x64xf32>
    %444 = vector.broadcast %424 : vector<1x64xf32> to vector<64x64xf32>
    %445 = arith.mulf %443, %444 : vector<64x64xf32>
    %446 = vector.broadcast %425 : vector<1x64xf32> to vector<64x64xf32>
    %447 = arith.addf %445, %446 : vector<64x64xf32>
    %c2_205 = arith.constant 2 : index
    %c0_206 = arith.constant 0 : index
    %c0_207 = arith.constant 0 : index
    %448 = vector.load %arg6[%c2_205, %c0_206, %c0_207] : memref<3x64x128xbf16, #tpu.memory_space<vmem>>, vector<1x64x128xbf16>
    %449 = vector.shape_cast %448 : vector<1x64x128xbf16> to vector<64x128xbf16>
    %450 = arith.truncf %447 : vector<64x64xf32> to vector<64x64xbf16>
    %cst_208 = arith.constant dense<0.000000e+00> : vector<64x128xf32>
    %451 = tpu.matmul %450, %449, %cst_208 {dimension_numbers = #tpu.dot_dimension_numbers<[1], [0], [0], [1], [0, 0, 1, 1], [], []>} : vector<64x64xbf16>, vector<64x128xbf16>, vector<64x128xf32> -> vector<64x128xf32>
    %c35 = arith.constant 35 : index
    %c0_209 = arith.constant 0 : index
    %452 = vector.load %arg10[%c35, %c0_209] : memref<48x128xf32, #tpu.memory_space<vmem>>, vector<1x128xf32>
    %453 = vector.broadcast %452 : vector<1x128xf32> to vector<64x128xf32>
    %454 = arith.addf %451, %453 : vector<64x128xf32>
    %cst_210 = arith.constant 0.000000e+00 : f32
    %455 = vector.broadcast %cst_210 : f32 to vector<64x128xf32>
    %456 = arith.maximumf %454, %455 : vector<64x128xf32>
    %c2_211 = arith.constant 2 : index
    %c0_212 = arith.constant 0 : index
    %c0_213 = arith.constant 0 : index
    %457 = vector.load %arg7[%c2_211, %c0_212, %c0_213] : memref<3x128x64xbf16, #tpu.memory_space<vmem>>, vector<1x128x64xbf16>
    %458 = vector.shape_cast %457 : vector<1x128x64xbf16> to vector<128x64xbf16>
    %459 = arith.truncf %456 : vector<64x128xf32> to vector<64x128xbf16>
    %cst_214 = arith.constant dense<0.000000e+00> : vector<64x64xf32>
    %460 = tpu.matmul %459, %458, %cst_214 {dimension_numbers = #tpu.dot_dimension_numbers<[1], [0], [0], [1], [0, 0, 1, 1], [], []>} : vector<64x128xbf16>, vector<128x64xbf16>, vector<64x64xf32> -> vector<64x64xf32>
    %c36 = arith.constant 36 : index
    %c0_215 = arith.constant 0 : index
    %461 = vector.load %arg10[%c36, %c0_215] : memref<48x128xf32, #tpu.memory_space<vmem>>, vector<1x64xf32>
    %462 = vector.broadcast %461 : vector<1x64xf32> to vector<64x64xf32>
    %463 = arith.addf %460, %462 : vector<64x64xf32>
    %464 = arith.addf %447, %463 : vector<64x64xf32>
    %c37 = arith.constant 37 : index
    %c0_216 = arith.constant 0 : index
    %465 = vector.load %arg10[%c37, %c0_216] : memref<48x128xf32, #tpu.memory_space<vmem>>, vector<1x64xf32>
    %c38 = arith.constant 38 : index
    %c0_217 = arith.constant 0 : index
    %466 = vector.load %arg10[%c38, %c0_217] : memref<48x128xf32, #tpu.memory_space<vmem>>, vector<1x64xf32>
    %cst_218 = arith.constant dense<0.000000e+00> : vector<64xf32>
    %467 = vector.multi_reduction <add>, %464, %cst_218 [1] : vector<64x64xf32> to vector<64xf32>
    %468 = vector.shape_cast %467 : vector<64xf32> to vector<64x1xf32>
    %cst_219 = arith.constant 6.400000e+01 : f32
    %469 = vector.broadcast %cst_219 : f32 to vector<64x1xf32>
    %470 = arith.divf %468, %469 : vector<64x1xf32>
    %471 = vector.broadcast %470 : vector<64x1xf32> to vector<64x64xf32>
    %472 = arith.subf %464, %471 : vector<64x64xf32>
    %473 = arith.mulf %472, %472 : vector<64x64xf32>
    %cst_220 = arith.constant dense<0.000000e+00> : vector<64xf32>
    %474 = vector.multi_reduction <add>, %473, %cst_220 [1] : vector<64x64xf32> to vector<64xf32>
    %475 = vector.shape_cast %474 : vector<64xf32> to vector<64x1xf32>
    %cst_221 = arith.constant 6.400000e+01 : f32
    %476 = vector.broadcast %cst_221 : f32 to vector<64x1xf32>
    %477 = arith.divf %475, %476 : vector<64x1xf32>
    %478 = vector.broadcast %470 : vector<64x1xf32> to vector<64x64xf32>
    %479 = arith.subf %464, %478 : vector<64x64xf32>
    %cst_222 = arith.constant 9.99999974E-6 : f32
    %480 = vector.broadcast %cst_222 : f32 to vector<64x1xf32>
    %481 = arith.addf %477, %480 : vector<64x1xf32>
    %482 = math.rsqrt %481 : vector<64x1xf32>
    %483 = vector.broadcast %482 : vector<64x1xf32> to vector<64x64xf32>
    %484 = arith.mulf %479, %483 : vector<64x64xf32>
    %485 = vector.broadcast %465 : vector<1x64xf32> to vector<64x64xf32>
    %486 = arith.mulf %484, %485 : vector<64x64xf32>
    %487 = vector.broadcast %466 : vector<1x64xf32> to vector<64x64xf32>
    %488 = arith.addf %486, %487 : vector<64x64xf32>
    %c40 = arith.constant 40 : index
    %c0_223 = arith.constant 0 : index
    %489 = vector.load %arg10[%c40, %c0_223] : memref<48x128xf32, #tpu.memory_space<vmem>>, vector<1x64xf32>
    %c41 = arith.constant 41 : index
    %c0_224 = arith.constant 0 : index
    %490 = vector.load %arg10[%c41, %c0_224] : memref<48x128xf32, #tpu.memory_space<vmem>>, vector<1x64xf32>
    %cst_225 = arith.constant dense<0.000000e+00> : vector<64xf32>
    %491 = vector.multi_reduction <add>, %488, %cst_225 [1] : vector<64x64xf32> to vector<64xf32>
    %492 = vector.shape_cast %491 : vector<64xf32> to vector<64x1xf32>
    %cst_226 = arith.constant 6.400000e+01 : f32
    %493 = vector.broadcast %cst_226 : f32 to vector<64x1xf32>
    %494 = arith.divf %492, %493 : vector<64x1xf32>
    %495 = vector.broadcast %494 : vector<64x1xf32> to vector<64x64xf32>
    %496 = arith.subf %488, %495 : vector<64x64xf32>
    %497 = arith.mulf %496, %496 : vector<64x64xf32>
    %cst_227 = arith.constant dense<0.000000e+00> : vector<64xf32>
    %498 = vector.multi_reduction <add>, %497, %cst_227 [1] : vector<64x64xf32> to vector<64xf32>
    %499 = vector.shape_cast %498 : vector<64xf32> to vector<64x1xf32>
    %cst_228 = arith.constant 6.400000e+01 : f32
    %500 = vector.broadcast %cst_228 : f32 to vector<64x1xf32>
    %501 = arith.divf %499, %500 : vector<64x1xf32>
    %502 = vector.broadcast %494 : vector<64x1xf32> to vector<64x64xf32>
    %503 = arith.subf %488, %502 : vector<64x64xf32>
    %cst_229 = arith.constant 9.99999974E-6 : f32
    %504 = vector.broadcast %cst_229 : f32 to vector<64x1xf32>
    %505 = arith.addf %501, %504 : vector<64x1xf32>
    %506 = math.rsqrt %505 : vector<64x1xf32>
    %507 = vector.broadcast %506 : vector<64x1xf32> to vector<64x64xf32>
    %508 = arith.mulf %503, %507 : vector<64x64xf32>
    %509 = vector.broadcast %489 : vector<1x64xf32> to vector<64x64xf32>
    %510 = arith.mulf %508, %509 : vector<64x64xf32>
    %511 = vector.broadcast %490 : vector<1x64xf32> to vector<64x64xf32>
    %512 = arith.addf %510, %511 : vector<64x64xf32>
    %513 = vector.extract_strided_slice %512 {offsets = [0, 0], sizes = [16, 64], strides = [1, 1]} : vector<64x64xf32> to vector<16x64xf32>
    %cst_230 = arith.constant dense<0xFF800000> : vector<64xf32>
    %514 = vector.multi_reduction <maximumf>, %513, %cst_230 [0] : vector<16x64xf32> to vector<64xf32>
    %515 = vector.shape_cast %514 : vector<64xf32> to vector<1x64xf32>
    %516 = vector.extract_strided_slice %512 {offsets = [16, 0], sizes = [16, 64], strides = [1, 1]} : vector<64x64xf32> to vector<16x64xf32>
    %cst_231 = arith.constant dense<0xFF800000> : vector<64xf32>
    %517 = vector.multi_reduction <maximumf>, %516, %cst_231 [0] : vector<16x64xf32> to vector<64xf32>
    %518 = vector.shape_cast %517 : vector<64xf32> to vector<1x64xf32>
    %519 = vector.extract_strided_slice %512 {offsets = [32, 0], sizes = [16, 64], strides = [1, 1]} : vector<64x64xf32> to vector<16x64xf32>
    %cst_232 = arith.constant dense<0xFF800000> : vector<64xf32>
    %520 = vector.multi_reduction <maximumf>, %519, %cst_232 [0] : vector<16x64xf32> to vector<64xf32>
    %521 = vector.shape_cast %520 : vector<64xf32> to vector<1x64xf32>
    %522 = vector.extract_strided_slice %512 {offsets = [48, 0], sizes = [16, 64], strides = [1, 1]} : vector<64x64xf32> to vector<16x64xf32>
    %cst_233 = arith.constant dense<0xFF800000> : vector<64xf32>
    %523 = vector.multi_reduction <maximumf>, %522, %cst_233 [0] : vector<16x64xf32> to vector<64xf32>
    %524 = vector.shape_cast %523 : vector<64xf32> to vector<1x64xf32>
    %525 = tpu.concatenate %515, %518, %521, %524 in 0 : vector<1x64xf32>, vector<1x64xf32>, vector<1x64xf32>, vector<1x64xf32> -> vector<4x64xf32>
    %c42 = arith.constant 42 : index
    %c0_234 = arith.constant 0 : index
    %526 = vector.load %arg10[%c42, %c0_234] : memref<48x128xf32, #tpu.memory_space<vmem>>, vector<1x64xf32>
    %c43 = arith.constant 43 : index
    %c0_235 = arith.constant 0 : index
    %527 = vector.load %arg10[%c43, %c0_235] : memref<48x128xf32, #tpu.memory_space<vmem>>, vector<1x64xf32>
    %cst_236 = arith.constant dense<0.000000e+00> : vector<4xf32>
    %528 = vector.multi_reduction <add>, %525, %cst_236 [1] : vector<4x64xf32> to vector<4xf32>
    %529 = vector.shape_cast %528 : vector<4xf32> to vector<4x1xf32>
    %cst_237 = arith.constant 6.400000e+01 : f32
    %530 = vector.broadcast %cst_237 : f32 to vector<4x1xf32>
    %531 = arith.divf %529, %530 : vector<4x1xf32>
    %532 = vector.broadcast %531 : vector<4x1xf32> to vector<4x64xf32>
    %533 = arith.subf %525, %532 : vector<4x64xf32>
    %534 = arith.mulf %533, %533 : vector<4x64xf32>
    %cst_238 = arith.constant dense<0.000000e+00> : vector<4xf32>
    %535 = vector.multi_reduction <add>, %534, %cst_238 [1] : vector<4x64xf32> to vector<4xf32>
    %536 = vector.shape_cast %535 : vector<4xf32> to vector<4x1xf32>
    %cst_239 = arith.constant 6.400000e+01 : f32
    %537 = vector.broadcast %cst_239 : f32 to vector<4x1xf32>
    %538 = arith.divf %536, %537 : vector<4x1xf32>
    %539 = vector.broadcast %531 : vector<4x1xf32> to vector<4x64xf32>
    %540 = arith.subf %525, %539 : vector<4x64xf32>
    %cst_240 = arith.constant 9.99999974E-6 : f32
    %541 = vector.broadcast %cst_240 : f32 to vector<4x1xf32>
    %542 = arith.addf %538, %541 : vector<4x1xf32>
    %543 = math.rsqrt %542 : vector<4x1xf32>
    %544 = vector.broadcast %543 : vector<4x1xf32> to vector<4x64xf32>
    %545 = arith.mulf %540, %544 : vector<4x64xf32>
    %546 = vector.broadcast %526 : vector<1x64xf32> to vector<4x64xf32>
    %547 = arith.mulf %545, %546 : vector<4x64xf32>
    %548 = vector.broadcast %527 : vector<1x64xf32> to vector<4x64xf32>
    %549 = arith.addf %547, %548 : vector<4x64xf32>
    %c0_241 = arith.constant 0 : index
    %c0_242 = arith.constant 0 : index
    %550 = vector.load %arg8[%c0_241, %c0_242] : memref<64x128xbf16, #tpu.memory_space<vmem>>, vector<64x128xbf16>
    %551 = arith.truncf %549 : vector<4x64xf32> to vector<4x64xbf16>
    %cst_243 = arith.constant dense<0.000000e+00> : vector<4x128xf32>
    %552 = tpu.matmul %551, %550, %cst_243 {dimension_numbers = #tpu.dot_dimension_numbers<[1], [0], [0], [1], [0, 0, 1, 1], [], []>} : vector<4x64xbf16>, vector<64x128xbf16>, vector<4x128xf32> -> vector<4x128xf32>
    %c44 = arith.constant 44 : index
    %c0_244 = arith.constant 0 : index
    %553 = vector.load %arg10[%c44, %c0_244] : memref<48x128xf32, #tpu.memory_space<vmem>>, vector<1x128xf32>
    %554 = vector.broadcast %553 : vector<1x128xf32> to vector<4x128xf32>
    %555 = arith.addf %552, %554 : vector<4x128xf32>
    %cst_245 = arith.constant 0.000000e+00 : f32
    %556 = vector.broadcast %cst_245 : f32 to vector<4x128xf32>
    %557 = arith.maximumf %555, %556 : vector<4x128xf32>
    %c0_246 = arith.constant 0 : index
    %c0_247 = arith.constant 0 : index
    %558 = vector.load %arg9[%c0_246, %c0_247] : memref<128x64xbf16, #tpu.memory_space<vmem>>, vector<128x64xbf16>
    %559 = arith.truncf %557 : vector<4x128xf32> to vector<4x128xbf16>
    %cst_248 = arith.constant dense<0.000000e+00> : vector<4x64xf32>
    %560 = tpu.matmul %559, %558, %cst_248 {dimension_numbers = #tpu.dot_dimension_numbers<[1], [0], [0], [1], [0, 0, 1, 1], [], []>} : vector<4x128xbf16>, vector<128x64xbf16>, vector<4x64xf32> -> vector<4x64xf32>
    %c45 = arith.constant 45 : index
    %c0_249 = arith.constant 0 : index
    %561 = vector.load %arg10[%c45, %c0_249] : memref<48x128xf32, #tpu.memory_space<vmem>>, vector<1x64xf32>
    %562 = vector.broadcast %561 : vector<1x64xf32> to vector<4x64xf32>
    %563 = arith.addf %560, %562 : vector<4x64xf32>
    %564 = tpu.concatenate %525, %563 in 1 : vector<4x64xf32>, vector<4x64xf32> -> vector<4x128xf32>
    %c0_250 = arith.constant 0 : index
    %c0_251 = arith.constant 0 : index
    %c0_252 = arith.constant 0 : index
    %565 = vector.load %arg11[%c0_250, %c0_251, %c0_252] : memref<1x4x128xf32, #tpu.memory_space<vmem>>, vector<1x4x128xf32>
    %566 = vector.shape_cast %565 : vector<1x4x128xf32> to vector<4x128xf32>
    %567 = vector.shape_cast %564 : vector<4x128xf32> to vector<1x4x128xf32>
    tpu.vector_store %arg11[%c0_250, %c0_251, %c0_252], %567 {strides = array<i32>} : memref<1x4x128xf32, #tpu.memory_space<vmem>>, vector<1x4x128xf32>,
    return
  }
  func.func @transform_0(%arg0: i32) -> (i32, i32) {
    %c0_i32 = arith.constant 0 : i32
    %c0_i32_0 = arith.constant 0 : i32
    return %arg0, %c0_i32 : i32, i32
  }
  func.func @transform_1(%arg0: i32) -> (i32, i32) {
    %c0_i32 = arith.constant 0 : i32
    %c0_i32_0 = arith.constant 0 : i32
    %c0_i32_1 = arith.constant 0 : i32
    return %c0_i32, %c0_i32_0 : i32, i32
  }
  func.func @transform_2(%arg0: i32) -> (i32, i32) {
    %c0_i32 = arith.constant 0 : i32
    %c0_i32_0 = arith.constant 0 : i32
    %c0_i32_1 = arith.constant 0 : i32
    return %c0_i32, %c0_i32_0 : i32, i32
  }
  func.func @transform_3(%arg0: i32) -> (i32, i32, i32) {
    %c0_i32 = arith.constant 0 : i32
    %c0_i32_0 = arith.constant 0 : i32
    %c0_i32_1 = arith.constant 0 : i32
    %c0_i32_2 = arith.constant 0 : i32
    return %c0_i32, %c0_i32_0, %c0_i32_1 : i32, i32, i32
  }
  func.func @transform_4(%arg0: i32) -> (i32, i32, i32) {
    %c0_i32 = arith.constant 0 : i32
    %c0_i32_0 = arith.constant 0 : i32
    %c0_i32_1 = arith.constant 0 : i32
    %c0_i32_2 = arith.constant 0 : i32
    return %c0_i32, %c0_i32_0, %c0_i32_1 : i32, i32, i32
  }
  func.func @transform_5(%arg0: i32) -> (i32, i32, i32) {
    %c0_i32 = arith.constant 0 : i32
    %c0_i32_0 = arith.constant 0 : i32
    %c0_i32_1 = arith.constant 0 : i32
    %c0_i32_2 = arith.constant 0 : i32
    return %c0_i32, %c0_i32_0, %c0_i32_1 : i32, i32, i32
  }
  func.func @transform_6(%arg0: i32) -> (i32, i32, i32) {
    %c0_i32 = arith.constant 0 : i32
    %c0_i32_0 = arith.constant 0 : i32
    %c0_i32_1 = arith.constant 0 : i32
    %c0_i32_2 = arith.constant 0 : i32
    return %c0_i32, %c0_i32_0, %c0_i32_1 : i32, i32, i32
  }
  func.func @transform_7(%arg0: i32) -> (i32, i32) {
    %c0_i32 = arith.constant 0 : i32
    %c0_i32_0 = arith.constant 0 : i32
    %c0_i32_1 = arith.constant 0 : i32
    return %c0_i32, %c0_i32_0 : i32, i32
  }
  func.func @transform_8(%arg0: i32) -> (i32, i32) {
    %c0_i32 = arith.constant 0 : i32
    %c0_i32_0 = arith.constant 0 : i32
    %c0_i32_1 = arith.constant 0 : i32
    return %c0_i32, %c0_i32_0 : i32, i32
  }
  func.func @transform_9(%arg0: i32) -> (i32, i32) {
    %c0_i32 = arith.constant 0 : i32
    %c0_i32_0 = arith.constant 0 : i32
    %c0_i32_1 = arith.constant 0 : i32
    return %c0_i32, %c0_i32_0 : i32, i32
  }
  func.func @transform_10(%arg0: i32) -> (i32, i32, i32) {
    %c0_i32 = arith.constant 0 : i32
    %c0_i32_0 = arith.constant 0 : i32
    %c0_i32_1 = arith.constant 0 : i32
    return %arg0, %c0_i32, %c0_i32_0 : i32, i32, i32
  }
}

</mosaic_0001>

<bundles_post_ra>
// kernel: vit_dann_forward.1
= control target key start
LH: loop header
LB: loop body
LE: loop exit
PB: predicated region body
PF: predicated region fallthrough
CT: control target
= control target key end

     0   :  { %s10207_s13 = smov 0   ;;  %s12131_s0 = inlined_call_operand.vmem [shape: f32[128,13], index: 0, kind: input, shape index: {}]   ;;  %s12132_s1 = inlined_call_operand.vmem [shape: f32[64,64], index: 1, kind: input, shape index: {}]   ;;  %s12133_s2 = inlined_call_operand.vmem [shape: bf16[13,64], index: 2, kind: input, shape index: {}]   ;;  %s12134_s3 = inlined_call_operand.vmem [shape: bf16[18,64,32], index: 3, kind: input, shape index: {}]   ;;  %s12135_s4 = inlined_call_operand.vmem [shape: bf16[6,32,64], index: 4, kind: input, shape index: {}]   ;;  %s12136_s5 = inlined_call_operand.vmem [shape: bf16[3,64,128], index: 5, kind: input, shape index: {}]   ;;  %s12137_s6 = inlined_call_operand.vmem [shape: bf16[3,128,64], index: 6, kind: input, shape index: {}]   ;;  %s12138_s7 = inlined_call_operand.vmem [shape: bf16[64,128], index: 7, kind: input, shape index: {}]   ;;  %s12139_s8 = inlined_call_operand.vmem [shape: bf16[128,64], index: 8, kind: input, shape index: {}]   ;;  %s12140_s9 = inlined_call_operand.vmem [shape: f32[48,128], index: 9, kind: input, shape index: {}]   ;;  %s12141_s10 = inlined_call_operand.vmem [shape: f32[2,4,128], index: 10, kind: output, shape index: {}]  }
   0x1 LB: > { %s10213_s14 = sadd.s32 4294967295, %s10146_s13   ;;  %p7926_p0 = scmp.ge.s32.totalorder %s10146_s13, 1  ;;  %s10146_s13 = sphi %s10207_s13, %s20_s13  }
   0x2   : > { %p313_p1 = scmp.lt.s32.totalorder %s10146_s13, 3 }
   0x4   : > { %p314_p2 = pnand %p7926_p0, %p313_p1 }
   0x5   : > { %v9701_v0 = vld [vmem:[%s12133_s2] sm:$0x7f] (!%p314_p2)   ;;  %vm398_vm0 = vcmask (!%p314_p2), 1045504   ;;  %vm399_vm1 = vcmask (!%p314_p2), 1046528   ;;  %s7927_s17 = sshll.u32 (!%p314_p2), %s10213_s14, 3  ;;  %v10148_v1 = vmov (!%p314_p2), 65535  }
   0x6   : > { %317 = sbr.rel (%p314_p2) target bundleno = 11303 (0x2c27), region = 60  ;;  %v400_v2 = vsel (!%p314_p2), %vm398_vm0, 4294967295, %v10148_v1  ;;  %p351_p3 = scmp.lt.s32.totalorder (!%p314_p2), %s7927_s17, 15  ;;  %v9703_v4 = vld [vmem:[%s12134_s3 + $0x40] sm:$0xff] (!%p314_p2)   ;;  %v9705_v7 = vld [vmem:[%s12134_s3 + $0x48] sm:$0xff] (!%p314_p2)   ;;  %vm385_vm2 = vcmask (!%p314_p2), 105472  }
   0x7   : > { %v401_v3 = vsel (!%p314_p2), %vm399_vm1, %v400_v2, 0  ;;  %v9702_v6 = vld [vmem:[%s12134_s3] sm:$0xff] (!%p314_p2)   ;;  %8857 = vmatprep.subr.bf16.mxu0 (!%p314_p2), %v9703_v4  ;;  %v9704_v17 = vld [vmem:[%s12134_s3 + $0x8] sm:$0xff] (!%p314_p2)   ;;  %v9706_v21 = vld [vmem:[%s12134_s3 + $0x10] sm:$0xff] (!%p314_p2)   ;;  %vm546_vm3 = vcmask (!%p314_p2), 523264   ;;  %v10149_v2 = vmov (!%p314_p2), 0.0  }
   0x8   : > { %v403_v5 = vand.u32 (!%p314_p2), %v9701_v0, %v401_v3  ;;  %8858 = vmatpush3.bf16.msra.mxu0 (!%p314_p2), %v9703_v4  ;;  %v9707_v22 = vld [vmem:[%s12134_s3 + $0x50] sm:$0xff] (!%p314_p2)   ;;  %v9708_v23 = vld [vmem:[%s12134_s3 + $0x18] sm:$0xff] (!%p314_p2)   ;;  %v9710_v25 = vld [vmem:[%s12134_s3 + $0x80] sm:$0xff] (!%p314_p2)   ;;  %vm10150_vm4 = vmmov (!%p314_p2), 0   ;;  %vm820_vm5 = vcmask (!%p314_p2), 261120   ;;  %vm1009_vm6 = vcmask (!%p314_p2), 130048  }
   0x9   : > { %8859 = vmatprep.subr.bf16.mxu0 (!%p314_p2), %v9705_v7  ;;  %v9709_v24 = vld [vmem:[%s12134_s3 + $0x58] sm:$0xff] (!%p314_p2)   ;;  %v7930_v26 = vld [vmem:[%s12140_s9 + $0x27] ss:$0 sm:$0xff] (!%p314_p2)  ;;  %v471_v36 = vld [vmem:[%s12132_s1 + $0x8] sm:$0xff] (!%p314_p2)  ;;  %vm7639_vm7 = vcmask (!%p314_p2), 1040384   ;;  %vm7641_vm8 = vcmask (!%p314_p2), 1041408  }
   0xa   : > { %8831 = vmatprep.subr.bf16.mxu1 (!%p314_p2), %v403_v5  ;;  %v473_v31 = vld [vmem:[%s12132_s1 + $0x18] sm:$0xff] (!%p314_p2)  ;;  %v470_v33 = vld [vmem:[%s12132_s1] sm:$0xff] (!%p314_p2)  ;;  %v472_v37 = vld [vmem:[%s12132_s1 + $0x10] sm:$0xff] (!%p314_p2)  ;;  %vm7643_vm9 = vcmask (!%p314_p2), 1042432   ;;  %vm7647_vm10 = vcmask (!%p314_p2), 519168   ;;  %s10151_s16 = smov (!%p314_p2), 64  }
   0xb   : > { %8832 = vmatpush3.bf16.msra.mxu1 (!%p314_p2), %v403_v5  ;;  %v476_v45 = vld [vmem:[%s12132_s1 + $0x30] sm:$0xff] (!%p314_p2)  ;;  %v474_v49 = vld [vmem:[%s12132_s1 + $0x20] sm:$0xff] (!%p314_p2)  ;;  %v9711_v50 = vld [vmem:[%s12134_s3 + $0x88] sm:$0xff] (!%p314_p2)   ;;  %p356_p4 = scmp.lt.s32.totalorder (!%p314_p2), %s10213_s14, 1 }
   0xc   : > { %8841 = vmatprep.subr.bf16.mxu1 (!%p314_p2), %v9702_v6  ;;  %8860 = vmatpush3.bf16.msra.mxu0 (!%p314_p2), %v9705_v7  ;;  %v477_v53 = vld [vmem:[%s12132_s1 + $0x38] sm:$0xff] (!%p314_p2)  ;;  %v475_v57 = vld [vmem:[%s12132_s1 + $0x28] sm:$0xff] (!%p314_p2)  ;;  %v9712_v61 = vld [vmem:[%s12134_s3 + $0x90] sm:$0xff] (!%p314_p2)  }
   0xd   : > { %s12143_s17 = smov (!%p351_p3, %s7927_s17), 15  ;;  %8861 = vmatprep.subr.bf16.mxu0 %v9707_v22  ;;  %v9713_v1 = vld [vmem:[%s12134_s3 + $0x98] sm:$0xff]   ;;  %v7952_v4 = vld [vmem:[%s12140_s9] ss:$0 sm:$0xff]  ;;  %s12145_s14 = smov (!%p356_p4, %s10213_s14), 1 }
   0xe   : > { %s7928_s24 = sshll.u32 %s12143_s17, 3  ;;  %s7929_s17 = sshll.u32 %s12145_s14, 2 }
   0xf   : > { %s354_s27 = scalar_lea.vmem %s12131_s0, %s7928_s24  ;;  %s359_s20 = scalar_lea.vmem %s12141_s10, %s7929_s17 }
  0x10   : > { %v361_v8 = vld [vmem:[%s354_s27] sm:$0xff]  ;;  %v362_v9 = vld [vmem:[%s354_s27 + $0x8] sm:$0xff]  ;;  %v363_v10 = vld [vmem:[%s354_s27 + $0x10] sm:$0xff]  ;;  %8862 = vmatpush3.bf16.msra.mxu0 %v9707_v22 }
  0x11   : > { %v371_v11 = vpack.c.bf16 %v362_v9, %v361_v8  ;;  %v364_v12 = vld [vmem:[%s354_s27 + $0x18] sm:$0xff]  ;;  %v365_v13 = vld [vmem:[%s354_s27 + $0x20] sm:$0xff]  ;;  %v366_v14 = vld [vmem:[%s354_s27 + $0x28] sm:$0xff]  ;;  %8863 = vmatprep.subr.bf16.mxu0 %v9709_v24 }
  0x12   : > { %v372_v15 = vpack.c.bf16 %v364_v12, %v363_v10  ;;  %v373_v16 = vpack.c.bf16 %v366_v14, %v365_v13  ;;  %v367_v18 = vld [vmem:[%s354_s27 + $0x30] sm:$0xff]  ;;  %v368_v19 = vld [vmem:[%s354_s27 + $0x38] sm:$0xff] }
  0x13   : > { %8833 = vmatprep.mubr.msk.bf16.mxu1 %vm385_vm2, %v371_v11  ;;  %v374_v20 = vpack.c.bf16 %v368_v19, %v367_v18 }
  0x14   : > { %8834 = vmatmul.mubr.msk.bf16.vlgmr.msra.gmra.mrb[0].mxu1 %vm385_vm2, %v372_v15  ;;  %8864 = vmatpush3.bf16.msra.mxu0 %v9709_v24 }
  0x15   : > { %8837 = vmatprep.mubr.msk.bf16.mxu1 %vm385_vm2, %v373_v16  ;;  %8842 = vmatpush3.bf16.msra.mxu1 %v9702_v6  ;;  %v7961_v6 = vld [vmem:[%s12140_s9 + $0x2] ss:$0 sm:$0xff] }
  0x16   : > { %8843 = vmatprep.subr.bf16.mxu1 %v9704_v17  ;;  %8889 = vmatprep.subr.bf16.mxu0 %v10149_v2 }
  0x19   : > { %8844 = vmatpush3.bf16.msra.mxu1 %v9704_v17 }
  0x1a   : > { %8845 = vmatprep.subr.bf16.mxu1 %v9706_v21 }
  0x1c   : > { %8838 = vmatmul.mubr.msk.bf16.gmra.mrb[4].mxu1 %vm385_vm2, %v374_v20 }
  0x1d   : > { %8846 = vmatpush3.bf16.msra.mxu1 %v9706_v21 }
  0x1e   : > { %8847 = vmatprep.subr.bf16.mxu1 %v9708_v23 }
  0x21   : > { %8848 = vmatpush3.bf16.msra.mxu1 %v9708_v23 }
  0x22   : > { %8873 = vmatprep.subr.bf16.mxu1 %v9710_v25 }
  0xe7   : > { %v8835_v27 = vpop.f32.mrb[0].mxu1 }
  0xe8   : > { %v439_v28 = vpop.f32.mrb[1].mxu1  ;;  %v448_v32 = vadd.f32 %v8835_v27, %v7930_v26 }
  0xe9   : > { %v440_v29 = vadd.f32 %v7930_v26, %v439_v28  ;;  %v8836_v30 = vpop.f32.mrb[2].mxu1 }
  0xea   : > { %v451_v34 = vadd.f32 %v8836_v30, %v7930_v26  ;;  %v442_v35 = vpop.f32.mrb[3].mxu1  ;;  %v10276_v42 = vadd.f32 %v472_v37, %v448_v32 }
  0xeb   : > { %v443_v38 = vadd.f32 %v7930_v26, %v442_v35  ;;  %v10272_v40 = vadd.f32 %v470_v33, %v440_v29 }
  0xec   : > { %v10270_v39 = vadd.f32 %v473_v31, %v451_v34 }
  0xed   : > { %v10274_v41 = vadd.f32 %v471_v36, %v443_v38 }
  0xee   : > { %v10287_v46 = vpack.c.bf16 %v10270_v39, %v10276_v42 }
  0xef   : > { %v10280_v43 = vpack.c.bf16 %v10274_v41, %v10272_v40  ;;  %v8839_v44 = vpop.f32.mrb[4].mxu1 }
  0xf0   : > { %v464_v47 = vadd.f32 %v8839_v44, %v7930_v26  ;;  %v455_v48 = vpop.f32.mrb[5].mxu1 }
  0xf1   : > { %v456_v51 = vadd.f32 %v7930_v26, %v455_v48  ;;  %v8840_v52 = vpop.f32.mrb[6].mxu1  ;;  %8849 = vmatprep.mubr.msk.bf16.mxu1 %vm546_vm3, %v10280_v43  ;;  %8865 = vmatprep.mubr.msk.bf16.mxu0 %vm546_vm3, %v10280_v43 }
  0xf2   : > { %v10302_v54 = vadd.f32 %v476_v45, %v464_v47  ;;  %v467_v55 = vadd.f32 %v8840_v52, %v7930_v26  ;;  %v458_v56 = vpop.f32.mrb[7].mxu1  ;;  %8850 = vmatmul.mubr.msk.bf16.vlgmr.msra.gmra.mrb[8].mxu1 %vm546_vm3, %v10287_v46  ;;  %8866 = vmatmul.mubr.msk.bf16.vlgmr.msra.gmra.mrb[0].mxu0 %vm546_vm3, %v10287_v46 }
  0xf3   : > { %v10311_v58 = vadd.f32 %v474_v49, %v456_v51  ;;  %v459_v59 = vadd.f32 %v7930_v26, %v458_v56  ;;  %8874 = vmatpush3.bf16.msra.mxu1 %v9710_v25 }
  0xf4   : > { %v10313_v60 = vadd.f32 %v477_v53, %v467_v55  ;;  %8875 = vmatprep.subr.bf16.mxu1 %v9711_v50  ;;  %v7970_v53 = vld [vmem:[%s12140_s9 + $0x4] ss:$0 sm:$0xff] }
  0xf5   : > { %v10318_v62 = vadd.f32 %v475_v57, %v459_v59 }
  0xf6   : > { %v10322_v63 = vpack.c.bf16 %v10313_v60, %v10302_v54 }
  0xf7   : > { %v10326_v0 = vpack.c.bf16 %v10318_v62, %v10311_v58  ;;  %8876 = vmatpush3.bf16.msra.mxu1 %v9711_v50 }
  0xf8   : > { %8877 = vmatprep.subr.bf16.mxu1 %v9712_v61 }
  0xf9   : > { %8853 = vmatprep.mubr.msk.bf16.mxu1 %vm546_vm3, %v10326_v0  ;;  %8869 = vmatprep.mubr.msk.bf16.mxu0 %vm546_vm3, %v10326_v0 }
  0xfa   : > { %8854 = vmatmul.mubr.msk.bf16.gmra.mrb[12].mxu1 %vm546_vm3, %v10322_v63  ;;  %8870 = vmatmul.mubr.msk.bf16.gmra.mrb[4].mxu0 %vm546_vm3, %v10322_v63 }
  0xfb   : > { %8878 = vmatpush3.bf16.msra.mxu1 %v9712_v61  ;;  %8881 = vmatprep.mubr.msk.bf16.mxu1 %vm546_vm3, %v10280_v43 }
  0xfc   : > { %8879 = vmatprep.subr.bf16.mxu1 %v9713_v1  ;;  %8891 = vmatprep.mubr.msk.bf16.mxu0 %vm10150_vm4, %v10149_v2 }
  0xff   : > { %8880 = vmatpush3.bf16.msra.mxu1 %v9713_v1 }
 0x100   : > { %8901 = vmatprep.subr.bf16.mxu1 %v10149_v2 }
 0x102   : > { %8882 = vmatmul.mubr.msk.bf16.vlgmr.msra.gmra.mrb[16].mxu1 %vm546_vm3, %v10287_v46 }
 0x103   : > { %8885 = vmatprep.mubr.msk.bf16.mxu1 %vm546_vm3, %v10326_v0 }
 0x10a   : > { %8886 = vmatmul.mubr.msk.bf16.gmra.mrb[20].mxu1 %vm546_vm3, %v10322_v63 }
 0x10b   : > { %8903 = vmatprep.mubr.msk.bf16.mxu1 %vm10150_vm4, %v10149_v2 }
 0x1c5   : > { %v8851_v3 = vpop.f32.mrb[8].mxu1  ;;  %v8867_v5 = vpop.f32.mrb[0].mxu0 }
 0x1c6   : > { %v593_v7 = vpop.f32.mrb[9].mxu1  ;;  %v687_v8 = vpop.f32.mrb[1].mxu0  ;;  %v602_v11 = vadd.f32 %v8851_v3, %v7952_v4  ;;  %v696_v12 = vadd.f32 %v8867_v5, %v7961_v6 }
 0x1c7   : > { %v8852_v9 = vpop.f32.mrb[10].mxu1  ;;  %v8868_v10 = vpop.f32.mrb[2].mxu0  ;;  %v594_v17 = vadd.f32 %v7952_v4, %v593_v7  ;;  %v688_v18 = vadd.f32 %v7961_v6, %v687_v8 }
 0x1c8   : > { %v605_v13 = vadd.f32 %v8852_v9, %v7952_v4  ;;  %v699_v14 = vadd.f32 %v8868_v10, %v7961_v6  ;;  %v596_v15 = vpop.f32.mrb[11].mxu1  ;;  %v690_v16 = vpop.f32.mrb[3].mxu0 }
 0x1c9   : > { %v597_v19 = vadd.f32 %v7952_v4, %v596_v15  ;;  %v691_v20 = vadd.f32 %v7961_v6, %v690_v16 }
 0x1ca   : > { %v813_v21 = vpack.c.bf16 %v605_v13, %v602_v11  ;;  %v817_v22 = vpack.c.bf16 %v699_v14, %v696_v12 }
 0x1cb   : > { %v812_v23 = vpack.c.bf16 %v597_v19, %v594_v17  ;;  %v816_v24 = vpack.c.bf16 %v691_v20, %v688_v18 }
 0x1cc   : > { %v872_v55 = vsel %vm820_vm5, %v817_v22, 0 }
 0x1cd   : > { %v8855_v25 = vpop.f32.mrb[12].mxu1  ;;  %v8871_v26 = vpop.f32.mrb[4].mxu0  ;;  %v825_v27 = vsel %vm820_vm5, %v816_v24, 0 }
 0x1ce   : > { %v618_v28 = vadd.f32 %v8855_v25, %v7952_v4  ;;  %v712_v29 = vadd.f32 %v8871_v26, %v7961_v6  ;;  %v609_v30 = vpop.f32.mrb[13].mxu1  ;;  %v703_v31 = vpop.f32.mrb[5].mxu0  ;;  %8890 = vmatpush3.bf16.xpose.msra.mxu0 %v825_v27 }
 0x1cf   : > { %v610_v32 = vadd.f32 %v7952_v4, %v609_v30  ;;  %v704_v33 = vadd.f32 %v7961_v6, %v703_v31  ;;  %v8856_v34 = vpop.f32.mrb[14].mxu1  ;;  %v8872_v35 = vpop.f32.mrb[6].mxu0  ;;  %8895 = vmatprep.subr.bf16.mxu0 %v10149_v2 }
 0x1d0   : > { %v621_v36 = vadd.f32 %v8856_v34, %v7952_v4  ;;  %v715_v37 = vadd.f32 %v8872_v35, %v7961_v6  ;;  %v612_v38 = vpop.f32.mrb[15].mxu1  ;;  %v706_v44 = vpop.f32.mrb[7].mxu0 }
 0x1d1   : > { %v613_v45 = vadd.f32 %v7952_v4, %v612_v38  ;;  %v707_v47 = vadd.f32 %v7961_v6, %v706_v44 }
 0x1d2   : > { %v815_v48 = vpack.c.bf16 %v621_v36, %v618_v28  ;;  %v819_v49 = vpack.c.bf16 %v715_v37, %v712_v29 }
 0x1d3   : > { %v814_v50 = vpack.c.bf16 %v613_v45, %v610_v32  ;;  %v818_v51 = vpack.c.bf16 %v707_v47, %v704_v33 }
 0x1d4   : > { %v966_v9 = vsel %vm820_vm5, %v819_v49, 0 }
 0x1d5   : > { %v8883_v52 = vpop.f32.mrb[16].mxu1  ;;  %8892 = vmatmul.mubr.msk.bf16.vlgmr.msra.gmra.mrb[8].mxu0 %vm820_vm5, %v812_v23  ;;  %v919_v56 = vsel %vm820_vm5, %v818_v51, 0 }
 0x1d6   : > { %v781_v57 = vpop.f32.mrb[17].mxu1  ;;  %8896 = vmatpush3.bf16.xpose.msra.mxu0 %v872_v55  ;;  %8902 = vmatpush3.bf16.xpose.msra.mxu1 %v919_v56  ;;  %v790_v61 = vadd.f32 %v8883_v52, %v7970_v53 }
 0x1d7   : > { %v8884_v59 = vpop.f32.mrb[18].mxu1  ;;  %8897 = vmatprep.mubr.msk.bf16.mxu0 %vm10150_vm4, %v10149_v2  ;;  %8907 = vmatprep.subr.bf16.mxu0 %v10149_v2  ;;  %v782_v4 = vadd.f32 %v7970_v53, %v781_v57 }
 0x1d8   : > { %v793_v1 = vadd.f32 %v8884_v59, %v7970_v53  ;;  %v784_v3 = vpop.f32.mrb[19].mxu1  ;;  %8913 = vmatprep.subr.bf16.mxu1 %v10149_v2 }
 0x1d9   : > { %v785_v5 = vadd.f32 %v7970_v53, %v784_v3 }
 0x1da   : > { %v1103_v6 = vpack.c.bf16 %v793_v1, %v790_v61 }
 0x1db   : > { %v1102_v7 = vpack.c.bf16 %v785_v5, %v782_v4 }
 0x1dd   : > { %v8887_v8 = vpop.f32.mrb[20].mxu1  ;;  %8898 = vmatmul.mubr.msk.bf16.vlgmr.msra.gmra.mrb[12].mxu0 %vm820_vm5, %v813_v21  ;;  %8904 = vmatmul.mubr.msk.bf16.vlgmr.msra.gmra.mrb[24].mxu1 %vm820_vm5, %v814_v50 }
 0x1de   : > { %v10374_v10 = vadd.f32 %v8887_v8, %v7970_v53  ;;  %v797_v11 = vpop.f32.mrb[21].mxu1  ;;  %8908 = vmatpush3.bf16.xpose.msra.mxu0 %v966_v9  ;;  %8914 = vmatpush3.bf16.msra.mxu1 %v1102_v7 }
 0x1df   : > { %v10376_v12 = vadd.f32 %v7970_v53, %v797_v11  ;;  %v8888_v13 = vpop.f32.mrb[22].mxu1  ;;  %8909 = vmatprep.mubr.msk.bf16.mxu0 %vm10150_vm4, %v10149_v2  ;;  %8919 = vmatprep.subr.bf16.mxu0 %v10149_v2 }
 0x1e0   : > { %v10381_v14 = vadd.f32 %v8888_v13, %v7970_v53  ;;  %v800_v15 = vpop.f32.mrb[23].mxu1  ;;  %8915 = vmatprep.mubr.msk.bf16.mxu1 %vm10150_vm4, %v10149_v2  ;;  %8925 = vmatprep.subr.bf16.mxu1 %v10149_v2 }
 0x1e1   : > { %v10386_v16 = vadd.f32 %v7970_v53, %v800_v15 }
 0x1e2   : > { %v1105_v17 = vpack.c.bf16 %v10381_v14, %v10374_v10  ;;  %v9716_v10 = vld [vmem:[%s12134_s3 + $0x30] sm:$0xff]   ;;  %v9717_v14 = vld [vmem:[%s12134_s3 + $0x38] sm:$0xff]  }
 0x1e3   : > { %v1104_v18 = vpack.c.bf16 %v10386_v16, %v10376_v12 }
 0x1e5   : > { %8910 = vmatmul.mubr.msk.bf16.vlgmr.msra.gmra.mrb[16].mxu0 %vm820_vm5, %v815_v48 }
 0x1e6   : > { %8920 = vmatpush3.bf16.msra.mxu0 %v1103_v6  ;;  %8921 = vmatprep.mubr.msk.bf16.mxu0 %vm10150_vm4, %v10149_v2 }
 0x1e7   : > { %8931 = vmatprep.subr.bf16.mxu0 %v10149_v2 }
 0x2a8   : > { %v861_v19 = vpop.f32.mrb[8].mxu0 }
 0x2a9   : > { %v8893_v20 = vpop.f32.mrb[9].mxu0  ;;  %v1010_v21 = vsel %vm1009_vm6, %v861_v19, -inf }
 0x2aa   : > { %1011 = vmax.xlane.f32.xlu0 %v1010_v21  ;;  %v864_v22 = vpop.f32.mrb[10].mxu0 }
 0x2ab   : > { %v8894_v23 = vpop.f32.mrb[11].mxu0  ;;  %v1013_v24 = vsel %vm1009_vm6, %v864_v22, -inf }
 0x2ae   : > { %1014 = vmax.xlane.f32.xlu0 %v1013_v24 }
 0x2b0   : > { %v908_v25 = vpop.f32.mrb[12].mxu0  ;;  %v955_v26 = vpop.f32.mrb[24].mxu1 }
 0x2b1   : > { %v8899_v27 = vpop.f32.mrb[13].mxu0  ;;  %v8905_v28 = vpop.f32.mrb[25].mxu1  ;;  %v1022_v29 = vsel %vm1009_vm6, %v955_v26, -inf  ;;  %v1016_v30 = vsel %vm1009_vm6, %v908_v25, -inf }
 0x2b2   : > { %v958_v31 = vpop.f32.mrb[26].mxu1  ;;  %1023 = vmax.xlane.f32.xlu0 %v1022_v29  ;;  %1017 = vmax.xlane.f32.xlu1 %v1016_v30  ;;  %v911_v32 = vpop.f32.mrb[14].mxu0 }
 0x2b3   : > { %v8900_v33 = vpop.f32.mrb[15].mxu0  ;;  %v8906_v34 = vpop.f32.mrb[27].mxu1  ;;  %v1019_v35 = vsel %vm1009_vm6, %v911_v32, -inf  ;;  %v1025_v38 = vsel %vm1009_vm6, %v958_v31, -inf }
 0x2b6   : > { %1020 = vmax.xlane.f32.xlu1 %v1019_v35 }
 0x2b8   : > { %v1002_v36 = vpop.f32.mrb[16].mxu0 }
 0x2b9   : > { %v8911_v37 = vpop.f32.mrb[17].mxu0  ;;  %v1028_v44 = vsel %vm1009_vm6, %v1002_v36, -inf }
 0x2ba   : > { %1026 = vmax.xlane.f32.xlu1 %v1025_v38  ;;  %1029 = vmax.xlane.f32.xlu0 %v1028_v44  ;;  %v1005_v45 = vpop.f32.mrb[18].mxu0 }
 0x2bb   : > { %v8912_v47 = vpop.f32.mrb[19].mxu0  ;;  %v1031_v48 = vsel %vm1009_vm6, %v1005_v45, -inf }
 0x2be   : > { %1032 = vmax.xlane.f32.xlu1 %v1031_v48 }
 0x337   : > { %v1012_v49 = vpop.xlane.xlu0 %1011 }
 0x338   : > { %v1034_v50 = vsub.f32 %v861_v19, %v1012_v49 }
 0x33a   : > { %v1042_v51 = vmul.f32 1.442695, %v1034_v50 }
 0x33b   : > { %v1015_v52 = vpop.xlane.xlu0 %1014 }
 0x33c   : > { %9834 = vpow2.f32 %v1042_v51  ;;  %v1035_v53 = vsub.f32 %v864_v22, %v1015_v52 }
 0x33e   : > { %v1044_v55 = vmul.f32 1.442695, %v1035_v53 }
 0x33f   : > { %v1024_v56 = vpop.xlane.xlu0 %1023  ;;  %v1018_v57 = vpop.xlane.xlu1 %1017 }
 0x340   : > { %9836 = vpow2.f32 %v1044_v55  ;;  %v1038_v59 = vsub.f32 %v955_v26, %v1024_v56  ;;  %v1036_v61 = vsub.f32 %v908_v25, %v1018_v57 }
 0x342   : > { %v1046_v1 = vmul.f32 1.442695, %v1036_v61  ;;  %v1050_v3 = vmul.f32 1.442695, %v1038_v59 }
 0x343   : > { %v1021_v4 = vpop.xlane.xlu1 %1020 }
 0x344   : > { %v1037_v5 = vsub.f32 %v911_v32, %v1021_v4  ;;  %9838 = vpow2.f32 %v1046_v1 }
 0x345   : > { %9840 = vpow2.f32 %v1050_v3 }
 0x346   : > { %v9835_v6 = vpop.eup %9834  ;;  %v1048_v7 = vmul.f32 1.442695, %v1037_v5 }
 0x347   : > { %v1027_v8 = vpop.xlane.xlu1 %1026  ;;  %v1030_v9 = vpop.xlane.xlu0 %1029  ;;  %v1058_v11 = vsel %vm1009_vm6, %v9835_v6, 0.0 }
 0x348   : > { %9842 = vpow2.f32 %v1048_v7  ;;  %v1039_v13 = vsub.f32 %v958_v31, %v1027_v8  ;;  %v1040_v15 = vsub.f32 %v1002_v36, %v1030_v9  ;;  %1059 = vadd.xlane.f32.xlu0 %v1058_v11 }
 0x34a   : > { %v9837_v19 = vpop.eup %9836  ;;  %v1052_v20 = vmul.f32 1.442695, %v1039_v13  ;;  %v1054_v21 = vmul.f32 1.442695, %v1040_v15 }
 0x34b   : > { %v1033_v22 = vpop.xlane.xlu1 %1032  ;;  %v1061_v23 = vsel %vm1009_vm6, %v9837_v19, 0.0 }
 0x34c   : > { %9844 = vpow2.f32 %v1052_v20  ;;  %v1041_v24 = vsub.f32 %v1005_v45, %v1033_v22  ;;  %1062 = vadd.xlane.f32.xlu1 %v1061_v23  ;;  %v9719_v20 = vld [vmem:[%s12134_s3 + $0xa8] sm:$0xff]   ;;  %v9721_v22 = vld [vmem:[%s12134_s3 + $0xb8] sm:$0xff]   ;;  %v9722_v23 = vld [vmem:[%s12135_s4] sm:$0xff]  }
 0x34d   : > { %9846 = vpow2.f32 %v1054_v21  ;;  %v9720_v21 = vld [vmem:[%s12134_s3 + $0xb0] sm:$0xff]  }
 0x34e   : > { %v1056_v25 = vmul.f32 1.442695, %v1041_v24  ;;  %v9839_v26 = vpop.eup %9838  ;;  %v9723_v24 = vld [vmem:[%s12135_s4 + $0x8] sm:$0xff]  }
 0x34f   : > { %v1064_v27 = vsel %vm1009_vm6, %v9839_v26, 0.0  ;;  %v9841_v28 = vpop.eup %9840 }
 0x350   : > { %9848 = vpow2.f32 %v1056_v25  ;;  %1065 = vadd.xlane.f32.xlu0 %v1064_v27  ;;  %v1070_v31 = vsel %vm1009_vm6, %v9841_v28, 0.0  ;;  %v9724_v25 = vld [vmem:[%s12134_s3 + $0x60] sm:$0xff]  }
 0x352   : > { %v9843_v29 = vpop.eup %9842 }
 0x353   : > { %v1067_v30 = vsel %vm1009_vm6, %v9843_v29, 0.0 }
 0x354   : > { %1068 = vadd.xlane.f32.xlu1 %v1067_v30  ;;  %1071 = vadd.xlane.f32.xlu0 %v1070_v31 }
 0x356   : > { %v9845_v32 = vpop.eup %9844 }
 0x357   : > { %v9847_v33 = vpop.eup %9846  ;;  %v1073_v34 = vsel %vm1009_vm6, %v9845_v32, 0.0 }
 0x358   : > { %v1076_v35 = vsel %vm1009_vm6, %v9847_v33, 0.0  ;;  %1074 = vadd.xlane.f32.xlu1 %v1073_v34 }
 0x359   : > { %1077 = vadd.xlane.f32.xlu0 %v1076_v35 }
 0x35a   : > { %v9849_v36 = vpop.eup %9848 }
 0x35b   : > { %v1079_v37 = vsel %vm1009_vm6, %v9849_v36, 0.0 }
 0x35c   : > { %1080 = vadd.xlane.f32.xlu1 %v1079_v37 }
 0x3d5   : > { %v1060_v38 = vpop.xlane.xlu0 %1059 }
 0x3d6   : > { %9850 = vrcp.f32 %v1060_v38 }
 0x3d9   : > { %v1063_v44 = vpop.xlane.xlu1 %1062 }
 0x3da   : > { %9852 = vrcp.f32 %v1063_v44 }
 0x3dd   : > { %v1066_v45 = vpop.xlane.xlu0 %1065 }
 0x3de   : > { %9854 = vrcp.f32 %v1066_v45 }
 0x3e0   : > { %v9851_v48 = vpop.eup %9850 }
 0x3e1   : > { %v1069_v47 = vpop.xlane.xlu1 %1068  ;;  %v1072_v49 = vpop.xlane.xlu0 %1071  ;;  %v1090_v51 = vmul.f32 %v9851_v48, %v9835_v6  ;;  %v9714_v6 = vld [vmem:[%s12134_s3 + $0x20] sm:$0xff]   ;;  %v9726_v48 = vld [vmem:[%s12134_s3 + $0x70] sm:$0xff]  }
 0x3e2   : > { %9856 = vrcp.f32 %v1069_v47 }
 0x3e3   : > { %9858 = vrcp.f32 %v1072_v49 }
 0x3e4   : > { %v9853_v50 = vpop.eup %9852 }
 0x3e5   : > { %v1091_v52 = vmul.f32 %v9853_v50, %v9837_v19  ;;  %v1075_v53 = vpop.xlane.xlu1 %1074  ;;  %v9715_v19 = vld [vmem:[%s12134_s3 + $0x28] sm:$0xff]  }
 0x3e6   : > { %v1078_v55 = vpop.xlane.xlu0 %1077  ;;  %9860 = vrcp.f32 %v1075_v53 }
 0x3e7   : > { %v1098_v56 = vpack.c.bf16 %v1091_v52, %v1090_v51  ;;  %9862 = vrcp.f32 %v1078_v55  ;;  %v9727_v55 = vld [vmem:[%s12134_s3 + $0x78] sm:$0xff]  }
 0x3e8   : > { %v9855_v59 = vpop.eup %9854 }
 0x3e9   : > { %8916 = vmatmul.mubr.msk.bf16.vlgmr.msra.gmra.mrb[28].mxu1 %vm1009_vm6, %v1098_v56  ;;  %v1081_v57 = vpop.xlane.xlu1 %1080  ;;  %v1092_v1 = vmul.f32 %v9855_v59, %v9839_v26 }
 0x3ea   : > { %8926 = vmatpush3.bf16.msra.mxu1 %v1104_v18  ;;  %9864 = vrcp.f32 %v1081_v57  ;;  %8927 = vmatprep.mubr.msk.bf16.mxu1 %vm10150_vm4, %v10149_v2  ;;  %v8018_v57 = vld [vmem:[%s12140_s9 + $0x1] ss:$0 sm:$0xff] }
 0x3eb   : > { %8937 = vmatprep.subr.bf16.mxu1 %v9722_v23 }
 0x3ec   : > { %v9857_v61 = vpop.eup %9856 }
 0x3ed   : > { %v1093_v3 = vmul.f32 %v9857_v61, %v9843_v29  ;;  %v9859_v4 = vpop.eup %9858 }
 0x3ee   : > { %v1094_v8 = vmul.f32 %v9859_v4, %v9841_v28 }
 0x3ef   : > { %v1099_v5 = vpack.c.bf16 %v1093_v3, %v1092_v1 }
 0x3f0   : > { %v9861_v7 = vpop.eup %9860 }
 0x3f1   : > { %v1095_v9 = vmul.f32 %v9861_v7, %v9845_v32  ;;  %8922 = vmatmul.mubr.msk.bf16.vlgmr.msra.gmra.mrb[20].mxu0 %vm1009_vm6, %v1099_v5  ;;  %v9863_v12 = vpop.eup %9862 }
 0x3f2   : > { %8932 = vmatpush3.bf16.msra.mxu0 %v1105_v17  ;;  %8933 = vmatprep.mubr.msk.bf16.mxu0 %vm10150_vm4, %v10149_v2  ;;  %v1096_v11 = vmul.f32 %v9863_v12, %v9847_v33  ;;  %v9718_v17 = vld [vmem:[%s12134_s3 + $0xa0] sm:$0xff]  }
 0x3f3   : > { %v1100_v16 = vpack.c.bf16 %v1095_v9, %v1094_v8  ;;  %8949 = vmatprep.subr.bf16.mxu0 %v9714_v6 }
 0x3f4   : > { %v9865_v18 = vpop.eup %9864 }
 0x3f5   : > { %v1097_v13 = vmul.f32 %v9865_v18, %v9849_v36  ;;  %8928 = vmatmul.mubr.msk.bf16.vlgmr.msra.gmra.mrb[32].mxu1 %vm1009_vm6, %v1100_v16  ;;  %v9725_v36 = vld [vmem:[%s12134_s3 + $0x68] sm:$0xff]  }
 0x3f6   : > { %8938 = vmatpush3.bf16.msra.mxu1 %v9722_v23 }
 0x3f7   : > { %v1101_v15 = vpack.c.bf16 %v1097_v13, %v1096_v11  ;;  %8939 = vmatprep.subr.bf16.mxu1 %v9723_v24 }
 0x3f9   : > { %8934 = vmatmul.mubr.msk.bf16.vlgmr.msra.gmra.mrb[24].mxu0 %vm1009_vm6, %v1101_v15 }
 0x3fa   : > { %8950 = vmatpush3.bf16.msra.mxu0 %v9714_v6  ;;  %8957 = vmatprep.mubr.msk.bf16.mxu0 %vm546_vm3, %v10280_v43 }
 0x3fb   : > { %8951 = vmatprep.subr.bf16.mxu0 %v9715_v19  ;;  %8940 = vmatpush3.bf16.msra.mxu1 %v9723_v24 }
 0x3fc   : > { %8965 = vmatprep.subr.bf16.mxu1 %v9724_v25 }
 0x3fe   : > { %8952 = vmatpush3.bf16.msra.mxu0 %v9715_v19 }
 0x3ff   : > { %8953 = vmatprep.subr.bf16.mxu0 %v9716_v10 }
 0x402   : > { %8954 = vmatpush3.bf16.msra.mxu0 %v9716_v10 }
 0x403   : > { %8955 = vmatprep.subr.bf16.mxu0 %v9717_v14 }
 0x406   : > { %8956 = vmatpush3.bf16.msra.mxu0 %v9717_v14 }
 0x407   : > { %8981 = vmatprep.subr.bf16.mxu0 %v9718_v17 }
 0x409   : > { %8958 = vmatmul.mubr.msk.bf16.vlgmr.msra.gmra.mrb[28].mxu0 %vm546_vm3, %v10287_v46 }
 0x40a   : > { %8961 = vmatprep.mubr.msk.bf16.mxu0 %vm546_vm3, %v10326_v0  ;;  %8982 = vmatpush3.bf16.msra.mxu0 %v9718_v17 }
 0x40b   : > { %8983 = vmatprep.subr.bf16.mxu0 %v9719_v20 }
 0x40e   : > { %8984 = vmatpush3.bf16.msra.mxu0 %v9719_v20 }
 0x40f   : > { %8985 = vmatprep.subr.bf16.mxu0 %v9720_v21 }
 0x411   : > { %8962 = vmatmul.mubr.msk.bf16.gmra.mrb[32].mxu0 %vm546_vm3, %v10322_v63 }
 0x412   : > { %8986 = vmatpush3.bf16.msra.mxu0 %v9720_v21  ;;  %8989 = vmatprep.mubr.msk.bf16.mxu0 %vm546_vm3, %v10280_v43 }
 0x413   : > { %8987 = vmatprep.subr.bf16.mxu0 %v9721_v22 }
 0x416   : > { %8988 = vmatpush3.bf16.msra.mxu0 %v9721_v22 }
 0x417   : > { %9009 = vmatprep.subr.bf16.mxu0 %v10149_v2 }
 0x419   : > { %8990 = vmatmul.mubr.msk.bf16.vlgmr.msra.gmra.mrb[36].mxu0 %vm546_vm3, %v10287_v46 }
 0x41a   : > { %8993 = vmatprep.mubr.msk.bf16.mxu0 %vm546_vm3, %v10326_v0 }
 0x421   : > { %8994 = vmatmul.mubr.msk.bf16.gmra.mrb[40].mxu0 %vm546_vm3, %v10322_v63 }
 0x422   : > { %9011 = vmatprep.mubr.msk.bf16.mxu0 %vm10150_vm4, %v10149_v2 }
 0x4bc   : > { %v1143_v26 = vpop.f32.mrb[28].mxu1 }
 0x4bd   : > { %v8917_v27 = vpop.f32.mrb[29].mxu1 }
 0x4be   : > { %v1146_v28 = vpop.f32.mrb[30].mxu1 }
 0x4bf   : > { %v1286_v29 = vpack.c.bf16 %v1146_v28, %v1143_v26  ;;  %v8918_v30 = vpop.f32.mrb[31].mxu1 }
 0x4c1   : > { %8941 = vmatprep.mubr.msk.bf16.mxu1 %vm820_vm5, %v1286_v29 }
 0x4c4   : > { %v1187_v31 = vpop.f32.mrb[20].mxu0 }
 0x4c5   : > { %v8923_v32 = vpop.f32.mrb[21].mxu0 }
 0x4c6   : > { %v1190_v33 = vpop.f32.mrb[22].mxu0 }
 0x4c7   : > { %v1287_v34 = vpack.c.bf16 %v1190_v33, %v1187_v31  ;;  %v8924_v35 = vpop.f32.mrb[23].mxu0 }
 0x4c8   : > { %v1231_v37 = vpop.f32.mrb[32].mxu1 }
 0x4c9   : > { %v8929_v38 = vpop.f32.mrb[33].mxu1  ;;  %8942 = vmatmul.mubr.msk.bf16.vlgmr.msra.gmra.mrb[36].mxu1 %vm820_vm5, %v1287_v34 }
 0x4ca   : > { %v1234_v44 = vpop.f32.mrb[34].mxu1  ;;  %8966 = vmatpush3.bf16.msra.mxu1 %v9724_v25 }
 0x4cb   : > { %v1288_v45 = vpack.c.bf16 %v1234_v44, %v1231_v37  ;;  %v8930_v47 = vpop.f32.mrb[35].mxu1  ;;  %8967 = vmatprep.subr.bf16.mxu1 %v9725_v36  ;;  %v8027_v37 = vld [vmem:[%s12140_s9 + $0x3] ss:$0 sm:$0xff] }
 0x4cc   : > { %v1275_v49 = vpop.f32.mrb[24].mxu0 }
 0x4cd   : > { %v8935_v50 = vpop.f32.mrb[25].mxu0  ;;  %8945 = vmatprep.mubr.msk.bf16.mxu1 %vm820_vm5, %v1288_v45 }
 0x4ce   : > { %v1278_v51 = vpop.f32.mrb[26].mxu0  ;;  %8968 = vmatpush3.bf16.msra.mxu1 %v9725_v36 }
 0x4cf   : > { %v1289_v52 = vpack.c.bf16 %v1278_v51, %v1275_v49  ;;  %v8936_v53 = vpop.f32.mrb[27].mxu0  ;;  %8969 = vmatprep.subr.bf16.mxu1 %v9726_v48 }
 0x4d1   : > { %8946 = vmatmul.mubr.msk.bf16.gmra.mrb[40].mxu1 %vm820_vm5, %v1289_v52 }
 0x4d2   : > { %8970 = vmatpush3.bf16.msra.mxu1 %v9726_v48  ;;  %8973 = vmatprep.mubr.msk.bf16.mxu1 %vm546_vm3, %v10280_v43 }
 0x4d3   : > { %8971 = vmatprep.subr.bf16.mxu1 %v9727_v55 }
 0x4d6   : > { %8972 = vmatpush3.bf16.msra.mxu1 %v9727_v55 }
 0x4d7   : > { %8997 = vmatprep.subr.bf16.mxu1 %v10149_v2 }
 0x4d9   : > { %8974 = vmatmul.mubr.msk.bf16.vlgmr.msra.gmra.mrb[44].mxu1 %vm546_vm3, %v10287_v46 }
 0x4da   : > { %8977 = vmatprep.mubr.msk.bf16.mxu1 %vm546_vm3, %v10326_v0 }
 0x4dc   : > { %v8959_v56 = vpop.f32.mrb[28].mxu0 }
 0x4dd   : > { %v1481_v59 = vpop.f32.mrb[29].mxu0  ;;  %v10501_v1 = vadd.f32 %v8959_v56, %v8018_v57 }
 0x4de   : > { %v8960_v61 = vpop.f32.mrb[30].mxu0  ;;  %v1482_v4 = vadd.f32 %v8018_v57, %v1481_v59 }
 0x4df   : > { %v10503_v43 = vadd.f32 %v8960_v61, %v8018_v57  ;;  %v1484_v3 = vpop.f32.mrb[31].mxu0 }
 0x4e0   : > { %v1485_v5 = vadd.f32 %v8018_v57, %v1484_v3 }
 0x4e1   : > { %v1701_v46 = vpack.c.bf16 %v10503_v43, %v10501_v1  ;;  %8978 = vmatmul.mubr.msk.bf16.gmra.mrb[48].mxu1 %vm546_vm3, %v10322_v63  ;;  %v8036_v63 = vld [vmem:[%s12140_s9 + $0x5] ss:$0 sm:$0xff] }
 0x4e2   : > { %v1700_v0 = vpack.c.bf16 %v1485_v5, %v1482_v4  ;;  %8999 = vmatprep.mubr.msk.bf16.mxu1 %vm10150_vm4, %v10149_v2 }
 0x4e4   : > { %v8963_v6 = vpop.f32.mrb[32].mxu0 }
 0x4e5   : > { %v1497_v7 = vpop.f32.mrb[33].mxu0  ;;  %v10511_v9 = vadd.f32 %v8963_v6, %v8018_v57 }
 0x4e6   : > { %v8964_v8 = vpop.f32.mrb[34].mxu0  ;;  %v1498_v18 = vadd.f32 %v8018_v57, %v1497_v7 }
 0x4e7   : > { %v10513_v12 = vadd.f32 %v8964_v8, %v8018_v57  ;;  %v1500_v16 = vpop.f32.mrb[35].mxu0 }
 0x4e8   : > { %v1501_v11 = vadd.f32 %v8018_v57, %v1500_v16 }
 0x4e9   : > { %v1703_v13 = vpack.c.bf16 %v10513_v12, %v10511_v9 }
 0x4ea   : > { %v1702_v15 = vpack.c.bf16 %v1501_v11, %v1498_v18 }
 0x4ec   : > { %v8991_v19 = vpop.f32.mrb[36].mxu0 }
 0x4ed   : > { %v1669_v10 = vpop.f32.mrb[37].mxu0  ;;  %v1678_v17 = vadd.f32 %v8991_v19, %v8036_v63 }
 0x4ee   : > { %v8992_v14 = vpop.f32.mrb[38].mxu0  ;;  %v1670_v22 = vadd.f32 %v8036_v63, %v1669_v10 }
 0x4ef   : > { %v1681_v20 = vadd.f32 %v8992_v14, %v8036_v63  ;;  %v1672_v21 = vpop.f32.mrb[39].mxu0 }
 0x4f0   : > { %v1673_v23 = vadd.f32 %v8036_v63, %v1672_v21 }
 0x4f1   : > { %v1989_v24 = vpack.c.bf16 %v1681_v20, %v1678_v17 }
 0x4f2   : > { %v1988_v25 = vpack.c.bf16 %v1673_v23, %v1670_v22 }
 0x4f4   : > { %v8995_v26 = vpop.f32.mrb[40].mxu0 }
 0x4f5   : > { %v10520_v27 = vadd.f32 %v8995_v26, %v8036_v63  ;;  %v1685_v28 = vpop.f32.mrb[41].mxu0 }
 0x4f6   : > { %v10522_v29 = vadd.f32 %v8036_v63, %v1685_v28  ;;  %v8996_v30 = vpop.f32.mrb[42].mxu0 }
 0x4f7   : > { %v10524_v31 = vadd.f32 %v8996_v30, %v8036_v63  ;;  %v1688_v32 = vpop.f32.mrb[43].mxu0 }
 0x4f8   : > { %v10526_v33 = vadd.f32 %v8036_v63, %v1688_v32 }
 0x4f9   : > { %v1991_v34 = vpack.c.bf16 %v10524_v31, %v10520_v27  ;;  %v9729_v27 = vld [vmem:[%s12135_s4 + $0x18] sm:$0xff]  }
 0x4fa   : > { %v1990_v35 = vpack.c.bf16 %v10526_v33, %v10522_v29 }
 0x5ac   : > { %v8975_v36 = vpop.f32.mrb[44].mxu1 }
 0x5ad   : > { %v1575_v38 = vpop.f32.mrb[45].mxu1  ;;  %v1584_v45 = vadd.f32 %v8975_v36, %v8027_v37 }
 0x5ae   : > { %v8976_v44 = vpop.f32.mrb[46].mxu1  ;;  %v1576_v49 = vadd.f32 %v8027_v37, %v1575_v38 }
 0x5af   : > { %v1587_v47 = vadd.f32 %v8976_v44, %v8027_v37  ;;  %v1578_v48 = vpop.f32.mrb[47].mxu1 }
 0x5b0   : > { %v1579_v50 = vadd.f32 %v8027_v37, %v1578_v48 }
 0x5b1   : > { %v1705_v51 = vpack.c.bf16 %v1587_v47, %v1584_v45 }
 0x5b2   : > { %v1704_v52 = vpack.c.bf16 %v1579_v50, %v1576_v49 }
 0x5b3   : > { %v1759_v8 = vsel %vm820_vm5, %v1705_v51, 0 }
 0x5b4   : > { %v8979_v53 = vpop.f32.mrb[48].mxu1  ;;  %v1712_v55 = vsel %vm820_vm5, %v1704_v52, 0 }
 0x5b5   : > { %v1591_v56 = vpop.f32.mrb[49].mxu1  ;;  %8998 = vmatpush3.bf16.xpose.msra.mxu1 %v1712_v55  ;;  %v1600_v59 = vadd.f32 %v8979_v53, %v8027_v37 }
 0x5b6   : > { %v8980_v57 = vpop.f32.mrb[50].mxu1  ;;  %9003 = vmatprep.subr.bf16.mxu1 %v10149_v2  ;;  %v1592_v4 = vadd.f32 %v8027_v37, %v1591_v56 }
 0x5b7   : > { %v1603_v61 = vadd.f32 %v8980_v57, %v8027_v37  ;;  %v1594_v3 = vpop.f32.mrb[51].mxu1 }
 0x5b8   : > { %v1595_v5 = vadd.f32 %v8027_v37, %v1594_v3 }
 0x5b9   : > { %v1707_v6 = vpack.c.bf16 %v1603_v61, %v1600_v59 }
 0x5ba   : > { %v1706_v7 = vpack.c.bf16 %v1595_v5, %v1592_v4 }
 0x5bc   : > { %9000 = vmatmul.mubr.msk.bf16.vlgmr.msra.gmra.mrb[52].mxu1 %vm820_vm5, %v1700_v0  ;;  %v1806_v16 = vsel %vm820_vm5, %v1706_v7, 0  ;;  %v1853_v0 = vsel %vm820_vm5, %v1707_v6, 0 }
 0x5bd   : > { %9004 = vmatpush3.bf16.xpose.msra.mxu1 %v1759_v8  ;;  %9010 = vmatpush3.bf16.xpose.msra.mxu0 %v1806_v16 }
 0x5be   : > { %9005 = vmatprep.mubr.msk.bf16.mxu1 %vm10150_vm4, %v10149_v2  ;;  %9015 = vmatprep.subr.bf16.mxu1 %v10149_v2 }
 0x5bf   : > { %9021 = vmatprep.subr.bf16.mxu0 %v10149_v2 }
 0x5c4   : > { %9006 = vmatmul.mubr.msk.bf16.vlgmr.msra.gmra.mrb[56].mxu1 %vm820_vm5, %v1701_v46  ;;  %9012 = vmatmul.mubr.msk.bf16.vlgmr.msra.gmra.mrb[44].mxu0 %vm820_vm5, %v1702_v15 }
 0x5c5   : > { %9016 = vmatpush3.bf16.xpose.msra.mxu1 %v1853_v0  ;;  %9022 = vmatpush3.bf16.msra.mxu0 %v1988_v25 }
 0x5c6   : > { %9017 = vmatprep.mubr.msk.bf16.mxu1 %vm10150_vm4, %v10149_v2  ;;  %9027 = vmatprep.subr.bf16.mxu1 %v10149_v2 }
 0x5c7   : > { %9023 = vmatprep.mubr.msk.bf16.mxu0 %vm10150_vm4, %v10149_v2  ;;  %9033 = vmatprep.subr.bf16.mxu0 %v10149_v2 }
 0x5cc   : > { %9018 = vmatmul.mubr.msk.bf16.vlgmr.msra.gmra.mrb[60].mxu1 %vm820_vm5, %v1703_v13 }
 0x5cd   : > { %9028 = vmatpush3.bf16.msra.mxu1 %v1989_v24  ;;  %9029 = vmatprep.mubr.msk.bf16.mxu1 %vm10150_vm4, %v10149_v2 }
 0x5ce   : > { %9039 = vmatprep.subr.bf16.mxu1 %v10149_v2 }
 0x68f   : > { %v1748_v1 = vpop.f32.mrb[52].mxu1 }
 0x690   : > { %v9001_v43 = vpop.f32.mrb[53].mxu1  ;;  %v1896_v46 = vsel %vm1009_vm6, %v1748_v1, -inf }
 0x691   : > { %1897 = vmax.xlane.f32.xlu0 %v1896_v46  ;;  %v1751_v18 = vpop.f32.mrb[54].mxu1 }
 0x692   : > { %v9002_v11 = vpop.f32.mrb[55].mxu1  ;;  %v1899_v15 = vsel %vm1009_vm6, %v1751_v18, -inf }
 0x693   : > { %1900 = vmax.xlane.f32.xlu1 %v1899_v15 }
 0x697   : > { %v1795_v19 = vpop.f32.mrb[56].mxu1  ;;  %v1842_v9 = vpop.f32.mrb[44].mxu0 }
 0x698   : > { %v9007_v12 = vpop.f32.mrb[57].mxu1  ;;  %v9013_v13 = vpop.f32.mrb[45].mxu0  ;;  %v1902_v63 = vsel %vm1009_vm6, %v1795_v19, -inf  ;;  %v1908_v22 = vsel %vm1009_vm6, %v1842_v9, -inf }
 0x699   : > { %v1845_v10 = vpop.f32.mrb[46].mxu0  ;;  %1903 = vmax.xlane.f32.xlu0 %v1902_v63  ;;  %v1798_v14 = vpop.f32.mrb[58].mxu1 }
 0x69a   : > { %v9008_v17 = vpop.f32.mrb[59].mxu1  ;;  %v9014_v20 = vpop.f32.mrb[47].mxu0  ;;  %v1905_v21 = vsel %vm1009_vm6, %v1798_v14, -inf  ;;  %v1911_v23 = vsel %vm1009_vm6, %v1845_v10, -inf }
 0x69b   : > { %1906 = vmax.xlane.f32.xlu1 %v1905_v21 }
 0x69d   : > { %1909 = vmax.xlane.f32.xlu0 %v1908_v22 }
 0x69f   : > { %1912 = vmax.xlane.f32.xlu1 %v1911_v23  ;;  %v1889_v24 = vpop.f32.mrb[60].mxu1 }
 0x6a0   : > { %v9019_v25 = vpop.f32.mrb[61].mxu1  ;;  %v1914_v26 = vsel %vm1009_vm6, %v1889_v24, -inf }
 0x6a1   : > { %1915 = vmax.xlane.f32.xlu0 %v1914_v26  ;;  %v1892_v28 = vpop.f32.mrb[62].mxu1 }
 0x6a2   : > { %v9020_v30 = vpop.f32.mrb[63].mxu1  ;;  %v1917_v32 = vsel %vm1009_vm6, %v1892_v28, -inf }
 0x6a3   : > { %1918 = vmax.xlane.f32.xlu1 %v1917_v32 }
 0x71e   : > { %v1898_v36 = vpop.xlane.xlu0 %1897 }
 0x71f   : > { %v1920_v37 = vsub.f32 %v1748_v1, %v1898_v36 }
 0x720   : > { %v1901_v38 = vpop.xlane.xlu1 %1900 }
 0x721   : > { %v1928_v44 = vmul.f32 1.442695, %v1920_v37  ;;  %v1921_v45 = vsub.f32 %v1751_v18, %v1901_v38 }
 0x723   : > { %9866 = vpow2.f32 %v1928_v44  ;;  %v1930_v47 = vmul.f32 1.442695, %v1921_v45 }
 0x725   : > { %9868 = vpow2.f32 %v1930_v47 }
 0x726   : > { %v1904_v48 = vpop.xlane.xlu0 %1903 }
 0x727   : > { %v1922_v49 = vsub.f32 %v1795_v19, %v1904_v48 }
 0x728   : > { %v1907_v50 = vpop.xlane.xlu1 %1906 }
 0x729   : > { %v1932_v51 = vmul.f32 1.442695, %v1922_v49  ;;  %v1923_v52 = vsub.f32 %v1798_v14, %v1907_v50 }
 0x72a   : > { %v1910_v53 = vpop.xlane.xlu0 %1909 }
 0x72b   : > { %9870 = vpow2.f32 %v1932_v51  ;;  %v1934_v55 = vmul.f32 1.442695, %v1923_v52  ;;  %v1924_v56 = vsub.f32 %v1842_v9, %v1910_v53 }
 0x72c   : > { %v1913_v57 = vpop.xlane.xlu1 %1912 }
 0x72d   : > { %v9867_v59 = vpop.eup %9866  ;;  %9872 = vpow2.f32 %v1934_v55  ;;  %v1936_v61 = vmul.f32 1.442695, %v1924_v56  ;;  %v1925_v3 = vsub.f32 %v1845_v10, %v1913_v57 }
 0x72e   : > { %v1916_v4 = vpop.xlane.xlu0 %1915  ;;  %v1944_v5 = vsel %vm1009_vm6, %v9867_v59, 0.0 }
 0x72f   : > { %v9869_v6 = vpop.eup %9868  ;;  %9874 = vpow2.f32 %v1936_v61  ;;  %v1938_v7 = vmul.f32 1.442695, %v1925_v3  ;;  %v1926_v8 = vsub.f32 %v1889_v24, %v1916_v4  ;;  %1945 = vadd.xlane.f32.xlu0 %v1944_v5  ;;  %v9728_v61 = vld [vmem:[%s12135_s4 + $0x10] sm:$0xff]  }
 0x730   : > { %v1919_v16 = vpop.xlane.xlu1 %1918  ;;  %v1947_v0 = vsel %vm1009_vm6, %v9869_v6, 0.0 }
 0x731   : > { %9876 = vpow2.f32 %v1938_v7  ;;  %v1940_v1 = vmul.f32 1.442695, %v1926_v8  ;;  %v1927_v43 = vsub.f32 %v1892_v28, %v1919_v16  ;;  %1948 = vadd.xlane.f32.xlu1 %v1947_v0 }
 0x733   : > { %9878 = vpow2.f32 %v1940_v1  ;;  %v1942_v46 = vmul.f32 1.442695, %v1927_v43 }
 0x735   : > { %v9871_v18 = vpop.eup %9870  ;;  %9880 = vpow2.f32 %v1942_v46 }
 0x736   : > { %v1950_v11 = vsel %vm1009_vm6, %v9871_v18, 0.0 }
 0x737   : > { %v9873_v15 = vpop.eup %9872  ;;  %1951 = vadd.xlane.f32.xlu0 %v1950_v11 }
 0x738   : > { %v1953_v19 = vsel %vm1009_vm6, %v9873_v15, 0.0 }
 0x739   : > { %v9875_v9 = vpop.eup %9874  ;;  %1954 = vadd.xlane.f32.xlu1 %v1953_v19 }
 0x73a   : > { %v1956_v12 = vsel %vm1009_vm6, %v9875_v9, 0.0 }
 0x73b   : > { %v9877_v13 = vpop.eup %9876  ;;  %1957 = vadd.xlane.f32.xlu0 %v1956_v12 }
 0x73c   : > { %v1959_v63 = vsel %vm1009_vm6, %v9877_v13, 0.0 }
 0x73d   : > { %v9879_v10 = vpop.eup %9878  ;;  %1960 = vadd.xlane.f32.xlu1 %v1959_v63  ;;  %v7993_v63 = vld [vmem:[%s12140_s9 + $0x6] ss:$0 sm:$0xff] }
 0x73e   : > { %v1962_v14 = vsel %vm1009_vm6, %v9879_v10, 0.0 }
 0x73f   : > { %v9881_v17 = vpop.eup %9880  ;;  %1963 = vadd.xlane.f32.xlu0 %v1962_v14 }
 0x740   : > { %v1965_v20 = vsel %vm1009_vm6, %v9881_v17, 0.0 }
 0x741   : > { %1966 = vadd.xlane.f32.xlu1 %v1965_v20 }
 0x7bc   : > { %v1946_v21 = vpop.xlane.xlu0 %1945 }
 0x7bd   : > { %9882 = vrcp.f32 %v1946_v21 }
 0x7be   : > { %v1949_v22 = vpop.xlane.xlu1 %1948 }
 0x7bf   : > { %9884 = vrcp.f32 %v1949_v22 }
 0x7c4   : > { %v1952_v23 = vpop.xlane.xlu0 %1951 }
 0x7c5   : > { %9886 = vrcp.f32 %v1952_v23 }
 0x7c6   : > { %v1955_v24 = vpop.xlane.xlu1 %1954 }
 0x7c7   : > { %v9883_v25 = vpop.eup %9882  ;;  %9888 = vrcp.f32 %v1955_v24 }
 0x7c8   : > { %v1958_v26 = vpop.xlane.xlu0 %1957  ;;  %v1976_v30 = vmul.f32 %v9883_v25, %v9867_v59 }
 0x7c9   : > { %v9885_v28 = vpop.eup %9884  ;;  %9890 = vrcp.f32 %v1958_v26 }
 0x7ca   : > { %v1977_v32 = vmul.f32 %v9885_v28, %v9869_v6  ;;  %v1961_v36 = vpop.xlane.xlu1 %1960 }
 0x7cb   : > { %9892 = vrcp.f32 %v1961_v36 }
 0x7cc   : > { %v1964_v37 = vpop.xlane.xlu0 %1963  ;;  %v1984_v38 = vpack.c.bf16 %v1977_v32, %v1976_v30 }
 0x7cd   : > { %9894 = vrcp.f32 %v1964_v37 }
 0x7ce   : > { %9024 = vmatmul.mubr.msk.bf16.vlgmr.msra.gmra.mrb[48].mxu0 %vm1009_vm6, %v1984_v38  ;;  %v1967_v44 = vpop.xlane.xlu1 %1966 }
 0x7cf   : > { %v9887_v45 = vpop.eup %9886  ;;  %9034 = vmatpush3.bf16.msra.mxu0 %v1990_v35  ;;  %9896 = vrcp.f32 %v1967_v44  ;;  %9035 = vmatprep.mubr.msk.bf16.mxu0 %vm10150_vm4, %v10149_v2 }
 0x7d0   : > { %v1978_v48 = vmul.f32 %v9887_v45, %v9871_v18 }
 0x7d1   : > { %v9889_v47 = vpop.eup %9888 }
 0x7d2   : > { %v1979_v49 = vmul.f32 %v9889_v47, %v9873_v15 }
 0x7d3   : > { %v9891_v50 = vpop.eup %9890 }
 0x7d4   : > { %v1985_v51 = vpack.c.bf16 %v1979_v49, %v1978_v48  ;;  %v1980_v53 = vmul.f32 %v9891_v50, %v9875_v9 }
 0x7d5   : > { %v9893_v52 = vpop.eup %9892 }
 0x7d6   : > { %v1981_v55 = vmul.f32 %v9893_v52, %v9877_v13  ;;  %9030 = vmatmul.mubr.msk.bf16.vlgmr.msra.gmra.mrb[64].mxu1 %vm1009_vm6, %v1985_v51 }
 0x7d7   : > { %v9895_v56 = vpop.eup %9894  ;;  %9040 = vmatpush3.bf16.msra.mxu1 %v1991_v34  ;;  %9041 = vmatprep.mubr.msk.bf16.mxu1 %vm10150_vm4, %v10149_v2 }
 0x7d8   : > { %v1986_v29 = vpack.c.bf16 %v1981_v55, %v1980_v53  ;;  %v1982_v35 = vmul.f32 %v9895_v56, %v9879_v10  ;;  %9045 = vmatprep.subr.bf16.mxu1 %v9728_v61 }
 0x7d9   : > { %v9897_v33 = vpop.eup %9896 }
 0x7da   : > { %v1983_v57 = vmul.f32 %v9897_v33, %v9881_v17  ;;  %9036 = vmatmul.mubr.msk.bf16.vlgmr.msra.gmra.mrb[52].mxu0 %vm1009_vm6, %v1986_v29 }
 0x7dc   : > { %v1987_v59 = vpack.c.bf16 %v1983_v57, %v1982_v35 }
 0x7de   : > { %9042 = vmatmul.mubr.msk.bf16.vlgmr.msra.gmra.mrb[68].mxu1 %vm1009_vm6, %v1987_v59 }
 0x7df   : > { %9046 = vmatpush3.bf16.msra.mxu1 %v9728_v61 }
 0x7e0   : > { %9047 = vmatprep.subr.bf16.mxu1 %v9729_v27 }
 0x7e3   : > { %9048 = vmatpush3.bf16.msra.mxu1 %v9729_v27 }
 0x8a1   : > { %v2029_v31 = vpop.f32.mrb[48].mxu0 }
 0x8a2   : > { %v9025_v34 = vpop.f32.mrb[49].mxu0 }
 0x8a3   : > { %v2032_v3 = vpop.f32.mrb[50].mxu0 }
 0x8a4   : > { %v2173_v4 = vpack.c.bf16 %v2032_v3, %v2029_v31  ;;  %v9026_v5 = vpop.f32.mrb[51].mxu0 }
 0x8a6   : > { %9049 = vmatprep.mubr.msk.bf16.mxu1 %vm820_vm5, %v2173_v4 }
 0x8a9   : > { %v2073_v6 = vpop.f32.mrb[64].mxu1 }
 0x8aa   : > { %v9031_v7 = vpop.f32.mrb[65].mxu1 }
 0x8ab   : > { %v2076_v8 = vpop.f32.mrb[66].mxu1 }
 0x8ac   : > { %v2174_v16 = vpack.c.bf16 %v2076_v8, %v2073_v6  ;;  %v9032_v0 = vpop.f32.mrb[67].mxu1 }
 0x8ad   : > { %v2117_v1 = vpop.f32.mrb[52].mxu0 }
 0x8ae   : > { %v9037_v43 = vpop.f32.mrb[53].mxu0  ;;  %9050 = vmatmul.mubr.msk.bf16.vlgmr.msra.gmra.mrb[36].mxu1 %vm820_vm5, %v2174_v16 }
 0x8af   : > { %v2120_v46 = vpop.f32.mrb[54].mxu0 }
 0x8b0   : > { %v2175_v18 = vpack.c.bf16 %v2120_v46, %v2117_v1  ;;  %v9038_v11 = vpop.f32.mrb[55].mxu0 }
 0x8b1   : > { %v2161_v15 = vpop.f32.mrb[68].mxu1 }
 0x8b2   : > { %v9043_v19 = vpop.f32.mrb[69].mxu1  ;;  %9053 = vmatprep.mubr.msk.bf16.mxu1 %vm820_vm5, %v2175_v18 }
 0x8b3   : > { %v2164_v9 = vpop.f32.mrb[70].mxu1 }
 0x8b4   : > { %v2176_v12 = vpack.c.bf16 %v2164_v9, %v2161_v15  ;;  %v9044_v13 = vpop.f32.mrb[71].mxu1 }
 0x8b6   : > { %9054 = vmatmul.mubr.msk.bf16.gmra.mrb[40].mxu1 %vm820_vm5, %v2176_v12 }
 0x981   : > { %v9051_v10 = vpop.f32.mrb[36].mxu1 }
 0x982   : > { %v2235_v14 = vpop.f32.mrb[37].mxu1  ;;  %v9641_v17 = vadd.f32 %v9051_v10, %v7993_v63 }
 0x983   : > { %v9642_v20 = vadd.f32 %v7993_v63, %v2235_v14  ;;  %v9052_v21 = vpop.f32.mrb[38].mxu1 }
 0x984   : > { %v2238_v22 = vpop.f32.mrb[39].mxu1  ;;  %v9643_v23 = vadd.f32 %v9052_v21, %v7993_v63  ;;  %v2276_v30 = vadd.f32 %v9641_v17, %v10276_v42 }
 0x985   : > { %v9644_v24 = vadd.f32 %v7993_v63, %v2238_v22  ;;  %v2274_v25 = vadd.f32 %v9642_v20, %v10272_v40 }
 0x986   : > { %v2277_v37 = vadd.f32 %v9643_v23, %v10270_v39  ;;  %v2290_v48 = vsel %vm546_vm3, %v2276_v30, 0.0 }
 0x987   : > { %v2284_v26 = vsel %vm546_vm3, %v2274_v25, 0.0  ;;  %v2275_v28 = vadd.f32 %v9644_v24, %v10274_v41 }
 0x988   : > { %2285 = vadd.xlane.f32.xlu0 %v2284_v26  ;;  %v2293_v41 = vsel %vm546_vm3, %v2277_v37, 0.0  ;;  %v9730_v26 = vld [vmem:[%s12136_s5] sm:$0xff]  }
 0x989   : > { %v9055_v32 = vpop.f32.mrb[40].mxu1  ;;  %v2287_v36 = vsel %vm546_vm3, %v2275_v28, 0.0  ;;  %9057 = vmatprep.subr.bf16.mxu0 %v9730_v26 }
 0x98a   : > { %2288 = vadd.xlane.f32.xlu1 %v2287_v36  ;;  %v2251_v38 = vpop.f32.mrb[41].mxu1  ;;  %v9645_v44 = vadd.f32 %v9055_v32, %v7993_v63  ;;  %9058 = vmatpush3.bf16.msra.mxu0 %v9730_v26  ;;  %v9733_v32 = vld [vmem:[%s12136_s5 + $0x18] sm:$0xff]   ;;  %v9734_v36 = vld [vmem:[%s12137_s6] sm:$0xff]  }
 0x98b   : > { %v9646_v45 = vadd.f32 %v7993_v63, %v2251_v38  ;;  %v9056_v47 = vpop.f32.mrb[42].mxu1  ;;  %9073 = vmatprep.subr.bf16.mxu1 %v9734_v36  ;;  %v9736_v38 = vld [vmem:[%s12137_s6 + $0x10] sm:$0xff]  }
 0x98c   : > { %2291 = vadd.xlane.f32.xlu0 %v2290_v48  ;;  %v2254_v40 = vpop.f32.mrb[43].mxu1  ;;  %v9647_v49 = vadd.f32 %v9056_v47, %v7993_v63  ;;  %v2280_v52 = vadd.f32 %v9645_v44, %v10302_v54  ;;  %9074 = vmatpush3.bf16.msra.mxu1 %v9734_v36  ;;  %v9737_v44 = vld [vmem:[%s12137_s6 + $0x18] sm:$0xff]   ;;  %v9739_v47 = vld [vmem:[%s12137_s6 + $0x28] sm:$0xff]  }
 0x98d   : > { %v9648_v50 = vadd.f32 %v7993_v63, %v2254_v40  ;;  %v2278_v42 = vadd.f32 %v9646_v45, %v10311_v58  ;;  %v9738_v45 = vld [vmem:[%s12137_s6 + $0x20] sm:$0xff]  }
 0x98e   : > { %2294 = vadd.xlane.f32.xlu1 %v2293_v41  ;;  %v2281_v55 = vadd.f32 %v9647_v49, %v10313_v60  ;;  %v2302_v56 = vsel %vm546_vm3, %v2280_v52, 0.0 }
 0x98f   : > { %v2296_v51 = vsel %vm546_vm3, %v2278_v42, 0.0  ;;  %v2279_v39 = vadd.f32 %v9648_v50, %v10318_v62 }
 0x990   : > { %2297 = vadd.xlane.f32.xlu0 %v2296_v51  ;;  %v2305_v29 = vsel %vm546_vm3, %v2281_v55, 0.0 }
 0x991   : > { %v2299_v53 = vsel %vm546_vm3, %v2279_v39, 0.0 }
 0x992   : > { %2300 = vadd.xlane.f32.xlu1 %v2299_v53 }
 0x994   : > { %2303 = vadd.xlane.f32.xlu0 %v2302_v56 }
 0x996   : > { %2306 = vadd.xlane.f32.xlu1 %v2305_v29 }
 0xa15   : > { %v2286_v58 = vpop.xlane.xlu0 %2285 }
 0xa16   : > { %v2309_v33 = vmul.f32 0.015625, %v2286_v58 }
 0xa17   : > { %v2289_v35 = vpop.xlane.xlu1 %2288 }
 0xa18   : > { %v10622_v57 = vsub.f32 %v2274_v25, %v2309_v33  ;;  %v2310_v62 = vmul.f32 0.015625, %v2289_v35 }
 0xa19   : > { %v2292_v59 = vpop.xlane.xlu0 %2291 }
 0xa1a   : > { %v10624_v54 = vsub.f32 %v2275_v28, %v2310_v62  ;;  %v2311_v61 = vmul.f32 0.015625, %v2292_v59  ;;  %v2325_v60 = vmul.f32 %v10622_v57, %v10622_v57  ;;  %v9731_v28 = vld [vmem:[%s12136_s5 + $0x8] sm:$0xff]  }
 0xa1b   : > { %v2295_v27 = vpop.xlane.xlu1 %2294  ;;  %9059 = vmatprep.subr.bf16.mxu0 %v9731_v28 }
 0xa1c   : > { %v10628_v31 = vsub.f32 %v2276_v30, %v2311_v61  ;;  %v2312_v34 = vmul.f32 0.015625, %v2295_v27  ;;  %v2333_v3 = vsel %vm546_vm3, %v2325_v60, 0.0  ;;  %v2326_v4 = vmul.f32 %v10624_v54, %v10624_v54  ;;  %9060 = vmatpush3.bf16.msra.mxu0 %v9731_v28  ;;  %v9732_v30 = vld [vmem:[%s12136_s5 + $0x10] sm:$0xff]  }
 0xa1d   : > { %2334 = vadd.xlane.f32.xlu0 %v2333_v3  ;;  %v2298_v5 = vpop.xlane.xlu0 %2297  ;;  %9061 = vmatprep.subr.bf16.mxu0 %v9732_v30  ;;  %v8063_v3 = vld [vmem:[%s12140_s9 + $0x7] ss:$0 sm:$0xff] }
 0xa1e   : > { %v10633_v6 = vsub.f32 %v2277_v37, %v2312_v34  ;;  %v2313_v7 = vmul.f32 0.015625, %v2298_v5  ;;  %v2336_v8 = vsel %vm546_vm3, %v2326_v4, 0.0  ;;  %v2327_v16 = vmul.f32 %v10628_v31, %v10628_v31  ;;  %v9735_v37 = vld [vmem:[%s12137_s6 + $0x8] sm:$0xff]  }
 0xa1f   : > { %2337 = vadd.xlane.f32.xlu1 %v2336_v8  ;;  %v2301_v0 = vpop.xlane.xlu1 %2300  ;;  %9075 = vmatprep.subr.bf16.mxu1 %v9735_v37 }
 0xa20   : > { %v10638_v1 = vsub.f32 %v2278_v42, %v2313_v7  ;;  %v2314_v43 = vmul.f32 0.015625, %v2301_v0  ;;  %v2339_v46 = vsel %vm546_vm3, %v2327_v16, 0.0  ;;  %v2328_v18 = vmul.f32 %v10633_v6, %v10633_v6  ;;  %9062 = vmatpush3.bf16.msra.mxu0 %v9732_v30  ;;  %9076 = vmatpush3.bf16.msra.mxu1 %v9735_v37 }
 0xa21   : > { %2340 = vadd.xlane.f32.xlu0 %v2339_v46  ;;  %v2304_v11 = vpop.xlane.xlu0 %2303  ;;  %9063 = vmatprep.subr.bf16.mxu0 %v9733_v32 }
 0xa22   : > { %v10643_v15 = vsub.f32 %v2279_v39, %v2314_v43  ;;  %v2315_v19 = vmul.f32 0.015625, %v2304_v11  ;;  %v2342_v9 = vsel %vm546_vm3, %v2328_v18, 0.0  ;;  %v2329_v12 = vmul.f32 %v10638_v1, %v10638_v1  ;;  %9077 = vmatprep.subr.bf16.mxu1 %v9736_v38  ;;  %v8064_v18 = vld [vmem:[%s12140_s9 + $0x8] ss:$0 sm:$0xff] }
 0xa23   : > { %2343 = vadd.xlane.f32.xlu1 %v2342_v9  ;;  %v2307_v13 = vpop.xlane.xlu1 %2306 }
 0xa24   : > { %v10648_v63 = vsub.f32 %v2280_v52, %v2315_v19  ;;  %v2316_v10 = vmul.f32 0.015625, %v2307_v13  ;;  %v2345_v14 = vsel %vm546_vm3, %v2329_v12, 0.0  ;;  %v2330_v17 = vmul.f32 %v10643_v15, %v10643_v15  ;;  %9064 = vmatpush3.bf16.msra.mxu0 %v9733_v32  ;;  %9078 = vmatpush3.bf16.msra.mxu1 %v9736_v38 }
 0xa25   : > { %2346 = vadd.xlane.f32.xlu0 %v2345_v14  ;;  %9079 = vmatprep.subr.bf16.mxu1 %v9737_v44 }
 0xa26   : > { %v10653_v20 = vsub.f32 %v2281_v55, %v2316_v10  ;;  %v2348_v21 = vsel %vm546_vm3, %v2330_v17, 0.0  ;;  %v2331_v22 = vmul.f32 %v10648_v63, %v10648_v63 }
 0xa27   : > { %2349 = vadd.xlane.f32.xlu1 %v2348_v21 }
 0xa28   : > { %v2351_v23 = vsel %vm546_vm3, %v2331_v22, 0.0  ;;  %v2332_v24 = vmul.f32 %v10653_v20, %v10653_v20  ;;  %9080 = vmatpush3.bf16.msra.mxu1 %v9737_v44 }
 0xa29   : > { %2352 = vadd.xlane.f32.xlu0 %v2351_v23  ;;  %9081 = vmatprep.subr.bf16.mxu1 %v9738_v45 }
 0xa2a   : > { %v2354_v25 = vsel %vm546_vm3, %v2332_v24, 0.0 }
 0xa2b   : > { %2355 = vadd.xlane.f32.xlu1 %v2354_v25 }
 0xa2c   : > { %9082 = vmatpush3.bf16.msra.mxu1 %v9738_v45 }
 0xa2d   : > { %9083 = vmatprep.subr.bf16.mxu1 %v9739_v47 }
 0xa30   : > { %9084 = vmatpush3.bf16.msra.mxu1 %v9739_v47 }
 0xaaa   : > { %v2335_v48 = vpop.xlane.xlu0 %2334 }
 0xaab   : > { %v2357_v40 = vmul.f32 0.015625, %v2335_v48  ;;  %v9741_v48 = vld [vmem:[%s12137_s6 + $0x38] sm:$0xff]  }
 0xaac   : > { %v2338_v49 = vpop.xlane.xlu1 %2337 }
 0xaad   : > { %v2365_v50 = vadd.f32 1e-05, %v2357_v40  ;;  %v2358_v41 = vmul.f32 0.015625, %v2338_v49  ;;  %v8065_v40 = vld [vmem:[%s12140_s9 + $0x9] ss:$0 sm:$0xff] }
 0xaae   : > { %v2341_v42 = vpop.xlane.xlu0 %2340 }
 0xaaf   : > { %9898 = vrsqrt.f32 %v2365_v50  ;;  %v2366_v51 = vadd.f32 1e-05, %v2358_v41  ;;  %v2359_v39 = vmul.f32 0.015625, %v2341_v42 }
 0xab0   : > { %v2344_v52 = vpop.xlane.xlu1 %2343 }
 0xab1   : > { %9900 = vrsqrt.f32 %v2366_v51  ;;  %v2367_v53 = vadd.f32 1e-05, %v2359_v39  ;;  %v2360_v55 = vmul.f32 0.015625, %v2344_v52 }
 0xab2   : > { %v2347_v56 = vpop.xlane.xlu0 %2346 }
 0xab3   : > { %9902 = vrsqrt.f32 %v2367_v53  ;;  %v2368_v29 = vadd.f32 1e-05, %v2360_v55  ;;  %v2361_v58 = vmul.f32 0.015625, %v2347_v56 }
 0xab4   : > { %v2350_v33 = vpop.xlane.xlu1 %2349 }
 0xab5   : > { %9904 = vrsqrt.f32 %v2368_v29  ;;  %v2369_v35 = vadd.f32 1e-05, %v2361_v58  ;;  %v2362_v62 = vmul.f32 0.015625, %v2350_v33 }
 0xab6   : > { %v2353_v59 = vpop.xlane.xlu0 %2352 }
 0xab7   : > { %9906 = vrsqrt.f32 %v2369_v35  ;;  %v2370_v61 = vadd.f32 1e-05, %v2362_v62  ;;  %v2363_v60 = vmul.f32 0.015625, %v2353_v59 }
 0xab8   : > { %v2356_v27 = vpop.xlane.xlu1 %2355 }
 0xab9   : > { %v9899_v34 = vpop.eup %9898  ;;  %9908 = vrsqrt.f32 %v2370_v61  ;;  %v2371_v4 = vadd.f32 1e-05, %v2363_v60  ;;  %v2364_v5 = vmul.f32 0.015625, %v2356_v27 }
 0xaba   : > { %v2381_v7 = vmul.f32 %v9899_v34, %v10622_v57 }
 0xabb   : > { %v9901_v8 = vpop.eup %9900  ;;  %9910 = vrsqrt.f32 %v2371_v4  ;;  %v2372_v16 = vadd.f32 1e-05, %v2364_v5 }
 0xabc   : > { %v2382_v0 = vmul.f32 %v9901_v8, %v10624_v54  ;;  %v2393_v43 = vmul.f32 %v8063_v3, %v2381_v7 }
 0xabd   : > { %v9903_v46 = vpop.eup %9902  ;;  %9912 = vrsqrt.f32 %v2372_v16 }
 0xabe   : > { %v2383_v11 = vmul.f32 %v9903_v46, %v10628_v31  ;;  %v2394_v19 = vmul.f32 %v8063_v3, %v2382_v0  ;;  %v10702_v57 = vadd.f32 %v8064_v18, %v2393_v43  ;;  %v8074_v46 = vld [vmem:[%s12140_s9 + $0xa] ss:$0 sm:$0xff] }
 0xabf   : > { %v9905_v9 = vpop.eup %9904 }
 0xac0   : > { %v2395_v12 = vmul.f32 %v8063_v3, %v2383_v11  ;;  %v2384_v13 = vmul.f32 %v9905_v9, %v10633_v6  ;;  %v10704_v10 = vadd.f32 %v8064_v18, %v2394_v19 }
 0xac1   : > { %v9907_v14 = vpop.eup %9906 }
 0xac2   : > { %v2396_v54 = vmul.f32 %v8063_v3, %v2384_v13  ;;  %v2421_v17 = vpack.c.bf16 %v10704_v10, %v10702_v57  ;;  %v2385_v21 = vmul.f32 %v9907_v14, %v10638_v1  ;;  %v10710_v31 = vadd.f32 %v8064_v18, %v2395_v12 }
 0xac3   : > { %v9909_v22 = vpop.eup %9908 }
 0xac4   : > { %9065 = vmatprep.mubr.msk.bf16.mxu0 %vm546_vm3, %v2421_v17  ;;  %v10712_v23 = vadd.f32 %v8064_v18, %v2396_v54  ;;  %v2386_v6 = vmul.f32 %v9909_v22, %v10643_v15  ;;  %v2397_v24 = vmul.f32 %v8063_v3, %v2385_v21 }
 0xac5   : > { %v9911_v25 = vpop.eup %9910 }
 0xac6   : > { %v2422_v26 = vpack.c.bf16 %v10712_v23, %v10710_v31  ;;  %v2398_v28 = vmul.f32 %v8063_v3, %v2386_v6  ;;  %v2387_v30 = vmul.f32 %v9911_v25, %v10648_v63  ;;  %v10719_v1 = vadd.f32 %v8064_v18, %v2397_v24 }
 0xac7   : > { %v9913_v32 = vpop.eup %9912 }
 0xac8   : > { %9066 = vmatmul.mubr.msk.bf16.vlgmr.msra.gmra.mrb[56].mxu0 %vm546_vm3, %v2422_v26  ;;  %v10721_v36 = vadd.f32 %v8064_v18, %v2398_v28  ;;  %v2388_v37 = vmul.f32 %v9913_v32, %v10653_v20  ;;  %v2399_v38 = vmul.f32 %v8063_v3, %v2387_v30  ;;  %v9740_v20 = vld [vmem:[%s12137_s6 + $0x30] sm:$0xff]  }
 0xac9   : > { %9085 = vmatprep.subr.bf16.mxu1 %v9740_v20 }
 0xaca   : > { %v2423_v15 = vpack.c.bf16 %v10721_v36, %v10719_v1  ;;  %v2400_v44 = vmul.f32 %v8063_v3, %v2388_v37  ;;  %v10727_v45 = vadd.f32 %v8064_v18, %v2399_v38  ;;  %9086 = vmatpush3.bf16.msra.mxu1 %v9740_v20 }
 0xacb   : > { %9087 = vmatprep.subr.bf16.mxu1 %v9741_v48 }
 0xacc   : > { %9069 = vmatprep.mubr.msk.bf16.mxu0 %vm546_vm3, %v2423_v15  ;;  %v10729_v47 = vadd.f32 %v8064_v18, %v2400_v44 }
 0xace   : > { %v2424_v63 = vpack.c.bf16 %v10729_v47, %v10727_v45  ;;  %9088 = vmatpush3.bf16.msra.mxu1 %v9741_v48 }
 0xad0   : > { %9070 = vmatmul.mubr.msk.bf16.gmra.mrb[60].mxu0 %vm546_vm3, %v2424_v63 }
 0xb9b   : > { %v9067_v49 = vpop.f32.mrb[56].mxu0 }
 0xb9c   : > { %v2509_v50 = vadd.f32 %v9067_v49, %v8065_v40  ;;  %v2500_v41 = vpop.f32.mrb[57].mxu0 }
 0xb9d   : > { %v2501_v42 = vadd.f32 %v8065_v40, %v2500_v41  ;;  %v9068_v51 = vpop.f32.mrb[58].mxu0 }
 0xb9e   : > { %v2512_v39 = vadd.f32 %v9068_v51, %v8065_v40  ;;  %v2503_v52 = vpop.f32.mrb[59].mxu0  ;;  %v2533_v55 = vmax.f32 %v2509_v50, 0.0 }
 0xb9f   : > { %v2504_v53 = vadd.f32 %v8065_v40, %v2503_v52  ;;  %v2531_v29 = vmax.f32 %v2501_v42, 0.0 }
 0xba0   : > { %v2534_v56 = vmax.f32 %v2512_v39, 0.0 }
 0xba1   : > { %v2532_v58 = vmax.f32 %v2504_v53, 0.0 }
 0xba2   : > { %v2556_v33 = vpack.c.bf16 %v2534_v56, %v2533_v55 }
 0xba3   : > { %v2555_v35 = vpack.c.bf16 %v2532_v58, %v2531_v29  ;;  %v9071_v62 = vpop.f32.mrb[60].mxu0 }
 0xba4   : > { %v2525_v59 = vadd.f32 %v9071_v62, %v8065_v40  ;;  %v2516_v61 = vpop.f32.mrb[61].mxu0 }
 0xba5   : > { %v2517_v60 = vadd.f32 %v8065_v40, %v2516_v61  ;;  %v9072_v27 = vpop.f32.mrb[62].mxu0  ;;  %9089 = vmatprep.mubr.bf16.mxu1 %v2555_v35 }
 0xba6   : > { %v2528_v34 = vadd.f32 %v9072_v27, %v8065_v40  ;;  %v2519_v3 = vpop.f32.mrb[63].mxu0  ;;  %9090 = vmatmul.mubr.bf16.vlgmr.msra.gmra.mrb[72].mxu1 %v2556_v33  ;;  %v2537_v5 = vmax.f32 %v2525_v59, 0.0 }
 0xba7   : > { %v2520_v4 = vadd.f32 %v8065_v40, %v2519_v3  ;;  %v2535_v8 = vmax.f32 %v2517_v60, 0.0 }
 0xba8   : > { %v2538_v7 = vmax.f32 %v2528_v34, 0.0 }
 0xba9   : > { %v2536_v16 = vmax.f32 %v2520_v4, 0.0 }
 0xbaa   : > { %v2558_v0 = vpack.c.bf16 %v2538_v7, %v2537_v5 }
 0xbab   : > { %v2557_v43 = vpack.c.bf16 %v2536_v16, %v2535_v8 }
 0xbad   : > { %9093 = vmatprep.mubr.bf16.mxu1 %v2557_v43 }
 0xbae   : > { %9094 = vmatmul.mubr.bf16.gmra.mrb[76].mxu1 %v2558_v0 }
 0xc79   : > { %v9091_v18 = vpop.f32.mrb[72].mxu1 }
 0xc7a   : > { %v2646_v11 = vpop.f32.mrb[73].mxu1  ;;  %v2655_v19 = vadd.f32 %v9091_v18, %v8074_v46 }
 0xc7b   : > { %v2647_v9 = vadd.f32 %v8074_v46, %v2646_v11  ;;  %v9092_v12 = vpop.f32.mrb[74].mxu1 }
 0xc7c   : > { %v2649_v13 = vpop.f32.mrb[75].mxu1  ;;  %v2658_v14 = vadd.f32 %v9092_v12, %v8074_v46  ;;  %v2679_v6 = vadd.f32 %v2655_v19, %v10710_v31 }
 0xc7d   : > { %v2650_v54 = vadd.f32 %v8074_v46, %v2649_v13  ;;  %v2677_v17 = vadd.f32 %v2647_v9, %v10702_v57 }
 0xc7e   : > { %v2680_v26 = vadd.f32 %v2658_v14, %v10712_v23  ;;  %v2693_v38 = vsel %vm546_vm3, %v2679_v6, 0.0 }
 0xc7f   : > { %v2687_v21 = vsel %vm546_vm3, %v2677_v17, 0.0  ;;  %v2678_v22 = vadd.f32 %v2650_v54, %v10704_v10 }
 0xc80   : > { %2688 = vadd.xlane.f32.xlu0 %v2687_v21  ;;  %v2696_v10 = vsel %vm546_vm3, %v2680_v26, 0.0  ;;  %v9742_v21 = vld [vmem:[%s12134_s3 + $0xc0] sm:$0xff]  }
 0xc81   : > { %v9095_v24 = vpop.f32.mrb[76].mxu1  ;;  %v2690_v25 = vsel %vm546_vm3, %v2678_v22, 0.0  ;;  %9097 = vmatprep.subr.bf16.mxu0 %v9742_v21 }
 0xc82   : > { %2691 = vadd.xlane.f32.xlu1 %v2690_v25  ;;  %v2662_v28 = vpop.f32.mrb[77].mxu1  ;;  %v2671_v30 = vadd.f32 %v9095_v24, %v8074_v46  ;;  %9098 = vmatpush3.bf16.msra.mxu0 %v9742_v21  ;;  %v9745_v24 = vld [vmem:[%s12134_s3 + $0x148] sm:$0xff]   ;;  %v9746_v25 = vld [vmem:[%s12134_s3 + $0xd0] sm:$0xff]  }
 0xc83   : > { %v2663_v32 = vadd.f32 %v8074_v46, %v2662_v28  ;;  %v9096_v37 = vpop.f32.mrb[78].mxu1  ;;  %v9748_v28 = vld [vmem:[%s12134_s3 + $0xd8] sm:$0xff]  }
 0xc84   : > { %2694 = vadd.xlane.f32.xlu0 %v2693_v38  ;;  %v2665_v57 = vpop.f32.mrb[79].mxu1  ;;  %v2674_v15 = vadd.f32 %v9096_v37, %v8074_v46  ;;  %v2683_v20 = vadd.f32 %v2671_v30, %v10727_v45  ;;  %v9749_v30 = vld [vmem:[%s12134_s3 + $0x158] sm:$0xff]  }
 0xc85   : > { %v2666_v44 = vadd.f32 %v8074_v46, %v2665_v57  ;;  %v2681_v31 = vadd.f32 %v2663_v32, %v10719_v1  ;;  %v10829_v32 = vld [vmem:[%s12134_s3 + $0x100] sm:$0xff]  }
 0xc86   : > { %2697 = vadd.xlane.f32.xlu1 %v2696_v10  ;;  %v2684_v40 = vadd.f32 %v2674_v15, %v10729_v47  ;;  %v2705_v49 = vsel %vm546_vm3, %v2683_v20, 0.0 }
 0xc87   : > { %v2699_v63 = vsel %vm546_vm3, %v2681_v31, 0.0  ;;  %v2682_v23 = vadd.f32 %v2666_v44, %v10721_v36 }
 0xc88   : > { %2700 = vadd.xlane.f32.xlu0 %v2699_v63  ;;  %v2708_v50 = vsel %vm546_vm3, %v2684_v40, 0.0 }
 0xc89   : > { %v2702_v48 = vsel %vm546_vm3, %v2682_v23, 0.0 }
 0xc8a   : > { %2703 = vadd.xlane.f32.xlu1 %v2702_v48 }
 0xc8c   : > { %2706 = vadd.xlane.f32.xlu0 %v2705_v49 }
 0xc8e   : > { %2709 = vadd.xlane.f32.xlu1 %v2708_v50 }
 0xd0d   : > { %v2689_v1 = vpop.xlane.xlu0 %2688 }
 0xd0e   : > { %v2711_v41 = vmul.f32 0.015625, %v2689_v1 }
 0xd0f   : > { %v2692_v42 = vpop.xlane.xlu1 %2691 }
 0xd10   : > { %v10762_v51 = vsub.f32 %v2677_v17, %v2711_v41  ;;  %v2712_v36 = vmul.f32 0.015625, %v2692_v42 }
 0xd11   : > { %v2695_v39 = vpop.xlane.xlu0 %2694 }
 0xd12   : > { %v10764_v45 = vsub.f32 %v2678_v22, %v2712_v36  ;;  %v2713_v52 = vmul.f32 0.015625, %v2695_v39  ;;  %v2727_v47 = vmul.f32 %v10762_v51, %v10762_v51  ;;  %v9743_v22 = vld [vmem:[%s12134_s3 + $0x140] sm:$0xff]  }
 0xd13   : > { %v2698_v53 = vpop.xlane.xlu1 %2697  ;;  %9129 = vmatprep.subr.bf16.mxu1 %v9743_v22 }
 0xd14   : > { %v10768_v55 = vsub.f32 %v2679_v6, %v2713_v52  ;;  %v2714_v56 = vmul.f32 0.015625, %v2698_v53  ;;  %v2735_v29 = vsel %vm546_vm3, %v2727_v47, 0.0  ;;  %v2728_v58 = vmul.f32 %v10764_v45, %v10764_v45  ;;  %9130 = vmatpush3.bf16.msra.mxu1 %v9743_v22  ;;  %v9744_v6 = vld [vmem:[%s12134_s3 + $0xc8] sm:$0xff]  }
 0xd15   : > { %2736 = vadd.xlane.f32.xlu0 %v2735_v29  ;;  %v2701_v33 = vpop.xlane.xlu0 %2700  ;;  %9099 = vmatprep.subr.bf16.mxu0 %v9744_v6  ;;  %v9751_v22 = vld [vmem:[%s12134_s3 + $0x108] sm:$0xff]  }
 0xd16   : > { %v10773_v35 = vsub.f32 %v2680_v26, %v2714_v56  ;;  %v2715_v62 = vmul.f32 0.015625, %v2701_v33  ;;  %v2738_v59 = vsel %vm546_vm3, %v2728_v58, 0.0  ;;  %v2729_v61 = vmul.f32 %v10768_v55, %v10768_v55  ;;  %9131 = vmatprep.subr.bf16.mxu1 %v9745_v24  ;;  %9100 = vmatpush3.bf16.msra.mxu0 %v9744_v6  ;;  %v9747_v26 = vld [vmem:[%s12134_s3 + $0x150] sm:$0xff]   ;;  %v8083_v56 = vld [vmem:[%s12140_s9 + $0xb] ss:$0 sm:$0xff] }
 0xd17   : > { %2739 = vadd.xlane.f32.xlu1 %v2738_v59  ;;  %v2704_v60 = vpop.xlane.xlu1 %2703  ;;  %9101 = vmatprep.subr.bf16.mxu0 %v9746_v25 }
 0xd18   : > { %v10778_v27 = vsub.f32 %v2681_v31, %v2715_v62  ;;  %v2716_v34 = vmul.f32 0.015625, %v2704_v60  ;;  %v2741_v3 = vsel %vm546_vm3, %v2729_v61, 0.0  ;;  %v2730_v4 = vmul.f32 %v10773_v35, %v10773_v35  ;;  %9132 = vmatpush3.bf16.msra.mxu1 %v9745_v24 }
 0xd19   : > { %2742 = vadd.xlane.f32.xlu0 %v2741_v3  ;;  %v2707_v5 = vpop.xlane.xlu0 %2706  ;;  %9133 = vmatprep.subr.bf16.mxu1 %v9747_v26  ;;  %v8084_v3 = vld [vmem:[%s12140_s9 + $0xc] ss:$0 sm:$0xff] }
 0xd1a   : > { %v10783_v7 = vsub.f32 %v2682_v23, %v2716_v34  ;;  %v2717_v8 = vmul.f32 0.015625, %v2707_v5  ;;  %v2744_v16 = vsel %vm546_vm3, %v2730_v4, 0.0  ;;  %v2731_v0 = vmul.f32 %v10778_v27, %v10778_v27  ;;  %9102 = vmatpush3.bf16.msra.mxu0 %v9746_v25 }
 0xd1b   : > { %2745 = vadd.xlane.f32.xlu1 %v2744_v16  ;;  %v2710_v43 = vpop.xlane.xlu1 %2709  ;;  %9103 = vmatprep.subr.bf16.mxu0 %v9748_v28 }
 0xd1c   : > { %v10788_v46 = vsub.f32 %v2683_v20, %v2717_v8  ;;  %v2718_v18 = vmul.f32 0.015625, %v2710_v43  ;;  %v2747_v11 = vsel %vm546_vm3, %v2731_v0, 0.0  ;;  %v2732_v19 = vmul.f32 %v10783_v7, %v10783_v7  ;;  %9134 = vmatpush3.bf16.msra.mxu1 %v9747_v26 }
 0xd1d   : > { %2748 = vadd.xlane.f32.xlu0 %v2747_v11  ;;  %9135 = vmatprep.subr.bf16.mxu1 %v9749_v30 }
 0xd1e   : > { %v10793_v9 = vsub.f32 %v2684_v40, %v2718_v18  ;;  %v2750_v12 = vsel %vm546_vm3, %v2732_v19, 0.0  ;;  %v2733_v13 = vmul.f32 %v10788_v46, %v10788_v46  ;;  %9104 = vmatpush3.bf16.msra.mxu0 %v9748_v28 }
 0xd1f   : > { %2751 = vadd.xlane.f32.xlu1 %v2750_v12  ;;  %9113 = vmatprep.subr.bf16.mxu0 %v10829_v32 }
 0xd20   : > { %v2753_v14 = vsel %vm546_vm3, %v2733_v13, 0.0  ;;  %v2734_v54 = vmul.f32 %v10793_v9, %v10793_v9  ;;  %9136 = vmatpush3.bf16.msra.mxu1 %v9749_v30  ;;  %v9752_v30 = vld [vmem:[%s12134_s3 + $0x110] sm:$0xff]  }
 0xd21   : > { %2754 = vadd.xlane.f32.xlu0 %v2753_v14  ;;  %9157 = vmatprep.subr.bf16.mxu1 %v10149_v2 }
 0xd22   : > { %v2756_v17 = vsel %vm546_vm3, %v2734_v54, 0.0 }
 0xd23   : > { %2757 = vadd.xlane.f32.xlu1 %v2756_v17 }
 0xda2   : > { %v2737_v37 = vpop.xlane.xlu0 %2736 }
 0xda3   : > { %v2759_v38 = vmul.f32 0.015625, %v2737_v37 }
 0xda4   : > { %v2740_v57 = vpop.xlane.xlu1 %2739 }
 0xda5   : > { %v2767_v15 = vadd.f32 1e-05, %v2759_v38  ;;  %v2760_v44 = vmul.f32 0.015625, %v2740_v57  ;;  %v9753_v38 = vld [vmem:[%s12134_s3 + $0x118] sm:$0xff]  }
 0xda6   : > { %v2743_v10 = vpop.xlane.xlu0 %2742 }
 0xda7   : > { %9914 = vrsqrt.f32 %v2767_v15  ;;  %v2768_v31 = vadd.f32 1e-05, %v2760_v44  ;;  %v2761_v63 = vmul.f32 0.015625, %v2743_v10  ;;  %v8109_v15 = vld [vmem:[%s12140_s9 + $0xd] ss:$0 sm:$0xff] }
 0xda8   : > { %v2746_v23 = vpop.xlane.xlu1 %2745  ;;  %v8127_v10 = vld [vmem:[%s12140_s9 + $0x11] ss:$0 sm:$0xff] }
 0xda9   : > { %9916 = vrsqrt.f32 %v2768_v31  ;;  %v2769_v20 = vadd.f32 1e-05, %v2761_v63  ;;  %v2762_v48 = vmul.f32 0.015625, %v2746_v23 }
 0xdaa   : > { %v2749_v40 = vpop.xlane.xlu0 %2748 }
 0xdab   : > { %9918 = vrsqrt.f32 %v2769_v20  ;;  %v2770_v49 = vadd.f32 1e-05, %v2762_v48  ;;  %v2763_v50 = vmul.f32 0.015625, %v2749_v40 }
 0xdac   : > { %v2752_v1 = vpop.xlane.xlu1 %2751 }
 0xdad   : > { %9920 = vrsqrt.f32 %v2770_v49  ;;  %v2771_v41 = vadd.f32 1e-05, %v2763_v50  ;;  %v2764_v42 = vmul.f32 0.015625, %v2752_v1 }
 0xdae   : > { %v2755_v36 = vpop.xlane.xlu0 %2754 }
 0xdaf   : > { %9922 = vrsqrt.f32 %v2771_v41  ;;  %v2772_v39 = vadd.f32 1e-05, %v2764_v42  ;;  %v2765_v52 = vmul.f32 0.015625, %v2755_v36 }
 0xdb0   : > { %v2758_v47 = vpop.xlane.xlu1 %2757 }
 0xdb1   : > { %v9915_v53 = vpop.eup %9914  ;;  %9924 = vrsqrt.f32 %v2772_v39  ;;  %v2773_v29 = vadd.f32 1e-05, %v2765_v52  ;;  %v2766_v58 = vmul.f32 0.015625, %v2758_v47 }
 0xdb2   : > { %v2783_v33 = vmul.f32 %v9915_v53, %v10762_v51 }
 0xdb3   : > { %v9917_v62 = vpop.eup %9916  ;;  %9926 = vrsqrt.f32 %v2773_v29  ;;  %v2774_v59 = vadd.f32 1e-05, %v2766_v58 }
 0xdb4   : > { %v2795_v61 = vmul.f32 %v8083_v56, %v2783_v33  ;;  %v2784_v60 = vmul.f32 %v9917_v62, %v10764_v45 }
 0xdb5   : > { %v9919_v34 = vpop.eup %9918  ;;  %9928 = vrsqrt.f32 %v2774_v59 }
 0xdb6   : > { %v2796_v4 = vmul.f32 %v8083_v56, %v2784_v60  ;;  %v2785_v5 = vmul.f32 %v9919_v34, %v10768_v55  ;;  %v10842_v16 = vadd.f32 %v8084_v3, %v2795_v61 }
 0xdb7   : > { %v9921_v8 = vpop.eup %9920 }
 0xdb8   : > { %v10844_v0 = vadd.f32 %v8084_v3, %v2796_v4  ;;  %v2797_v51 = vmul.f32 %v8083_v56, %v2785_v5  ;;  %v2786_v43 = vmul.f32 %v9921_v8, %v10773_v35 }
 0xdb9   : > { %v9923_v18 = vpop.eup %9922 }
 0xdba   : > { %v2798_v11 = vmul.f32 %v8083_v56, %v2786_v43  ;;  %v2787_v45 = vmul.f32 %v9923_v18, %v10778_v27  ;;  %v10850_v19 = vpack.c.bf16 %v10844_v0, %v10842_v16  ;;  %v10852_v13 = vadd.f32 %v8084_v3, %v2797_v51 }
 0xdbb   : > { %v9925_v12 = vpop.eup %9924 }
 0xdbc   : > { %v10854_v55 = vadd.f32 %v8084_v3, %v2798_v11  ;;  %v2799_v14 = vmul.f32 %v8083_v56, %v2787_v45  ;;  %v2788_v54 = vmul.f32 %v9925_v12, %v10783_v7  ;;  %9105 = vmatprep.mubr.msk.bf16.mxu0 %vm546_vm3, %v10850_v19  ;;  %9137 = vmatprep.mubr.msk.bf16.mxu1 %vm546_vm3, %v10850_v19 }
 0xdbd   : > { %v9927_v35 = vpop.eup %9926 }
 0xdbe   : > { %v2800_v27 = vmul.f32 %v8083_v56, %v2788_v54  ;;  %v2789_v17 = vmul.f32 %v9927_v35, %v10788_v46  ;;  %v10864_v21 = vpack.c.bf16 %v10854_v55, %v10852_v13  ;;  %v10869_v7 = vadd.f32 %v8084_v3, %v2799_v14 }
 0xdbf   : > { %v9929_v6 = vpop.eup %9928 }
 0xdc0   : > { %v10871_v24 = vadd.f32 %v8084_v3, %v2800_v27  ;;  %v2801_v25 = vmul.f32 %v8083_v56, %v2789_v17  ;;  %v2790_v26 = vmul.f32 %v9929_v6, %v10793_v9  ;;  %9106 = vmatmul.mubr.msk.bf16.vlgmr.msra.gmra.mrb[64].mxu0 %vm546_vm3, %v10864_v21  ;;  %9138 = vmatmul.mubr.msk.bf16.vlgmr.msra.gmra.mrb[80].mxu1 %vm546_vm3, %v10864_v21  ;;  %v8118_v17 = vld [vmem:[%s12140_s9 + $0xf] ss:$0 sm:$0xff] }
 0xdc1   : > { %9114 = vmatpush3.bf16.msra.mxu0 %v10829_v32 }
 0xdc2   : > { %v2802_v46 = vmul.f32 %v8083_v56, %v2790_v26  ;;  %v10881_v28 = vpack.c.bf16 %v10871_v24, %v10869_v7  ;;  %9115 = vmatprep.subr.bf16.mxu0 %v9751_v22  ;;  %v10886_v37 = vadd.f32 %v8084_v3, %v2801_v25 }
 0xdc4   : > { %v10888_v9 = vadd.f32 %v8084_v3, %v2802_v46  ;;  %9109 = vmatprep.mubr.msk.bf16.mxu0 %vm546_vm3, %v10881_v28  ;;  %9141 = vmatprep.mubr.msk.bf16.mxu1 %vm546_vm3, %v10881_v28 }
 0xdc5   : > { %9116 = vmatpush3.bf16.msra.mxu0 %v9751_v22 }
 0xdc6   : > { %v10896_v32 = vpack.c.bf16 %v10888_v9, %v10886_v37  ;;  %9117 = vmatprep.subr.bf16.mxu0 %v9752_v30 }
 0xdc8   : > { %9110 = vmatmul.mubr.msk.bf16.gmra.mrb[68].mxu0 %vm546_vm3, %v10896_v32  ;;  %9142 = vmatmul.mubr.msk.bf16.gmra.mrb[84].mxu1 %vm546_vm3, %v10896_v32 }
 0xdc9   : > { %9118 = vmatpush3.bf16.msra.mxu0 %v9752_v30  ;;  %9121 = vmatprep.mubr.msk.bf16.mxu0 %vm546_vm3, %v10850_v19 }
 0xdca   : > { %9119 = vmatprep.subr.bf16.mxu0 %v9753_v38  ;;  %9159 = vmatprep.mubr.msk.bf16.mxu1 %vm10150_vm4, %v10149_v2 }
 0xdcd   : > { %9120 = vmatpush3.bf16.msra.mxu0 %v9753_v38 }
 0xdce   : > { %9145 = vmatprep.subr.bf16.mxu0 %v10149_v2 }
 0xdd0   : > { %9122 = vmatmul.mubr.msk.bf16.vlgmr.msra.gmra.mrb[72].mxu0 %vm546_vm3, %v10864_v21 }
 0xdd1   : > { %9125 = vmatprep.mubr.msk.bf16.mxu0 %vm546_vm3, %v10881_v28 }
 0xdd8   : > { %9126 = vmatmul.mubr.msk.bf16.gmra.mrb[76].mxu0 %vm546_vm3, %v10896_v32 }
 0xdd9   : > { %9147 = vmatprep.mubr.msk.bf16.mxu0 %vm10150_vm4, %v10149_v2 }
 0xe93   : > { %v9107_v57 = vpop.f32.mrb[64].mxu0  ;;  %v9139_v44 = vpop.f32.mrb[80].mxu1 }
 0xe94   : > { %v2922_v31 = vpop.f32.mrb[65].mxu0  ;;  %v3110_v63 = vpop.f32.mrb[81].mxu1  ;;  %v10924_v48 = vadd.f32 %v9107_v57, %v8109_v15  ;;  %v10926_v40 = vadd.f32 %v9139_v44, %v8127_v10 }
 0xe95   : > { %v9108_v23 = vpop.f32.mrb[66].mxu0  ;;  %v9140_v20 = vpop.f32.mrb[82].mxu1  ;;  %v2923_v42 = vadd.f32 %v8109_v15, %v2922_v31  ;;  %v10932_v36 = vadd.f32 %v8127_v10, %v3110_v63 }
 0xe96   : > { %v10928_v49 = vadd.f32 %v9108_v23, %v8109_v15  ;;  %v10930_v50 = vadd.f32 %v9140_v20, %v8127_v10  ;;  %v2925_v1 = vpop.f32.mrb[67].mxu0  ;;  %v3113_v41 = vpop.f32.mrb[83].mxu1 }
 0xe97   : > { %v2926_v39 = vadd.f32 %v8109_v15, %v2925_v1  ;;  %v3114_v52 = vadd.f32 %v8127_v10, %v3113_v41 }
 0xe98   : > { %v3142_v47 = vpack.c.bf16 %v10928_v49, %v10924_v48  ;;  %v3430_v53 = vpack.c.bf16 %v10930_v50, %v10926_v40 }
 0xe99   : > { %v3141_v56 = vpack.c.bf16 %v2926_v39, %v2923_v42  ;;  %v3429_v29 = vpack.c.bf16 %v3114_v52, %v10932_v36 }
 0xe9b   : > { %v9111_v58 = vpop.f32.mrb[68].mxu0  ;;  %v9143_v33 = vpop.f32.mrb[84].mxu1 }
 0xe9c   : > { %v10939_v62 = vadd.f32 %v9143_v33, %v8127_v10  ;;  %v2938_v59 = vpop.f32.mrb[69].mxu0  ;;  %v3126_v61 = vpop.f32.mrb[85].mxu1  ;;  %v2947_v4 = vadd.f32 %v9111_v58, %v8109_v15 }
 0xe9d   : > { %v10941_v60 = vadd.f32 %v8127_v10, %v3126_v61  ;;  %v9112_v34 = vpop.f32.mrb[70].mxu0  ;;  %v9144_v3 = vpop.f32.mrb[86].mxu1  ;;  %v2939_v18 = vadd.f32 %v8109_v15, %v2938_v59 }
 0xe9e   : > { %v2950_v5 = vadd.f32 %v9112_v34, %v8109_v15  ;;  %v10943_v8 = vadd.f32 %v9144_v3, %v8127_v10  ;;  %v2941_v51 = vpop.f32.mrb[71].mxu0  ;;  %v3129_v43 = vpop.f32.mrb[87].mxu1 }
 0xe9f   : > { %v2942_v11 = vadd.f32 %v8109_v15, %v2941_v51  ;;  %v10945_v45 = vadd.f32 %v8127_v10, %v3129_v43 }
 0xea0   : > { %v3144_v12 = vpack.c.bf16 %v2950_v5, %v2947_v4  ;;  %v3432_v14 = vpack.c.bf16 %v10943_v8, %v10939_v62  ;;  %v9756_v62 = vld [vmem:[%s12134_s3 + $0xf0] sm:$0xff]   ;;  %v9757_v8 = vld [vmem:[%s12134_s3 + $0xf8] sm:$0xff]  }
 0xea1   : > { %v3143_v54 = vpack.c.bf16 %v2942_v11, %v2939_v18  ;;  %v3431_v35 = vpack.c.bf16 %v10945_v45, %v10941_v60 }
 0xea3   : > { %v9123_v27 = vpop.f32.mrb[72].mxu0 }
 0xea4   : > { %v3016_v22 = vpop.f32.mrb[73].mxu0  ;;  %v3025_v25 = vadd.f32 %v9123_v27, %v8118_v17 }
 0xea5   : > { %v9124_v6 = vpop.f32.mrb[74].mxu0  ;;  %v3017_v30 = vadd.f32 %v8118_v17, %v3016_v22 }
 0xea6   : > { %v3028_v26 = vadd.f32 %v9124_v6, %v8118_v17  ;;  %v3019_v46 = vpop.f32.mrb[75].mxu0 }
 0xea7   : > { %v3020_v38 = vadd.f32 %v8118_v17, %v3019_v46 }
 0xea8   : > { %v3146_v57 = vpack.c.bf16 %v3028_v26, %v3025_v25 }
 0xea9   : > { %v3145_v15 = vpack.c.bf16 %v3020_v38, %v3017_v30 }
 0xeaa   : > { %v3200_v36 = vsel %vm820_vm5, %v3146_v57, 0 }
 0xeab   : > { %v9127_v44 = vpop.f32.mrb[76].mxu0  ;;  %v3153_v10 = vsel %vm820_vm5, %v3145_v15, 0 }
 0xeac   : > { %v3032_v31 = vpop.f32.mrb[77].mxu0  ;;  %9146 = vmatpush3.bf16.xpose.msra.mxu0 %v3153_v10  ;;  %v3041_v23 = vadd.f32 %v9127_v44, %v8118_v17 }
 0xead   : > { %v9128_v63 = vpop.f32.mrb[78].mxu0  ;;  %9151 = vmatprep.subr.bf16.mxu0 %v10149_v2  ;;  %v3033_v49 = vadd.f32 %v8118_v17, %v3032_v31 }
 0xeae   : > { %v3044_v20 = vadd.f32 %v9128_v63, %v8118_v17  ;;  %v3035_v48 = vpop.f32.mrb[79].mxu0 }
 0xeaf   : > { %v3036_v1 = vadd.f32 %v8118_v17, %v3035_v48 }
 0xeb0   : > { %v3148_v41 = vpack.c.bf16 %v3044_v20, %v3041_v23 }
 0xeb1   : > { %v3147_v42 = vpack.c.bf16 %v3036_v1, %v3033_v49 }
 0xeb2   : > { %v3294_v52 = vsel %vm820_vm5, %v3148_v41, 0 }
 0xeb3   : > { %9148 = vmatmul.mubr.msk.bf16.vlgmr.msra.gmra.mrb[80].mxu0 %vm820_vm5, %v3141_v56  ;;  %v3247_v39 = vsel %vm820_vm5, %v3147_v42, 0 }
 0xeb4   : > { %9152 = vmatpush3.bf16.xpose.msra.mxu0 %v3200_v36  ;;  %9158 = vmatpush3.bf16.xpose.msra.mxu1 %v3247_v39 }
 0xeb5   : > { %9153 = vmatprep.mubr.msk.bf16.mxu0 %vm10150_vm4, %v10149_v2  ;;  %9163 = vmatprep.subr.bf16.mxu0 %v10149_v2 }
 0xeb6   : > { %9169 = vmatprep.subr.bf16.mxu1 %v10149_v2 }
 0xebb   : > { %9154 = vmatmul.mubr.msk.bf16.vlgmr.msra.gmra.mrb[84].mxu0 %vm820_vm5, %v3142_v47  ;;  %9160 = vmatmul.mubr.msk.bf16.vlgmr.msra.gmra.mrb[88].mxu1 %vm820_vm5, %v3143_v54 }
 0xebc   : > { %9164 = vmatpush3.bf16.xpose.msra.mxu0 %v3294_v52  ;;  %9170 = vmatpush3.bf16.msra.mxu1 %v3429_v29 }
 0xebd   : > { %9165 = vmatprep.mubr.msk.bf16.mxu0 %vm10150_vm4, %v10149_v2  ;;  %9175 = vmatprep.subr.bf16.mxu0 %v10149_v2 }
 0xebe   : > { %9171 = vmatprep.mubr.msk.bf16.mxu1 %vm10150_vm4, %v10149_v2  ;;  %9181 = vmatprep.subr.bf16.mxu1 %v10149_v2 }
 0xec3   : > { %9166 = vmatmul.mubr.msk.bf16.vlgmr.msra.gmra.mrb[88].mxu0 %vm820_vm5, %v3144_v12 }
 0xec4   : > { %9176 = vmatpush3.bf16.msra.mxu0 %v3430_v53  ;;  %9177 = vmatprep.mubr.msk.bf16.mxu0 %vm10150_vm4, %v10149_v2 }
 0xec5   : > { %9187 = vmatprep.subr.bf16.mxu0 %v10149_v2 }
 0xf86   : > { %v3189_v47 = vpop.f32.mrb[80].mxu0 }
 0xf87   : > { %v9149_v56 = vpop.f32.mrb[81].mxu0  ;;  %v3337_v29 = vsel %vm1009_vm6, %v3189_v47, -inf }
 0xf88   : > { %3338 = vmax.xlane.f32.xlu0 %v3337_v29  ;;  %v3192_v58 = vpop.f32.mrb[82].mxu0 }
 0xf89   : > { %v9150_v33 = vpop.f32.mrb[83].mxu0  ;;  %v3340_v59 = vsel %vm1009_vm6, %v3192_v58, -inf }
 0xf8a   : > { %3341 = vmax.xlane.f32.xlu1 %v3340_v59 }
 0xf8e   : > { %v3236_v61 = vpop.f32.mrb[84].mxu0  ;;  %v3283_v34 = vpop.f32.mrb[88].mxu1 }
 0xf8f   : > { %v9155_v3 = vpop.f32.mrb[85].mxu0  ;;  %v9161_v40 = vpop.f32.mrb[89].mxu1  ;;  %v3343_v50 = vsel %vm1009_vm6, %v3236_v61, -inf  ;;  %v3349_v18 = vsel %vm1009_vm6, %v3283_v34, -inf }
 0xf90   : > { %3344 = vmax.xlane.f32.xlu0 %v3343_v50  ;;  %v3239_v53 = vpop.f32.mrb[86].mxu0  ;;  %v3286_v4 = vpop.f32.mrb[90].mxu1 }
 0xf91   : > { %v9156_v5 = vpop.f32.mrb[87].mxu0  ;;  %v9162_v51 = vpop.f32.mrb[91].mxu1  ;;  %v3346_v43 = vsel %vm1009_vm6, %v3239_v53, -inf  ;;  %v3352_v11 = vsel %vm1009_vm6, %v3286_v4, -inf }
 0xf92   : > { %3347 = vmax.xlane.f32.xlu1 %v3346_v43 }
 0xf94   : > { %3350 = vmax.xlane.f32.xlu0 %v3349_v18 }
 0xf96   : > { %v3330_v12 = vpop.f32.mrb[88].mxu0  ;;  %3353 = vmax.xlane.f32.xlu1 %v3352_v11 }
 0xf97   : > { %v9167_v54 = vpop.f32.mrb[89].mxu0  ;;  %v3355_v27 = vsel %vm1009_vm6, %v3330_v12, -inf }
 0xf98   : > { %v3333_v17 = vpop.f32.mrb[90].mxu0  ;;  %3356 = vmax.xlane.f32.xlu0 %v3355_v27 }
 0xf99   : > { %v9168_v22 = vpop.f32.mrb[91].mxu0  ;;  %v3358_v6 = vsel %vm1009_vm6, %v3333_v17, -inf }
 0xf9a   : > { %3359 = vmax.xlane.f32.xlu1 %v3358_v6 }
0x1015   : > { %v3339_v25 = vpop.xlane.xlu0 %3338 }
0x1016   : > { %v3361_v26 = vsub.f32 %v3189_v47, %v3339_v25 }
0x1017   : > { %v3342_v46 = vpop.xlane.xlu1 %3341 }
0x1018   : > { %v3369_v30 = vmul.f32 1.442695, %v3361_v26  ;;  %v3362_v38 = vsub.f32 %v3192_v58, %v3342_v46 }
0x101a   : > { %9930 = vpow2.f32 %v3369_v30  ;;  %v3371_v57 = vmul.f32 1.442695, %v3362_v38 }
0x101c   : > { %9932 = vpow2.f32 %v3371_v57 }
0x101d   : > { %v3345_v15 = vpop.xlane.xlu0 %3344 }
0x101e   : > { %v3363_v44 = vsub.f32 %v3236_v61, %v3345_v15 }
0x101f   : > { %v3348_v10 = vpop.xlane.xlu1 %3347 }
0x1020   : > { %v3373_v31 = vmul.f32 1.442695, %v3363_v44  ;;  %v3364_v63 = vsub.f32 %v3239_v53, %v3348_v10 }
0x1021   : > { %v3351_v23 = vpop.xlane.xlu0 %3350 }
0x1022   : > { %9934 = vpow2.f32 %v3373_v31  ;;  %v3375_v20 = vmul.f32 1.442695, %v3364_v63  ;;  %v3365_v48 = vsub.f32 %v3283_v34, %v3351_v23 }
0x1023   : > { %v3354_v49 = vpop.xlane.xlu1 %3353 }
0x1024   : > { %v9931_v1 = vpop.eup %9930  ;;  %9936 = vpow2.f32 %v3375_v20  ;;  %v3377_v41 = vmul.f32 1.442695, %v3365_v48  ;;  %v3366_v42 = vsub.f32 %v3286_v4, %v3354_v49  ;;  %v9754_v49 = vld [vmem:[%s12134_s3 + $0xe0] sm:$0xff]  }
0x1025   : > { %v3357_v36 = vpop.xlane.xlu0 %3356  ;;  %v3385_v39 = vsel %vm1009_vm6, %v9931_v1, 0.0 }
0x1026   : > { %v9933_v52 = vpop.eup %9932  ;;  %9938 = vpow2.f32 %v3377_v41  ;;  %v3379_v47 = vmul.f32 1.442695, %v3366_v42  ;;  %v3367_v56 = vsub.f32 %v3330_v12, %v3357_v36  ;;  %3386 = vadd.xlane.f32.xlu0 %v3385_v39 }
0x1027   : > { %v3360_v29 = vpop.xlane.xlu1 %3359  ;;  %v3388_v58 = vsel %vm1009_vm6, %v9933_v52, 0.0 }
0x1028   : > { %9940 = vpow2.f32 %v3379_v47  ;;  %v3381_v33 = vmul.f32 1.442695, %v3367_v56  ;;  %v3368_v59 = vsub.f32 %v3333_v17, %v3360_v29  ;;  %3389 = vadd.xlane.f32.xlu1 %v3388_v58  ;;  %v9755_v47 = vld [vmem:[%s12134_s3 + $0xe8] sm:$0xff]   ;;  %v9760_v29 = vld [vmem:[%s12134_s3 + $0x170] sm:$0xff]   ;;  %v9761_v58 = vld [vmem:[%s12134_s3 + $0x178] sm:$0xff]  }
0x1029   : > { %v9759_v56 = vld [vmem:[%s12134_s3 + $0x168] sm:$0xff]  }
0x102a   : > { %9942 = vpow2.f32 %v3381_v33  ;;  %v3383_v61 = vmul.f32 1.442695, %v3368_v59  ;;  %v9762_v33 = vld [vmem:[%s12135_s4 + $0x20] sm:$0xff]   ;;  %v9763_v59 = vld [vmem:[%s12135_s4 + $0x28] sm:$0xff]  }
0x102c   : > { %v9935_v34 = vpop.eup %9934  ;;  %9944 = vpow2.f32 %v3383_v61  ;;  %v9764_v61 = vld [vmem:[%s12134_s3 + $0x120] sm:$0xff]  }
0x102d   : > { %v3391_v3 = vsel %vm1009_vm6, %v9935_v34, 0.0 }
0x102e   : > { %v9937_v40 = vpop.eup %9936  ;;  %3392 = vadd.xlane.f32.xlu0 %v3391_v3 }
0x102f   : > { %v3394_v50 = vsel %vm1009_vm6, %v9937_v40, 0.0 }
0x1030   : > { %v9939_v53 = vpop.eup %9938  ;;  %3395 = vadd.xlane.f32.xlu1 %v3394_v50 }
0x1031   : > { %v3397_v4 = vsel %vm1009_vm6, %v9939_v53, 0.0 }
0x1032   : > { %v9941_v5 = vpop.eup %9940  ;;  %3398 = vadd.xlane.f32.xlu0 %v3397_v4 }
0x1033   : > { %v3400_v51 = vsel %vm1009_vm6, %v9941_v5, 0.0 }
0x1034   : > { %v9943_v43 = vpop.eup %9942  ;;  %3401 = vadd.xlane.f32.xlu1 %v3400_v51 }
0x1035   : > { %v3403_v18 = vsel %vm1009_vm6, %v9943_v43, 0.0 }
0x1036   : > { %v9945_v11 = vpop.eup %9944  ;;  %3404 = vadd.xlane.f32.xlu0 %v3403_v18 }
0x1037   : > { %v3406_v12 = vsel %vm1009_vm6, %v9945_v11, 0.0 }
0x1038   : > { %3407 = vadd.xlane.f32.xlu1 %v3406_v12 }
0x10b3   : > { %v3387_v54 = vpop.xlane.xlu0 %3386 }
0x10b4   : > { %9946 = vrcp.f32 %v3387_v54 }
0x10b5   : > { %v3390_v27 = vpop.xlane.xlu1 %3389 }
0x10b6   : > { %9948 = vrcp.f32 %v3390_v27 }
0x10bb   : > { %v3393_v17 = vpop.xlane.xlu0 %3392 }
0x10bc   : > { %9950 = vrcp.f32 %v3393_v17 }
0x10bd   : > { %v3396_v22 = vpop.xlane.xlu1 %3395 }
0x10be   : > { %v9947_v6 = vpop.eup %9946  ;;  %9952 = vrcp.f32 %v3396_v22 }
0x10bf   : > { %v3399_v25 = vpop.xlane.xlu0 %3398  ;;  %v3417_v46 = vmul.f32 %v9947_v6, %v9931_v1  ;;  %v9766_v6 = vld [vmem:[%s12134_s3 + $0x130] sm:$0xff]  }
0x10c0   : > { %v9949_v26 = vpop.eup %9948  ;;  %9954 = vrcp.f32 %v3399_v25 }
0x10c1   : > { %v3418_v30 = vmul.f32 %v9949_v26, %v9933_v52  ;;  %v3402_v38 = vpop.xlane.xlu1 %3401 }
0x10c2   : > { %9956 = vrcp.f32 %v3402_v38 }
0x10c3   : > { %v3405_v57 = vpop.xlane.xlu0 %3404  ;;  %v3425_v15 = vpack.c.bf16 %v3418_v30, %v3417_v46 }
0x10c4   : > { %9958 = vrcp.f32 %v3405_v57  ;;  %v9767_v57 = vld [vmem:[%s12134_s3 + $0x138] sm:$0xff]  }
0x10c5   : > { %9172 = vmatmul.mubr.msk.bf16.vlgmr.msra.gmra.mrb[92].mxu1 %vm1009_vm6, %v3425_v15  ;;  %v3408_v44 = vpop.xlane.xlu1 %3407 }
0x10c6   : > { %v9951_v10 = vpop.eup %9950  ;;  %9182 = vmatpush3.bf16.msra.mxu1 %v3431_v35  ;;  %9960 = vrcp.f32 %v3408_v44  ;;  %9183 = vmatprep.mubr.msk.bf16.mxu1 %vm10150_vm4, %v10149_v2  ;;  %v8179_v44 = vld [vmem:[%s12140_s9 + $0xe] ss:$0 sm:$0xff] }
0x10c7   : > { %v3419_v63 = vmul.f32 %v9951_v10, %v9935_v34  ;;  %9193 = vmatprep.subr.bf16.mxu1 %v9762_v33 }
0x10c8   : > { %v9953_v31 = vpop.eup %9952 }
0x10c9   : > { %v3420_v23 = vmul.f32 %v9953_v31, %v9937_v40 }
0x10ca   : > { %v9955_v20 = vpop.eup %9954 }
0x10cb   : > { %v3426_v48 = vpack.c.bf16 %v3420_v23, %v3419_v63  ;;  %v3421_v41 = vmul.f32 %v9955_v20, %v9939_v53 }
0x10cc   : > { %v9957_v1 = vpop.eup %9956 }
0x10cd   : > { %v3422_v42 = vmul.f32 %v9957_v1, %v9941_v5  ;;  %9178 = vmatmul.mubr.msk.bf16.vlgmr.msra.gmra.mrb[92].mxu0 %vm1009_vm6, %v3426_v48 }
0x10ce   : > { %v9959_v60 = vpop.eup %9958  ;;  %9188 = vmatpush3.bf16.msra.mxu0 %v3432_v14  ;;  %9189 = vmatprep.mubr.msk.bf16.mxu0 %vm10150_vm4, %v10149_v2  ;;  %v9758_v14 = vld [vmem:[%s12134_s3 + $0x160] sm:$0xff]  }
0x10cf   : > { %v3427_v45 = vpack.c.bf16 %v3422_v42, %v3421_v41  ;;  %9205 = vmatprep.subr.bf16.mxu0 %v9754_v49  ;;  %v3423_v36 = vmul.f32 %v9959_v60, %v9943_v43 }
0x10d0   : > { %v9961_v35 = vpop.eup %9960 }
0x10d1   : > { %v3424_v39 = vmul.f32 %v9961_v35, %v9945_v11  ;;  %9184 = vmatmul.mubr.msk.bf16.vlgmr.msra.gmra.mrb[96].mxu1 %vm1009_vm6, %v3427_v45  ;;  %v9765_v11 = vld [vmem:[%s12134_s3 + $0x128] sm:$0xff]  }
0x10d2   : > { %9194 = vmatpush3.bf16.msra.mxu1 %v9762_v33 }
0x10d3   : > { %v3428_v52 = vpack.c.bf16 %v3424_v39, %v3423_v36  ;;  %9195 = vmatprep.subr.bf16.mxu1 %v9763_v59 }
0x10d5   : > { %9190 = vmatmul.mubr.msk.bf16.vlgmr.msra.gmra.mrb[96].mxu0 %vm1009_vm6, %v3428_v52 }
0x10d6   : > { %9206 = vmatpush3.bf16.msra.mxu0 %v9754_v49  ;;  %9213 = vmatprep.mubr.msk.bf16.mxu0 %vm546_vm3, %v10850_v19 }
0x10d7   : > { %9207 = vmatprep.subr.bf16.mxu0 %v9755_v47  ;;  %9196 = vmatpush3.bf16.msra.mxu1 %v9763_v59 }
0x10d8   : > { %9221 = vmatprep.subr.bf16.mxu1 %v9764_v61 }
0x10da   : > { %9208 = vmatpush3.bf16.msra.mxu0 %v9755_v47 }
0x10db   : > { %9209 = vmatprep.subr.bf16.mxu0 %v9756_v62 }
0x10de   : > { %9210 = vmatpush3.bf16.msra.mxu0 %v9756_v62 }
0x10df   : > { %9211 = vmatprep.subr.bf16.mxu0 %v9757_v8 }
0x10e2   : > { %9212 = vmatpush3.bf16.msra.mxu0 %v9757_v8 }
0x10e3   : > { %9237 = vmatprep.subr.bf16.mxu0 %v9758_v14 }
0x10e5   : > { %9214 = vmatmul.mubr.msk.bf16.vlgmr.msra.gmra.mrb[100].mxu0 %vm546_vm3, %v10864_v21 }
0x10e6   : > { %9217 = vmatprep.mubr.msk.bf16.mxu0 %vm546_vm3, %v10881_v28  ;;  %9238 = vmatpush3.bf16.msra.mxu0 %v9758_v14 }
0x10e7   : > { %9239 = vmatprep.subr.bf16.mxu0 %v9759_v56 }
0x10ea   : > { %9240 = vmatpush3.bf16.msra.mxu0 %v9759_v56 }
0x10eb   : > { %9241 = vmatprep.subr.bf16.mxu0 %v9760_v29 }
0x10ed   : > { %9218 = vmatmul.mubr.msk.bf16.gmra.mrb[104].mxu0 %vm546_vm3, %v10896_v32 }
0x10ee   : > { %9242 = vmatpush3.bf16.msra.mxu0 %v9760_v29  ;;  %9245 = vmatprep.mubr.msk.bf16.mxu0 %vm546_vm3, %v10850_v19 }
0x10ef   : > { %9243 = vmatprep.subr.bf16.mxu0 %v9761_v58 }
0x10f2   : > { %9244 = vmatpush3.bf16.msra.mxu0 %v9761_v58 }
0x10f3   : > { %9265 = vmatprep.subr.bf16.mxu0 %v10149_v2 }
0x10f5   : > { %9246 = vmatmul.mubr.msk.bf16.vlgmr.msra.gmra.mrb[108].mxu0 %vm546_vm3, %v10864_v21 }
0x10f6   : > { %9249 = vmatprep.mubr.msk.bf16.mxu0 %vm546_vm3, %v10881_v28 }
0x10fd   : > { %9250 = vmatmul.mubr.msk.bf16.gmra.mrb[112].mxu0 %vm546_vm3, %v10896_v32 }
0x10fe   : > { %9267 = vmatprep.mubr.msk.bf16.mxu0 %vm10150_vm4, %v10149_v2 }
0x1198   : > { %v3470_v34 = vpop.f32.mrb[92].mxu1 }
0x1199   : > { %v9173_v3 = vpop.f32.mrb[93].mxu1 }
0x119a   : > { %v3473_v40 = vpop.f32.mrb[94].mxu1 }
0x119b   : > { %v3614_v50 = vpack.c.bf16 %v3473_v40, %v3470_v34  ;;  %v9174_v53 = vpop.f32.mrb[95].mxu1 }
0x119d   : > { %9197 = vmatprep.mubr.msk.bf16.mxu1 %vm820_vm5, %v3614_v50 }
0x11a0   : > { %v3514_v4 = vpop.f32.mrb[92].mxu0 }
0x11a1   : > { %v9179_v5 = vpop.f32.mrb[93].mxu0 }
0x11a2   : > { %v3517_v51 = vpop.f32.mrb[94].mxu0 }
0x11a3   : > { %v3615_v43 = vpack.c.bf16 %v3517_v51, %v3514_v4  ;;  %v9180_v18 = vpop.f32.mrb[95].mxu0 }
0x11a4   : > { %v3558_v12 = vpop.f32.mrb[96].mxu1 }
0x11a5   : > { %v9185_v54 = vpop.f32.mrb[97].mxu1  ;;  %9198 = vmatmul.mubr.msk.bf16.vlgmr.msra.gmra.mrb[100].mxu1 %vm820_vm5, %v3615_v43 }
0x11a6   : > { %v3561_v27 = vpop.f32.mrb[98].mxu1  ;;  %9222 = vmatpush3.bf16.msra.mxu1 %v9764_v61 }
0x11a7   : > { %v3616_v17 = vpack.c.bf16 %v3561_v27, %v3558_v12  ;;  %v9186_v22 = vpop.f32.mrb[99].mxu1  ;;  %9223 = vmatprep.subr.bf16.mxu1 %v9765_v11  ;;  %v8188_v12 = vld [vmem:[%s12140_s9 + $0x10] ss:$0 sm:$0xff] }
0x11a8   : > { %v3602_v25 = vpop.f32.mrb[96].mxu0 }
0x11a9   : > { %v9191_v26 = vpop.f32.mrb[97].mxu0  ;;  %9201 = vmatprep.mubr.msk.bf16.mxu1 %vm820_vm5, %v3616_v17 }
0x11aa   : > { %v3605_v46 = vpop.f32.mrb[98].mxu0  ;;  %9224 = vmatpush3.bf16.msra.mxu1 %v9765_v11 }
0x11ab   : > { %v3617_v30 = vpack.c.bf16 %v3605_v46, %v3602_v25  ;;  %v9192_v38 = vpop.f32.mrb[99].mxu0  ;;  %9225 = vmatprep.subr.bf16.mxu1 %v9766_v6 }
0x11ad   : > { %9202 = vmatmul.mubr.msk.bf16.gmra.mrb[104].mxu1 %vm820_vm5, %v3617_v30 }
0x11ae   : > { %9226 = vmatpush3.bf16.msra.mxu1 %v9766_v6  ;;  %9229 = vmatprep.mubr.msk.bf16.mxu1 %vm546_vm3, %v10850_v19 }
0x11af   : > { %9227 = vmatprep.subr.bf16.mxu1 %v9767_v57 }
0x11b2   : > { %9228 = vmatpush3.bf16.msra.mxu1 %v9767_v57 }
0x11b3   : > { %9253 = vmatprep.subr.bf16.mxu1 %v10149_v2 }
0x11b5   : > { %9230 = vmatmul.mubr.msk.bf16.vlgmr.msra.gmra.mrb[108].mxu1 %vm546_vm3, %v10864_v21 }
0x11b6   : > { %9233 = vmatprep.mubr.msk.bf16.mxu1 %vm546_vm3, %v10881_v28 }
0x11b8   : > { %v9215_v15 = vpop.f32.mrb[100].mxu0 }
0x11b9   : > { %v3809_v10 = vpop.f32.mrb[101].mxu0  ;;  %v11084_v63 = vadd.f32 %v9215_v15, %v8179_v44 }
0x11ba   : > { %v9216_v31 = vpop.f32.mrb[102].mxu0  ;;  %v3810_v20 = vadd.f32 %v8179_v44, %v3809_v10 }
0x11bb   : > { %v11086_v19 = vadd.f32 %v9216_v31, %v8179_v44  ;;  %v3812_v23 = vpop.f32.mrb[103].mxu0 }
0x11bc   : > { %v3813_v48 = vadd.f32 %v8179_v44, %v3812_v23 }
0x11bd   : > { %v4029_v21 = vpack.c.bf16 %v11086_v19, %v11084_v63  ;;  %9234 = vmatmul.mubr.msk.bf16.gmra.mrb[112].mxu1 %vm546_vm3, %v10896_v32  ;;  %v8197_v32 = vld [vmem:[%s12140_s9 + $0x12] ss:$0 sm:$0xff] }
0x11be   : > { %v4028_v28 = vpack.c.bf16 %v3813_v48, %v3810_v20  ;;  %9255 = vmatprep.mubr.msk.bf16.mxu1 %vm10150_vm4, %v10149_v2 }
0x11c0   : > { %v9219_v49 = vpop.f32.mrb[104].mxu0 }
0x11c1   : > { %v3825_v1 = vpop.f32.mrb[105].mxu0  ;;  %v11094_v42 = vadd.f32 %v9219_v49, %v8179_v44 }
0x11c2   : > { %v9220_v41 = vpop.f32.mrb[106].mxu0  ;;  %v3826_v35 = vadd.f32 %v8179_v44, %v3825_v1 }
0x11c3   : > { %v11096_v60 = vadd.f32 %v9220_v41, %v8179_v44  ;;  %v3828_v45 = vpop.f32.mrb[107].mxu0 }
0x11c4   : > { %v3829_v36 = vadd.f32 %v8179_v44, %v3828_v45 }
0x11c5   : > { %v4031_v39 = vpack.c.bf16 %v11096_v60, %v11094_v42 }
0x11c6   : > { %v4030_v52 = vpack.c.bf16 %v3829_v36, %v3826_v35 }
0x11c8   : > { %v9247_v47 = vpop.f32.mrb[108].mxu0 }
0x11c9   : > { %v3997_v62 = vpop.f32.mrb[109].mxu0  ;;  %v4006_v14 = vadd.f32 %v9247_v47, %v8197_v32 }
0x11ca   : > { %v9248_v8 = vpop.f32.mrb[110].mxu0  ;;  %v3998_v58 = vadd.f32 %v8197_v32, %v3997_v62 }
0x11cb   : > { %v4009_v56 = vadd.f32 %v9248_v8, %v8197_v32  ;;  %v4000_v29 = vpop.f32.mrb[111].mxu0 }
0x11cc   : > { %v4001_v33 = vadd.f32 %v8197_v32, %v4000_v29 }
0x11cd   : > { %v4317_v59 = vpack.c.bf16 %v4009_v56, %v4006_v14 }
0x11ce   : > { %v4316_v61 = vpack.c.bf16 %v4001_v33, %v3998_v58 }
0x11d0   : > { %v9251_v34 = vpop.f32.mrb[112].mxu0 }
0x11d1   : > { %v11103_v3 = vadd.f32 %v9251_v34, %v8197_v32  ;;  %v4013_v40 = vpop.f32.mrb[113].mxu0 }
0x11d2   : > { %v11105_v50 = vadd.f32 %v8197_v32, %v4013_v40  ;;  %v9252_v53 = vpop.f32.mrb[114].mxu0 }
0x11d3   : > { %v11107_v4 = vadd.f32 %v9252_v53, %v8197_v32  ;;  %v4016_v5 = vpop.f32.mrb[115].mxu0 }
0x11d4   : > { %v11109_v51 = vadd.f32 %v8197_v32, %v4016_v5 }
0x11d5   : > { %v4319_v43 = vpack.c.bf16 %v11107_v4, %v11103_v3  ;;  %v9769_v3 = vld [vmem:[%s12135_s4 + $0x38] sm:$0xff]  }
0x11d6   : > { %v4318_v18 = vpack.c.bf16 %v11109_v51, %v11105_v50 }
0x1288   : > { %v9231_v11 = vpop.f32.mrb[108].mxu1 }
0x1289   : > { %v3903_v54 = vpop.f32.mrb[109].mxu1  ;;  %v3912_v17 = vadd.f32 %v9231_v11, %v8188_v12 }
0x128a   : > { %v9232_v27 = vpop.f32.mrb[110].mxu1  ;;  %v3904_v25 = vadd.f32 %v8188_v12, %v3903_v54 }
0x128b   : > { %v3915_v22 = vadd.f32 %v9232_v27, %v8188_v12  ;;  %v3906_v6 = vpop.f32.mrb[111].mxu1 }
0x128c   : > { %v3907_v26 = vadd.f32 %v8188_v12, %v3906_v6 }
0x128d   : > { %v4033_v46 = vpack.c.bf16 %v3915_v22, %v3912_v17 }
0x128e   : > { %v4032_v30 = vpack.c.bf16 %v3907_v26, %v3904_v25 }
0x128f   : > { %v4087_v41 = vsel %vm820_vm5, %v4033_v46, 0 }
0x1290   : > { %v9235_v38 = vpop.f32.mrb[112].mxu1  ;;  %v4040_v57 = vsel %vm820_vm5, %v4032_v30, 0 }
0x1291   : > { %v3919_v15 = vpop.f32.mrb[113].mxu1  ;;  %9254 = vmatpush3.bf16.xpose.msra.mxu1 %v4040_v57  ;;  %v3928_v10 = vadd.f32 %v9235_v38, %v8188_v12 }
0x1292   : > { %v9236_v44 = vpop.f32.mrb[114].mxu1  ;;  %9259 = vmatprep.subr.bf16.mxu1 %v10149_v2  ;;  %v3920_v20 = vadd.f32 %v8188_v12, %v3919_v15 }
0x1293   : > { %v3931_v31 = vadd.f32 %v9236_v44, %v8188_v12  ;;  %v3922_v23 = vpop.f32.mrb[115].mxu1 }
0x1294   : > { %v3923_v48 = vadd.f32 %v8188_v12, %v3922_v23 }
0x1295   : > { %v4035_v49 = vpack.c.bf16 %v3931_v31, %v3928_v10 }
0x1296   : > { %v4034_v1 = vpack.c.bf16 %v3923_v48, %v3920_v20 }
0x1298   : > { %9256 = vmatmul.mubr.msk.bf16.vlgmr.msra.gmra.mrb[116].mxu1 %vm820_vm5, %v4028_v28  ;;  %v4134_v45 = vsel %vm820_vm5, %v4034_v1, 0  ;;  %v4181_v28 = vsel %vm820_vm5, %v4035_v49, 0 }
0x1299   : > { %9260 = vmatpush3.bf16.xpose.msra.mxu1 %v4087_v41  ;;  %9266 = vmatpush3.bf16.xpose.msra.mxu0 %v4134_v45 }
0x129a   : > { %9261 = vmatprep.mubr.msk.bf16.mxu1 %vm10150_vm4, %v10149_v2  ;;  %9271 = vmatprep.subr.bf16.mxu1 %v10149_v2 }
0x129b   : > { %9277 = vmatprep.subr.bf16.mxu0 %v10149_v2 }
0x12a0   : > { %9262 = vmatmul.mubr.msk.bf16.vlgmr.msra.gmra.mrb[120].mxu1 %vm820_vm5, %v4029_v21  ;;  %9268 = vmatmul.mubr.msk.bf16.vlgmr.msra.gmra.mrb[116].mxu0 %vm820_vm5, %v4030_v52 }
0x12a1   : > { %9272 = vmatpush3.bf16.xpose.msra.mxu1 %v4181_v28  ;;  %9278 = vmatpush3.bf16.msra.mxu0 %v4316_v61 }
0x12a2   : > { %9273 = vmatprep.mubr.msk.bf16.mxu1 %vm10150_vm4, %v10149_v2  ;;  %9283 = vmatprep.subr.bf16.mxu1 %v10149_v2 }
0x12a3   : > { %9279 = vmatprep.mubr.msk.bf16.mxu0 %vm10150_vm4, %v10149_v2  ;;  %9289 = vmatprep.subr.bf16.mxu0 %v10149_v2 }
0x12a8   : > { %9274 = vmatmul.mubr.msk.bf16.vlgmr.msra.gmra.mrb[124].mxu1 %vm820_vm5, %v4031_v39 }
0x12a9   : > { %9284 = vmatpush3.bf16.msra.mxu1 %v4317_v59  ;;  %9285 = vmatprep.mubr.msk.bf16.mxu1 %vm10150_vm4, %v10149_v2 }
0x12aa   : > { %9295 = vmatprep.subr.bf16.mxu1 %v10149_v2 }
0x136b   : > { %v4076_v63 = vpop.f32.mrb[116].mxu1 }
0x136c   : > { %v9257_v19 = vpop.f32.mrb[117].mxu1  ;;  %v4224_v21 = vsel %vm1009_vm6, %v4076_v63, -inf }
0x136d   : > { %4225 = vmax.xlane.f32.xlu0 %v4224_v21  ;;  %v4079_v35 = vpop.f32.mrb[118].mxu1 }
0x136e   : > { %v9258_v36 = vpop.f32.mrb[119].mxu1  ;;  %v4227_v52 = vsel %vm1009_vm6, %v4079_v35, -inf }
0x136f   : > { %4228 = vmax.xlane.f32.xlu1 %v4227_v52 }
0x1373   : > { %v4123_v47 = vpop.f32.mrb[120].mxu1  ;;  %v4170_v42 = vpop.f32.mrb[116].mxu0 }
0x1374   : > { %v9263_v60 = vpop.f32.mrb[121].mxu1  ;;  %v9269_v39 = vpop.f32.mrb[117].mxu0  ;;  %v4230_v32 = vsel %vm1009_vm6, %v4123_v47, -inf  ;;  %v4236_v58 = vsel %vm1009_vm6, %v4170_v42, -inf }
0x1375   : > { %v4173_v62 = vpop.f32.mrb[118].mxu0  ;;  %4231 = vmax.xlane.f32.xlu0 %v4230_v32  ;;  %v4126_v8 = vpop.f32.mrb[122].mxu1 }
0x1376   : > { %v9264_v14 = vpop.f32.mrb[123].mxu1  ;;  %v9270_v56 = vpop.f32.mrb[119].mxu0  ;;  %v4233_v29 = vsel %vm1009_vm6, %v4126_v8, -inf  ;;  %v4239_v33 = vsel %vm1009_vm6, %v4173_v62, -inf }
0x1377   : > { %4234 = vmax.xlane.f32.xlu1 %v4233_v29 }
0x1379   : > { %4237 = vmax.xlane.f32.xlu0 %v4236_v58 }
0x137b   : > { %4240 = vmax.xlane.f32.xlu1 %v4239_v33  ;;  %v4217_v59 = vpop.f32.mrb[124].mxu1 }
0x137c   : > { %v9275_v61 = vpop.f32.mrb[125].mxu1  ;;  %v4242_v34 = vsel %vm1009_vm6, %v4217_v59, -inf }
0x137d   : > { %4243 = vmax.xlane.f32.xlu0 %v4242_v34  ;;  %v4220_v40 = vpop.f32.mrb[126].mxu1 }
0x137e   : > { %v9276_v53 = vpop.f32.mrb[127].mxu1  ;;  %v4245_v5 = vsel %vm1009_vm6, %v4220_v40, -inf }
0x137f   : > { %4246 = vmax.xlane.f32.xlu1 %v4245_v5 }
0x13fa   : > { %v4226_v11 = vpop.xlane.xlu0 %4225 }
0x13fb   : > { %v4248_v12 = vsub.f32 %v4076_v63, %v4226_v11 }
0x13fc   : > { %v4229_v54 = vpop.xlane.xlu1 %4228 }
0x13fd   : > { %v4256_v27 = vmul.f32 1.442695, %v4248_v12  ;;  %v4249_v17 = vsub.f32 %v4079_v35, %v4229_v54 }
0x13ff   : > { %9962 = vpow2.f32 %v4256_v27  ;;  %v4258_v22 = vmul.f32 1.442695, %v4249_v17 }
0x1401   : > { %9964 = vpow2.f32 %v4258_v22 }
0x1402   : > { %v4232_v6 = vpop.xlane.xlu0 %4231 }
0x1403   : > { %v4250_v25 = vsub.f32 %v4123_v47, %v4232_v6 }
0x1404   : > { %v4235_v26 = vpop.xlane.xlu1 %4234 }
0x1405   : > { %v4260_v46 = vmul.f32 1.442695, %v4250_v25  ;;  %v4251_v30 = vsub.f32 %v4126_v8, %v4235_v26 }
0x1406   : > { %v4238_v38 = vpop.xlane.xlu0 %4237 }
0x1407   : > { %9966 = vpow2.f32 %v4260_v46  ;;  %v4262_v57 = vmul.f32 1.442695, %v4251_v30  ;;  %v4252_v15 = vsub.f32 %v4170_v42, %v4238_v38 }
0x1408   : > { %v4241_v44 = vpop.xlane.xlu1 %4240 }
0x1409   : > { %v9963_v10 = vpop.eup %9962  ;;  %9968 = vpow2.f32 %v4262_v57  ;;  %v4264_v31 = vmul.f32 1.442695, %v4252_v15  ;;  %v4253_v23 = vsub.f32 %v4173_v62, %v4241_v44 }
0x140a   : > { %v4244_v20 = vpop.xlane.xlu0 %4243  ;;  %v4272_v48 = vsel %vm1009_vm6, %v9963_v10, 0.0 }
0x140b   : > { %v9965_v49 = vpop.eup %9964  ;;  %9970 = vpow2.f32 %v4264_v31  ;;  %v4266_v1 = vmul.f32 1.442695, %v4253_v23  ;;  %v4254_v41 = vsub.f32 %v4217_v59, %v4244_v20  ;;  %4273 = vadd.xlane.f32.xlu0 %v4272_v48  ;;  %v9768_v31 = vld [vmem:[%s12135_s4 + $0x30] sm:$0xff]  }
0x140c   : > { %v4247_v45 = vpop.xlane.xlu1 %4246  ;;  %v4275_v28 = vsel %vm1009_vm6, %v9965_v49, 0.0 }
0x140d   : > { %9972 = vpow2.f32 %v4266_v1  ;;  %v4268_v63 = vmul.f32 1.442695, %v4254_v41  ;;  %v4255_v19 = vsub.f32 %v4220_v40, %v4247_v45  ;;  %4276 = vadd.xlane.f32.xlu1 %v4275_v28 }
0x140f   : > { %9974 = vpow2.f32 %v4268_v63  ;;  %v4270_v21 = vmul.f32 1.442695, %v4255_v19 }
0x1411   : > { %v9967_v35 = vpop.eup %9966  ;;  %9976 = vpow2.f32 %v4270_v21 }
0x1412   : > { %v4278_v36 = vsel %vm1009_vm6, %v9967_v35, 0.0 }
0x1413   : > { %v9969_v52 = vpop.eup %9968  ;;  %4279 = vadd.xlane.f32.xlu0 %v4278_v36 }
0x1414   : > { %v4281_v47 = vsel %vm1009_vm6, %v9969_v52, 0.0 }
0x1415   : > { %v9971_v42 = vpop.eup %9970  ;;  %4282 = vadd.xlane.f32.xlu1 %v4281_v47 }
0x1416   : > { %v4284_v60 = vsel %vm1009_vm6, %v9971_v42, 0.0 }
0x1417   : > { %v9973_v39 = vpop.eup %9972  ;;  %4285 = vadd.xlane.f32.xlu0 %v4284_v60 }
0x1418   : > { %v4287_v32 = vsel %vm1009_vm6, %v9973_v39, 0.0 }
0x1419   : > { %v9975_v62 = vpop.eup %9974  ;;  %4288 = vadd.xlane.f32.xlu1 %v4287_v32  ;;  %v8154_v32 = vld [vmem:[%s12140_s9 + $0x13] ss:$0 sm:$0xff] }
0x141a   : > { %v4290_v8 = vsel %vm1009_vm6, %v9975_v62, 0.0 }
0x141b   : > { %v9977_v14 = vpop.eup %9976  ;;  %4291 = vadd.xlane.f32.xlu0 %v4290_v8 }
0x141c   : > { %v4293_v56 = vsel %vm1009_vm6, %v9977_v14, 0.0 }
0x141d   : > { %4294 = vadd.xlane.f32.xlu1 %v4293_v56 }
0x1498   : > { %v4274_v29 = vpop.xlane.xlu0 %4273 }
0x1499   : > { %9978 = vrcp.f32 %v4274_v29 }
0x149a   : > { %v4277_v58 = vpop.xlane.xlu1 %4276 }
0x149b   : > { %9980 = vrcp.f32 %v4277_v58 }
0x14a0   : > { %v4280_v33 = vpop.xlane.xlu0 %4279 }
0x14a1   : > { %9982 = vrcp.f32 %v4280_v33 }
0x14a2   : > { %v4283_v59 = vpop.xlane.xlu1 %4282 }
0x14a3   : > { %v9979_v61 = vpop.eup %9978  ;;  %9984 = vrcp.f32 %v4283_v59 }
0x14a4   : > { %v4286_v34 = vpop.xlane.xlu0 %4285  ;;  %v4304_v53 = vmul.f32 %v9979_v61, %v9963_v10 }
0x14a5   : > { %v9981_v40 = vpop.eup %9980  ;;  %9986 = vrcp.f32 %v4286_v34 }
0x14a6   : > { %v4305_v5 = vmul.f32 %v9981_v40, %v9965_v49  ;;  %v4289_v11 = vpop.xlane.xlu1 %4288 }
0x14a7   : > { %9988 = vrcp.f32 %v4289_v11 }
0x14a8   : > { %v4292_v12 = vpop.xlane.xlu0 %4291  ;;  %v4312_v54 = vpack.c.bf16 %v4305_v5, %v4304_v53 }
0x14a9   : > { %9990 = vrcp.f32 %v4292_v12 }
0x14aa   : > { %9280 = vmatmul.mubr.msk.bf16.vlgmr.msra.gmra.mrb[120].mxu0 %vm1009_vm6, %v4312_v54  ;;  %v4295_v27 = vpop.xlane.xlu1 %4294 }
0x14ab   : > { %v9983_v17 = vpop.eup %9982  ;;  %9290 = vmatpush3.bf16.msra.mxu0 %v4318_v18  ;;  %9992 = vrcp.f32 %v4295_v27  ;;  %9291 = vmatprep.mubr.msk.bf16.mxu0 %vm10150_vm4, %v10149_v2 }
0x14ac   : > { %v4306_v6 = vmul.f32 %v9983_v17, %v9967_v35 }
0x14ad   : > { %v9985_v22 = vpop.eup %9984 }
0x14ae   : > { %v4307_v25 = vmul.f32 %v9985_v22, %v9969_v52 }
0x14af   : > { %v9987_v26 = vpop.eup %9986 }
0x14b0   : > { %v4313_v46 = vpack.c.bf16 %v4307_v25, %v4306_v6  ;;  %v4308_v38 = vmul.f32 %v9987_v26, %v9971_v42 }
0x14b1   : > { %v9989_v30 = vpop.eup %9988 }
0x14b2   : > { %v4309_v57 = vmul.f32 %v9989_v30, %v9973_v39  ;;  %9286 = vmatmul.mubr.msk.bf16.vlgmr.msra.gmra.mrb[128].mxu1 %vm1009_vm6, %v4313_v46 }
0x14b3   : > { %v9991_v15 = vpop.eup %9990  ;;  %9296 = vmatpush3.bf16.msra.mxu1 %v4319_v43  ;;  %9297 = vmatprep.mubr.msk.bf16.mxu1 %vm10150_vm4, %v10149_v2 }
0x14b4   : > { %v4314_v50 = vpack.c.bf16 %v4309_v57, %v4308_v38  ;;  %v4310_v18 = vmul.f32 %v9991_v15, %v9975_v62  ;;  %9301 = vmatprep.subr.bf16.mxu1 %v9768_v31 }
0x14b5   : > { %v9993_v51 = vpop.eup %9992 }
0x14b6   : > { %v4311_v44 = vmul.f32 %v9993_v51, %v9977_v14  ;;  %9292 = vmatmul.mubr.msk.bf16.vlgmr.msra.gmra.mrb[124].mxu0 %vm1009_vm6, %v4314_v50 }
0x14b8   : > { %v4315_v10 = vpack.c.bf16 %v4311_v44, %v4310_v18 }
0x14ba   : > { %9298 = vmatmul.mubr.msk.bf16.vlgmr.msra.gmra.mrb[132].mxu1 %vm1009_vm6, %v4315_v10 }
0x14bb   : > { %9302 = vmatpush3.bf16.msra.mxu1 %v9768_v31 }
0x14bc   : > { %9303 = vmatprep.subr.bf16.mxu1 %v9769_v3 }
0x14bf   : > { %9304 = vmatpush3.bf16.msra.mxu1 %v9769_v3 }
0x157d   : > { %v4357_v4 = vpop.f32.mrb[120].mxu0 }
0x157e   : > { %v9281_v43 = vpop.f32.mrb[121].mxu0 }
0x157f   : > { %v4360_v23 = vpop.f32.mrb[122].mxu0 }
0x1580   : > { %v4501_v20 = vpack.c.bf16 %v4360_v23, %v4357_v4  ;;  %v9282_v48 = vpop.f32.mrb[123].mxu0 }
0x1582   : > { %9305 = vmatprep.mubr.msk.bf16.mxu1 %vm820_vm5, %v4501_v20 }
0x1585   : > { %v4401_v49 = vpop.f32.mrb[128].mxu1 }
0x1586   : > { %v9287_v1 = vpop.f32.mrb[129].mxu1 }
0x1587   : > { %v4404_v41 = vpop.f32.mrb[130].mxu1 }
0x1588   : > { %v4502_v45 = vpack.c.bf16 %v4404_v41, %v4401_v49  ;;  %v9288_v28 = vpop.f32.mrb[131].mxu1 }
0x1589   : > { %v4445_v63 = vpop.f32.mrb[124].mxu0 }
0x158a   : > { %v9293_v19 = vpop.f32.mrb[125].mxu0  ;;  %9306 = vmatmul.mubr.msk.bf16.vlgmr.msra.gmra.mrb[100].mxu1 %vm820_vm5, %v4502_v45 }
0x158b   : > { %v4448_v21 = vpop.f32.mrb[126].mxu0 }
0x158c   : > { %v4503_v35 = vpack.c.bf16 %v4448_v21, %v4445_v63  ;;  %v9294_v36 = vpop.f32.mrb[127].mxu0 }
0x158d   : > { %v4489_v52 = vpop.f32.mrb[132].mxu1 }
0x158e   : > { %v9299_v47 = vpop.f32.mrb[133].mxu1  ;;  %9309 = vmatprep.mubr.msk.bf16.mxu1 %vm820_vm5, %v4503_v35 }
0x158f   : > { %v4492_v42 = vpop.f32.mrb[134].mxu1 }
0x1590   : > { %v4504_v60 = vpack.c.bf16 %v4492_v42, %v4489_v52  ;;  %v9300_v39 = vpop.f32.mrb[135].mxu1 }
0x1592   : > { %9310 = vmatmul.mubr.msk.bf16.gmra.mrb[104].mxu1 %vm820_vm5, %v4504_v60 }
0x165d   : > { %v9307_v62 = vpop.f32.mrb[100].mxu1 }
0x165e   : > { %v4563_v8 = vpop.f32.mrb[101].mxu1  ;;  %v9649_v14 = vadd.f32 %v9307_v62, %v8154_v32 }
0x165f   : > { %v9650_v56 = vadd.f32 %v8154_v32, %v4563_v8  ;;  %v9308_v29 = vpop.f32.mrb[102].mxu1 }
0x1660   : > { %v4566_v58 = vpop.f32.mrb[103].mxu1  ;;  %v9651_v33 = vadd.f32 %v9308_v29, %v8154_v32  ;;  %v4604_v34 = vadd.f32 %v9649_v14, %v10852_v13 }
0x1661   : > { %v9652_v59 = vadd.f32 %v8154_v32, %v4566_v58  ;;  %v4602_v61 = vadd.f32 %v9650_v56, %v10842_v16 }
0x1662   : > { %v4605_v5 = vadd.f32 %v9651_v33, %v10854_v55  ;;  %v4618_v6 = vsel %vm546_vm3, %v4604_v34, 0.0 }
0x1663   : > { %v4612_v40 = vsel %vm546_vm3, %v4602_v61, 0.0  ;;  %v4603_v53 = vadd.f32 %v9652_v59, %v10844_v0 }
0x1664   : > { %4613 = vadd.xlane.f32.xlu0 %v4612_v40  ;;  %v4621_v0 = vsel %vm546_vm3, %v4605_v5, 0.0  ;;  %v9771_v40 = vld [vmem:[%s12136_s5 + $0x28] sm:$0xff]  }
0x1665   : > { %v9311_v11 = vpop.f32.mrb[104].mxu1  ;;  %v4615_v12 = vsel %vm546_vm3, %v4603_v53, 0.0 }
0x1666   : > { %4616 = vadd.xlane.f32.xlu1 %v4615_v12  ;;  %v4579_v54 = vpop.f32.mrb[105].mxu1  ;;  %v9653_v27 = vadd.f32 %v9311_v11, %v8154_v32  ;;  %v9774_v11 = vld [vmem:[%s12137_s6 + $0x40] sm:$0xff]   ;;  %v9775_v12 = vld [vmem:[%s12137_s6 + $0x48] sm:$0xff]  }
0x1667   : > { %v9654_v17 = vadd.f32 %v8154_v32, %v4579_v54  ;;  %v9312_v22 = vpop.f32.mrb[106].mxu1  ;;  %9329 = vmatprep.subr.bf16.mxu1 %v9774_v11  ;;  %v9776_v54 = vld [vmem:[%s12137_s6 + $0x50] sm:$0xff]  }
0x1668   : > { %4619 = vadd.xlane.f32.xlu0 %v4618_v6  ;;  %v4582_v16 = vpop.f32.mrb[107].mxu1  ;;  %v9655_v25 = vadd.f32 %v9312_v22, %v8154_v32  ;;  %v4608_v55 = vadd.f32 %v9653_v27, %v10886_v37  ;;  %9330 = vmatpush3.bf16.msra.mxu1 %v9774_v11  ;;  %v9777_v27 = vld [vmem:[%s12137_s6 + $0x58] sm:$0xff]   ;;  %v9779_v22 = vld [vmem:[%s12137_s6 + $0x68] sm:$0xff]  }
0x1669   : > { %v4606_v13 = vadd.f32 %v9654_v17, %v10869_v7  ;;  %v9656_v26 = vadd.f32 %v8154_v32, %v4582_v16  ;;  %9331 = vmatprep.subr.bf16.mxu1 %v9775_v12  ;;  %v9778_v17 = vld [vmem:[%s12137_s6 + $0x60] sm:$0xff]  }
0x166a   : > { %4622 = vadd.xlane.f32.xlu1 %v4621_v0  ;;  %v4609_v38 = vadd.f32 %v9655_v25, %v10888_v9  ;;  %v4630_v15 = vsel %vm546_vm3, %v4608_v55, 0.0 }
0x166b   : > { %v4607_v46 = vadd.f32 %v9656_v26, %v10871_v24  ;;  %v4624_v30 = vsel %vm546_vm3, %v4606_v13, 0.0 }
0x166c   : > { %4625 = vadd.xlane.f32.xlu0 %v4624_v30  ;;  %v4633_v7 = vsel %vm546_vm3, %v4609_v38, 0.0  ;;  %9332 = vmatpush3.bf16.msra.mxu1 %v9775_v12 }
0x166d   : > { %v4627_v57 = vsel %vm546_vm3, %v4607_v46, 0.0  ;;  %9333 = vmatprep.subr.bf16.mxu1 %v9776_v54 }
0x166e   : > { %4628 = vadd.xlane.f32.xlu1 %v4627_v57 }
0x1670   : > { %4631 = vadd.xlane.f32.xlu0 %v4630_v15  ;;  %9334 = vmatpush3.bf16.msra.mxu1 %v9776_v54 }
0x1671   : > { %9335 = vmatprep.subr.bf16.mxu1 %v9777_v27 }
0x1672   : > { %4634 = vadd.xlane.f32.xlu1 %v4633_v7 }
0x1674   : > { %9336 = vmatpush3.bf16.msra.mxu1 %v9777_v27 }
0x1675   : > { %9337 = vmatprep.subr.bf16.mxu1 %v9778_v17 }
0x1678   : > { %9338 = vmatpush3.bf16.msra.mxu1 %v9778_v17 }
0x1679   : > { %9339 = vmatprep.subr.bf16.mxu1 %v9779_v22 }
0x167c   : > { %9340 = vmatpush3.bf16.msra.mxu1 %v9779_v22 }
0x16f1   : > { %v4614_v50 = vpop.xlane.xlu0 %4613 }
0x16f2   : > { %v4636_v51 = vmul.f32 0.015625, %v4614_v50 }
0x16f3   : > { %v4617_v18 = vpop.xlane.xlu1 %4616 }
0x16f4   : > { %v11205_v37 = vsub.f32 %v4602_v61, %v4636_v51  ;;  %v4637_v24 = vmul.f32 0.015625, %v4617_v18 }
0x16f5   : > { %v4620_v44 = vpop.xlane.xlu0 %4619 }
0x16f6   : > { %v11207_v10 = vsub.f32 %v4603_v53, %v4637_v24  ;;  %v4638_v31 = vmul.f32 0.015625, %v4620_v44  ;;  %v4652_v9 = vmul.f32 %v11205_v37, %v11205_v37  ;;  %v9772_v53 = vld [vmem:[%s12136_s5 + $0x30] sm:$0xff]  }
0x16f7   : > { %v4623_v3 = vpop.xlane.xlu1 %4622 }
0x16f8   : > { %v11211_v4 = vsub.f32 %v4604_v34, %v4638_v31  ;;  %v4639_v43 = vmul.f32 0.015625, %v4623_v3  ;;  %v4660_v23 = vsel %vm546_vm3, %v4652_v9, 0.0  ;;  %v4653_v20 = vmul.f32 %v11207_v10, %v11207_v10  ;;  %v9770_v34 = vld [vmem:[%s12136_s5 + $0x20] sm:$0xff]  }
0x16f9   : > { %4661 = vadd.xlane.f32.xlu0 %v4660_v23  ;;  %v4626_v48 = vpop.xlane.xlu0 %4625  ;;  %9313 = vmatprep.subr.bf16.mxu0 %v9770_v34  ;;  %v8224_v23 = vld [vmem:[%s12140_s9 + $0x14] ss:$0 sm:$0xff] }
0x16fa   : > { %v11216_v49 = vsub.f32 %v4605_v5, %v4639_v43  ;;  %v4640_v1 = vmul.f32 0.015625, %v4626_v48  ;;  %v4663_v41 = vsel %vm546_vm3, %v4653_v20, 0.0  ;;  %v4654_v45 = vmul.f32 %v11211_v4, %v11211_v4  ;;  %9314 = vmatpush3.bf16.msra.mxu0 %v9770_v34  ;;  %v9773_v5 = vld [vmem:[%s12136_s5 + $0x38] sm:$0xff]  }
0x16fb   : > { %4664 = vadd.xlane.f32.xlu1 %v4663_v41  ;;  %v4629_v28 = vpop.xlane.xlu1 %4628  ;;  %9315 = vmatprep.subr.bf16.mxu0 %v9771_v40 }
0x16fc   : > { %v11221_v63 = vsub.f32 %v4606_v13, %v4640_v1  ;;  %v4641_v19 = vmul.f32 0.015625, %v4629_v28  ;;  %v4666_v21 = vsel %vm546_vm3, %v4654_v45, 0.0  ;;  %v4655_v35 = vmul.f32 %v11216_v49, %v11216_v49 }
0x16fd   : > { %4667 = vadd.xlane.f32.xlu0 %v4666_v21  ;;  %v4632_v36 = vpop.xlane.xlu0 %4631 }
0x16fe   : > { %v11226_v52 = vsub.f32 %v4607_v46, %v4641_v19  ;;  %v4642_v47 = vmul.f32 0.015625, %v4632_v36  ;;  %v4669_v42 = vsel %vm546_vm3, %v4655_v35, 0.0  ;;  %v4656_v60 = vmul.f32 %v11221_v63, %v11221_v63  ;;  %9316 = vmatpush3.bf16.msra.mxu0 %v9771_v40  ;;  %v8225_v35 = vld [vmem:[%s12140_s9 + $0x15] ss:$0 sm:$0xff] }
0x16ff   : > { %4670 = vadd.xlane.f32.xlu1 %v4669_v42  ;;  %v4635_v39 = vpop.xlane.xlu1 %4634  ;;  %9317 = vmatprep.subr.bf16.mxu0 %v9772_v53 }
0x1700   : > { %v11231_v32 = vsub.f32 %v4608_v55, %v4642_v47  ;;  %v4643_v62 = vmul.f32 0.015625, %v4635_v39  ;;  %v4672_v8 = vsel %vm546_vm3, %v4656_v60, 0.0  ;;  %v4657_v14 = vmul.f32 %v11226_v52, %v11226_v52 }
0x1701   : > { %4673 = vadd.xlane.f32.xlu0 %v4672_v8 }
0x1702   : > { %v11236_v56 = vsub.f32 %v4609_v38, %v4643_v62  ;;  %v4675_v29 = vsel %vm546_vm3, %v4657_v14, 0.0  ;;  %v4658_v58 = vmul.f32 %v11231_v32, %v11231_v32  ;;  %9318 = vmatpush3.bf16.msra.mxu0 %v9772_v53 }
0x1703   : > { %4676 = vadd.xlane.f32.xlu1 %v4675_v29  ;;  %9319 = vmatprep.subr.bf16.mxu0 %v9773_v5 }
0x1704   : > { %v4678_v33 = vsel %vm546_vm3, %v4658_v58, 0.0  ;;  %v4659_v59 = vmul.f32 %v11236_v56, %v11236_v56 }
0x1705   : > { %4679 = vadd.xlane.f32.xlu0 %v4678_v33 }
0x1706   : > { %v4681_v61 = vsel %vm546_vm3, %v4659_v59, 0.0  ;;  %9320 = vmatpush3.bf16.msra.mxu0 %v9773_v5 }
0x1707   : > { %4682 = vadd.xlane.f32.xlu1 %v4681_v61 }
0x1786   : > { %v4662_v6 = vpop.xlane.xlu0 %4661 }
0x1787   : > { %v4684_v16 = vmul.f32 0.015625, %v4662_v6  ;;  %v9781_v6 = vld [vmem:[%s12137_s6 + $0x78] sm:$0xff]  }
0x1788   : > { %v4665_v13 = vpop.xlane.xlu1 %4664 }
0x1789   : > { %v4692_v25 = vadd.f32 1e-05, %v4684_v16  ;;  %v4685_v26 = vmul.f32 0.015625, %v4665_v13  ;;  %v8234_v16 = vld [vmem:[%s12140_s9 + $0x16] ss:$0 sm:$0xff] }
0x178a   : > { %v4668_v0 = vpop.xlane.xlu0 %4667 }
0x178b   : > { %9994 = vrsqrt.f32 %v4692_v25  ;;  %v4693_v55 = vadd.f32 1e-05, %v4685_v26  ;;  %v4686_v46 = vmul.f32 0.015625, %v4668_v0 }
0x178c   : > { %v4671_v30 = vpop.xlane.xlu1 %4670 }
0x178d   : > { %9996 = vrsqrt.f32 %v4693_v55  ;;  %v4694_v38 = vadd.f32 1e-05, %v4686_v46  ;;  %v4687_v57 = vmul.f32 0.015625, %v4671_v30 }
0x178e   : > { %v4674_v15 = vpop.xlane.xlu0 %4673 }
0x178f   : > { %9998 = vrsqrt.f32 %v4694_v38  ;;  %v4695_v7 = vadd.f32 1e-05, %v4687_v57  ;;  %v4688_v50 = vmul.f32 0.015625, %v4674_v15 }
0x1790   : > { %v4677_v51 = vpop.xlane.xlu1 %4676 }
0x1791   : > { %10000 = vrsqrt.f32 %v4695_v7  ;;  %v4696_v18 = vadd.f32 1e-05, %v4688_v50  ;;  %v4689_v24 = vmul.f32 0.015625, %v4677_v51 }
0x1792   : > { %v4680_v44 = vpop.xlane.xlu0 %4679 }
0x1793   : > { %10002 = vrsqrt.f32 %v4696_v18  ;;  %v4697_v31 = vadd.f32 1e-05, %v4689_v24  ;;  %v4690_v9 = vmul.f32 0.015625, %v4680_v44 }
0x1794   : > { %v4683_v3 = vpop.xlane.xlu1 %4682 }
0x1795   : > { %v9995_v43 = vpop.eup %9994  ;;  %10004 = vrsqrt.f32 %v4697_v31  ;;  %v4698_v20 = vadd.f32 1e-05, %v4690_v9  ;;  %v4691_v48 = vmul.f32 0.015625, %v4683_v3 }
0x1796   : > { %v4708_v1 = vmul.f32 %v9995_v43, %v11205_v37 }
0x1797   : > { %v9997_v41 = vpop.eup %9996  ;;  %10006 = vrsqrt.f32 %v4698_v20  ;;  %v4699_v45 = vadd.f32 1e-05, %v4691_v48 }
0x1798   : > { %v4709_v28 = vmul.f32 %v9997_v41, %v11207_v10  ;;  %v4720_v19 = vmul.f32 %v8224_v23, %v4708_v1 }
0x1799   : > { %v9999_v21 = vpop.eup %9998  ;;  %10008 = vrsqrt.f32 %v4699_v45 }
0x179a   : > { %v4710_v36 = vmul.f32 %v9999_v21, %v11211_v4  ;;  %v4721_v47 = vmul.f32 %v8224_v23, %v4709_v28  ;;  %v11285_v37 = vadd.f32 %v8225_v35, %v4720_v19  ;;  %v8259_v21 = vld [vmem:[%s12140_s9 + $0x17] ss:$0 sm:$0xff] }
0x179b   : > { %v10001_v42 = vpop.eup %10000 }
0x179c   : > { %v4722_v60 = vmul.f32 %v8224_v23, %v4710_v36  ;;  %v4711_v39 = vmul.f32 %v10001_v42, %v11216_v49  ;;  %v11287_v62 = vadd.f32 %v8225_v35, %v4721_v47 }
0x179d   : > { %v10003_v8 = vpop.eup %10002 }
0x179e   : > { %v4723_v10 = vmul.f32 %v8224_v23, %v4711_v39  ;;  %v4749_v14 = vpack.c.bf16 %v11287_v62, %v11285_v37  ;;  %v4712_v29 = vmul.f32 %v10003_v8, %v11221_v63  ;;  %v11293_v4 = vadd.f32 %v8225_v35, %v4722_v60 }
0x179f   : > { %v10005_v58 = vpop.eup %10004 }
0x17a0   : > { %9321 = vmatprep.mubr.msk.bf16.mxu0 %vm546_vm3, %v4749_v14  ;;  %v11295_v33 = vadd.f32 %v8225_v35, %v4723_v10  ;;  %v4713_v49 = vmul.f32 %v10005_v58, %v11226_v52  ;;  %v4724_v59 = vmul.f32 %v8224_v23, %v4712_v29 }
0x17a1   : > { %v10007_v61 = vpop.eup %10006 }
0x17a2   : > { %v4750_v34 = vpack.c.bf16 %v11295_v33, %v11293_v4  ;;  %v4725_v40 = vmul.f32 %v8224_v23, %v4713_v49  ;;  %v4714_v53 = vmul.f32 %v10007_v61, %v11231_v32  ;;  %v11302_v63 = vadd.f32 %v8225_v35, %v4724_v59 }
0x17a3   : > { %v10009_v5 = vpop.eup %10008 }
0x17a4   : > { %9322 = vmatmul.mubr.msk.bf16.vlgmr.msra.gmra.mrb[128].mxu0 %vm546_vm3, %v4750_v34  ;;  %v11304_v11 = vadd.f32 %v8225_v35, %v4725_v40  ;;  %v4715_v12 = vmul.f32 %v10009_v5, %v11236_v56  ;;  %v4726_v54 = vmul.f32 %v8224_v23, %v4714_v53  ;;  %v9780_v56 = vld [vmem:[%s12137_s6 + $0x70] sm:$0xff]  }
0x17a5   : > { %9341 = vmatprep.subr.bf16.mxu1 %v9780_v56 }
0x17a6   : > { %v4751_v52 = vpack.c.bf16 %v11304_v11, %v11302_v63  ;;  %v4727_v27 = vmul.f32 %v8224_v23, %v4715_v12  ;;  %v11310_v17 = vadd.f32 %v8225_v35, %v4726_v54  ;;  %9342 = vmatpush3.bf16.msra.mxu1 %v9780_v56 }
0x17a7   : > { %9343 = vmatprep.subr.bf16.mxu1 %v9781_v6 }
0x17a8   : > { %9325 = vmatprep.mubr.msk.bf16.mxu0 %vm546_vm3, %v4751_v52  ;;  %v11312_v22 = vadd.f32 %v8225_v35, %v4727_v27 }
0x17aa   : > { %v4752_v32 = vpack.c.bf16 %v11312_v22, %v11310_v17  ;;  %9344 = vmatpush3.bf16.msra.mxu1 %v9781_v6 }
0x17ac   : > { %9326 = vmatmul.mubr.msk.bf16.gmra.mrb[132].mxu0 %vm546_vm3, %v4752_v32 }
0x1877   : > { %v9323_v13 = vpop.f32.mrb[128].mxu0 }
0x1878   : > { %v4837_v25 = vadd.f32 %v9323_v13, %v8234_v16  ;;  %v4828_v26 = vpop.f32.mrb[129].mxu0 }
0x1879   : > { %v4829_v0 = vadd.f32 %v8234_v16, %v4828_v26  ;;  %v9324_v55 = vpop.f32.mrb[130].mxu0 }
0x187a   : > { %v4840_v46 = vadd.f32 %v9324_v55, %v8234_v16  ;;  %v4831_v30 = vpop.f32.mrb[131].mxu0  ;;  %v4861_v57 = vmax.f32 %v4837_v25, 0.0 }
0x187b   : > { %v4832_v38 = vadd.f32 %v8234_v16, %v4831_v30  ;;  %v4859_v7 = vmax.f32 %v4829_v0, 0.0 }
0x187c   : > { %v4862_v15 = vmax.f32 %v4840_v46, 0.0 }
0x187d   : > { %v4860_v50 = vmax.f32 %v4832_v38, 0.0 }
0x187e   : > { %v4885_v51 = vpack.c.bf16 %v4862_v15, %v4861_v57 }
0x187f   : > { %v4884_v18 = vpack.c.bf16 %v4860_v50, %v4859_v7  ;;  %v9327_v24 = vpop.f32.mrb[132].mxu0 }
0x1880   : > { %v4853_v44 = vadd.f32 %v9327_v24, %v8234_v16  ;;  %v4844_v31 = vpop.f32.mrb[133].mxu0 }
0x1881   : > { %v4845_v9 = vadd.f32 %v8234_v16, %v4844_v31  ;;  %v9328_v3 = vpop.f32.mrb[134].mxu0  ;;  %9345 = vmatprep.mubr.bf16.mxu1 %v4884_v18 }
0x1882   : > { %v4856_v43 = vadd.f32 %v9328_v3, %v8234_v16  ;;  %v4847_v23 = vpop.f32.mrb[135].mxu0  ;;  %9346 = vmatmul.mubr.bf16.vlgmr.msra.gmra.mrb[136].mxu1 %v4885_v51  ;;  %v4865_v48 = vmax.f32 %v4853_v44, 0.0 }
0x1883   : > { %v4848_v20 = vadd.f32 %v8234_v16, %v4847_v23  ;;  %v4863_v41 = vmax.f32 %v4845_v9, 0.0 }
0x1884   : > { %v4866_v1 = vmax.f32 %v4856_v43, 0.0 }
0x1885   : > { %v4864_v45 = vmax.f32 %v4848_v20, 0.0 }
0x1886   : > { %v4887_v28 = vpack.c.bf16 %v4866_v1, %v4865_v48 }
0x1887   : > { %v4886_v19 = vpack.c.bf16 %v4864_v45, %v4863_v41 }
0x1889   : > { %9349 = vmatprep.mubr.bf16.mxu1 %v4886_v19 }
0x188a   : > { %9350 = vmatmul.mubr.bf16.gmra.mrb[140].mxu1 %v4887_v28 }
0x1955   : > { %v9347_v35 = vpop.f32.mrb[136].mxu1 }
0x1956   : > { %v4975_v36 = vpop.f32.mrb[137].mxu1  ;;  %v4984_v47 = vadd.f32 %v9347_v35, %v8259_v21 }
0x1957   : > { %v4976_v42 = vadd.f32 %v8259_v21, %v4975_v36  ;;  %v9348_v60 = vpop.f32.mrb[138].mxu1 }
0x1958   : > { %v4978_v39 = vpop.f32.mrb[139].mxu1  ;;  %v4987_v10 = vadd.f32 %v9348_v60, %v8259_v21  ;;  %v5008_v29 = vadd.f32 %v4984_v47, %v11293_v4 }
0x1959   : > { %v5006_v8 = vadd.f32 %v4976_v42, %v11285_v37  ;;  %v4979_v14 = vadd.f32 %v8259_v21, %v4978_v39 }
0x195a   : > { %v5009_v59 = vadd.f32 %v4987_v10, %v11295_v33  ;;  %v5022_v37 = vsel %vm546_vm3, %v5008_v29, 0.0 }
0x195b   : > { %v5007_v58 = vadd.f32 %v4979_v14, %v11287_v62  ;;  %v5016_v49 = vsel %vm546_vm3, %v5006_v8, 0.0 }
0x195c   : > { %5017 = vadd.xlane.f32.xlu0 %v5016_v49  ;;  %v5025_v27 = vsel %vm546_vm3, %v5009_v59, 0.0  ;;  %v9784_v49 = vld [vmem:[%s12134_s3 + $0x188] sm:$0xff]  }
0x195d   : > { %v9351_v61 = vpop.f32.mrb[140].mxu1  ;;  %v5019_v34 = vsel %vm546_vm3, %v5007_v58, 0.0 }
0x195e   : > { %5020 = vadd.xlane.f32.xlu1 %v5019_v34  ;;  %v4991_v40 = vpop.f32.mrb[141].mxu1  ;;  %v5000_v53 = vadd.f32 %v9351_v61, %v8259_v21  ;;  %v9786_v61 = vld [vmem:[%s12134_s3 + $0x190] sm:$0xff]  }
0x195f   : > { %v4992_v5 = vadd.f32 %v8259_v21, %v4991_v40  ;;  %v9352_v12 = vpop.f32.mrb[142].mxu1  ;;  %v9787_v34 = vld [vmem:[%s12134_s3 + $0x210] sm:$0xff]   ;;  %v9788_v40 = vld [vmem:[%s12134_s3 + $0x198] sm:$0xff]  }
0x1960   : > { %5023 = vadd.xlane.f32.xlu0 %v5022_v37  ;;  %v4994_v54 = vpop.f32.mrb[143].mxu1  ;;  %v5003_v62 = vadd.f32 %v9352_v12, %v8259_v21  ;;  %v5012_v33 = vadd.f32 %v5000_v53, %v11310_v17  ;;  %v9789_v53 = vld [vmem:[%s12134_s3 + $0x218] sm:$0xff]  }
0x1961   : > { %v5010_v4 = vadd.f32 %v4992_v5, %v11302_v63  ;;  %v4995_v52 = vadd.f32 %v8259_v21, %v4994_v54  ;;  %v11412_v5 = vld [vmem:[%s12134_s3 + $0x1c0] sm:$0xff]  }
0x1962   : > { %5026 = vadd.xlane.f32.xlu1 %v5025_v27  ;;  %v5013_v6 = vadd.f32 %v5003_v62, %v11312_v22  ;;  %v5034_v13 = vsel %vm546_vm3, %v5012_v33, 0.0 }
0x1963   : > { %v5011_v32 = vadd.f32 %v4995_v52, %v11304_v11  ;;  %v5028_v56 = vsel %vm546_vm3, %v5010_v4, 0.0 }
0x1964   : > { %5029 = vadd.xlane.f32.xlu0 %v5028_v56  ;;  %v5037_v63 = vsel %vm546_vm3, %v5013_v6, 0.0 }
0x1965   : > { %v5031_v16 = vsel %vm546_vm3, %v5011_v32, 0.0 }
0x1966   : > { %5032 = vadd.xlane.f32.xlu1 %v5031_v16 }
0x1968   : > { %5035 = vadd.xlane.f32.xlu0 %v5034_v13 }
0x196a   : > { %5038 = vadd.xlane.f32.xlu1 %v5037_v63 }
0x19e9   : > { %v5018_v25 = vpop.xlane.xlu0 %5017 }
0x19ea   : > { %v5040_v26 = vmul.f32 0.015625, %v5018_v25 }
0x19eb   : > { %v5021_v0 = vpop.xlane.xlu1 %5020 }
0x19ec   : > { %v11345_v17 = vsub.f32 %v5006_v8, %v5040_v26  ;;  %v5041_v11 = vmul.f32 0.015625, %v5021_v0 }
0x19ed   : > { %v5024_v55 = vpop.xlane.xlu0 %5023 }
0x19ee   : > { %v11347_v46 = vsub.f32 %v5007_v58, %v5041_v11  ;;  %v5042_v30 = vmul.f32 0.015625, %v5024_v55  ;;  %v5056_v22 = vmul.f32 %v11345_v17, %v11345_v17  ;;  %v9783_v58 = vld [vmem:[%s12134_s3 + $0x200] sm:$0xff]  }
0x19ef   : > { %v5027_v38 = vpop.xlane.xlu1 %5026  ;;  %9385 = vmatprep.subr.bf16.mxu1 %v9783_v58 }
0x19f0   : > { %v11351_v57 = vsub.f32 %v5008_v29, %v5042_v30  ;;  %v5043_v15 = vmul.f32 0.015625, %v5027_v38  ;;  %v5064_v7 = vsel %vm546_vm3, %v5056_v22, 0.0  ;;  %v5057_v50 = vmul.f32 %v11347_v46, %v11347_v46  ;;  %v9782_v29 = vld [vmem:[%s12134_s3 + $0x180] sm:$0xff]   ;;  %9386 = vmatpush3.bf16.msra.mxu1 %v9783_v58  ;;  %v9791_v58 = vld [vmem:[%s12134_s3 + $0x1c8] sm:$0xff]  }
0x19f1   : > { %5065 = vadd.xlane.f32.xlu0 %v5064_v7  ;;  %v5030_v51 = vpop.xlane.xlu0 %5029  ;;  %9353 = vmatprep.subr.bf16.mxu0 %v9782_v29 }
0x19f2   : > { %v11356_v18 = vsub.f32 %v5009_v59, %v5043_v15  ;;  %v5044_v24 = vmul.f32 0.015625, %v5030_v51  ;;  %v5067_v44 = vsel %vm546_vm3, %v5057_v50, 0.0  ;;  %v5058_v31 = vmul.f32 %v11351_v57, %v11351_v57  ;;  %9354 = vmatpush3.bf16.msra.mxu0 %v9782_v29  ;;  %v9785_v59 = vld [vmem:[%s12134_s3 + $0x208] sm:$0xff]   ;;  %v8268_v15 = vld [vmem:[%s12140_s9 + $0x18] ss:$0 sm:$0xff] }
0x19f3   : > { %5068 = vadd.xlane.f32.xlu1 %v5067_v44  ;;  %v5033_v9 = vpop.xlane.xlu1 %5032  ;;  %9355 = vmatprep.subr.bf16.mxu0 %v9784_v49 }
0x19f4   : > { %v11361_v3 = vsub.f32 %v5010_v4, %v5044_v24  ;;  %v5045_v43 = vmul.f32 0.015625, %v5033_v9  ;;  %v5070_v23 = vsel %vm546_vm3, %v5058_v31, 0.0  ;;  %v5059_v20 = vmul.f32 %v11356_v18, %v11356_v18  ;;  %9387 = vmatprep.subr.bf16.mxu1 %v9785_v59 }
0x19f5   : > { %5071 = vadd.xlane.f32.xlu0 %v5070_v23  ;;  %v5036_v48 = vpop.xlane.xlu0 %5035  ;;  %9388 = vmatpush3.bf16.msra.mxu1 %v9785_v59  ;;  %v8269_v23 = vld [vmem:[%s12140_s9 + $0x19] ss:$0 sm:$0xff] }
0x19f6   : > { %v11366_v1 = vsub.f32 %v5011_v32, %v5045_v43  ;;  %v5046_v41 = vmul.f32 0.015625, %v5036_v48  ;;  %v5073_v45 = vsel %vm546_vm3, %v5059_v20, 0.0  ;;  %v5060_v28 = vmul.f32 %v11361_v3, %v11361_v3  ;;  %9356 = vmatpush3.bf16.msra.mxu0 %v9784_v49  ;;  %9389 = vmatprep.subr.bf16.mxu1 %v9787_v34 }
0x19f7   : > { %5074 = vadd.xlane.f32.xlu1 %v5073_v45  ;;  %v5039_v19 = vpop.xlane.xlu1 %5038  ;;  %9357 = vmatprep.subr.bf16.mxu0 %v9786_v61 }
0x19f8   : > { %v11371_v21 = vsub.f32 %v5012_v33, %v5046_v41  ;;  %v5047_v35 = vmul.f32 0.015625, %v5039_v19  ;;  %v5076_v36 = vsel %vm546_vm3, %v5060_v28, 0.0  ;;  %v5061_v47 = vmul.f32 %v11366_v1, %v11366_v1 }
0x19f9   : > { %5077 = vadd.xlane.f32.xlu0 %v5076_v36  ;;  %9390 = vmatpush3.bf16.msra.mxu1 %v9787_v34 }
0x19fa   : > { %v11376_v42 = vsub.f32 %v5013_v6, %v5047_v35  ;;  %v5079_v60 = vsel %vm546_vm3, %v5061_v47, 0.0  ;;  %v5062_v39 = vmul.f32 %v11371_v21, %v11371_v21  ;;  %9358 = vmatpush3.bf16.msra.mxu0 %v9786_v61  ;;  %9391 = vmatprep.subr.bf16.mxu1 %v9789_v53 }
0x19fb   : > { %5080 = vadd.xlane.f32.xlu1 %v5079_v60  ;;  %9359 = vmatprep.subr.bf16.mxu0 %v9788_v40 }
0x19fc   : > { %v5082_v8 = vsel %vm546_vm3, %v5062_v39, 0.0  ;;  %v5063_v10 = vmul.f32 %v11376_v42, %v11376_v42 }
0x19fd   : > { %5083 = vadd.xlane.f32.xlu0 %v5082_v8  ;;  %9392 = vmatpush3.bf16.msra.mxu1 %v9789_v53  ;;  %v9792_v53 = vld [vmem:[%s12134_s3 + $0x1d0] sm:$0xff]  }
0x19fe   : > { %v5085_v14 = vsel %vm546_vm3, %v5063_v10, 0.0  ;;  %9360 = vmatpush3.bf16.msra.mxu0 %v9788_v40  ;;  %9413 = vmatprep.subr.bf16.mxu1 %v10149_v2 }
0x19ff   : > { %5086 = vadd.xlane.f32.xlu1 %v5085_v14  ;;  %9369 = vmatprep.subr.bf16.mxu0 %v11412_v5 }
0x1a7e   : > { %v5066_v12 = vpop.xlane.xlu0 %5065 }
0x1a7f   : > { %v5088_v37 = vmul.f32 0.015625, %v5066_v12 }
0x1a80   : > { %v5069_v54 = vpop.xlane.xlu1 %5068 }
0x1a81   : > { %v5096_v4 = vadd.f32 1e-05, %v5088_v37  ;;  %v5089_v62 = vmul.f32 0.015625, %v5069_v54  ;;  %v9793_v37 = vld [vmem:[%s12134_s3 + $0x1d8] sm:$0xff]  }
0x1a82   : > { %v5072_v52 = vpop.xlane.xlu0 %5071 }
0x1a83   : > { %10010 = vrsqrt.f32 %v5096_v4  ;;  %v5097_v27 = vadd.f32 1e-05, %v5089_v62  ;;  %v5090_v33 = vmul.f32 0.015625, %v5072_v52  ;;  %v8294_v4 = vld [vmem:[%s12140_s9 + $0x1a] ss:$0 sm:$0xff] }
0x1a84   : > { %v5075_v32 = vpop.xlane.xlu1 %5074  ;;  %v8312_v52 = vld [vmem:[%s12140_s9 + $0x1e] ss:$0 sm:$0xff] }
0x1a85   : > { %10012 = vrsqrt.f32 %v5097_v27  ;;  %v5098_v56 = vadd.f32 1e-05, %v5090_v33  ;;  %v5091_v6 = vmul.f32 0.015625, %v5075_v32 }
0x1a86   : > { %v5078_v16 = vpop.xlane.xlu0 %5077 }
0x1a87   : > { %10014 = vrsqrt.f32 %v5098_v56  ;;  %v5099_v13 = vadd.f32 1e-05, %v5091_v6  ;;  %v5092_v63 = vmul.f32 0.015625, %v5078_v16 }
0x1a88   : > { %v5081_v25 = vpop.xlane.xlu1 %5080 }
0x1a89   : > { %10016 = vrsqrt.f32 %v5099_v13  ;;  %v5100_v26 = vadd.f32 1e-05, %v5092_v63  ;;  %v5093_v0 = vmul.f32 0.015625, %v5081_v25 }
0x1a8a   : > { %v5084_v11 = vpop.xlane.xlu0 %5083 }
0x1a8b   : > { %10018 = vrsqrt.f32 %v5100_v26  ;;  %v5101_v55 = vadd.f32 1e-05, %v5093_v0  ;;  %v5094_v30 = vmul.f32 0.015625, %v5084_v11 }
0x1a8c   : > { %v5087_v22 = vpop.xlane.xlu1 %5086 }
0x1a8d   : > { %v10011_v38 = vpop.eup %10010  ;;  %10020 = vrsqrt.f32 %v5101_v55  ;;  %v5102_v7 = vadd.f32 1e-05, %v5094_v30  ;;  %v5095_v50 = vmul.f32 0.015625, %v5087_v22 }
0x1a8e   : > { %v5112_v51 = vmul.f32 %v10011_v38, %v11345_v17 }
0x1a8f   : > { %v10013_v24 = vpop.eup %10012  ;;  %10022 = vrsqrt.f32 %v5102_v7  ;;  %v5103_v44 = vadd.f32 1e-05, %v5095_v50 }
0x1a90   : > { %v5124_v31 = vmul.f32 %v8268_v15, %v5112_v51  ;;  %v5113_v9 = vmul.f32 %v10013_v24, %v11347_v46 }
0x1a91   : > { %v10015_v43 = vpop.eup %10014  ;;  %10024 = vrsqrt.f32 %v5103_v44 }
0x1a92   : > { %v5125_v20 = vmul.f32 %v8268_v15, %v5113_v9  ;;  %v5114_v48 = vmul.f32 %v10015_v43, %v11351_v57  ;;  %v11425_v45 = vadd.f32 %v8269_v23, %v5124_v31 }
0x1a93   : > { %v10017_v41 = vpop.eup %10016 }
0x1a94   : > { %v11427_v28 = vadd.f32 %v8269_v23, %v5125_v20  ;;  %v5126_v17 = vmul.f32 %v8268_v15, %v5114_v48  ;;  %v5115_v19 = vmul.f32 %v10017_v41, %v11356_v18 }
0x1a95   : > { %v10019_v35 = vpop.eup %10018 }
0x1a96   : > { %v5127_v36 = vmul.f32 %v8268_v15, %v5115_v19  ;;  %v5116_v46 = vmul.f32 %v10019_v35, %v11361_v3  ;;  %v11433_v47 = vpack.c.bf16 %v11427_v28, %v11425_v45  ;;  %v11435_v39 = vadd.f32 %v8269_v23, %v5126_v17 }
0x1a97   : > { %v10021_v60 = vpop.eup %10020 }
0x1a98   : > { %v11437_v57 = vadd.f32 %v8269_v23, %v5127_v36  ;;  %v5128_v8 = vmul.f32 %v8268_v15, %v5116_v46  ;;  %v5117_v10 = vmul.f32 %v10021_v60, %v11366_v1  ;;  %9361 = vmatprep.mubr.msk.bf16.mxu0 %vm546_vm3, %v11433_v47  ;;  %9393 = vmatprep.mubr.msk.bf16.mxu1 %vm546_vm3, %v11433_v47 }
0x1a99   : > { %v10023_v18 = vpop.eup %10022 }
0x1a9a   : > { %v5129_v3 = vmul.f32 %v8268_v15, %v5117_v10  ;;  %v5118_v14 = vmul.f32 %v10023_v18, %v11371_v21  ;;  %v11447_v29 = vpack.c.bf16 %v11437_v57, %v11435_v39  ;;  %v11452_v1 = vadd.f32 %v8269_v23, %v5128_v8 }
0x1a9b   : > { %v10025_v49 = vpop.eup %10024 }
0x1a9c   : > { %v11454_v59 = vadd.f32 %v8269_v23, %v5129_v3  ;;  %v5130_v61 = vmul.f32 %v8268_v15, %v5118_v14  ;;  %v5119_v34 = vmul.f32 %v10025_v49, %v11376_v42  ;;  %9362 = vmatmul.mubr.msk.bf16.vlgmr.msra.gmra.mrb[136].mxu0 %vm546_vm3, %v11447_v29  ;;  %9394 = vmatmul.mubr.msk.bf16.vlgmr.msra.gmra.mrb[144].mxu1 %vm546_vm3, %v11447_v29  ;;  %v8303_v14 = vld [vmem:[%s12140_s9 + $0x1c] ss:$0 sm:$0xff] }
0x1a9d   : > { %9370 = vmatpush3.bf16.msra.mxu0 %v11412_v5 }
0x1a9e   : > { %v5131_v21 = vmul.f32 %v8268_v15, %v5119_v34  ;;  %v11464_v40 = vpack.c.bf16 %v11454_v59, %v11452_v1  ;;  %9371 = vmatprep.subr.bf16.mxu0 %v9791_v58  ;;  %v11469_v12 = vadd.f32 %v8269_v23, %v5130_v61 }
0x1aa0   : > { %v11471_v42 = vadd.f32 %v8269_v23, %v5131_v21  ;;  %9365 = vmatprep.mubr.msk.bf16.mxu0 %vm546_vm3, %v11464_v40  ;;  %9397 = vmatprep.mubr.msk.bf16.mxu1 %vm546_vm3, %v11464_v40 }
0x1aa1   : > { %9372 = vmatpush3.bf16.msra.mxu0 %v9791_v58 }
0x1aa2   : > { %v11479_v5 = vpack.c.bf16 %v11471_v42, %v11469_v12  ;;  %9373 = vmatprep.subr.bf16.mxu0 %v9792_v53 }
0x1aa4   : > { %9366 = vmatmul.mubr.msk.bf16.gmra.mrb[140].mxu0 %vm546_vm3, %v11479_v5  ;;  %9398 = vmatmul.mubr.msk.bf16.gmra.mrb[148].mxu1 %vm546_vm3, %v11479_v5 }
0x1aa5   : > { %9374 = vmatpush3.bf16.msra.mxu0 %v9792_v53  ;;  %9377 = vmatprep.mubr.msk.bf16.mxu0 %vm546_vm3, %v11433_v47 }
0x1aa6   : > { %9375 = vmatprep.subr.bf16.mxu0 %v9793_v37  ;;  %9415 = vmatprep.mubr.msk.bf16.mxu1 %vm10150_vm4, %v10149_v2 }
0x1aa9   : > { %9376 = vmatpush3.bf16.msra.mxu0 %v9793_v37 }
0x1aaa   : > { %9401 = vmatprep.subr.bf16.mxu0 %v10149_v2 }
0x1aac   : > { %9378 = vmatmul.mubr.msk.bf16.vlgmr.msra.gmra.mrb[144].mxu0 %vm546_vm3, %v11447_v29 }
0x1aad   : > { %9381 = vmatprep.mubr.msk.bf16.mxu0 %vm546_vm3, %v11464_v40 }
0x1ab4   : > { %9382 = vmatmul.mubr.msk.bf16.gmra.mrb[148].mxu0 %vm546_vm3, %v11479_v5 }
0x1ab5   : > { %9403 = vmatprep.mubr.msk.bf16.mxu0 %vm10150_vm4, %v10149_v2 }
0x1b6f   : > { %v9363_v54 = vpop.f32.mrb[136].mxu0  ;;  %v9395_v62 = vpop.f32.mrb[144].mxu1 }
0x1b70   : > { %v5251_v27 = vpop.f32.mrb[137].mxu0  ;;  %v5439_v33 = vpop.f32.mrb[145].mxu1  ;;  %v11507_v6 = vadd.f32 %v9363_v54, %v8294_v4  ;;  %v11509_v16 = vadd.f32 %v9395_v62, %v8312_v52 }
0x1b71   : > { %v9364_v32 = vpop.f32.mrb[138].mxu0  ;;  %v9396_v56 = vpop.f32.mrb[146].mxu1  ;;  %v5252_v0 = vadd.f32 %v8294_v4, %v5251_v27  ;;  %v11515_v11 = vadd.f32 %v8312_v52, %v5439_v33 }
0x1b72   : > { %v11511_v13 = vadd.f32 %v9364_v32, %v8294_v4  ;;  %v11513_v63 = vadd.f32 %v9396_v56, %v8312_v52  ;;  %v5254_v25 = vpop.f32.mrb[139].mxu0  ;;  %v5442_v26 = vpop.f32.mrb[147].mxu1 }
0x1b73   : > { %v5255_v55 = vadd.f32 %v8294_v4, %v5254_v25  ;;  %v5443_v30 = vadd.f32 %v8312_v52, %v5442_v26 }
0x1b74   : > { %v5471_v22 = vpack.c.bf16 %v11511_v13, %v11507_v6  ;;  %v5759_v38 = vpack.c.bf16 %v11513_v63, %v11509_v16 }
0x1b75   : > { %v5470_v15 = vpack.c.bf16 %v5255_v55, %v5252_v0  ;;  %v5758_v7 = vpack.c.bf16 %v5443_v30, %v11515_v11 }
0x1b77   : > { %v9367_v50 = vpop.f32.mrb[140].mxu0  ;;  %v9399_v51 = vpop.f32.mrb[148].mxu1 }
0x1b78   : > { %v11522_v24 = vadd.f32 %v9399_v51, %v8312_v52  ;;  %v5267_v44 = vpop.f32.mrb[141].mxu0  ;;  %v5455_v31 = vpop.f32.mrb[149].mxu1  ;;  %v5276_v20 = vadd.f32 %v9367_v50, %v8294_v4 }
0x1b79   : > { %v11524_v9 = vadd.f32 %v8312_v52, %v5455_v31  ;;  %v9368_v43 = vpop.f32.mrb[142].mxu0  ;;  %v9400_v23 = vpop.f32.mrb[150].mxu1  ;;  %v5268_v35 = vadd.f32 %v8294_v4, %v5267_v44 }
0x1b7a   : > { %v5279_v48 = vadd.f32 %v9368_v43, %v8294_v4  ;;  %v11526_v41 = vadd.f32 %v9400_v23, %v8312_v52  ;;  %v5270_v17 = vpop.f32.mrb[143].mxu0  ;;  %v5458_v19 = vpop.f32.mrb[151].mxu1 }
0x1b7b   : > { %v5271_v36 = vadd.f32 %v8294_v4, %v5270_v17  ;;  %v11528_v46 = vadd.f32 %v8312_v52, %v5458_v19 }
0x1b7c   : > { %v5473_v60 = vpack.c.bf16 %v5279_v48, %v5276_v20  ;;  %v5761_v8 = vpack.c.bf16 %v11526_v41, %v11522_v24  ;;  %v9796_v24 = vld [vmem:[%s12134_s3 + $0x1b0] sm:$0xff]   ;;  %v9797_v41 = vld [vmem:[%s12134_s3 + $0x1b8] sm:$0xff]  }
0x1b7d   : > { %v5472_v10 = vpack.c.bf16 %v5271_v36, %v5268_v35  ;;  %v5760_v18 = vpack.c.bf16 %v11528_v46, %v11524_v9 }
0x1b7f   : > { %v9379_v3 = vpop.f32.mrb[144].mxu0 }
0x1b80   : > { %v5345_v58 = vpop.f32.mrb[145].mxu0  ;;  %v5354_v61 = vadd.f32 %v9379_v3, %v8303_v14 }
0x1b81   : > { %v9380_v49 = vpop.f32.mrb[146].mxu0  ;;  %v5346_v53 = vadd.f32 %v8303_v14, %v5345_v58 }
0x1b82   : > { %v5357_v34 = vadd.f32 %v9380_v49, %v8303_v14  ;;  %v5348_v21 = vpop.f32.mrb[147].mxu0 }
0x1b83   : > { %v5349_v37 = vadd.f32 %v8303_v14, %v5348_v21 }
0x1b84   : > { %v5475_v54 = vpack.c.bf16 %v5357_v34, %v5354_v61 }
0x1b85   : > { %v5474_v4 = vpack.c.bf16 %v5349_v37, %v5346_v53 }
0x1b86   : > { %v5529_v11 = vsel %vm820_vm5, %v5475_v54, 0 }
0x1b87   : > { %v9383_v62 = vpop.f32.mrb[148].mxu0  ;;  %v5482_v52 = vsel %vm820_vm5, %v5474_v4, 0 }
0x1b88   : > { %v5361_v27 = vpop.f32.mrb[149].mxu0  ;;  %9402 = vmatpush3.bf16.xpose.msra.mxu0 %v5482_v52  ;;  %v5370_v32 = vadd.f32 %v9383_v62, %v8303_v14 }
0x1b89   : > { %v9384_v33 = vpop.f32.mrb[150].mxu0  ;;  %9407 = vmatprep.subr.bf16.mxu0 %v10149_v2  ;;  %v5362_v13 = vadd.f32 %v8303_v14, %v5361_v27 }
0x1b8a   : > { %v5373_v56 = vadd.f32 %v9384_v33, %v8303_v14  ;;  %v5364_v6 = vpop.f32.mrb[151].mxu0 }
0x1b8b   : > { %v5365_v25 = vadd.f32 %v8303_v14, %v5364_v6 }
0x1b8c   : > { %v5477_v26 = vpack.c.bf16 %v5373_v56, %v5370_v32 }
0x1b8d   : > { %v5476_v0 = vpack.c.bf16 %v5365_v25, %v5362_v13 }
0x1b8e   : > { %v5623_v30 = vsel %vm820_vm5, %v5477_v26, 0 }
0x1b8f   : > { %9404 = vmatmul.mubr.msk.bf16.vlgmr.msra.gmra.mrb[152].mxu0 %vm820_vm5, %v5470_v15  ;;  %v5576_v55 = vsel %vm820_vm5, %v5476_v0, 0 }
0x1b90   : > { %9408 = vmatpush3.bf16.xpose.msra.mxu0 %v5529_v11  ;;  %9414 = vmatpush3.bf16.xpose.msra.mxu1 %v5576_v55 }
0x1b91   : > { %9409 = vmatprep.mubr.msk.bf16.mxu0 %vm10150_vm4, %v10149_v2  ;;  %9419 = vmatprep.subr.bf16.mxu0 %v10149_v2 }
0x1b92   : > { %9425 = vmatprep.subr.bf16.mxu1 %v10149_v2 }
0x1b97   : > { %9410 = vmatmul.mubr.msk.bf16.vlgmr.msra.gmra.mrb[156].mxu0 %vm820_vm5, %v5471_v22  ;;  %9416 = vmatmul.mubr.msk.bf16.vlgmr.msra.gmra.mrb[152].mxu1 %vm820_vm5, %v5472_v10 }
0x1b98   : > { %9420 = vmatpush3.bf16.xpose.msra.mxu0 %v5623_v30  ;;  %9426 = vmatpush3.bf16.msra.mxu1 %v5758_v7 }
0x1b99   : > { %9421 = vmatprep.mubr.msk.bf16.mxu0 %vm10150_vm4, %v10149_v2  ;;  %9431 = vmatprep.subr.bf16.mxu0 %v10149_v2 }
0x1b9a   : > { %9427 = vmatprep.mubr.msk.bf16.mxu1 %vm10150_vm4, %v10149_v2  ;;  %9437 = vmatprep.subr.bf16.mxu1 %v10149_v2 }
0x1b9f   : > { %9422 = vmatmul.mubr.msk.bf16.vlgmr.msra.gmra.mrb[160].mxu0 %vm820_vm5, %v5473_v60 }
0x1ba0   : > { %9432 = vmatpush3.bf16.msra.mxu0 %v5759_v38  ;;  %9433 = vmatprep.mubr.msk.bf16.mxu0 %vm10150_vm4, %v10149_v2 }
0x1ba1   : > { %9443 = vmatprep.subr.bf16.mxu0 %v10149_v2 }
0x1c62   : > { %v5518_v22 = vpop.f32.mrb[152].mxu0 }
0x1c63   : > { %v9405_v15 = vpop.f32.mrb[153].mxu0  ;;  %v5666_v7 = vsel %vm1009_vm6, %v5518_v22, -inf }
0x1c64   : > { %5667 = vmax.xlane.f32.xlu0 %v5666_v7  ;;  %v5521_v50 = vpop.f32.mrb[154].mxu0 }
0x1c65   : > { %v9406_v51 = vpop.f32.mrb[155].mxu0  ;;  %v5669_v44 = vsel %vm1009_vm6, %v5521_v50, -inf }
0x1c66   : > { %5670 = vmax.xlane.f32.xlu1 %v5669_v44 }
0x1c6a   : > { %v5565_v31 = vpop.f32.mrb[156].mxu0  ;;  %v5612_v43 = vpop.f32.mrb[152].mxu1 }
0x1c6b   : > { %v9411_v23 = vpop.f32.mrb[157].mxu0  ;;  %v9417_v16 = vpop.f32.mrb[153].mxu1  ;;  %v5672_v63 = vsel %vm1009_vm6, %v5565_v31, -inf  ;;  %v5678_v35 = vsel %vm1009_vm6, %v5612_v43, -inf }
0x1c6c   : > { %5673 = vmax.xlane.f32.xlu0 %v5672_v63  ;;  %v5568_v38 = vpop.f32.mrb[158].mxu0  ;;  %v5615_v20 = vpop.f32.mrb[154].mxu1 }
0x1c6d   : > { %v9412_v48 = vpop.f32.mrb[159].mxu0  ;;  %v9418_v17 = vpop.f32.mrb[155].mxu1  ;;  %v5675_v19 = vsel %vm1009_vm6, %v5568_v38, -inf  ;;  %v5681_v36 = vsel %vm1009_vm6, %v5615_v20, -inf }
0x1c6e   : > { %5676 = vmax.xlane.f32.xlu1 %v5675_v19 }
0x1c70   : > { %5679 = vmax.xlane.f32.xlu0 %v5678_v35 }
0x1c72   : > { %v5659_v60 = vpop.f32.mrb[160].mxu0  ;;  %5682 = vmax.xlane.f32.xlu1 %v5681_v36 }
0x1c73   : > { %v9423_v10 = vpop.f32.mrb[161].mxu0  ;;  %v5684_v3 = vsel %vm1009_vm6, %v5659_v60, -inf }
0x1c74   : > { %v5662_v14 = vpop.f32.mrb[162].mxu0  ;;  %5685 = vmax.xlane.f32.xlu0 %v5684_v3 }
0x1c75   : > { %v9424_v58 = vpop.f32.mrb[163].mxu0  ;;  %v5687_v49 = vsel %vm1009_vm6, %v5662_v14, -inf }
0x1c76   : > { %5688 = vmax.xlane.f32.xlu1 %v5687_v49 }
0x1cf1   : > { %v5668_v61 = vpop.xlane.xlu0 %5667 }
0x1cf2   : > { %v5690_v34 = vsub.f32 %v5518_v22, %v5668_v61 }
0x1cf3   : > { %v5671_v21 = vpop.xlane.xlu1 %5670 }
0x1cf4   : > { %v5698_v53 = vmul.f32 1.442695, %v5690_v34  ;;  %v5691_v37 = vsub.f32 %v5521_v50, %v5671_v21 }
0x1cf6   : > { %10026 = vpow2.f32 %v5698_v53  ;;  %v5700_v54 = vmul.f32 1.442695, %v5691_v37 }
0x1cf8   : > { %10028 = vpow2.f32 %v5700_v54 }
0x1cf9   : > { %v5674_v4 = vpop.xlane.xlu0 %5673 }
0x1cfa   : > { %v5692_v62 = vsub.f32 %v5565_v31, %v5674_v4 }
0x1cfb   : > { %v5677_v52 = vpop.xlane.xlu1 %5676 }
0x1cfc   : > { %v5702_v27 = vmul.f32 1.442695, %v5692_v62  ;;  %v5693_v33 = vsub.f32 %v5568_v38, %v5677_v52 }
0x1cfd   : > { %v5680_v32 = vpop.xlane.xlu0 %5679 }
0x1cfe   : > { %10030 = vpow2.f32 %v5702_v27  ;;  %v5704_v56 = vmul.f32 1.442695, %v5693_v33  ;;  %v5694_v6 = vsub.f32 %v5612_v43, %v5680_v32 }
0x1cff   : > { %v5683_v13 = vpop.xlane.xlu1 %5682 }
0x1d00   : > { %v10027_v25 = vpop.eup %10026  ;;  %10032 = vpow2.f32 %v5704_v56  ;;  %v5706_v26 = vmul.f32 1.442695, %v5694_v6  ;;  %v5695_v0 = vsub.f32 %v5615_v20, %v5683_v13  ;;  %v9794_v13 = vld [vmem:[%s12134_s3 + $0x1a0] sm:$0xff]  }
0x1d01   : > { %v5686_v11 = vpop.xlane.xlu0 %5685  ;;  %v5714_v55 = vsel %vm1009_vm6, %v10027_v25, 0.0 }
0x1d02   : > { %v10029_v30 = vpop.eup %10028  ;;  %10034 = vpow2.f32 %v5706_v26  ;;  %v5708_v22 = vmul.f32 1.442695, %v5695_v0  ;;  %v5696_v15 = vsub.f32 %v5659_v60, %v5686_v11  ;;  %5715 = vadd.xlane.f32.xlu0 %v5714_v55 }
0x1d03   : > { %v5689_v7 = vpop.xlane.xlu1 %5688  ;;  %v5717_v50 = vsel %vm1009_vm6, %v10029_v30, 0.0 }
0x1d04   : > { %10036 = vpow2.f32 %v5708_v22  ;;  %v5710_v51 = vmul.f32 1.442695, %v5696_v15  ;;  %v5697_v44 = vsub.f32 %v5662_v14, %v5689_v7  ;;  %5718 = vadd.xlane.f32.xlu1 %v5717_v50  ;;  %v9795_v22 = vld [vmem:[%s12134_s3 + $0x1a8] sm:$0xff]   ;;  %v9800_v7 = vld [vmem:[%s12134_s3 + $0x230] sm:$0xff]   ;;  %v9801_v50 = vld [vmem:[%s12134_s3 + $0x238] sm:$0xff]  }
0x1d05   : > { %v9799_v15 = vld [vmem:[%s12134_s3 + $0x228] sm:$0xff]  }
0x1d06   : > { %10038 = vpow2.f32 %v5710_v51  ;;  %v5712_v31 = vmul.f32 1.442695, %v5697_v44  ;;  %v9802_v51 = vld [vmem:[%s12135_s4 + $0x40] sm:$0xff]   ;;  %v9803_v44 = vld [vmem:[%s12135_s4 + $0x48] sm:$0xff]  }
0x1d08   : > { %v10031_v43 = vpop.eup %10030  ;;  %10040 = vpow2.f32 %v5712_v31  ;;  %v9804_v31 = vld [vmem:[%s12134_s3 + $0x1e0] sm:$0xff]  }
0x1d09   : > { %v5720_v23 = vsel %vm1009_vm6, %v10031_v43, 0.0 }
0x1d0a   : > { %v10033_v16 = vpop.eup %10032  ;;  %5721 = vadd.xlane.f32.xlu0 %v5720_v23 }
0x1d0b   : > { %v5723_v63 = vsel %vm1009_vm6, %v10033_v16, 0.0 }
0x1d0c   : > { %v10035_v38 = vpop.eup %10034  ;;  %5724 = vadd.xlane.f32.xlu1 %v5723_v63 }
0x1d0d   : > { %v5726_v20 = vsel %vm1009_vm6, %v10035_v38, 0.0 }
0x1d0e   : > { %v10037_v48 = vpop.eup %10036  ;;  %5727 = vadd.xlane.f32.xlu0 %v5726_v20 }
0x1d0f   : > { %v5729_v17 = vsel %vm1009_vm6, %v10037_v48, 0.0 }
0x1d10   : > { %v10039_v19 = vpop.eup %10038  ;;  %5730 = vadd.xlane.f32.xlu1 %v5729_v17 }
0x1d11   : > { %v5732_v35 = vsel %vm1009_vm6, %v10039_v19, 0.0 }
0x1d12   : > { %v10041_v36 = vpop.eup %10040  ;;  %5733 = vadd.xlane.f32.xlu0 %v5732_v35 }
0x1d13   : > { %v5735_v60 = vsel %vm1009_vm6, %v10041_v36, 0.0 }
0x1d14   : > { %5736 = vadd.xlane.f32.xlu1 %v5735_v60 }
0x1d8f   : > { %v5716_v10 = vpop.xlane.xlu0 %5715 }
0x1d90   : > { %10042 = vrcp.f32 %v5716_v10 }
0x1d91   : > { %v5719_v3 = vpop.xlane.xlu1 %5718 }
0x1d92   : > { %10044 = vrcp.f32 %v5719_v3 }
0x1d97   : > { %v5722_v14 = vpop.xlane.xlu0 %5721 }
0x1d98   : > { %10046 = vrcp.f32 %v5722_v14 }
0x1d99   : > { %v5725_v58 = vpop.xlane.xlu1 %5724 }
0x1d9a   : > { %v10043_v49 = vpop.eup %10042  ;;  %10048 = vrcp.f32 %v5725_v58 }
0x1d9b   : > { %v5728_v61 = vpop.xlane.xlu0 %5727  ;;  %v5746_v21 = vmul.f32 %v10043_v49, %v10027_v25  ;;  %v9806_v49 = vld [vmem:[%s12134_s3 + $0x1f0] sm:$0xff]  }
0x1d9c   : > { %v10045_v34 = vpop.eup %10044  ;;  %10050 = vrcp.f32 %v5728_v61 }
0x1d9d   : > { %v5747_v53 = vmul.f32 %v10045_v34, %v10029_v30  ;;  %v5731_v37 = vpop.xlane.xlu1 %5730 }
0x1d9e   : > { %10052 = vrcp.f32 %v5731_v37 }
0x1d9f   : > { %v5734_v54 = vpop.xlane.xlu0 %5733  ;;  %v5754_v4 = vpack.c.bf16 %v5747_v53, %v5746_v21 }
0x1da0   : > { %10054 = vrcp.f32 %v5734_v54  ;;  %v9807_v54 = vld [vmem:[%s12134_s3 + $0x1f8] sm:$0xff]  }
0x1da1   : > { %9428 = vmatmul.mubr.msk.bf16.vlgmr.msra.gmra.mrb[156].mxu1 %vm1009_vm6, %v5754_v4  ;;  %v5737_v62 = vpop.xlane.xlu1 %5736 }
0x1da2   : > { %v10047_v52 = vpop.eup %10046  ;;  %9438 = vmatpush3.bf16.msra.mxu1 %v5760_v18  ;;  %10056 = vrcp.f32 %v5737_v62  ;;  %9439 = vmatprep.mubr.msk.bf16.mxu1 %vm10150_vm4, %v10149_v2  ;;  %v8364_v62 = vld [vmem:[%s12140_s9 + $0x1b] ss:$0 sm:$0xff] }
0x1da3   : > { %v5748_v33 = vmul.f32 %v10047_v52, %v10031_v43  ;;  %9449 = vmatprep.subr.bf16.mxu1 %v9802_v51 }
0x1da4   : > { %v10049_v27 = vpop.eup %10048 }
0x1da5   : > { %v5749_v32 = vmul.f32 %v10049_v27, %v10033_v16 }
0x1da6   : > { %v10051_v56 = vpop.eup %10050 }
0x1da7   : > { %v5755_v6 = vpack.c.bf16 %v5749_v32, %v5748_v33  ;;  %v5750_v26 = vmul.f32 %v10051_v56, %v10035_v38 }
0x1da8   : > { %v10053_v25 = vpop.eup %10052 }
0x1da9   : > { %v5751_v0 = vmul.f32 %v10053_v25, %v10037_v48  ;;  %9434 = vmatmul.mubr.msk.bf16.vlgmr.msra.gmra.mrb[164].mxu0 %vm1009_vm6, %v5755_v6 }
0x1daa   : > { %v10055_v9 = vpop.eup %10054  ;;  %9444 = vmatpush3.bf16.msra.mxu0 %v5761_v8  ;;  %9445 = vmatprep.mubr.msk.bf16.mxu0 %vm10150_vm4, %v10149_v2  ;;  %v9798_v8 = vld [vmem:[%s12134_s3 + $0x220] sm:$0xff]  }
0x1dab   : > { %v5756_v46 = vpack.c.bf16 %v5751_v0, %v5750_v26  ;;  %9461 = vmatprep.subr.bf16.mxu0 %v9794_v13  ;;  %v5752_v11 = vmul.f32 %v10055_v9, %v10039_v19 }
0x1dac   : > { %v10057_v18 = vpop.eup %10056 }
0x1dad   : > { %v5753_v55 = vmul.f32 %v10057_v18, %v10041_v36  ;;  %9440 = vmatmul.mubr.msk.bf16.vlgmr.msra.gmra.mrb[160].mxu1 %vm1009_vm6, %v5756_v46  ;;  %v9805_v36 = vld [vmem:[%s12134_s3 + $0x1e8] sm:$0xff]  }
0x1dae   : > { %9450 = vmatpush3.bf16.msra.mxu1 %v9802_v51 }
0x1daf   : > { %v5757_v30 = vpack.c.bf16 %v5753_v55, %v5752_v11  ;;  %9451 = vmatprep.subr.bf16.mxu1 %v9803_v44 }
0x1db1   : > { %9446 = vmatmul.mubr.msk.bf16.vlgmr.msra.gmra.mrb[168].mxu0 %vm1009_vm6, %v5757_v30 }
0x1db2   : > { %9462 = vmatpush3.bf16.msra.mxu0 %v9794_v13  ;;  %9469 = vmatprep.mubr.msk.bf16.mxu0 %vm546_vm3, %v11433_v47 }
0x1db3   : > { %9463 = vmatprep.subr.bf16.mxu0 %v9795_v22  ;;  %9452 = vmatpush3.bf16.msra.mxu1 %v9803_v44 }
0x1db4   : > { %9477 = vmatprep.subr.bf16.mxu1 %v9804_v31 }
0x1db6   : > { %9464 = vmatpush3.bf16.msra.mxu0 %v9795_v22 }
0x1db7   : > { %9465 = vmatprep.subr.bf16.mxu0 %v9796_v24 }
0x1dba   : > { %9466 = vmatpush3.bf16.msra.mxu0 %v9796_v24 }
0x1dbb   : > { %9467 = vmatprep.subr.bf16.mxu0 %v9797_v41 }
0x1dbe   : > { %9468 = vmatpush3.bf16.msra.mxu0 %v9797_v41 }
0x1dbf   : > { %9493 = vmatprep.subr.bf16.mxu0 %v9798_v8 }
0x1dc1   : > { %9470 = vmatmul.mubr.msk.bf16.vlgmr.msra.gmra.mrb[172].mxu0 %vm546_vm3, %v11447_v29 }
0x1dc2   : > { %9473 = vmatprep.mubr.msk.bf16.mxu0 %vm546_vm3, %v11464_v40  ;;  %9494 = vmatpush3.bf16.msra.mxu0 %v9798_v8 }
0x1dc3   : > { %9495 = vmatprep.subr.bf16.mxu0 %v9799_v15 }
0x1dc6   : > { %9496 = vmatpush3.bf16.msra.mxu0 %v9799_v15 }
0x1dc7   : > { %9497 = vmatprep.subr.bf16.mxu0 %v9800_v7 }
0x1dc9   : > { %9474 = vmatmul.mubr.msk.bf16.gmra.mrb[176].mxu0 %vm546_vm3, %v11479_v5 }
0x1dca   : > { %9498 = vmatpush3.bf16.msra.mxu0 %v9800_v7  ;;  %9501 = vmatprep.mubr.msk.bf16.mxu0 %vm546_vm3, %v11433_v47 }
0x1dcb   : > { %9499 = vmatprep.subr.bf16.mxu0 %v9801_v50 }
0x1dce   : > { %9500 = vmatpush3.bf16.msra.mxu0 %v9801_v50 }
0x1dcf   : > { %9521 = vmatprep.subr.bf16.mxu0 %v10149_v2 }
0x1dd1   : > { %9502 = vmatmul.mubr.msk.bf16.vlgmr.msra.gmra.mrb[180].mxu0 %vm546_vm3, %v11447_v29 }
0x1dd2   : > { %9505 = vmatprep.mubr.msk.bf16.mxu0 %vm546_vm3, %v11464_v40 }
0x1dd9   : > { %9506 = vmatmul.mubr.msk.bf16.gmra.mrb[184].mxu0 %vm546_vm3, %v11479_v5 }
0x1dda   : > { %9523 = vmatprep.mubr.msk.bf16.mxu0 %vm10150_vm4, %v10149_v2 }
0x1e74   : > { %v5799_v43 = vpop.f32.mrb[156].mxu1 }
0x1e75   : > { %v9429_v23 = vpop.f32.mrb[157].mxu1 }
0x1e76   : > { %v5802_v16 = vpop.f32.mrb[158].mxu1 }
0x1e77   : > { %v5943_v63 = vpack.c.bf16 %v5802_v16, %v5799_v43  ;;  %v9430_v38 = vpop.f32.mrb[159].mxu1 }
0x1e79   : > { %9453 = vmatprep.mubr.msk.bf16.mxu1 %vm820_vm5, %v5943_v63 }
0x1e7c   : > { %v5843_v20 = vpop.f32.mrb[164].mxu0 }
0x1e7d   : > { %v9435_v48 = vpop.f32.mrb[165].mxu0 }
0x1e7e   : > { %v5846_v17 = vpop.f32.mrb[166].mxu0 }
0x1e7f   : > { %v5944_v19 = vpack.c.bf16 %v5846_v17, %v5843_v20  ;;  %v9436_v35 = vpop.f32.mrb[167].mxu0 }
0x1e80   : > { %v5887_v60 = vpop.f32.mrb[160].mxu1 }
0x1e81   : > { %v9441_v10 = vpop.f32.mrb[161].mxu1  ;;  %9454 = vmatmul.mubr.msk.bf16.vlgmr.msra.gmra.mrb[164].mxu1 %vm820_vm5, %v5944_v19 }
0x1e82   : > { %v5890_v3 = vpop.f32.mrb[162].mxu1  ;;  %9478 = vmatpush3.bf16.msra.mxu1 %v9804_v31 }
0x1e83   : > { %v5945_v14 = vpack.c.bf16 %v5890_v3, %v5887_v60  ;;  %v9442_v58 = vpop.f32.mrb[163].mxu1  ;;  %9479 = vmatprep.subr.bf16.mxu1 %v9805_v36  ;;  %v8373_v60 = vld [vmem:[%s12140_s9 + $0x1d] ss:$0 sm:$0xff] }
0x1e84   : > { %v5931_v61 = vpop.f32.mrb[168].mxu0 }
0x1e85   : > { %v9447_v34 = vpop.f32.mrb[169].mxu0  ;;  %9457 = vmatprep.mubr.msk.bf16.mxu1 %vm820_vm5, %v5945_v14 }
0x1e86   : > { %v5934_v21 = vpop.f32.mrb[170].mxu0  ;;  %9480 = vmatpush3.bf16.msra.mxu1 %v9805_v36 }
0x1e87   : > { %v5946_v53 = vpack.c.bf16 %v5934_v21, %v5931_v61  ;;  %v9448_v37 = vpop.f32.mrb[171].mxu0  ;;  %9481 = vmatprep.subr.bf16.mxu1 %v9806_v49 }
0x1e89   : > { %9458 = vmatmul.mubr.msk.bf16.gmra.mrb[168].mxu1 %vm820_vm5, %v5946_v53 }
0x1e8a   : > { %9482 = vmatpush3.bf16.msra.mxu1 %v9806_v49  ;;  %9485 = vmatprep.mubr.msk.bf16.mxu1 %vm546_vm3, %v11433_v47 }
0x1e8b   : > { %9483 = vmatprep.subr.bf16.mxu1 %v9807_v54 }
0x1e8e   : > { %9484 = vmatpush3.bf16.msra.mxu1 %v9807_v54 }
0x1e8f   : > { %9509 = vmatprep.subr.bf16.mxu1 %v10149_v2 }
0x1e91   : > { %9486 = vmatmul.mubr.msk.bf16.vlgmr.msra.gmra.mrb[172].mxu1 %vm546_vm3, %v11447_v29 }
0x1e92   : > { %9489 = vmatprep.mubr.msk.bf16.mxu1 %vm546_vm3, %v11464_v40 }
0x1e94   : > { %v9471_v4 = vpop.f32.mrb[172].mxu0 }
0x1e95   : > { %v6138_v52 = vpop.f32.mrb[173].mxu0  ;;  %v11667_v33 = vadd.f32 %v9471_v4, %v8364_v62 }
0x1e96   : > { %v9472_v27 = vpop.f32.mrb[174].mxu0  ;;  %v6139_v56 = vadd.f32 %v8364_v62, %v6138_v52 }
0x1e97   : > { %v11669_v47 = vadd.f32 %v9472_v27, %v8364_v62  ;;  %v6141_v32 = vpop.f32.mrb[175].mxu0 }
0x1e98   : > { %v6142_v6 = vadd.f32 %v8364_v62, %v6141_v32 }
0x1e99   : > { %v6358_v29 = vpack.c.bf16 %v11669_v47, %v11667_v33  ;;  %9490 = vmatmul.mubr.msk.bf16.gmra.mrb[176].mxu1 %vm546_vm3, %v11479_v5  ;;  %v8382_v5 = vld [vmem:[%s12140_s9 + $0x1f] ss:$0 sm:$0xff] }
0x1e9a   : > { %v6357_v40 = vpack.c.bf16 %v6142_v6, %v6139_v56  ;;  %9511 = vmatprep.mubr.msk.bf16.mxu1 %vm10150_vm4, %v10149_v2 }
0x1e9c   : > { %v9475_v13 = vpop.f32.mrb[176].mxu0 }
0x1e9d   : > { %v6154_v25 = vpop.f32.mrb[177].mxu0  ;;  %v11677_v0 = vadd.f32 %v9475_v13, %v8364_v62 }
0x1e9e   : > { %v9476_v26 = vpop.f32.mrb[178].mxu0  ;;  %v6155_v18 = vadd.f32 %v8364_v62, %v6154_v25 }
0x1e9f   : > { %v11679_v9 = vadd.f32 %v9476_v26, %v8364_v62  ;;  %v6157_v46 = vpop.f32.mrb[179].mxu0 }
0x1ea0   : > { %v6158_v11 = vadd.f32 %v8364_v62, %v6157_v46 }
0x1ea1   : > { %v6360_v55 = vpack.c.bf16 %v11679_v9, %v11677_v0 }
0x1ea2   : > { %v6359_v30 = vpack.c.bf16 %v6158_v11, %v6155_v18 }
0x1ea4   : > { %v9503_v22 = vpop.f32.mrb[180].mxu0 }
0x1ea5   : > { %v6326_v24 = vpop.f32.mrb[181].mxu0  ;;  %v6335_v8 = vadd.f32 %v9503_v22, %v8382_v5 }
0x1ea6   : > { %v9504_v41 = vpop.f32.mrb[182].mxu0  ;;  %v6327_v50 = vadd.f32 %v8382_v5, %v6326_v24 }
0x1ea7   : > { %v6338_v15 = vadd.f32 %v9504_v41, %v8382_v5  ;;  %v6329_v7 = vpop.f32.mrb[183].mxu0 }
0x1ea8   : > { %v6330_v51 = vadd.f32 %v8382_v5, %v6329_v7 }
0x1ea9   : > { %v6646_v44 = vpack.c.bf16 %v6338_v15, %v6335_v8 }
0x1eaa   : > { %v6645_v31 = vpack.c.bf16 %v6330_v51, %v6327_v50 }
0x1eac   : > { %v9507_v43 = vpop.f32.mrb[184].mxu0 }
0x1ead   : > { %v11686_v23 = vadd.f32 %v9507_v43, %v8382_v5  ;;  %v6342_v16 = vpop.f32.mrb[185].mxu0 }
0x1eae   : > { %v11688_v63 = vadd.f32 %v8382_v5, %v6342_v16  ;;  %v9508_v38 = vpop.f32.mrb[186].mxu0 }
0x1eaf   : > { %v11690_v20 = vadd.f32 %v9508_v38, %v8382_v5  ;;  %v6345_v48 = vpop.f32.mrb[187].mxu0 }
0x1eb0   : > { %v11692_v17 = vadd.f32 %v8382_v5, %v6345_v48 }
0x1eb1   : > { %v6648_v19 = vpack.c.bf16 %v11690_v20, %v11686_v23  ;;  %v9809_v23 = vld [vmem:[%s12135_s4 + $0x58] sm:$0xff]  }
0x1eb2   : > { %v6647_v35 = vpack.c.bf16 %v11692_v17, %v11688_v63 }
0x1f64   : > { %v9487_v36 = vpop.f32.mrb[172].mxu1 }
0x1f65   : > { %v6232_v10 = vpop.f32.mrb[173].mxu1  ;;  %v6241_v14 = vadd.f32 %v9487_v36, %v8373_v60 }
0x1f66   : > { %v9488_v3 = vpop.f32.mrb[174].mxu1  ;;  %v6233_v61 = vadd.f32 %v8373_v60, %v6232_v10 }
0x1f67   : > { %v6244_v58 = vadd.f32 %v9488_v3, %v8373_v60  ;;  %v6235_v49 = vpop.f32.mrb[175].mxu1 }
0x1f68   : > { %v6236_v34 = vadd.f32 %v8373_v60, %v6235_v49 }
0x1f69   : > { %v6362_v21 = vpack.c.bf16 %v6244_v58, %v6241_v14 }
0x1f6a   : > { %v6361_v53 = vpack.c.bf16 %v6236_v34, %v6233_v61 }
0x1f6b   : > { %v6416_v26 = vsel %vm820_vm5, %v6362_v21, 0 }
0x1f6c   : > { %v9491_v37 = vpop.f32.mrb[176].mxu1  ;;  %v6369_v54 = vsel %vm820_vm5, %v6361_v53, 0 }
0x1f6d   : > { %v6248_v4 = vpop.f32.mrb[177].mxu1  ;;  %9510 = vmatpush3.bf16.xpose.msra.mxu1 %v6369_v54  ;;  %v6257_v52 = vadd.f32 %v9491_v37, %v8373_v60 }
0x1f6e   : > { %v9492_v62 = vpop.f32.mrb[178].mxu1  ;;  %9515 = vmatprep.subr.bf16.mxu1 %v10149_v2  ;;  %v6249_v56 = vadd.f32 %v8373_v60, %v6248_v4 }
0x1f6f   : > { %v6260_v27 = vadd.f32 %v9492_v62, %v8373_v60  ;;  %v6251_v32 = vpop.f32.mrb[179].mxu1 }
0x1f70   : > { %v6252_v6 = vadd.f32 %v8373_v60, %v6251_v32 }
0x1f71   : > { %v6364_v13 = vpack.c.bf16 %v6260_v27, %v6257_v52 }
0x1f72   : > { %v6363_v25 = vpack.c.bf16 %v6252_v6, %v6249_v56 }
0x1f74   : > { %9512 = vmatmul.mubr.msk.bf16.vlgmr.msra.gmra.mrb[180].mxu1 %vm820_vm5, %v6357_v40  ;;  %v6463_v46 = vsel %vm820_vm5, %v6363_v25, 0  ;;  %v6510_v40 = vsel %vm820_vm5, %v6364_v13, 0 }
0x1f75   : > { %9516 = vmatpush3.bf16.xpose.msra.mxu1 %v6416_v26  ;;  %9522 = vmatpush3.bf16.xpose.msra.mxu0 %v6463_v46 }
0x1f76   : > { %9517 = vmatprep.mubr.msk.bf16.mxu1 %vm10150_vm4, %v10149_v2  ;;  %9527 = vmatprep.subr.bf16.mxu1 %v10149_v2 }
0x1f77   : > { %9533 = vmatprep.subr.bf16.mxu0 %v10149_v2 }
0x1f7c   : > { %9518 = vmatmul.mubr.msk.bf16.vlgmr.msra.gmra.mrb[184].mxu1 %vm820_vm5, %v6358_v29  ;;  %9524 = vmatmul.mubr.msk.bf16.vlgmr.msra.gmra.mrb[188].mxu0 %vm820_vm5, %v6359_v30 }
0x1f7d   : > { %9528 = vmatpush3.bf16.xpose.msra.mxu1 %v6510_v40  ;;  %9534 = vmatpush3.bf16.msra.mxu0 %v6645_v31 }
0x1f7e   : > { %9529 = vmatprep.mubr.msk.bf16.mxu1 %vm10150_vm4, %v10149_v2  ;;  %9539 = vmatprep.subr.bf16.mxu1 %v10149_v2 }
0x1f7f   : > { %9535 = vmatprep.mubr.msk.bf16.mxu0 %vm10150_vm4, %v10149_v2  ;;  %9545 = vmatprep.subr.bf16.mxu0 %v10149_v2 }
0x1f84   : > { %9530 = vmatmul.mubr.msk.bf16.vlgmr.msra.gmra.mrb[188].mxu1 %vm820_vm5, %v6360_v55 }
0x1f85   : > { %9540 = vmatpush3.bf16.msra.mxu1 %v6646_v44  ;;  %9541 = vmatprep.mubr.msk.bf16.mxu1 %vm10150_vm4, %v10149_v2 }
0x1f86   : > { %9551 = vmatprep.subr.bf16.mxu1 %v10149_v2 }
0x2047   : > { %v6405_v33 = vpop.f32.mrb[180].mxu1 }
0x2048   : > { %v9513_v47 = vpop.f32.mrb[181].mxu1  ;;  %v6553_v29 = vsel %vm1009_vm6, %v6405_v33, -inf }
0x2049   : > { %6554 = vmax.xlane.f32.xlu0 %v6553_v29  ;;  %v6408_v18 = vpop.f32.mrb[182].mxu1 }
0x204a   : > { %v9514_v11 = vpop.f32.mrb[183].mxu1  ;;  %v6556_v30 = vsel %vm1009_vm6, %v6408_v18, -inf }
0x204b   : > { %6557 = vmax.xlane.f32.xlu1 %v6556_v30 }
0x204f   : > { %v6452_v22 = vpop.f32.mrb[184].mxu1  ;;  %v6499_v0 = vpop.f32.mrb[188].mxu0 }
0x2050   : > { %v9519_v9 = vpop.f32.mrb[185].mxu1  ;;  %v9525_v55 = vpop.f32.mrb[189].mxu0  ;;  %v6559_v5 = vsel %vm1009_vm6, %v6452_v22, -inf  ;;  %v6565_v50 = vsel %vm1009_vm6, %v6499_v0, -inf }
0x2051   : > { %v6502_v24 = vpop.f32.mrb[190].mxu0  ;;  %6560 = vmax.xlane.f32.xlu0 %v6559_v5  ;;  %v6455_v41 = vpop.f32.mrb[186].mxu1 }
0x2052   : > { %v9520_v8 = vpop.f32.mrb[187].mxu1  ;;  %v9526_v15 = vpop.f32.mrb[191].mxu0  ;;  %v6562_v7 = vsel %vm1009_vm6, %v6455_v41, -inf  ;;  %v6568_v51 = vsel %vm1009_vm6, %v6502_v24, -inf }
0x2053   : > { %6563 = vmax.xlane.f32.xlu1 %v6562_v7 }
0x2055   : > { %6566 = vmax.xlane.f32.xlu0 %v6565_v50 }
0x2057   : > { %6569 = vmax.xlane.f32.xlu1 %v6568_v51  ;;  %v6546_v44 = vpop.f32.mrb[188].mxu1 }
0x2058   : > { %v9531_v31 = vpop.f32.mrb[189].mxu1  ;;  %v6571_v43 = vsel %vm1009_vm6, %v6546_v44, -inf }
0x2059   : > { %6572 = vmax.xlane.f32.xlu0 %v6571_v43  ;;  %v6549_v16 = vpop.f32.mrb[190].mxu1 }
0x205a   : > { %v9532_v38 = vpop.f32.mrb[191].mxu1  ;;  %v6574_v48 = vsel %vm1009_vm6, %v6549_v16, -inf }
0x205b   : > { %6575 = vmax.xlane.f32.xlu1 %v6574_v48 }
0x20d6   : > { %v6555_v36 = vpop.xlane.xlu0 %6554 }
0x20d7   : > { %v6577_v60 = vsub.f32 %v6405_v33, %v6555_v36 }
0x20d8   : > { %v6558_v10 = vpop.xlane.xlu1 %6557 }
0x20d9   : > { %v6585_v3 = vmul.f32 1.442695, %v6577_v60  ;;  %v6578_v14 = vsub.f32 %v6408_v18, %v6558_v10 }
0x20db   : > { %10058 = vpow2.f32 %v6585_v3  ;;  %v6587_v58 = vmul.f32 1.442695, %v6578_v14 }
0x20dd   : > { %10060 = vpow2.f32 %v6587_v58 }
0x20de   : > { %v6561_v49 = vpop.xlane.xlu0 %6560 }
0x20df   : > { %v6579_v61 = vsub.f32 %v6452_v22, %v6561_v49 }
0x20e0   : > { %v6564_v34 = vpop.xlane.xlu1 %6563 }
0x20e1   : > { %v6589_v21 = vmul.f32 1.442695, %v6579_v61  ;;  %v6580_v53 = vsub.f32 %v6455_v41, %v6564_v34 }
0x20e2   : > { %v6567_v37 = vpop.xlane.xlu0 %6566 }
0x20e3   : > { %10062 = vpow2.f32 %v6589_v21  ;;  %v6591_v54 = vmul.f32 1.442695, %v6580_v53  ;;  %v6581_v4 = vsub.f32 %v6499_v0, %v6567_v37 }
0x20e4   : > { %v6570_v62 = vpop.xlane.xlu1 %6569 }
0x20e5   : > { %v10059_v52 = vpop.eup %10058  ;;  %10064 = vpow2.f32 %v6591_v54  ;;  %v6593_v27 = vmul.f32 1.442695, %v6581_v4  ;;  %v6582_v32 = vsub.f32 %v6502_v24, %v6570_v62 }
0x20e6   : > { %v6573_v56 = vpop.xlane.xlu0 %6572  ;;  %v6601_v6 = vsel %vm1009_vm6, %v10059_v52, 0.0 }
0x20e7   : > { %v10061_v13 = vpop.eup %10060  ;;  %10066 = vpow2.f32 %v6593_v27  ;;  %v6595_v25 = vmul.f32 1.442695, %v6582_v32  ;;  %v6583_v26 = vsub.f32 %v6546_v44, %v6573_v56  ;;  %6602 = vadd.xlane.f32.xlu0 %v6601_v6  ;;  %v9808_v27 = vld [vmem:[%s12135_s4 + $0x50] sm:$0xff]  }
0x20e8   : > { %v6576_v46 = vpop.xlane.xlu1 %6575  ;;  %v6604_v40 = vsel %vm1009_vm6, %v10061_v13, 0.0 }
0x20e9   : > { %10068 = vpow2.f32 %v6595_v25  ;;  %v6597_v33 = vmul.f32 1.442695, %v6583_v26  ;;  %v6584_v47 = vsub.f32 %v6549_v16, %v6576_v46  ;;  %6605 = vadd.xlane.f32.xlu1 %v6604_v40 }
0x20eb   : > { %10070 = vpow2.f32 %v6597_v33  ;;  %v6599_v29 = vmul.f32 1.442695, %v6584_v47 }
0x20ed   : > { %v10063_v18 = vpop.eup %10062  ;;  %10072 = vpow2.f32 %v6599_v29 }
0x20ee   : > { %v6607_v11 = vsel %vm1009_vm6, %v10063_v18, 0.0 }
0x20ef   : > { %v10065_v30 = vpop.eup %10064  ;;  %6608 = vadd.xlane.f32.xlu0 %v6607_v11 }
0x20f0   : > { %v6610_v22 = vsel %vm1009_vm6, %v10065_v30, 0.0 }
0x20f1   : > { %v10067_v0 = vpop.eup %10066  ;;  %6611 = vadd.xlane.f32.xlu1 %v6610_v22 }
0x20f2   : > { %v6613_v9 = vsel %vm1009_vm6, %v10067_v0, 0.0 }
0x20f3   : > { %v10069_v55 = vpop.eup %10068  ;;  %6614 = vadd.xlane.f32.xlu0 %v6613_v9 }
0x20f4   : > { %v6616_v5 = vsel %vm1009_vm6, %v10069_v55, 0.0 }
0x20f5   : > { %v10071_v24 = vpop.eup %10070  ;;  %6617 = vadd.xlane.f32.xlu1 %v6616_v5  ;;  %v8339_v5 = vld [vmem:[%s12140_s9 + $0x20] ss:$0 sm:$0xff] }
0x20f6   : > { %v6619_v41 = vsel %vm1009_vm6, %v10071_v24, 0.0 }
0x20f7   : > { %v10073_v8 = vpop.eup %10072  ;;  %6620 = vadd.xlane.f32.xlu0 %v6619_v41 }
0x20f8   : > { %v6622_v15 = vsel %vm1009_vm6, %v10073_v8, 0.0 }
0x20f9   : > { %6623 = vadd.xlane.f32.xlu1 %v6622_v15 }
0x2174   : > { %v6603_v7 = vpop.xlane.xlu0 %6602 }
0x2175   : > { %10074 = vrcp.f32 %v6603_v7 }
0x2176   : > { %v6606_v50 = vpop.xlane.xlu1 %6605 }
0x2177   : > { %10076 = vrcp.f32 %v6606_v50 }
0x217c   : > { %v6609_v51 = vpop.xlane.xlu0 %6608 }
0x217d   : > { %10078 = vrcp.f32 %v6609_v51 }
0x217e   : > { %v6612_v44 = vpop.xlane.xlu1 %6611 }
0x217f   : > { %v10075_v31 = vpop.eup %10074  ;;  %10080 = vrcp.f32 %v6612_v44 }
0x2180   : > { %v6615_v43 = vpop.xlane.xlu0 %6614  ;;  %v6633_v38 = vmul.f32 %v10075_v31, %v10059_v52 }
0x2181   : > { %v10077_v16 = vpop.eup %10076  ;;  %10082 = vrcp.f32 %v6615_v43 }
0x2182   : > { %v6634_v48 = vmul.f32 %v10077_v16, %v10061_v13  ;;  %v6618_v36 = vpop.xlane.xlu1 %6617 }
0x2183   : > { %10084 = vrcp.f32 %v6618_v36 }
0x2184   : > { %v6621_v60 = vpop.xlane.xlu0 %6620  ;;  %v6641_v10 = vpack.c.bf16 %v6634_v48, %v6633_v38 }
0x2185   : > { %10086 = vrcp.f32 %v6621_v60 }
0x2186   : > { %9536 = vmatmul.mubr.msk.bf16.vlgmr.msra.gmra.mrb[192].mxu0 %vm1009_vm6, %v6641_v10  ;;  %v6624_v3 = vpop.xlane.xlu1 %6623 }
0x2187   : > { %v10079_v14 = vpop.eup %10078  ;;  %9546 = vmatpush3.bf16.msra.mxu0 %v6647_v35  ;;  %10088 = vrcp.f32 %v6624_v3  ;;  %9547 = vmatprep.mubr.msk.bf16.mxu0 %vm10150_vm4, %v10149_v2 }
0x2188   : > { %v6635_v49 = vmul.f32 %v10079_v14, %v10063_v18 }
0x2189   : > { %v10081_v58 = vpop.eup %10080 }
0x218a   : > { %v6636_v61 = vmul.f32 %v10081_v58, %v10065_v30 }
0x218b   : > { %v10083_v34 = vpop.eup %10082 }
0x218c   : > { %v6642_v21 = vpack.c.bf16 %v6636_v61, %v6635_v49  ;;  %v6637_v37 = vmul.f32 %v10083_v34, %v10067_v0 }
0x218d   : > { %v10085_v53 = vpop.eup %10084 }
0x218e   : > { %v6638_v54 = vmul.f32 %v10085_v53, %v10069_v55  ;;  %9542 = vmatmul.mubr.msk.bf16.vlgmr.msra.gmra.mrb[192].mxu1 %vm1009_vm6, %v6642_v21 }
0x218f   : > { %v10087_v4 = vpop.eup %10086  ;;  %9552 = vmatpush3.bf16.msra.mxu1 %v6648_v19  ;;  %9553 = vmatprep.mubr.msk.bf16.mxu1 %vm10150_vm4, %v10149_v2 }
0x2190   : > { %v6643_v63 = vpack.c.bf16 %v6638_v54, %v6637_v37  ;;  %v6639_v35 = vmul.f32 %v10087_v4, %v10071_v24  ;;  %9557 = vmatprep.subr.bf16.mxu1 %v9808_v27 }
0x2191   : > { %v10089_v17 = vpop.eup %10088 }
0x2192   : > { %v6640_v62 = vmul.f32 %v10089_v17, %v10073_v8  ;;  %9548 = vmatmul.mubr.msk.bf16.vlgmr.msra.gmra.mrb[196].mxu0 %vm1009_vm6, %v6643_v63 }
0x2194   : > { %v6644_v52 = vpack.c.bf16 %v6640_v62, %v6639_v35 }
0x2196   : > { %9554 = vmatmul.mubr.msk.bf16.vlgmr.msra.gmra.mrb[196].mxu1 %vm1009_vm6, %v6644_v52 }
0x2197   : > { %9558 = vmatpush3.bf16.msra.mxu1 %v9808_v27 }
0x2198   : > { %9559 = vmatprep.subr.bf16.mxu1 %v9809_v23 }
0x219b   : > { %9560 = vmatpush3.bf16.msra.mxu1 %v9809_v23 }
0x2259   : > { %v6686_v20 = vpop.f32.mrb[192].mxu0 }
0x225a   : > { %v9537_v19 = vpop.f32.mrb[193].mxu0 }
0x225b   : > { %v6689_v32 = vpop.f32.mrb[194].mxu0 }
0x225c   : > { %v6830_v56 = vpack.c.bf16 %v6689_v32, %v6686_v20  ;;  %v9538_v6 = vpop.f32.mrb[195].mxu0 }
0x225e   : > { %9561 = vmatprep.mubr.msk.bf16.mxu1 %vm820_vm5, %v6830_v56 }
0x2261   : > { %v6730_v13 = vpop.f32.mrb[192].mxu1 }
0x2262   : > { %v9543_v25 = vpop.f32.mrb[193].mxu1 }
0x2263   : > { %v6733_v26 = vpop.f32.mrb[194].mxu1 }
0x2264   : > { %v6831_v46 = vpack.c.bf16 %v6733_v26, %v6730_v13  ;;  %v9544_v40 = vpop.f32.mrb[195].mxu1 }
0x2265   : > { %v6774_v33 = vpop.f32.mrb[196].mxu0 }
0x2266   : > { %v9549_v47 = vpop.f32.mrb[197].mxu0  ;;  %9562 = vmatmul.mubr.msk.bf16.vlgmr.msra.gmra.mrb[164].mxu1 %vm820_vm5, %v6831_v46 }
0x2267   : > { %v6777_v29 = vpop.f32.mrb[198].mxu0 }
0x2268   : > { %v6832_v18 = vpack.c.bf16 %v6777_v29, %v6774_v33  ;;  %v9550_v11 = vpop.f32.mrb[199].mxu0 }
0x2269   : > { %v6818_v30 = vpop.f32.mrb[196].mxu1 }
0x226a   : > { %v9555_v22 = vpop.f32.mrb[197].mxu1  ;;  %9565 = vmatprep.mubr.msk.bf16.mxu1 %vm820_vm5, %v6832_v18 }
0x226b   : > { %v6821_v0 = vpop.f32.mrb[198].mxu1 }
0x226c   : > { %v6833_v9 = vpack.c.bf16 %v6821_v0, %v6818_v30  ;;  %v9556_v55 = vpop.f32.mrb[199].mxu1 }
0x226e   : > { %9566 = vmatmul.mubr.msk.bf16.gmra.mrb[168].mxu1 %vm820_vm5, %v6833_v9 }
0x2339   : > { %v9563_v24 = vpop.f32.mrb[164].mxu1 }
0x233a   : > { %v6892_v41 = vpop.f32.mrb[165].mxu1  ;;  %v9657_v8 = vadd.f32 %v9563_v24, %v8339_v5 }
0x233b   : > { %v9658_v15 = vadd.f32 %v8339_v5, %v6892_v41  ;;  %v9564_v7 = vpop.f32.mrb[166].mxu1 }
0x233c   : > { %v6895_v50 = vpop.f32.mrb[167].mxu1  ;;  %v9659_v44 = vadd.f32 %v9564_v7, %v8339_v5  ;;  %v6933_v43 = vadd.f32 %v9657_v8, %v11435_v39 }
0x233d   : > { %v6931_v51 = vadd.f32 %v9658_v15, %v11425_v45  ;;  %v9660_v31 = vadd.f32 %v8339_v5, %v6895_v50 }
0x233e   : > { %v6934_v48 = vadd.f32 %v9659_v44, %v11437_v57  ;;  %v6947_v45 = vsel %vm546_vm3, %v6933_v43, 0.0 }
0x233f   : > { %v6932_v16 = vadd.f32 %v9660_v31, %v11427_v28  ;;  %v6941_v38 = vsel %vm546_vm3, %v6931_v51, 0.0 }
0x2340   : > { %6942 = vadd.xlane.f32.xlu0 %v6941_v38  ;;  %v6950_v34 = vsel %vm546_vm3, %v6934_v48, 0.0  ;;  %v9812_v38 = vld [vmem:[%s12136_s5 + $0x50] sm:$0xff]  }
0x2341   : > { %v9567_v36 = vpop.f32.mrb[168].mxu1  ;;  %v6944_v60 = vsel %vm546_vm3, %v6932_v16, 0.0 }
0x2342   : > { %6945 = vadd.xlane.f32.xlu1 %v6944_v60  ;;  %v6908_v10 = vpop.f32.mrb[169].mxu1  ;;  %v9661_v3 = vadd.f32 %v9567_v36, %v8339_v5  ;;  %v9814_v36 = vld [vmem:[%s12137_s6 + $0x80] sm:$0xff]   ;;  %v9815_v60 = vld [vmem:[%s12137_s6 + $0x88] sm:$0xff]  }
0x2343   : > { %v9662_v14 = vadd.f32 %v8339_v5, %v6908_v10  ;;  %v9568_v58 = vpop.f32.mrb[170].mxu1  ;;  %9585 = vmatprep.subr.bf16.mxu1 %v9814_v36  ;;  %v9816_v10 = vld [vmem:[%s12137_s6 + $0x90] sm:$0xff]  }
0x2344   : > { %6948 = vadd.xlane.f32.xlu0 %v6947_v45  ;;  %v6911_v49 = vpop.f32.mrb[171].mxu1  ;;  %v9663_v28 = vadd.f32 %v9568_v58, %v8339_v5  ;;  %v6937_v57 = vadd.f32 %v9661_v3, %v11469_v12  ;;  %9586 = vmatpush3.bf16.msra.mxu1 %v9814_v36  ;;  %v9817_v3 = vld [vmem:[%s12137_s6 + $0x98] sm:$0xff]   ;;  %v9819_v58 = vld [vmem:[%s12137_s6 + $0xa8] sm:$0xff]  }
0x2345   : > { %v6935_v39 = vadd.f32 %v9662_v14, %v11452_v1  ;;  %v9664_v61 = vadd.f32 %v8339_v5, %v6911_v49  ;;  %9587 = vmatprep.subr.bf16.mxu1 %v9815_v60  ;;  %v9818_v14 = vld [vmem:[%s12137_s6 + $0xa0] sm:$0xff]  }
0x2346   : > { %6951 = vadd.xlane.f32.xlu1 %v6950_v34  ;;  %v6938_v37 = vadd.f32 %v9663_v28, %v11471_v42  ;;  %v6959_v4 = vsel %vm546_vm3, %v6937_v57, 0.0 }
0x2347   : > { %v6936_v21 = vadd.f32 %v9664_v61, %v11454_v59  ;;  %v6953_v53 = vsel %vm546_vm3, %v6935_v39, 0.0 }
0x2348   : > { %6954 = vadd.xlane.f32.xlu0 %v6953_v53  ;;  %v6962_v1 = vsel %vm546_vm3, %v6938_v37, 0.0  ;;  %9588 = vmatpush3.bf16.msra.mxu1 %v9815_v60 }
0x2349   : > { %v6956_v54 = vsel %vm546_vm3, %v6936_v21, 0.0  ;;  %9589 = vmatprep.subr.bf16.mxu1 %v9816_v10 }
0x234a   : > { %6957 = vadd.xlane.f32.xlu1 %v6956_v54 }
0x234c   : > { %6960 = vadd.xlane.f32.xlu0 %v6959_v4  ;;  %9590 = vmatpush3.bf16.msra.mxu1 %v9816_v10 }
0x234d   : > { %9591 = vmatprep.subr.bf16.mxu1 %v9817_v3 }
0x234e   : > { %6963 = vadd.xlane.f32.xlu1 %v6962_v1 }
0x2350   : > { %9592 = vmatpush3.bf16.msra.mxu1 %v9817_v3 }
0x2351   : > { %9593 = vmatprep.subr.bf16.mxu1 %v9818_v14 }
0x2354   : > { %9594 = vmatpush3.bf16.msra.mxu1 %v9818_v14 }
0x2355   : > { %9595 = vmatprep.subr.bf16.mxu1 %v9819_v58 }
0x2358   : > { %9596 = vmatpush3.bf16.msra.mxu1 %v9819_v58  ;;  %v9820_v58 = vld [vmem:[%s12137_s6 + $0xb0] sm:$0xff]  }
0x2359   : > { %9597 = vmatprep.subr.bf16.mxu1 %v9820_v58 }
0x235c   : > { %9598 = vmatpush3.bf16.msra.mxu1 %v9820_v58 }
0x23cd   : > { %v6943_v63 = vpop.xlane.xlu0 %6942 }
0x23ce   : > { %v6965_v17 = vmul.f32 0.015625, %v6943_v63 }
0x23cf   : > { %v6946_v35 = vpop.xlane.xlu1 %6945 }
0x23d0   : > { %v11788_v12 = vsub.f32 %v6931_v51, %v6965_v17  ;;  %v6966_v59 = vmul.f32 0.015625, %v6946_v35 }
0x23d1   : > { %v6949_v62 = vpop.xlane.xlu0 %6948 }
0x23d2   : > { %v11790_v52 = vsub.f32 %v6932_v16, %v6966_v59  ;;  %v6967_v27 = vmul.f32 0.015625, %v6949_v62  ;;  %v6981_v42 = vmul.f32 %v11788_v12, %v11788_v12  ;;  %v9811_v16 = vld [vmem:[%s12136_s5 + $0x48] sm:$0xff]  }
0x23d3   : > { %v6952_v23 = vpop.xlane.xlu1 %6951 }
0x23d4   : > { %v11794_v20 = vsub.f32 %v6933_v43, %v6967_v27  ;;  %v6968_v19 = vmul.f32 0.015625, %v6952_v23  ;;  %v6989_v32 = vsel %vm546_vm3, %v6981_v42, 0.0  ;;  %v6982_v56 = vmul.f32 %v11790_v52, %v11790_v52  ;;  %v9810_v43 = vld [vmem:[%s12136_s5 + $0x40] sm:$0xff]  }
0x23d5   : > { %6990 = vadd.xlane.f32.xlu0 %v6989_v32  ;;  %v6955_v6 = vpop.xlane.xlu0 %6954  ;;  %9569 = vmatprep.subr.bf16.mxu0 %v9810_v43  ;;  %v8409_v32 = vld [vmem:[%s12140_s9 + $0x21] ss:$0 sm:$0xff] }
0x23d6   : > { %v11799_v13 = vsub.f32 %v6934_v48, %v6968_v19  ;;  %v6969_v25 = vmul.f32 0.015625, %v6955_v6  ;;  %v6992_v26 = vsel %vm546_vm3, %v6982_v56, 0.0  ;;  %v6983_v46 = vmul.f32 %v11794_v20, %v11794_v20  ;;  %9570 = vmatpush3.bf16.msra.mxu0 %v9810_v43  ;;  %v9813_v48 = vld [vmem:[%s12136_s5 + $0x58] sm:$0xff]  }
0x23d7   : > { %6993 = vadd.xlane.f32.xlu1 %v6992_v26  ;;  %v6958_v40 = vpop.xlane.xlu1 %6957  ;;  %9571 = vmatprep.subr.bf16.mxu0 %v9811_v16 }
0x23d8   : > { %v11804_v33 = vsub.f32 %v6935_v39, %v6969_v25  ;;  %v6970_v47 = vmul.f32 0.015625, %v6958_v40  ;;  %v6995_v29 = vsel %vm546_vm3, %v6983_v46, 0.0  ;;  %v6984_v18 = vmul.f32 %v11799_v13, %v11799_v13 }
0x23d9   : > { %6996 = vadd.xlane.f32.xlu0 %v6995_v29  ;;  %v6961_v11 = vpop.xlane.xlu0 %6960 }
0x23da   : > { %v11809_v30 = vsub.f32 %v6936_v21, %v6970_v47  ;;  %v6971_v22 = vmul.f32 0.015625, %v6961_v11  ;;  %v6998_v0 = vsel %vm546_vm3, %v6984_v18, 0.0  ;;  %v6985_v9 = vmul.f32 %v11804_v33, %v11804_v33  ;;  %9572 = vmatpush3.bf16.msra.mxu0 %v9811_v16  ;;  %v8410_v18 = vld [vmem:[%s12140_s9 + $0x22] ss:$0 sm:$0xff] }
0x23db   : > { %6999 = vadd.xlane.f32.xlu1 %v6998_v0  ;;  %v6964_v55 = vpop.xlane.xlu1 %6963  ;;  %9573 = vmatprep.subr.bf16.mxu0 %v9812_v38 }
0x23dc   : > { %v11814_v5 = vsub.f32 %v6937_v57, %v6971_v22  ;;  %v6972_v24 = vmul.f32 0.015625, %v6964_v55  ;;  %v7001_v41 = vsel %vm546_vm3, %v6985_v9, 0.0  ;;  %v6986_v8 = vmul.f32 %v11809_v30, %v11809_v30 }
0x23dd   : > { %7002 = vadd.xlane.f32.xlu0 %v7001_v41 }
0x23de   : > { %v11819_v15 = vsub.f32 %v6938_v37, %v6972_v24  ;;  %v7004_v7 = vsel %vm546_vm3, %v6986_v8, 0.0  ;;  %v6987_v50 = vmul.f32 %v11814_v5, %v11814_v5  ;;  %9574 = vmatpush3.bf16.msra.mxu0 %v9812_v38 }
0x23df   : > { %7005 = vadd.xlane.f32.xlu1 %v7004_v7  ;;  %9575 = vmatprep.subr.bf16.mxu0 %v9813_v48 }
0x23e0   : > { %v7007_v51 = vsel %vm546_vm3, %v6987_v50, 0.0  ;;  %v6988_v44 = vmul.f32 %v11819_v15, %v11819_v15 }
0x23e1   : > { %7008 = vadd.xlane.f32.xlu0 %v7007_v51 }
0x23e2   : > { %v7010_v31 = vsel %vm546_vm3, %v6988_v44, 0.0  ;;  %9576 = vmatpush3.bf16.msra.mxu0 %v9813_v48 }
0x23e3   : > { %7011 = vadd.xlane.f32.xlu1 %v7010_v31  ;;  %9609 = vmatprep.subr.bf16.mxu0 %v10149_v2 }
0x2462   : > { %v6991_v45 = vpop.xlane.xlu0 %6990 }
0x2463   : > { %v7013_v49 = vmul.f32 0.015625, %v6991_v45  ;;  %v9821_v45 = vld [vmem:[%s12137_s6 + $0xb8] sm:$0xff]  }
0x2464   : > { %v6994_v39 = vpop.xlane.xlu1 %6993  ;;  %9599 = vmatprep.subr.bf16.mxu1 %v9821_v45 }
0x2465   : > { %v7021_v28 = vadd.f32 1e-05, %v7013_v49  ;;  %v7014_v61 = vmul.f32 0.015625, %v6994_v39  ;;  %9600 = vmatpush3.bf16.msra.mxu1 %v9821_v45  ;;  %v8419_v49 = vld [vmem:[%s12140_s9 + $0x23] ss:$0 sm:$0xff] }
0x2466   : > { %v6997_v34 = vpop.xlane.xlu0 %6996 }
0x2467   : > { %10090 = vrsqrt.f32 %v7021_v28  ;;  %v7022_v57 = vadd.f32 1e-05, %v7014_v61  ;;  %v7015_v21 = vmul.f32 0.015625, %v6997_v34 }
0x2468   : > { %v7000_v53 = vpop.xlane.xlu1 %6999 }
0x2469   : > { %10092 = vrsqrt.f32 %v7022_v57  ;;  %v7023_v37 = vadd.f32 1e-05, %v7015_v21  ;;  %v7016_v54 = vmul.f32 0.015625, %v7000_v53 }
0x246a   : > { %v7003_v4 = vpop.xlane.xlu0 %7002 }
0x246b   : > { %10094 = vrsqrt.f32 %v7023_v37  ;;  %v7024_v1 = vadd.f32 1e-05, %v7016_v54  ;;  %v7017_v63 = vmul.f32 0.015625, %v7003_v4 }
0x246c   : > { %v7006_v17 = vpop.xlane.xlu1 %7005 }
0x246d   : > { %10096 = vrsqrt.f32 %v7024_v1  ;;  %v7025_v35 = vadd.f32 1e-05, %v7017_v63  ;;  %v7018_v59 = vmul.f32 0.015625, %v7006_v17 }
0x246e   : > { %v7009_v62 = vpop.xlane.xlu0 %7008 }
0x246f   : > { %10098 = vrsqrt.f32 %v7025_v35  ;;  %v7026_v27 = vadd.f32 1e-05, %v7018_v59  ;;  %v7019_v42 = vmul.f32 0.015625, %v7009_v62 }
0x2470   : > { %v7012_v23 = vpop.xlane.xlu1 %7011 }
0x2471   : > { %v10091_v19 = vpop.eup %10090  ;;  %10100 = vrsqrt.f32 %v7026_v27  ;;  %v7027_v56 = vadd.f32 1e-05, %v7019_v42  ;;  %v7020_v6 = vmul.f32 0.015625, %v7012_v23 }
0x2472   : > { %v7037_v25 = vmul.f32 %v10091_v19, %v11788_v12 }
0x2473   : > { %v10093_v26 = vpop.eup %10092  ;;  %10102 = vrsqrt.f32 %v7027_v56  ;;  %v7028_v46 = vadd.f32 1e-05, %v7020_v6 }
0x2474   : > { %v7038_v40 = vmul.f32 %v10093_v26, %v11790_v52  ;;  %v7049_v47 = vmul.f32 %v8409_v32, %v7037_v25 }
0x2475   : > { %v10095_v29 = vpop.eup %10094  ;;  %10104 = vrsqrt.f32 %v7028_v46 }
0x2476   : > { %v7039_v11 = vmul.f32 %v10095_v29, %v11794_v20  ;;  %v7050_v22 = vmul.f32 %v8409_v32, %v7038_v40  ;;  %v11869_v12 = vadd.f32 %v8410_v18, %v7049_v47  ;;  %v8444_v29 = vld [vmem:[%s12140_s9 + $0x24] ss:$0 sm:$0xff] }
0x2477   : > { %v10097_v0 = vpop.eup %10096 }
0x2478   : > { %v7051_v9 = vmul.f32 %v8409_v32, %v7039_v11  ;;  %v7040_v55 = vmul.f32 %v10097_v0, %v11799_v13  ;;  %v11871_v24 = vadd.f32 %v8410_v18, %v7050_v22 }
0x2479   : > { %v10099_v41 = vpop.eup %10098 }
0x247a   : > { %v7052_v52 = vmul.f32 %v8409_v32, %v7040_v55  ;;  %v7041_v8 = vmul.f32 %v10099_v41, %v11804_v33  ;;  %v7078_v7 = vpack.c.bf16 %v11871_v24, %v11869_v12  ;;  %v11878_v20 = vadd.f32 %v8410_v18, %v7051_v9 }
0x247b   : > { %v10101_v50 = vpop.eup %10100 }
0x247c   : > { %v7042_v51 = vmul.f32 %v10101_v50, %v11809_v30  ;;  %9577 = vmatprep.mubr.msk.bf16.mxu0 %vm546_vm3, %v7078_v7  ;;  %v11880_v44 = vadd.f32 %v8410_v18, %v7052_v52  ;;  %v7053_v13 = vmul.f32 %v8409_v32, %v7041_v8 }
0x247d   : > { %v10103_v31 = vpop.eup %10102 }
0x247e   : > { %v7043_v43 = vmul.f32 %v10103_v31, %v11814_v5  ;;  %v7079_v16 = vpack.c.bf16 %v11880_v44, %v11878_v20  ;;  %v7054_v33 = vmul.f32 %v8409_v32, %v7042_v51  ;;  %v11887_v30 = vadd.f32 %v8410_v18, %v7053_v13 }
0x247f   : > { %v10105_v38 = vpop.eup %10104 }
0x2480   : > { %v7044_v48 = vmul.f32 %v10105_v38, %v11819_v15  ;;  %9578 = vmatmul.mubr.msk.bf16.vlgmr.msra.gmra.mrb[200].mxu0 %vm546_vm3, %v7079_v16  ;;  %v11889_v36 = vadd.f32 %v8410_v18, %v7054_v33  ;;  %v7055_v60 = vmul.f32 %v8409_v32, %v7043_v43 }
0x2482   : > { %v7080_v10 = vpack.c.bf16 %v11889_v36, %v11887_v30  ;;  %v7056_v3 = vmul.f32 %v8409_v32, %v7044_v48  ;;  %v11894_v5 = vadd.f32 %v8410_v18, %v7055_v60 }
0x2484   : > { %9581 = vmatprep.mubr.msk.bf16.mxu0 %vm546_vm3, %v7080_v10  ;;  %v11896_v14 = vadd.f32 %v8410_v18, %v7056_v3 }
0x2486   : > { %v7081_v15 = vpack.c.bf16 %v11896_v14, %v11894_v5 }
0x2488   : > { %9582 = vmatmul.mubr.msk.bf16.gmra.mrb[204].mxu0 %vm546_vm3, %v7081_v15 }
0x2489   : > { %9617 = vmatprep.mubr.msk.bf16.mxu0 %vm10150_vm4, %v10149_v2 }
0x2553   : > { %v9579_v39 = vpop.f32.mrb[200].mxu0 }
0x2554   : > { %v7166_v28 = vadd.f32 %v9579_v39, %v8419_v49  ;;  %v7157_v61 = vpop.f32.mrb[201].mxu0 }
0x2555   : > { %v7158_v34 = vadd.f32 %v8419_v49, %v7157_v61  ;;  %v9580_v57 = vpop.f32.mrb[202].mxu0 }
0x2556   : > { %v7169_v21 = vadd.f32 %v9580_v57, %v8419_v49  ;;  %v7160_v53 = vpop.f32.mrb[203].mxu0  ;;  %v7190_v54 = vmax.f32 %v7166_v28, 0.0 }
0x2557   : > { %v7161_v37 = vadd.f32 %v8419_v49, %v7160_v53  ;;  %v7188_v1 = vmax.f32 %v7158_v34, 0.0 }
0x2558   : > { %v7191_v4 = vmax.f32 %v7169_v21, 0.0 }
0x2559   : > { %v7189_v63 = vmax.f32 %v7161_v37, 0.0 }
0x255a   : > { %v7214_v17 = vpack.c.bf16 %v7191_v4, %v7190_v54 }
0x255b   : > { %v7213_v35 = vpack.c.bf16 %v7189_v63, %v7188_v1  ;;  %v9583_v59 = vpop.f32.mrb[204].mxu0 }
0x255c   : > { %v7182_v62 = vadd.f32 %v9583_v59, %v8419_v49  ;;  %v7173_v27 = vpop.f32.mrb[205].mxu0 }
0x255d   : > { %v7174_v42 = vadd.f32 %v8419_v49, %v7173_v27  ;;  %v9584_v23 = vpop.f32.mrb[206].mxu0  ;;  %9601 = vmatprep.mubr.bf16.mxu1 %v7213_v35 }
0x255e   : > { %v7185_v19 = vadd.f32 %v9584_v23, %v8419_v49  ;;  %v7176_v32 = vpop.f32.mrb[207].mxu0  ;;  %9602 = vmatmul.mubr.bf16.vlgmr.msra.gmra.mrb[200].mxu1 %v7214_v17  ;;  %v7194_v6 = vmax.f32 %v7182_v62, 0.0 }
0x255f   : > { %v7177_v56 = vadd.f32 %v8419_v49, %v7176_v32  ;;  %v7192_v26 = vmax.f32 %v7174_v42, 0.0 }
0x2560   : > { %v7195_v25 = vmax.f32 %v7185_v19, 0.0 }
0x2561   : > { %v7193_v46 = vmax.f32 %v7177_v56, 0.0 }
0x2562   : > { %v7216_v40 = vpack.c.bf16 %v7195_v25, %v7194_v6 }
0x2563   : > { %v7215_v47 = vpack.c.bf16 %v7193_v46, %v7192_v26 }
0x2565   : > { %9605 = vmatprep.mubr.bf16.mxu1 %v7215_v47 }
0x2566   : > { %9606 = vmatmul.mubr.bf16.gmra.mrb[204].mxu1 %v7216_v40 }
0x2631   : > { %v9603_v18 = vpop.f32.mrb[200].mxu1 }
0x2632   : > { %v7313_v11 = vadd.f32 %v9603_v18, %v8444_v29  ;;  %v7304_v22 = vpop.f32.mrb[201].mxu1 }
0x2633   : > { %v7305_v0 = vadd.f32 %v8444_v29, %v7304_v22  ;;  %v9604_v9 = vpop.f32.mrb[202].mxu1 }
0x2634   : > { %v7337_v55 = vadd.f32 %v7313_v11, %v11878_v20  ;;  %v7316_v41 = vadd.f32 %v9604_v9, %v8444_v29  ;;  %v7307_v52 = vpop.f32.mrb[203].mxu1 }
0x2635   : > { %v7308_v8 = vadd.f32 %v8444_v29, %v7307_v52  ;;  %v7335_v7 = vadd.f32 %v7305_v0, %v11869_v12 }
0x2636   : > { %v7338_v50 = vadd.f32 %v7316_v41, %v11880_v44  ;;  %v7351_v51 = vsel %vm546_vm3, %v7337_v55, 0.0 }
0x2637   : > { %7352 = vadd.xlane.f32.xlu0 %v7351_v51  ;;  %v7336_v13 = vadd.f32 %v7308_v8, %v11871_v24  ;;  %v7345_v33 = vsel %vm546_vm3, %v7335_v7, 0.0 }
0x2638   : > { %v7354_v31 = vsel %vm546_vm3, %v7338_v50, 0.0 }
0x2639   : > { %7355 = vadd.xlane.f32.xlu1 %v7354_v31  ;;  %v9607_v43 = vpop.f32.mrb[204].mxu1  ;;  %v7348_v12 = vsel %vm546_vm3, %v7336_v13, 0.0 }
0x263a   : > { %v7320_v16 = vpop.f32.mrb[205].mxu1  ;;  %v7329_v20 = vadd.f32 %v9607_v43, %v8444_v29 }
0x263b   : > { %v7321_v38 = vadd.f32 %v8444_v29, %v7320_v16  ;;  %7346 = vadd.xlane.f32.xlu0 %v7345_v33  ;;  %v9608_v48 = vpop.f32.mrb[206].mxu1 }
0x263c   : > { %v7323_v60 = vpop.f32.mrb[207].mxu1  ;;  %v7332_v10 = vadd.f32 %v9608_v48, %v8444_v29  ;;  %v7341_v24 = vadd.f32 %v7329_v20, %v11894_v5 }
0x263d   : > { %v7339_v44 = vadd.f32 %v7321_v38, %v11887_v30  ;;  %v7324_v3 = vadd.f32 %v8444_v29, %v7323_v60  ;;  %7349 = vadd.xlane.f32.xlu1 %v7348_v12 }
0x263e   : > { %v7342_v45 = vadd.f32 %v7332_v10, %v11896_v14  ;;  %v7363_v39 = vsel %vm546_vm3, %v7341_v24, 0.0 }
0x263f   : > { %v7340_v15 = vadd.f32 %v7324_v3, %v11889_v36  ;;  %v7357_v58 = vsel %vm546_vm3, %v7339_v44, 0.0 }
0x2640   : > { %7358 = vadd.xlane.f32.xlu0 %v7357_v58  ;;  %v7366_v30 = vsel %vm546_vm3, %v7342_v45, 0.0 }
0x2641   : > { %v7360_v49 = vsel %vm546_vm3, %v7340_v15, 0.0 }
0x2642   : > { %7361 = vadd.xlane.f32.xlu1 %v7360_v49 }
0x2644   : > { %7364 = vadd.xlane.f32.xlu0 %v7363_v39 }
0x2646   : > { %7367 = vadd.xlane.f32.xlu1 %v7366_v30  ;;  %v8453_v30 = vld [vmem:[%s12140_s9 + $0x25] ss:$0 sm:$0xff] }
0x26c4   : > { %v7353_v28 = vpop.xlane.xlu0 %7352 }
0x26c5   : > { %v7371_v61 = vmul.f32 0.015625, %v7353_v28 }
0x26c6   : > { %v7356_v34 = vpop.xlane.xlu1 %7355 }
0x26c7   : > { %v11931_v5 = vsub.f32 %v7337_v55, %v7371_v61  ;;  %v7372_v36 = vmul.f32 0.015625, %v7356_v34 }
0x26c8   : > { %v7347_v57 = vpop.xlane.xlu0 %7346 }
0x26c9   : > { %v11933_v21 = vsub.f32 %v7338_v50, %v7372_v36  ;;  %v7369_v53 = vmul.f32 0.015625, %v7347_v57  ;;  %v7387_v14 = vmul.f32 %v11931_v5, %v11931_v5  ;;  %v8454_v57 = vld [vmem:[%s12140_s9 + $0x26] ss:$0 sm:$0xff] }
0x26ca   : > { %v7350_v37 = vpop.xlane.xlu1 %7349 }
0x26cb   : > { %v11937_v54 = vsub.f32 %v7335_v7, %v7369_v53  ;;  %v7370_v4 = vmul.f32 0.015625, %v7350_v37  ;;  %v7399_v1 = vsel %vm546_vm3, %v7387_v14, 0.0  ;;  %v7388_v63 = vmul.f32 %v11933_v21, %v11933_v21 }
0x26cc   : > { %7400 = vadd.xlane.f32.xlu0 %v7399_v1 }
0x26cd   : > { %v11942_v17 = vsub.f32 %v7336_v13, %v7370_v4  ;;  %v7359_v35 = vpop.xlane.xlu0 %7358  ;;  %v7402_v59 = vsel %vm546_vm3, %v7388_v63, 0.0  ;;  %v7385_v62 = vmul.f32 %v11937_v54, %v11937_v54 }
0x26ce   : > { %v7373_v27 = vmul.f32 0.015625, %v7359_v35  ;;  %7403 = vadd.xlane.f32.xlu1 %v7402_v59 }
0x26cf   : > { %v7362_v42 = vpop.xlane.xlu1 %7361  ;;  %v7393_v23 = vsel %vm546_vm3, %v7385_v62, 0.0  ;;  %v7386_v19 = vmul.f32 %v11942_v17, %v11942_v17 }
0x26d0   : > { %v11950_v32 = vsub.f32 %v7339_v44, %v7373_v27  ;;  %v7374_v56 = vmul.f32 0.015625, %v7362_v42  ;;  %7394 = vadd.xlane.f32.xlu0 %v7393_v23 }
0x26d1   : > { %v7365_v6 = vpop.xlane.xlu0 %7364  ;;  %v7396_v25 = vsel %vm546_vm3, %v7386_v19, 0.0 }
0x26d2   : > { %v11953_v26 = vsub.f32 %v7340_v15, %v7374_v56  ;;  %v7375_v46 = vmul.f32 0.015625, %v7365_v6  ;;  %7397 = vadd.xlane.f32.xlu1 %v7396_v25  ;;  %v7389_v40 = vmul.f32 %v11950_v32, %v11950_v32 }
0x26d3   : > { %v7368_v47 = vpop.xlane.xlu1 %7367 }
0x26d4   : > { %v11957_v29 = vsub.f32 %v7341_v24, %v7375_v46  ;;  %v7376_v18 = vmul.f32 0.015625, %v7368_v47  ;;  %v7405_v11 = vsel %vm546_vm3, %v7389_v40, 0.0  ;;  %v7390_v22 = vmul.f32 %v11953_v26, %v11953_v26 }
0x26d5   : > { %7406 = vadd.xlane.f32.xlu0 %v7405_v11 }
0x26d6   : > { %v11962_v0 = vsub.f32 %v7342_v45, %v7376_v18  ;;  %v7408_v9 = vsel %vm546_vm3, %v7390_v22, 0.0  ;;  %v7391_v55 = vmul.f32 %v11957_v29, %v11957_v29 }
0x26d7   : > { %7409 = vadd.xlane.f32.xlu1 %v7408_v9 }
0x26d8   : > { %v7411_v41 = vsel %vm546_vm3, %v7391_v55, 0.0  ;;  %v7392_v52 = vmul.f32 %v11962_v0, %v11962_v0 }
0x26d9   : > { %7412 = vadd.xlane.f32.xlu0 %v7411_v41 }
0x26da   : > { %v7414_v8 = vsel %vm546_vm3, %v7392_v52, 0.0 }
0x26db   : > { %7415 = vadd.xlane.f32.xlu1 %v7414_v8 }
0x2759   : > { %v7401_v7 = vpop.xlane.xlu0 %7400 }
0x275a   : > { %v7419_v50 = vmul.f32 0.015625, %v7401_v7 }
0x275b   : > { %v7404_v51 = vpop.xlane.xlu1 %7403 }
0x275c   : > { %v7427_v13 = vadd.f32 1e-05, %v7419_v50  ;;  %v7420_v31 = vmul.f32 0.015625, %v7404_v51 }
0x275d   : > { %v7395_v43 = vpop.xlane.xlu0 %7394 }
0x275e   : > { %10106 = vrsqrt.f32 %v7427_v13  ;;  %v7428_v16 = vadd.f32 1e-05, %v7420_v31  ;;  %v7417_v33 = vmul.f32 0.015625, %v7395_v43 }
0x275f   : > { %v7398_v20 = vpop.xlane.xlu1 %7397 }
0x2760   : > { %10108 = vrsqrt.f32 %v7428_v16  ;;  %v7425_v38 = vadd.f32 1e-05, %v7417_v33  ;;  %v7418_v48 = vmul.f32 0.015625, %v7398_v20 }
0x2762   : > { %10110 = vrsqrt.f32 %v7425_v38  ;;  %v7426_v60 = vadd.f32 1e-05, %v7418_v48  ;;  %v7407_v12 = vpop.xlane.xlu0 %7406 }
0x2763   : > { %v7421_v44 = vmul.f32 0.015625, %v7407_v12 }
0x2764   : > { %10112 = vrsqrt.f32 %v7426_v60  ;;  %v7410_v10 = vpop.xlane.xlu1 %7409 }
0x2765   : > { %v7429_v3 = vadd.f32 1e-05, %v7421_v44  ;;  %v7422_v24 = vmul.f32 0.015625, %v7410_v10 }
0x2766   : > { %v7413_v15 = vpop.xlane.xlu0 %7412 }
0x2767   : > { %10114 = vrsqrt.f32 %v7429_v3  ;;  %v7430_v58 = vadd.f32 1e-05, %v7422_v24  ;;  %v7423_v45 = vmul.f32 0.015625, %v7413_v15 }
0x2768   : > { %v10107_v49 = vpop.eup %10106  ;;  %v7416_v39 = vpop.xlane.xlu1 %7415 }
0x2769   : > { %10116 = vrsqrt.f32 %v7430_v58  ;;  %v7431_v28 = vadd.f32 1e-05, %v7423_v45  ;;  %v7424_v61 = vmul.f32 0.015625, %v7416_v39  ;;  %v7443_v34 = vmul.f32 %v10107_v49, %v11931_v5 }
0x276a   : > { %v10109_v36 = vpop.eup %10108 }
0x276b   : > { %10118 = vrsqrt.f32 %v7431_v28  ;;  %v7432_v53 = vadd.f32 1e-05, %v7424_v61  ;;  %v7455_v14 = vmul.f32 %v8453_v30, %v7443_v34  ;;  %v7444_v37 = vmul.f32 %v10109_v36, %v11933_v21 }
0x276c   : > { %v10111_v4 = vpop.eup %10110 }
0x276d   : > { %10120 = vrsqrt.f32 %v7432_v53  ;;  %v7467_v1 = vadd.f32 %v8454_v57, %v7455_v14  ;;  %v7456_v63 = vmul.f32 %v8453_v30, %v7444_v37  ;;  %v7441_v35 = vmul.f32 %v10111_v4, %v11937_v54 }
0x276e   : > { %v10113_v59 = vpop.eup %10112 }
0x276f   : > { %v7481_v62 = vsel %vm546_vm3, %v7467_v1, 0.0  ;;  %v7468_v5 = vadd.f32 %v8454_v57, %v7456_v63  ;;  %v7453_v27 = vmul.f32 %v8453_v30, %v7441_v35  ;;  %v7442_v42 = vmul.f32 %v10113_v59, %v11942_v17 }
0x2770   : > { %7482 = vadd.xlane.f32.xlu0 %v7481_v62 }
0x2771   : > { %v10115_v23 = vpop.eup %10114  ;;  %v7484_v19 = vsel %vm546_vm3, %v7468_v5, 0.0  ;;  %v7465_v56 = vadd.f32 %v8454_v57, %v7453_v27  ;;  %v7454_v6 = vmul.f32 %v8453_v30, %v7442_v42 }
0x2772   : > { %7485 = vadd.xlane.f32.xlu1 %v7484_v19  ;;  %v7445_v21 = vmul.f32 %v10115_v23, %v11950_v32 }
0x2773   : > { %v10117_v25 = vpop.eup %10116  ;;  %v7475_v46 = vsel %vm546_vm3, %v7465_v56, 0.0  ;;  %v7466_v54 = vadd.f32 %v8454_v57, %v7454_v6 }
0x2774   : > { %7476 = vadd.xlane.f32.xlu0 %v7475_v46  ;;  %v7457_v40 = vmul.f32 %v8453_v30, %v7445_v21  ;;  %v7446_v47 = vmul.f32 %v10117_v25, %v11953_v26 }
0x2775   : > { %v10119_v18 = vpop.eup %10118  ;;  %v7478_v17 = vsel %vm546_vm3, %v7466_v54, 0.0 }
0x2776   : > { %7479 = vadd.xlane.f32.xlu1 %v7478_v17  ;;  %v7469_v11 = vadd.f32 %v8454_v57, %v7457_v40  ;;  %v7458_v22 = vmul.f32 %v8453_v30, %v7446_v47  ;;  %v7447_v9 = vmul.f32 %v10119_v18, %v11957_v29 }
0x2777   : > { %v10121_v55 = vpop.eup %10120 }
0x2778   : > { %v7487_v41 = vsel %vm546_vm3, %v7469_v11, 0.0  ;;  %v7470_v32 = vadd.f32 %v8454_v57, %v7458_v22  ;;  %v7459_v52 = vmul.f32 %v8453_v30, %v7447_v9  ;;  %v7448_v8 = vmul.f32 %v10121_v55, %v11962_v0 }
0x2779   : > { %7488 = vadd.xlane.f32.xlu0 %v7487_v41 }
0x277a   : > { %v7490_v7 = vsel %vm546_vm3, %v7470_v32, 0.0  ;;  %v7471_v50 = vadd.f32 %v8454_v57, %v7459_v52  ;;  %v7460_v26 = vmul.f32 %v8453_v30, %v7448_v8 }
0x277b   : > { %7491 = vadd.xlane.f32.xlu1 %v7490_v7 }
0x277c   : > { %v7493_v51 = vsel %vm546_vm3, %v7471_v50, 0.0  ;;  %v7472_v13 = vadd.f32 %v8454_v57, %v7460_v26 }
0x277d   : > { %7494 = vadd.xlane.f32.xlu0 %v7493_v51 }
0x277e   : > { %v7496_v31 = vsel %vm546_vm3, %v7472_v13, 0.0 }
0x277f   : > { %7497 = vadd.xlane.f32.xlu1 %v7496_v31 }
0x27fd   : > { %v7483_v29 = vpop.xlane.xlu0 %7482 }
0x27fe   : > { %v7501_v43 = vmul.f32 0.015625, %v7483_v29 }
0x27ff   : > { %v7486_v16 = vpop.xlane.xlu1 %7485 }
0x2800   : > { %v11993_v33 = vsub.f32 %v7467_v1, %v7501_v43  ;;  %v7502_v20 = vmul.f32 0.015625, %v7486_v16 }
0x2801   : > { %v7477_v0 = vpop.xlane.xlu0 %7476 }
0x2802   : > { %v11995_v38 = vsub.f32 %v7468_v5, %v7502_v20  ;;  %v7499_v48 = vmul.f32 0.015625, %v7477_v0  ;;  %v7517_v60 = vmul.f32 %v11993_v33, %v11993_v33  ;;  %v8456_v0 = vld [vmem:[%s12140_s9 + $0x29] ss:$0 sm:$0xff] }
0x2803   : > { %v7480_v12 = vpop.xlane.xlu1 %7479 }
0x2804   : > { %v11999_v44 = vsub.f32 %v7465_v56, %v7499_v48  ;;  %v7500_v10 = vmul.f32 0.015625, %v7480_v12  ;;  %v7529_v3 = vsel %vm546_vm3, %v7517_v60, 0.0  ;;  %v7518_v24 = vmul.f32 %v11995_v38, %v11995_v38 }
0x2805   : > { %7530 = vadd.xlane.f32.xlu0 %v7529_v3 }
0x2806   : > { %v12004_v15 = vsub.f32 %v7466_v54, %v7500_v10  ;;  %v7489_v58 = vpop.xlane.xlu0 %7488  ;;  %v7532_v45 = vsel %vm546_vm3, %v7518_v24, 0.0  ;;  %v7515_v49 = vmul.f32 %v11999_v44, %v11999_v44 }
0x2807   : > { %v7503_v39 = vmul.f32 0.015625, %v7489_v58  ;;  %7533 = vadd.xlane.f32.xlu1 %v7532_v45 }
0x2808   : > { %v7492_v30 = vpop.xlane.xlu1 %7491  ;;  %v7523_v28 = vsel %vm546_vm3, %v7515_v49, 0.0  ;;  %v7516_v61 = vmul.f32 %v12004_v15, %v12004_v15 }
0x2809   : > { %v12012_v34 = vsub.f32 %v7469_v11, %v7503_v39  ;;  %v7504_v36 = vmul.f32 0.015625, %v7492_v30  ;;  %7524 = vadd.xlane.f32.xlu0 %v7523_v28 }
0x280a   : > { %v7495_v57 = vpop.xlane.xlu0 %7494  ;;  %v7526_v53 = vsel %vm546_vm3, %v7516_v61, 0.0 }
0x280b   : > { %v12015_v14 = vsub.f32 %v7470_v32, %v7504_v36  ;;  %v7505_v37 = vmul.f32 0.015625, %v7495_v57  ;;  %7527 = vadd.xlane.f32.xlu1 %v7526_v53  ;;  %v7519_v4 = vmul.f32 %v12012_v34, %v12012_v34 }
0x280c   : > { %v7498_v1 = vpop.xlane.xlu1 %7497 }
0x280d   : > { %v12019_v63 = vsub.f32 %v7471_v50, %v7505_v37  ;;  %v7506_v35 = vmul.f32 0.015625, %v7498_v1  ;;  %v7535_v59 = vsel %vm546_vm3, %v7519_v4, 0.0  ;;  %v7520_v62 = vmul.f32 %v12015_v14, %v12015_v14 }
0x280e   : > { %7536 = vadd.xlane.f32.xlu0 %v7535_v59 }
0x280f   : > { %v12024_v5 = vsub.f32 %v7472_v13, %v7506_v35  ;;  %v7538_v27 = vsel %vm546_vm3, %v7520_v62, 0.0  ;;  %v7521_v42 = vmul.f32 %v12019_v63, %v12019_v63  ;;  %v8455_v13 = vld [vmem:[%s12140_s9 + $0x28] ss:$0 sm:$0xff] }
0x2810   : > { %7539 = vadd.xlane.f32.xlu1 %v7538_v27 }
0x2811   : > { %v7541_v23 = vsel %vm546_vm3, %v7521_v42, 0.0  ;;  %v7522_v19 = vmul.f32 %v12024_v5, %v12024_v5 }
0x2812   : > { %7542 = vadd.xlane.f32.xlu0 %v7541_v23 }
0x2813   : > { %v7544_v56 = vsel %vm546_vm3, %v7522_v19, 0.0 }
0x2814   : > { %7545 = vadd.xlane.f32.xlu1 %v7544_v56 }
0x2892   : > { %v7531_v6 = vpop.xlane.xlu0 %7530 }
0x2893   : > { %v7549_v21 = vmul.f32 0.015625, %v7531_v6 }
0x2894   : > { %v7534_v25 = vpop.xlane.xlu1 %7533 }
0x2895   : > { %v7557_v46 = vadd.f32 1e-05, %v7549_v21  ;;  %v7550_v54 = vmul.f32 0.015625, %v7534_v25 }
0x2896   : > { %v7525_v40 = vpop.xlane.xlu0 %7524 }
0x2897   : > { %10122 = vrsqrt.f32 %v7557_v46  ;;  %v7558_v47 = vadd.f32 1e-05, %v7550_v54  ;;  %v7547_v18 = vmul.f32 0.015625, %v7525_v40 }
0x2898   : > { %v7528_v17 = vpop.xlane.xlu1 %7527 }
0x2899   : > { %10124 = vrsqrt.f32 %v7558_v47  ;;  %v7555_v11 = vadd.f32 1e-05, %v7547_v18  ;;  %v7548_v22 = vmul.f32 0.015625, %v7528_v17 }
0x289b   : > { %10126 = vrsqrt.f32 %v7555_v11  ;;  %v7556_v9 = vadd.f32 1e-05, %v7548_v22  ;;  %v7537_v55 = vpop.xlane.xlu0 %7536 }
0x289c   : > { %v7551_v41 = vmul.f32 0.015625, %v7537_v55 }
0x289d   : > { %10128 = vrsqrt.f32 %v7556_v9  ;;  %v7540_v32 = vpop.xlane.xlu1 %7539 }
0x289e   : > { %v7559_v52 = vadd.f32 1e-05, %v7551_v41  ;;  %v7552_v8 = vmul.f32 0.015625, %v7540_v32 }
0x289f   : > { %v7543_v7 = vpop.xlane.xlu0 %7542 }
0x28a0   : > { %10130 = vrsqrt.f32 %v7559_v52  ;;  %v7560_v50 = vadd.f32 1e-05, %v7552_v8  ;;  %v7553_v26 = vmul.f32 0.015625, %v7543_v7 }
0x28a1   : > { %v10123_v51 = vpop.eup %10122  ;;  %v7546_v31 = vpop.xlane.xlu1 %7545 }
0x28a2   : > { %v7573_v29 = vmul.f32 %v10123_v51, %v11993_v33  ;;  %10132 = vrsqrt.f32 %v7560_v50  ;;  %v7561_v43 = vadd.f32 1e-05, %v7553_v26  ;;  %v7554_v16 = vmul.f32 0.015625, %v7546_v31 }
0x28a3   : > { %v10125_v20 = vpop.eup %10124 }
0x28a4   : > { %v7585_v48 = vmul.f32 %v8455_v13, %v7573_v29  ;;  %v7574_v60 = vmul.f32 %v10125_v20, %v11995_v38  ;;  %10134 = vrsqrt.f32 %v7561_v43  ;;  %v7562_v12 = vadd.f32 1e-05, %v7554_v16 }
0x28a5   : > { %v10127_v10 = vpop.eup %10126 }
0x28a6   : > { %v7597_v3 = vadd.f32 %v8456_v0, %v7585_v48  ;;  %v7586_v24 = vmul.f32 %v8455_v13, %v7574_v60  ;;  %v7571_v58 = vmul.f32 %v10127_v10, %v11999_v44  ;;  %10136 = vrsqrt.f32 %v7562_v12 }
0x28a7   : > { %v10129_v33 = vpop.eup %10128 }
0x28a8   : > { %v7598_v45 = vadd.f32 %v8456_v0, %v7586_v24  ;;  %v7583_v49 = vmul.f32 %v8455_v13, %v7571_v58  ;;  %v7572_v39 = vmul.f32 %v10129_v33, %v12004_v15  ;;  %v7612_v28 = vsel %vm546_vm3, %v7597_v3, -inf }
0x28aa   : > { %v10131_v30 = vpop.eup %10130  ;;  %v7613_v61 = vsel %vm546_vm3, %v7598_v45, -inf  ;;  %v7595_v36 = vadd.f32 %v8456_v0, %v7583_v49  ;;  %v7584_v38 = vmul.f32 %v8455_v13, %v7572_v39 }
0x28ab   : > { %v7575_v57 = vmul.f32 %v10131_v30, %v12012_v34  ;;  %v7614_v53 = vmax.f32 %v7612_v28, %v7613_v61  ;;  %v9822_v28 = vld [vmem:[%s12138_s7] sm:$0xff]   ;;  %v9823_v61 = vld [vmem:[%s12138_s7 + $0x8] sm:$0xff]  }
0x28ac   : > { %v10133_v37 = vpop.eup %10132  ;;  %v7596_v4 = vadd.f32 %v8456_v0, %v7584_v38  ;;  %v7603_v59 = vsel %vm546_vm3, %v7595_v36, -inf  ;;  %9610 = vmatpush3.bf16.msra.mxu0 %v9822_v28  ;;  %v9824_v36 = vld [vmem:[%s12138_s7 + $0x10] sm:$0xff]   ;;  %v9825_v38 = vld [vmem:[%s12138_s7 + $0x18] sm:$0xff]  }
0x28ad   : > { %v7587_v1 = vmul.f32 %v8455_v13, %v7575_v57  ;;  %v7576_v44 = vmul.f32 %v10133_v37, %v12015_v14  ;;  %v7615_v62 = vrot.slane %v7614_v53, 4  ;;  %9611 = vmatprep.subr.bf16.mxu0 %v10149_v2 }
0x28ae   : > { %v10135_v35 = vpop.eup %10134  ;;  %v7604_v15 = vsel %vm546_vm3, %v7596_v4, -inf }
0x28af   : > { %v7599_v27 = vadd.f32 %v8456_v0, %v7587_v1  ;;  %v7588_v42 = vmul.f32 %v8455_v13, %v7576_v44  ;;  %v7577_v23 = vmul.f32 %v10135_v35, %v12019_v63  ;;  %v7605_v19 = vmax.f32 %v7603_v59, %v7604_v15  ;;  %v8457_v1 = vld [vmem:[%s12140_s9 + $0x2a] ss:$0 sm:$0xff]  ;;  %v8458_v35 = vld [vmem:[%s12140_s9 + $0x2b] ss:$0 sm:$0xff] }
0x28b0   : > { %v10137_v56 = vpop.eup %10136  ;;  %v7616_v46 = vmax.f32 %v7614_v53, %v7615_v62  ;;  %9612 = vmatpush3.bf16.msra.mxu0 %v9823_v61  ;;  %v9826_v62 = vld [vmem:[%s12139_s8] sm:$0xff]  }
0x28b1   : > { %v7600_v6 = vadd.f32 %v8456_v0, %v7588_v42  ;;  %v7589_v34 = vmul.f32 %v8455_v13, %v7577_v23  ;;  %v7578_v21 = vmul.f32 %v10137_v56, %v12024_v5  ;;  %v7606_v25 = vrot.slane %v7605_v19, 4  ;;  %9613 = vmatprep.subr.bf16.mxu0 %v10149_v2  ;;  %v9827_v42 = vld [vmem:[%s12139_s8 + $0x8] sm:$0xff]   ;;  %v9828_v23 = vld [vmem:[%s12139_s8 + $0x10] sm:$0xff]   ;;  %v9830_v56 = vld [vmem:[%s12139_s8 + $0x20] sm:$0xff]  }
0x28b2   : > { %v7621_v14 = vsel %vm546_vm3, %v7599_v27, -inf  ;;  %v7617_v9 = vrot.slane %v7616_v46, 2 }
0x28b3   : > { %v7601_v54 = vadd.f32 %v8456_v0, %v7589_v34  ;;  %v7590_v40 = vmul.f32 %v8455_v13, %v7578_v21  ;;  %v7607_v47 = vmax.f32 %v7605_v19, %v7606_v25  ;;  %v7622_v18 = vsel %vm546_vm3, %v7600_v6, -inf  ;;  %v9829_v19 = vld [vmem:[%s12139_s8 + $0x18] sm:$0xff]   ;;  %v9831_v6 = vld [vmem:[%s12139_s8 + $0x28] sm:$0xff]   ;;  %v9832_v34 = vld [vmem:[%s12139_s8 + $0x30] sm:$0xff]  }
0x28b4   : > { %v7623_v17 = vmax.f32 %v7621_v14, %v7622_v18  ;;  %v7618_v8 = vmax.f32 %v7616_v46, %v7617_v9  ;;  %9614 = vmatpush3.bf16.msra.mxu0 %v9824_v36  ;;  %v9833_v21 = vld [vmem:[%s12139_s8 + $0x38] sm:$0xff]   ;;  %v8459_v25 = vld [vmem:[%s12140_s9 + $0x2c] ss:$0 sm:$0xff] }
0x28b5   : > { %v7602_v11 = vadd.f32 %v8456_v0, %v7590_v40  ;;  %v7608_v22 = vrot.slane %v7607_v47, 2  ;;  %v7630_v55 = vsel %vm546_vm3, %v7601_v54, -inf  ;;  %9615 = vmatprep.subr.bf16.mxu0 %v10149_v2 }
0x28b6   : > { %v7624_v63 = vrot.slane %v7623_v17, 4  ;;  %v7619_v31 = vrot.slane %v7618_v8, 1 }
0x28b7   : > { %v7631_v41 = vsel %vm546_vm3, %v7602_v11, -inf  ;;  %v7609_v32 = vmax.f32 %v7607_v47, %v7608_v22 }
0x28b8   : > { %v7625_v5 = vmax.f32 %v7623_v17, %v7624_v63  ;;  %v7632_v52 = vmax.f32 %v7630_v55, %v7631_v41  ;;  %v7620_v48 = vmax.f32 %v7618_v8, %v7619_v31  ;;  %9616 = vmatpush3.bf16.msra.mxu0 %v9825_v38 }
0x28b9   : > { %v7610_v26 = vrot.slane %v7609_v32, 1  ;;  %9621 = vmatprep.subr.bf16.mxu0 %v10149_v2 }
0x28ba   : > { %v7626_v7 = vrot.slane %v7625_v5, 2  ;;  %v7633_v50 = vrot.slane %v7632_v52, 4 }
0x28bb   : > { %v7611_v16 = vmax.f32 %v7609_v32, %v7610_v26 }
0x28bc   : > { %v7627_v51 = vmax.f32 %v7625_v5, %v7626_v7  ;;  %v7634_v13 = vmax.f32 %v7632_v52, %v7633_v50 }
0x28bd   : > { %v7640_v10 = vsel %vm7639_vm7, %v7611_v16, %v7620_v48 }
0x28be   : > { %v7628_v29 = vrot.slane %v7627_v51, 1  ;;  %v7635_v43 = vrot.slane %v7634_v13, 2 }
0x28c0   : > { %v7636_v20 = vmax.f32 %v7634_v13, %v7635_v43  ;;  %v7629_v0 = vmax.f32 %v7627_v51, %v7628_v29 }
0x28c2   : > { %v7637_v60 = vrot.slane %v7636_v20, 1  ;;  %v7642_v3 = vsel %vm7641_vm8, %v7640_v10, %v7629_v0 }
0x28c4   : > { %v7638_v12 = vmax.f32 %v7636_v20, %v7637_v60 }
0x28c6   : > { %v12055_v24 = vsel %vm7643_vm9, %v7642_v3, %v7638_v12 }
0x28c7   : > { %v7648_v58 = vsel %vm7647_vm10, %v12055_v24, 0.0 }
0x28c8   : > { %7649 = vadd.xlane.f32.xlu0 %v7648_v58 }
0x2955   : > { %v7650_v33 = vpop.xlane.xlu0 %7649 }
0x2956   : > { %v7651_v45 = vmul.f32 0.015625, %v7650_v33 }
0x2958   : > { %v7652_v49 = vsub.f32 %v12055_v24, %v7651_v45 }
0x295a   : > { %v7653_v39 = vmul.f32 %v7652_v49, %v7652_v49 }
0x295c   : > { %v7654_v30 = vsel %vm7647_vm10, %v7653_v39, 0.0 }
0x295d   : > { %7655 = vadd.xlane.f32.xlu1 %v7654_v30 }
0x29ea   : > { %v7656_v57 = vpop.xlane.xlu1 %7655 }
0x29eb   : > { %v7657_v53 = vmul.f32 0.015625, %v7656_v57 }
0x29ed   : > { %v7658_v37 = vadd.f32 1e-05, %v7657_v53 }
0x29ef   : > { %10138 = vrsqrt.f32 %v7658_v37 }
0x29f9   : > { %v10139_v4 = vpop.eup %10138 }
0x29fa   : > { %v7660_v44 = vmul.f32 %v10139_v4, %v7652_v49 }
0x29fc   : > { %v7665_v59 = vmul.f32 %v8457_v1, %v7660_v44 }
0x29fe   : > { %v7670_v15 = vadd.f32 %v8458_v35, %v7665_v59 }
0x2a00   : > { %v7679_v27 = vpack.c.bf16 %v7670_v15, %v7670_v15 }
0x2a02   : > { %9618 = vmatmul.mubr.msk.bf16.vlgmr.msra.gmra.mrb[208].mxu0 %vm546_vm3, %v7679_v27 }
0x2a03   : > { %9622 = vmatpush3.bf16.msra.mxu0 %v9826_v62  ;;  %9637 = vmatprep.mubr.msk.bf16.mxu0 %vm10150_vm4, %v10149_v2 }
0x2a04   : > { %9623 = vmatprep.subr.bf16.mxu0 %v10149_v2 }
0x2a07   : > { %9624 = vmatpush3.bf16.msra.mxu0 %v9827_v42 }
0x2a08   : > { %9625 = vmatprep.subr.bf16.mxu0 %v10149_v2 }
0x2a0b   : > { %9626 = vmatpush3.bf16.msra.mxu0 %v9828_v23 }
0x2a0c   : > { %9627 = vmatprep.subr.bf16.mxu0 %v10149_v2 }
0x2a0f   : > { %9628 = vmatpush3.bf16.msra.mxu0 %v9829_v19 }
0x2a10   : > { %9629 = vmatprep.subr.bf16.mxu0 %v10149_v2 }
0x2a13   : > { %9630 = vmatpush3.bf16.msra.mxu0 %v9830_v56 }
0x2a14   : > { %9631 = vmatprep.subr.bf16.mxu0 %v10149_v2 }
0x2a17   : > { %9632 = vmatpush3.bf16.msra.mxu0 %v9831_v6 }
0x2a18   : > { %9633 = vmatprep.subr.bf16.mxu0 %v10149_v2 }
0x2a1b   : > { %9634 = vmatpush3.bf16.msra.mxu0 %v9832_v34 }
0x2a1c   : > { %9635 = vmatprep.subr.bf16.mxu0 %v10149_v2  ;;  %v8465_v2 = vld [vmem:[%s12140_s9 + $0x2d] ss:$0 sm:$0xff] }
0x2a1f   : > { %9636 = vmatpush3.bf16.msra.mxu0 %v9833_v21 }
0x2ad5   : > { %v7746_v46 = vpop.f32.mrb[208].mxu0 }
0x2ad6   : > { %v7747_v14 = vadd.f32 %v8459_v25, %v7746_v46  ;;  %v9619_v54 = vpop.f32.mrb[209].mxu0 }
0x2ad7   : > { %v7749_v40 = vpop.f32.mrb[210].mxu0 }
0x2ad8   : > { %v7752_v47 = vmax.f32 %v7747_v14, 0.0  ;;  %v9620_v18 = vpop.f32.mrb[211].mxu0 }
0x2ada   : > { %v7769_v17 = vpack.c.bf16 %v7752_v47, %v7752_v47 }
0x2adc   : > { %9638 = vmatmul.mubr.bf16.vlgmr.msra.gmra.mrb[212].mxu0 %v7769_v17 }
0x2baf   : > { %v7857_v11 = vpop.f32.mrb[212].mxu0 }
0x2bb0   : > { %v7858_v22 = vadd.f32 %v8465_v2, %v7857_v11  ;;  %v9639_v9 = vpop.f32.mrb[213].mxu0 }
0x2bb1   : > { %v7860_v63 = vpop.f32.mrb[214].mxu0 }
0x2bb2   : > { %7864 = vrot.lane.b32.xlu0 %v7858_v22, %s10151_s16  ;;  %v9640_v55 = vpop.f32.mrb[215].mxu0 }
0x2c24   : > { %v7865_v41 = vpop.permute.xlu0 %7864 }
0x2c25   : > { %v7867_v32 = vsel %vm546_vm3, %v12055_v24, %v7865_v41 }
0x2c26   : > { %7868 = vst [vmem:[%s359_s20] sm:$0xf] %v7867_v32 }
0x2c27 PF: > { %s20_s13 = sadd.s32 1, %s10146_s13  }
0x2c28   : > { %p17_p5 = scmp.ge.s32.totalorder %s20_s13, 4  }
0x2c2a   :  { %19 = sbr.rel (!%p17_p5) target bundleno = 1 (0x1), region = 116 }

</bundles_post_ra>
